<compile_context>
chip_gen: v7x
topology: tpu7x:2x2x1
jax: 0.10.0
libtpu: 0.0.40
codegen_flags: <defaults>
</compile_context>

<pallas_src>
import jax
import jax.numpy as jnp
from jax import lax
from jax.experimental import pallas as pl
from jax.experimental.pallas import tpu as pltpu


DILATIONS = (1, 6, 12, 18)
NUM_BRANCHES = 1 + len(DILATIONS)        # conv1x1 + four dilated 3x3 convs


# ----------------------------- Pallas kernel ------------------------------ #

def _make_aspp_kernel(*, tile_rows, width, cin, cout, pad, dilations):
    TH, W, Cin, Cout, P = tile_rows, width, cin, cout, pad

    def kernel(x_ref, w1_ref, w3_ref, scale_ref, bias_ref, o_ref):
        # x_ref:     (Hp, Wp, Cin)      whole zero-padded image (VMEM resident,
        #                               re-fetched only when the batch index
        #                               changes -> one HBM read per image)
        # w1_ref:    (Cin, Cout)        1x1 conv weight
        # w3_ref:    (4, 9, Cin, Cout)  dilated 3x3 weights, tap k = ky*3 + kx
        # scale_ref: (5, 1, Cout)       folded BN scale = gamma / sqrt(var+eps)
        # bias_ref:  (5, 1, Cout)       folded BN bias  = beta - mean * scale
        # o_ref:     (TH*W, 5*Cout)     channel-concatenated output tile
        t = pl.program_id(1)
        h0 = pl.multiple_of(t * TH, TH)       # first output row of this tile

        def tap(dy, dx):
            # Shifted (TH, W, Cin) window of the padded image, flattened over
            # pixels.  Shifts are static; only the row-tile origin is dynamic.
            s = x_ref[pl.ds(h0 + P + dy, TH), pl.ds(P + dx, W), :]
            return s.reshape(TH * W, Cin)

        def epilogue(acc_f32, b):
            # Fused BatchNorm (eval) + ReLU in f32, then store this branch's
            # channel slice of the fused output tile.
            y = acc_f32 * scale_ref[b] + bias_ref[b]
            o_ref[:, b * Cout:(b + 1) * Cout] = jnp.maximum(y, 0.0).astype(
                o_ref.dtype)

        center = tap(0, 0)

        # Branch 0: 1x1 conv -> BN -> ReLU (center tap only).
        epilogue(jnp.dot(center, w1_ref[...],
                         preferred_element_type=jnp.float32), 0)

        # Branches 1..4: dilated 3x3 conv -> BN -> ReLU.  The nine taps are
        # accumulated in f32 out of the MXU; for Cin >= 128 each dot already
        # has an efficient contraction length, so assembling a (TH*W, 9*Cin)
        # matrix in VMEM is not required.
        for bi, d in enumerate(dilations):
            acc = None
            for ky in range(3):
                for kx in range(3):
                    xk = center if (ky == 1 and kx == 1) else tap(
                        (ky - 1) * d, (kx - 1) * d)
                    contrib = jnp.dot(xk, w3_ref[bi, ky * 3 + kx],
                                      preferred_element_type=jnp.float32)
                    acc = contrib if acc is None else acc + contrib
            epilogue(acc, bi + 1)

    return kernel


# ------------------------------ JAX wrapper -------------------------------- #

def aspp_forward(x_nchw, params, *, rows_per_tile=None,
                 compute_dtype=jnp.float32, out_dtype=jnp.float32):
    """ASPP forward: channels = concat([conv1x1, d=1, d=6, d=12, d=18])."""
    w1, w3, scale, bias = params
    N, Cin, H, W = x_nchw.shape
    Cout = w1.shape[-1]
    assert w1.shape == (Cin, Cout)
    assert w3.shape == (len(DILATIONS), 9, Cin, Cout)

    P = max(DILATIONS)                       # pad once by the largest dilation
    Hp, Wp = H + 2 * P, W + 2 * P
    M = N * H * W

    if rows_per_tile is None:
        # Biggest row tile that keeps the per-step pixel tile modest (whole
        # image for small feature maps) -> per-grid-step overhead negligible.
        rows_per_tile = H
        while rows_per_tile % 2 == 0 and rows_per_tile * W > 2048:
            rows_per_tile //= 2
    TH = rows_per_tile
    assert H % TH == 0, "rows_per_tile must divide H"
    T = H // TH

    # NCHW -> NHWC and zero-pad once; every dilated tap is a shifted window of
    # this single array (no im2col materialization in HBM).
    x_nhwc = jnp.transpose(x_nchw, (0, 2, 3, 1))
    x_pad = jnp.pad(x_nhwc, ((0, 0), (P, P), (P, P), (0, 0))).astype(
        compute_dtype)

    kernel = _make_aspp_kernel(tile_rows=TH, width=W, cin=Cin, cout=Cout,
                               pad=P, dilations=DILATIONS)

    out = pl.pallas_call(
        kernel,
        out_shape=jax.ShapeDtypeStruct((M, NUM_BRANCHES * Cout), out_dtype),
        grid_spec=pltpu.PrefetchScalarGridSpec(
            num_scalar_prefetch=0,
            grid=(N, T),
            in_specs=[
                # Whole padded image; block index ignores t -> DMA'd from HBM
                # only when the batch index changes (one read per image).
                pl.BlockSpec((None, Hp, Wp, Cin), lambda n, t: (n, 0, 0, 0)),
                # Grid-invariant weights / folded BN params (fetched once).
                pl.BlockSpec((Cin, Cout), lambda n, t: (0, 0)),
                pl.BlockSpec((len(DILATIONS), 9, Cin, Cout),
                             lambda n, t: (0, 0, 0, 0)),
                pl.BlockSpec((NUM_BRANCHES, 1, Cout), lambda n, t: (0, 0, 0)),
                pl.BlockSpec((NUM_BRANCHES, 1, Cout), lambda n, t: (0, 0, 0)),
            ],
            out_specs=pl.BlockSpec((TH * W, NUM_BRANCHES * Cout),
                                   lambda n, t: (n * T + t, 0)),
        ),
        compiler_params=pltpu.CompilerParams(
            dimension_semantics=("parallel", "parallel")),
    )(x_pad, w1.astype(compute_dtype), w3.astype(compute_dtype),
      scale.astype(jnp.float32), bias.astype(jnp.float32))

    y_nhwc = out.reshape(N, H, W, NUM_BRANCHES * Cout)
    # TODO(synk): NHWC->NCHW transpose kept only to match torch.cat(dim=1)
    # layout exactly; fold into the consumer if it accepts channels-last.
    return jnp.transpose(y_nhwc, (0, 3, 1, 2))


# -------------------------- parameter handling ----------------------------- #

def _fold_bn(bn, eps=1e-5):
    gamma, beta, mean, var = bn
    scale = gamma / jnp.sqrt(var + eps)
    return scale, beta - mean * scale


def pack_params(raw):
    """PyTorch-layout parameters -> fused kernel layout."""
    cout, cin = raw["conv1x1"]["w"].shape[:2]
    w1 = jnp.transpose(raw["conv1x1"]["w"][:, :, 0, 0], (1, 0))   # (Cin, Cout)
    # (Cout, Cin, 3, 3) -> (ky, kx, Cin, Cout) -> (9, Cin, Cout); k = ky*3+kx.
    w3 = jnp.stack(
        [jnp.transpose(br["w"], (2, 3, 1, 0)).reshape(9, cin, cout)
         for br in raw["aspp"]], axis=0)                          # (4,9,Cin,Cout)
    folded = [_fold_bn(raw["conv1x1"]["bn"])] + [
        _fold_bn(br["bn"]) for br in raw["aspp"]]
    scale = jnp.stack([s for s, _ in folded], 0).reshape(NUM_BRANCHES, 1, cout)
    bias = jnp.stack([b for _, b in folded], 0).reshape(NUM_BRANCHES, 1, cout)
    return w1, w3, scale, bias


def init_params(key, in_channels, out_channels):
    """Deterministic synthetic parameters in PyTorch layout (eval-mode BN)."""
    keys = jax.random.split(key, NUM_BRANCHES)

    def make_bn(k):
        k1, k2, k3, k4 = jax.random.split(k, 4)
        gamma = 1.0 + 0.1 * jax.random.normal(k1, (out_channels,), jnp.float32)
        beta = 0.1 * jax.random.normal(k2, (out_channels,), jnp.float32)
        mean = 0.05 * jax.random.normal(k3, (out_channels,), jnp.float32)
        var = 0.9 + 0.1 * jnp.abs(
            jax.random.normal(k4, (out_channels,), jnp.float32))
        return (gamma, beta, mean, var)

    kw, kb = jax.random.split(keys[0])
    raw = {
        "conv1x1": {
            "w": 0.1 * jax.random.normal(
                kw, (out_channels, in_channels, 1, 1), jnp.float32),
            "bn": make_bn(kb),
        },
        "aspp": [],
    }
    for i in range(len(DILATIONS)):
        kw, kb = jax.random.split(keys[i + 1])
        raw["aspp"].append({
            "w": 0.1 * jax.random.normal(
                kw, (out_channels, in_channels, 3, 3), jnp.float32),
            "bn": make_bn(kb),
        })
    return raw


# ------------------------------ reference ---------------------------------- #

def aspp_reference(x_nchw, raw, eps=1e-5):
    """Pure-JAX reference (XLA convs), eval-mode BN, Dropout = identity."""
    dn = ("NCHW", "OIHW", "NCHW")
    prec = lax.Precision.HIGHEST

    def bn_relu(y, bn):
        gamma, beta, mean, var = bn
        s = (gamma / jnp.sqrt(var + eps)).reshape(1, -1, 1, 1)
        b = (beta - mean * gamma / jnp.sqrt(var + eps)).reshape(1, -1, 1, 1)
        return jnp.maximum(y * s + b, 0.0)

    outs = [bn_relu(
        lax.conv_general_dilated(x_nchw, raw["conv1x1"]["w"], (1, 1), "VALID",
                                 dimension_numbers=dn, precision=prec),
        raw["conv1x1"]["bn"])]
    for d, br in zip(DILATIONS, raw["aspp"]):
        y = lax.conv_general_dilated(x_nchw, br["w"], (1, 1),
                                     [(d, d), (d, d)], rhs_dilation=(d, d),
                                     dimension_numbers=dn, precision=prec)
        outs.append(bn_relu(y, br["bn"]))
    return jnp.concatenate(outs, axis=1)


# --------------------------------- main ------------------------------------ #

if __name__ == "__main__":
    key = jax.random.PRNGKey(0)
    k_x, k_p = jax.random.split(key)

    N, Cin, H, W = 2, 4, 16, 16
    Cout = 8
    x = jax.random.normal(k_x, (N, Cin, H, W), jnp.float32)

    raw = init_params(k_p, Cin, Cout)
    params = pack_params(raw)
    ref = aspp_reference(x, raw)

    # f32 path: whole image per grid step (grid = (N, 1)).
    out = jax.block_until_ready(aspp_forward(x, params))
    assert out.shape == (N, NUM_BRANCHES * Cout, H, W), out.shape
    assert bool(jnp.all(jnp.isfinite(out)))
    assert bool(jnp.all(out >= 0.0))                         # ReLU outputs
    assert bool(jnp.allclose(out, ref, rtol=2e-2, atol=2e-2)), float(
        jnp.max(jnp.abs(out - ref)))

    # bf16 MXU-input path (v6e/v7x recommendation) with explicit row tiling
    # (grid = (N, 2)); accumulation and BN/ReLU epilogue stay in f32.
    out_bf16 = jax.block_until_ready(
        aspp_forward(x, params, rows_per_tile=8, compute_dtype=jnp.bfloat16))
    assert out_bf16.shape == (N, NUM_BRANCHES * Cout, H, W)
    assert bool(jnp.all(jnp.isfinite(out_bf16)))
    assert bool(jnp.all(out_bf16 >= 0.0))
    assert bool(jnp.allclose(out_bf16, ref, rtol=1e-1, atol=1e-1))

    print("KERNEL_OK")
</pallas_src>

<mosaic_0001>
module attributes {stable_mosaic.version = 11 : i64} {
  func.func @kernel(%arg0: i32, %arg1: i32, %arg2: memref<1x52x52x4xf32, #tpu.memory_space<vmem>>, %arg3: memref<4x8xf32, #tpu.memory_space<vmem>>, %arg4: memref<4x9x4x8xf32, #tpu.memory_space<vmem>>, %arg5: memref<5x1x8xf32, #tpu.memory_space<vmem>>, %arg6: memref<5x1x8xf32, #tpu.memory_space<vmem>>, %arg7: memref<256x40xf32, #tpu.memory_space<vmem>>) attributes {dimension_semantics = [#tpu.dimension_semantics<parallel>, #tpu.dimension_semantics<parallel>], iteration_bounds = array<i64: 2, 1>, scalar_prefetch = 0 : i64, scratch_operands = 0 : i64, tpu.core_type = #tpu.core_type<tc>, window_params = [{transform_indices = @transform_0, window_bounds = array<i64: 1, 52, 52, 4>}, {pipeline_mode = #tpu.pipeline_mode<synchronous>, transform_indices = @transform_1, window_bounds = array<i64: 4, 8>}, {pipeline_mode = #tpu.pipeline_mode<synchronous>, transform_indices = @transform_2, window_bounds = array<i64: 4, 9, 4, 8>}, {pipeline_mode = #tpu.pipeline_mode<synchronous>, transform_indices = @transform_3, window_bounds = array<i64: 5, 1, 8>}, {pipeline_mode = #tpu.pipeline_mode<synchronous>, transform_indices = @transform_4, window_bounds = array<i64: 5, 1, 8>}, {transform_indices = @transform_5, window_bounds = array<i64: 256, 40>}]} {
    %c16_i32 = arith.constant 16 : i32
    %0 = arith.muli %arg1, %c16_i32 : i32
    %1 = tpu.assume_multiple %0, 16 : i32
    %c18_i32 = arith.constant 18 : i32
    %2 = arith.addi %1, %c18_i32 : i32
    %c0_i32 = arith.constant 0 : i32
    %3 = arith.addi %2, %c0_i32 : i32
    %c0 = arith.constant 0 : index
    %4 = arith.index_cast %3 : i32 to index
    %c18 = arith.constant 18 : index
    %c0_0 = arith.constant 0 : index
    %5 = vector.load %arg2[%c0, %4, %c18, %c0_0] : memref<1x52x52x4xf32, #tpu.memory_space<vmem>>, vector<1x16x16x4xf32>
    %6 = vector.shape_cast %5 : vector<1x16x16x4xf32> to vector<16x16x4xf32>
    %7 = vector.shape_cast %6 : vector<16x16x4xf32> to vector<256x4xf32>
    %c0_1 = arith.constant 0 : index
    %c0_2 = arith.constant 0 : index
    %8 = vector.load %arg3[%c0_1, %c0_2] : memref<4x8xf32, #tpu.memory_space<vmem>>, vector<4x8xf32>
    %cst = arith.constant dense<0.000000e+00> : vector<256x8xf32>
    %9 = tpu.matmul %7, %8, %cst {dimension_numbers = #tpu.dot_dimension_numbers<[1], [0], [0], [1], [0, 0, 1, 1], [], []>} : vector<256x4xf32>, vector<4x8xf32>, vector<256x8xf32> -> vector<256x8xf32>
    %c0_3 = arith.constant 0 : index
    %c0_4 = arith.constant 0 : index
    %c0_5 = arith.constant 0 : index
    %10 = vector.load %arg5[%c0_3, %c0_4, %c0_5] : memref<5x1x8xf32, #tpu.memory_space<vmem>>, vector<1x1x8xf32>
    %11 = vector.shape_cast %10 : vector<1x1x8xf32> to vector<1x8xf32>
    %12 = vector.broadcast %11 : vector<1x8xf32> to vector<256x8xf32>
    %13 = arith.mulf %9, %12 : vector<256x8xf32>
    %c0_6 = arith.constant 0 : index
    %c0_7 = arith.constant 0 : index
    %c0_8 = arith.constant 0 : index
    %14 = vector.load %arg6[%c0_6, %c0_7, %c0_8] : memref<5x1x8xf32, #tpu.memory_space<vmem>>, vector<1x1x8xf32>
    %15 = vector.shape_cast %14 : vector<1x1x8xf32> to vector<1x8xf32>
    %16 = vector.broadcast %15 : vector<1x8xf32> to vector<256x8xf32>
    %17 = arith.addf %13, %16 : vector<256x8xf32>
    %cst_9 = arith.constant 0.000000e+00 : f32
    %18 = vector.broadcast %cst_9 : f32 to vector<256x8xf32>
    %19 = arith.maximumf %17, %18 : vector<256x8xf32>
    %c0_10 = arith.constant 0 : index
    %c0_11 = arith.constant 0 : index
    %20 = vector.load %arg7[%c0_10, %c0_11] : memref<256x40xf32, #tpu.memory_space<vmem>>, vector<256x8xf32>
    tpu.vector_store %arg7[%c0_10, %c0_11], %19 {strides = array<i32>} : memref<256x40xf32, #tpu.memory_space<vmem>>, vector<256x8xf32>,
    %c18_i32_12 = arith.constant 18 : i32
    %21 = arith.addi %1, %c18_i32_12 : i32
    %c-1_i32 = arith.constant -1 : i32
    %22 = arith.addi %21, %c-1_i32 : i32
    %c0_13 = arith.constant 0 : index
    %23 = arith.index_cast %22 : i32 to index
    %c17 = arith.constant 17 : index
    %c0_14 = arith.constant 0 : index
    %24 = vector.load %arg2[%c0_13, %23, %c17, %c0_14] : memref<1x52x52x4xf32, #tpu.memory_space<vmem>>, vector<1x16x16x4xf32>
    %25 = vector.shape_cast %24 : vector<1x16x16x4xf32> to vector<16x16x4xf32>
    %26 = vector.shape_cast %25 : vector<16x16x4xf32> to vector<256x4xf32>
    %c0_15 = arith.constant 0 : index
    %c0_16 = arith.constant 0 : index
    %c0_17 = arith.constant 0 : index
    %c0_18 = arith.constant 0 : index
    %27 = vector.load %arg4[%c0_15, %c0_16, %c0_17, %c0_18] : memref<4x9x4x8xf32, #tpu.memory_space<vmem>>, vector<1x1x4x8xf32>
    %28 = vector.shape_cast %27 : vector<1x1x4x8xf32> to vector<4x8xf32>
    %cst_19 = arith.constant dense<0.000000e+00> : vector<256x8xf32>
    %29 = tpu.matmul %26, %28, %cst_19 {dimension_numbers = #tpu.dot_dimension_numbers<[1], [0], [0], [1], [0, 0, 1, 1], [], []>} : vector<256x4xf32>, vector<4x8xf32>, vector<256x8xf32> -> vector<256x8xf32>
    %c18_i32_20 = arith.constant 18 : i32
    %30 = arith.addi %1, %c18_i32_20 : i32
    %c-1_i32_21 = arith.constant -1 : i32
    %31 = arith.addi %30, %c-1_i32_21 : i32
    %c0_22 = arith.constant 0 : index
    %32 = arith.index_cast %31 : i32 to index
    %c18_23 = arith.constant 18 : index
    %c0_24 = arith.constant 0 : index
    %33 = vector.load %arg2[%c0_22, %32, %c18_23, %c0_24] : memref<1x52x52x4xf32, #tpu.memory_space<vmem>>, vector<1x16x16x4xf32>
    %34 = vector.shape_cast %33 : vector<1x16x16x4xf32> to vector<16x16x4xf32>
    %35 = vector.shape_cast %34 : vector<16x16x4xf32> to vector<256x4xf32>
    %c0_25 = arith.constant 0 : index
    %c1 = arith.constant 1 : index
    %c0_26 = arith.constant 0 : index
    %c0_27 = arith.constant 0 : index
    %36 = vector.load %arg4[%c0_25, %c1, %c0_26, %c0_27] : memref<4x9x4x8xf32, #tpu.memory_space<vmem>>, vector<1x1x4x8xf32>
    %37 = vector.shape_cast %36 : vector<1x1x4x8xf32> to vector<4x8xf32>
    %cst_28 = arith.constant dense<0.000000e+00> : vector<256x8xf32>
    %38 = tpu.matmul %35, %37, %cst_28 {dimension_numbers = #tpu.dot_dimension_numbers<[1], [0], [0], [1], [0, 0, 1, 1], [], []>} : vector<256x4xf32>, vector<4x8xf32>, vector<256x8xf32> -> vector<256x8xf32>
    %39 = arith.addf %29, %38 : vector<256x8xf32>
    %c18_i32_29 = arith.constant 18 : i32
    %40 = arith.addi %1, %c18_i32_29 : i32
    %c-1_i32_30 = arith.constant -1 : i32
    %41 = arith.addi %40, %c-1_i32_30 : i32
    %c0_31 = arith.constant 0 : index
    %42 = arith.index_cast %41 : i32 to index
    %c19 = arith.constant 19 : index
    %c0_32 = arith.constant 0 : index
    %43 = vector.load %arg2[%c0_31, %42, %c19, %c0_32] : memref<1x52x52x4xf32, #tpu.memory_space<vmem>>, vector<1x16x16x4xf32>
    %44 = vector.shape_cast %43 : vector<1x16x16x4xf32> to vector<16x16x4xf32>
    %45 = vector.shape_cast %44 : vector<16x16x4xf32> to vector<256x4xf32>
    %c0_33 = arith.constant 0 : index
    %c2 = arith.constant 2 : index
    %c0_34 = arith.constant 0 : index
    %c0_35 = arith.constant 0 : index
    %46 = vector.load %arg4[%c0_33, %c2, %c0_34, %c0_35] : memref<4x9x4x8xf32, #tpu.memory_space<vmem>>, vector<1x1x4x8xf32>
    %47 = vector.shape_cast %46 : vector<1x1x4x8xf32> to vector<4x8xf32>
    %cst_36 = arith.constant dense<0.000000e+00> : vector<256x8xf32>
    %48 = tpu.matmul %45, %47, %cst_36 {dimension_numbers = #tpu.dot_dimension_numbers<[1], [0], [0], [1], [0, 0, 1, 1], [], []>} : vector<256x4xf32>, vector<4x8xf32>, vector<256x8xf32> -> vector<256x8xf32>
    %49 = arith.addf %39, %48 : vector<256x8xf32>
    %c18_i32_37 = arith.constant 18 : i32
    %50 = arith.addi %1, %c18_i32_37 : i32
    %c0_i32_38 = arith.constant 0 : i32
    %51 = arith.addi %50, %c0_i32_38 : i32
    %c0_39 = arith.constant 0 : index
    %52 = arith.index_cast %51 : i32 to index
    %c17_40 = arith.constant 17 : index
    %c0_41 = arith.constant 0 : index
    %53 = vector.load %arg2[%c0_39, %52, %c17_40, %c0_41] : memref<1x52x52x4xf32, #tpu.memory_space<vmem>>, vector<1x16x16x4xf32>
    %54 = vector.shape_cast %53 : vector<1x16x16x4xf32> to vector<16x16x4xf32>
    %55 = vector.shape_cast %54 : vector<16x16x4xf32> to vector<256x4xf32>
    %c0_42 = arith.constant 0 : index
    %c3 = arith.constant 3 : index
    %c0_43 = arith.constant 0 : index
    %c0_44 = arith.constant 0 : index
    %56 = vector.load %arg4[%c0_42, %c3, %c0_43, %c0_44] : memref<4x9x4x8xf32, #tpu.memory_space<vmem>>, vector<1x1x4x8xf32>
    %57 = vector.shape_cast %56 : vector<1x1x4x8xf32> to vector<4x8xf32>
    %cst_45 = arith.constant dense<0.000000e+00> : vector<256x8xf32>
    %58 = tpu.matmul %55, %57, %cst_45 {dimension_numbers = #tpu.dot_dimension_numbers<[1], [0], [0], [1], [0, 0, 1, 1], [], []>} : vector<256x4xf32>, vector<4x8xf32>, vector<256x8xf32> -> vector<256x8xf32>
    %59 = arith.addf %49, %58 : vector<256x8xf32>
    %c0_46 = arith.constant 0 : index
    %c4 = arith.constant 4 : index
    %c0_47 = arith.constant 0 : index
    %c0_48 = arith.constant 0 : index
    %60 = vector.load %arg4[%c0_46, %c4, %c0_47, %c0_48] : memref<4x9x4x8xf32, #tpu.memory_space<vmem>>, vector<1x1x4x8xf32>
    %61 = vector.shape_cast %60 : vector<1x1x4x8xf32> to vector<4x8xf32>
    %cst_49 = arith.constant dense<0.000000e+00> : vector<256x8xf32>
    %62 = tpu.matmul %7, %61, %cst_49 {dimension_numbers = #tpu.dot_dimension_numbers<[1], [0], [0], [1], [0, 0, 1, 1], [], []>} : vector<256x4xf32>, vector<4x8xf32>, vector<256x8xf32> -> vector<256x8xf32>
    %63 = arith.addf %59, %62 : vector<256x8xf32>
    %c18_i32_50 = arith.constant 18 : i32
    %64 = arith.addi %1, %c18_i32_50 : i32
    %c0_i32_51 = arith.constant 0 : i32
    %65 = arith.addi %64, %c0_i32_51 : i32
    %c0_52 = arith.constant 0 : index
    %66 = arith.index_cast %65 : i32 to index
    %c19_53 = arith.constant 19 : index
    %c0_54 = arith.constant 0 : index
    %67 = vector.load %arg2[%c0_52, %66, %c19_53, %c0_54] : memref<1x52x52x4xf32, #tpu.memory_space<vmem>>, vector<1x16x16x4xf32>
    %68 = vector.shape_cast %67 : vector<1x16x16x4xf32> to vector<16x16x4xf32>
    %69 = vector.shape_cast %68 : vector<16x16x4xf32> to vector<256x4xf32>
    %c0_55 = arith.constant 0 : index
    %c5 = arith.constant 5 : index
    %c0_56 = arith.constant 0 : index
    %c0_57 = arith.constant 0 : index
    %70 = vector.load %arg4[%c0_55, %c5, %c0_56, %c0_57] : memref<4x9x4x8xf32, #tpu.memory_space<vmem>>, vector<1x1x4x8xf32>
    %71 = vector.shape_cast %70 : vector<1x1x4x8xf32> to vector<4x8xf32>
    %cst_58 = arith.constant dense<0.000000e+00> : vector<256x8xf32>
    %72 = tpu.matmul %69, %71, %cst_58 {dimension_numbers = #tpu.dot_dimension_numbers<[1], [0], [0], [1], [0, 0, 1, 1], [], []>} : vector<256x4xf32>, vector<4x8xf32>, vector<256x8xf32> -> vector<256x8xf32>
    %73 = arith.addf %63, %72 : vector<256x8xf32>
    %c18_i32_59 = arith.constant 18 : i32
    %74 = arith.addi %1, %c18_i32_59 : i32
    %c1_i32 = arith.constant 1 : i32
    %75 = arith.addi %74, %c1_i32 : i32
    %c0_60 = arith.constant 0 : index
    %76 = arith.index_cast %75 : i32 to index
    %c17_61 = arith.constant 17 : index
    %c0_62 = arith.constant 0 : index
    %77 = vector.load %arg2[%c0_60, %76, %c17_61, %c0_62] : memref<1x52x52x4xf32, #tpu.memory_space<vmem>>, vector<1x16x16x4xf32>
    %78 = vector.shape_cast %77 : vector<1x16x16x4xf32> to vector<16x16x4xf32>
    %79 = vector.shape_cast %78 : vector<16x16x4xf32> to vector<256x4xf32>
    %c0_63 = arith.constant 0 : index
    %c6 = arith.constant 6 : index
    %c0_64 = arith.constant 0 : index
    %c0_65 = arith.constant 0 : index
    %80 = vector.load %arg4[%c0_63, %c6, %c0_64, %c0_65] : memref<4x9x4x8xf32, #tpu.memory_space<vmem>>, vector<1x1x4x8xf32>
    %81 = vector.shape_cast %80 : vector<1x1x4x8xf32> to vector<4x8xf32>
    %cst_66 = arith.constant dense<0.000000e+00> : vector<256x8xf32>
    %82 = tpu.matmul %79, %81, %cst_66 {dimension_numbers = #tpu.dot_dimension_numbers<[1], [0], [0], [1], [0, 0, 1, 1], [], []>} : vector<256x4xf32>, vector<4x8xf32>, vector<256x8xf32> -> vector<256x8xf32>
    %83 = arith.addf %73, %82 : vector<256x8xf32>
    %c18_i32_67 = arith.constant 18 : i32
    %84 = arith.addi %1, %c18_i32_67 : i32
    %c1_i32_68 = arith.constant 1 : i32
    %85 = arith.addi %84, %c1_i32_68 : i32
    %c0_69 = arith.constant 0 : index
    %86 = arith.index_cast %85 : i32 to index
    %c18_70 = arith.constant 18 : index
    %c0_71 = arith.constant 0 : index
    %87 = vector.load %arg2[%c0_69, %86, %c18_70, %c0_71] : memref<1x52x52x4xf32, #tpu.memory_space<vmem>>, vector<1x16x16x4xf32>
    %88 = vector.shape_cast %87 : vector<1x16x16x4xf32> to vector<16x16x4xf32>
    %89 = vector.shape_cast %88 : vector<16x16x4xf32> to vector<256x4xf32>
    %c0_72 = arith.constant 0 : index
    %c7 = arith.constant 7 : index
    %c0_73 = arith.constant 0 : index
    %c0_74 = arith.constant 0 : index
    %90 = vector.load %arg4[%c0_72, %c7, %c0_73, %c0_74] : memref<4x9x4x8xf32, #tpu.memory_space<vmem>>, vector<1x1x4x8xf32>
    %91 = vector.shape_cast %90 : vector<1x1x4x8xf32> to vector<4x8xf32>
    %cst_75 = arith.constant dense<0.000000e+00> : vector<256x8xf32>
    %92 = tpu.matmul %89, %91, %cst_75 {dimension_numbers = #tpu.dot_dimension_numbers<[1], [0], [0], [1], [0, 0, 1, 1], [], []>} : vector<256x4xf32>, vector<4x8xf32>, vector<256x8xf32> -> vector<256x8xf32>
    %93 = arith.addf %83, %92 : vector<256x8xf32>
    %c18_i32_76 = arith.constant 18 : i32
    %94 = arith.addi %1, %c18_i32_76 : i32
    %c1_i32_77 = arith.constant 1 : i32
    %95 = arith.addi %94, %c1_i32_77 : i32
    %c0_78 = arith.constant 0 : index
    %96 = arith.index_cast %95 : i32 to index
    %c19_79 = arith.constant 19 : index
    %c0_80 = arith.constant 0 : index
    %97 = vector.load %arg2[%c0_78, %96, %c19_79, %c0_80] : memref<1x52x52x4xf32, #tpu.memory_space<vmem>>, vector<1x16x16x4xf32>
    %98 = vector.shape_cast %97 : vector<1x16x16x4xf32> to vector<16x16x4xf32>
    %99 = vector.shape_cast %98 : vector<16x16x4xf32> to vector<256x4xf32>
    %c0_81 = arith.constant 0 : index
    %c8 = arith.constant 8 : index
    %c0_82 = arith.constant 0 : index
    %c0_83 = arith.constant 0 : index
    %100 = vector.load %arg4[%c0_81, %c8, %c0_82, %c0_83] : memref<4x9x4x8xf32, #tpu.memory_space<vmem>>, vector<1x1x4x8xf32>
    %101 = vector.shape_cast %100 : vector<1x1x4x8xf32> to vector<4x8xf32>
    %cst_84 = arith.constant dense<0.000000e+00> : vector<256x8xf32>
    %102 = tpu.matmul %99, %101, %cst_84 {dimension_numbers = #tpu.dot_dimension_numbers<[1], [0], [0], [1], [0, 0, 1, 1], [], []>} : vector<256x4xf32>, vector<4x8xf32>, vector<256x8xf32> -> vector<256x8xf32>
    %103 = arith.addf %93, %102 : vector<256x8xf32>
    %c1_85 = arith.constant 1 : index
    %c0_86 = arith.constant 0 : index
    %c0_87 = arith.constant 0 : index
    %104 = vector.load %arg5[%c1_85, %c0_86, %c0_87] : memref<5x1x8xf32, #tpu.memory_space<vmem>>, vector<1x1x8xf32>
    %105 = vector.shape_cast %104 : vector<1x1x8xf32> to vector<1x8xf32>
    %106 = vector.broadcast %105 : vector<1x8xf32> to vector<256x8xf32>
    %107 = arith.mulf %103, %106 : vector<256x8xf32>
    %c1_88 = arith.constant 1 : index
    %c0_89 = arith.constant 0 : index
    %c0_90 = arith.constant 0 : index
    %108 = vector.load %arg6[%c1_88, %c0_89, %c0_90] : memref<5x1x8xf32, #tpu.memory_space<vmem>>, vector<1x1x8xf32>
    %109 = vector.shape_cast %108 : vector<1x1x8xf32> to vector<1x8xf32>
    %110 = vector.broadcast %109 : vector<1x8xf32> to vector<256x8xf32>
    %111 = arith.addf %107, %110 : vector<256x8xf32>
    %cst_91 = arith.constant 0.000000e+00 : f32
    %112 = vector.broadcast %cst_91 : f32 to vector<256x8xf32>
    %113 = arith.maximumf %111, %112 : vector<256x8xf32>
    %c0_92 = arith.constant 0 : index
    %c8_93 = arith.constant 8 : index
    %114 = vector.load %arg7[%c0_92, %c8_93] : memref<256x40xf32, #tpu.memory_space<vmem>>, vector<256x8xf32>
    tpu.vector_store %arg7[%c0_92, %c8_93], %113 {strides = array<i32>} : memref<256x40xf32, #tpu.memory_space<vmem>>, vector<256x8xf32>,
    %c18_i32_94 = arith.constant 18 : i32
    %115 = arith.addi %1, %c18_i32_94 : i32
    %c-6_i32 = arith.constant -6 : i32
    %116 = arith.addi %115, %c-6_i32 : i32
    %c0_95 = arith.constant 0 : index
    %117 = arith.index_cast %116 : i32 to index
    %c12 = arith.constant 12 : index
    %c0_96 = arith.constant 0 : index
    %118 = vector.load %arg2[%c0_95, %117, %c12, %c0_96] : memref<1x52x52x4xf32, #tpu.memory_space<vmem>>, vector<1x16x16x4xf32>
    %119 = vector.shape_cast %118 : vector<1x16x16x4xf32> to vector<16x16x4xf32>
    %120 = vector.shape_cast %119 : vector<16x16x4xf32> to vector<256x4xf32>
    %c1_97 = arith.constant 1 : index
    %c0_98 = arith.constant 0 : index
    %c0_99 = arith.constant 0 : index
    %c0_100 = arith.constant 0 : index
    %121 = vector.load %arg4[%c1_97, %c0_98, %c0_99, %c0_100] : memref<4x9x4x8xf32, #tpu.memory_space<vmem>>, vector<1x1x4x8xf32>
    %122 = vector.shape_cast %121 : vector<1x1x4x8xf32> to vector<4x8xf32>
    %cst_101 = arith.constant dense<0.000000e+00> : vector<256x8xf32>
    %123 = tpu.matmul %120, %122, %cst_101 {dimension_numbers = #tpu.dot_dimension_numbers<[1], [0], [0], [1], [0, 0, 1, 1], [], []>} : vector<256x4xf32>, vector<4x8xf32>, vector<256x8xf32> -> vector<256x8xf32>
    %c18_i32_102 = arith.constant 18 : i32
    %124 = arith.addi %1, %c18_i32_102 : i32
    %c-6_i32_103 = arith.constant -6 : i32
    %125 = arith.addi %124, %c-6_i32_103 : i32
    %c0_104 = arith.constant 0 : index
    %126 = arith.index_cast %125 : i32 to index
    %c18_105 = arith.constant 18 : index
    %c0_106 = arith.constant 0 : index
    %127 = vector.load %arg2[%c0_104, %126, %c18_105, %c0_106] : memref<1x52x52x4xf32, #tpu.memory_space<vmem>>, vector<1x16x16x4xf32>
    %128 = vector.shape_cast %127 : vector<1x16x16x4xf32> to vector<16x16x4xf32>
    %129 = vector.shape_cast %128 : vector<16x16x4xf32> to vector<256x4xf32>
    %c1_107 = arith.constant 1 : index
    %c1_108 = arith.constant 1 : index
    %c0_109 = arith.constant 0 : index
    %c0_110 = arith.constant 0 : index
    %130 = vector.load %arg4[%c1_107, %c1_108, %c0_109, %c0_110] : memref<4x9x4x8xf32, #tpu.memory_space<vmem>>, vector<1x1x4x8xf32>
    %131 = vector.shape_cast %130 : vector<1x1x4x8xf32> to vector<4x8xf32>
    %cst_111 = arith.constant dense<0.000000e+00> : vector<256x8xf32>
    %132 = tpu.matmul %129, %131, %cst_111 {dimension_numbers = #tpu.dot_dimension_numbers<[1], [0], [0], [1], [0, 0, 1, 1], [], []>} : vector<256x4xf32>, vector<4x8xf32>, vector<256x8xf32> -> vector<256x8xf32>
    %133 = arith.addf %123, %132 : vector<256x8xf32>
    %c18_i32_112 = arith.constant 18 : i32
    %134 = arith.addi %1, %c18_i32_112 : i32
    %c-6_i32_113 = arith.constant -6 : i32
    %135 = arith.addi %134, %c-6_i32_113 : i32
    %c0_114 = arith.constant 0 : index
    %136 = arith.index_cast %135 : i32 to index
    %c24 = arith.constant 24 : index
    %c0_115 = arith.constant 0 : index
    %137 = vector.load %arg2[%c0_114, %136, %c24, %c0_115] : memref<1x52x52x4xf32, #tpu.memory_space<vmem>>, vector<1x16x16x4xf32>
    %138 = vector.shape_cast %137 : vector<1x16x16x4xf32> to vector<16x16x4xf32>
    %139 = vector.shape_cast %138 : vector<16x16x4xf32> to vector<256x4xf32>
    %c1_116 = arith.constant 1 : index
    %c2_117 = arith.constant 2 : index
    %c0_118 = arith.constant 0 : index
    %c0_119 = arith.constant 0 : index
    %140 = vector.load %arg4[%c1_116, %c2_117, %c0_118, %c0_119] : memref<4x9x4x8xf32, #tpu.memory_space<vmem>>, vector<1x1x4x8xf32>
    %141 = vector.shape_cast %140 : vector<1x1x4x8xf32> to vector<4x8xf32>
    %cst_120 = arith.constant dense<0.000000e+00> : vector<256x8xf32>
    %142 = tpu.matmul %139, %141, %cst_120 {dimension_numbers = #tpu.dot_dimension_numbers<[1], [0], [0], [1], [0, 0, 1, 1], [], []>} : vector<256x4xf32>, vector<4x8xf32>, vector<256x8xf32> -> vector<256x8xf32>
    %143 = arith.addf %133, %142 : vector<256x8xf32>
    %c18_i32_121 = arith.constant 18 : i32
    %144 = arith.addi %1, %c18_i32_121 : i32
    %c0_i32_122 = arith.constant 0 : i32
    %145 = arith.addi %144, %c0_i32_122 : i32
    %c0_123 = arith.constant 0 : index
    %146 = arith.index_cast %145 : i32 to index
    %c12_124 = arith.constant 12 : index
    %c0_125 = arith.constant 0 : index
    %147 = vector.load %arg2[%c0_123, %146, %c12_124, %c0_125] : memref<1x52x52x4xf32, #tpu.memory_space<vmem>>, vector<1x16x16x4xf32>
    %148 = vector.shape_cast %147 : vector<1x16x16x4xf32> to vector<16x16x4xf32>
    %149 = vector.shape_cast %148 : vector<16x16x4xf32> to vector<256x4xf32>
    %c1_126 = arith.constant 1 : index
    %c3_127 = arith.constant 3 : index
    %c0_128 = arith.constant 0 : index
    %c0_129 = arith.constant 0 : index
    %150 = vector.load %arg4[%c1_126, %c3_127, %c0_128, %c0_129] : memref<4x9x4x8xf32, #tpu.memory_space<vmem>>, vector<1x1x4x8xf32>
    %151 = vector.shape_cast %150 : vector<1x1x4x8xf32> to vector<4x8xf32>
    %cst_130 = arith.constant dense<0.000000e+00> : vector<256x8xf32>
    %152 = tpu.matmul %149, %151, %cst_130 {dimension_numbers = #tpu.dot_dimension_numbers<[1], [0], [0], [1], [0, 0, 1, 1], [], []>} : vector<256x4xf32>, vector<4x8xf32>, vector<256x8xf32> -> vector<256x8xf32>
    %153 = arith.addf %143, %152 : vector<256x8xf32>
    %c1_131 = arith.constant 1 : index
    %c4_132 = arith.constant 4 : index
    %c0_133 = arith.constant 0 : index
    %c0_134 = arith.constant 0 : index
    %154 = vector.load %arg4[%c1_131, %c4_132, %c0_133, %c0_134] : memref<4x9x4x8xf32, #tpu.memory_space<vmem>>, vector<1x1x4x8xf32>
    %155 = vector.shape_cast %154 : vector<1x1x4x8xf32> to vector<4x8xf32>
    %cst_135 = arith.constant dense<0.000000e+00> : vector<256x8xf32>
    %156 = tpu.matmul %7, %155, %cst_135 {dimension_numbers = #tpu.dot_dimension_numbers<[1], [0], [0], [1], [0, 0, 1, 1], [], []>} : vector<256x4xf32>, vector<4x8xf32>, vector<256x8xf32> -> vector<256x8xf32>
    %157 = arith.addf %153, %156 : vector<256x8xf32>
    %c18_i32_136 = arith.constant 18 : i32
    %158 = arith.addi %1, %c18_i32_136 : i32
    %c0_i32_137 = arith.constant 0 : i32
    %159 = arith.addi %158, %c0_i32_137 : i32
    %c0_138 = arith.constant 0 : index
    %160 = arith.index_cast %159 : i32 to index
    %c24_139 = arith.constant 24 : index
    %c0_140 = arith.constant 0 : index
    %161 = vector.load %arg2[%c0_138, %160, %c24_139, %c0_140] : memref<1x52x52x4xf32, #tpu.memory_space<vmem>>, vector<1x16x16x4xf32>
    %162 = vector.shape_cast %161 : vector<1x16x16x4xf32> to vector<16x16x4xf32>
    %163 = vector.shape_cast %162 : vector<16x16x4xf32> to vector<256x4xf32>
    %c1_141 = arith.constant 1 : index
    %c5_142 = arith.constant 5 : index
    %c0_143 = arith.constant 0 : index
    %c0_144 = arith.constant 0 : index
    %164 = vector.load %arg4[%c1_141, %c5_142, %c0_143, %c0_144] : memref<4x9x4x8xf32, #tpu.memory_space<vmem>>, vector<1x1x4x8xf32>
    %165 = vector.shape_cast %164 : vector<1x1x4x8xf32> to vector<4x8xf32>
    %cst_145 = arith.constant dense<0.000000e+00> : vector<256x8xf32>
    %166 = tpu.matmul %163, %165, %cst_145 {dimension_numbers = #tpu.dot_dimension_numbers<[1], [0], [0], [1], [0, 0, 1, 1], [], []>} : vector<256x4xf32>, vector<4x8xf32>, vector<256x8xf32> -> vector<256x8xf32>
    %167 = arith.addf %157, %166 : vector<256x8xf32>
    %c18_i32_146 = arith.constant 18 : i32
    %168 = arith.addi %1, %c18_i32_146 : i32
    %c6_i32 = arith.constant 6 : i32
    %169 = arith.addi %168, %c6_i32 : i32
    %c0_147 = arith.constant 0 : index
    %170 = arith.index_cast %169 : i32 to index
    %c12_148 = arith.constant 12 : index
    %c0_149 = arith.constant 0 : index
    %171 = vector.load %arg2[%c0_147, %170, %c12_148, %c0_149] : memref<1x52x52x4xf32, #tpu.memory_space<vmem>>, vector<1x16x16x4xf32>
    %172 = vector.shape_cast %171 : vector<1x16x16x4xf32> to vector<16x16x4xf32>
    %173 = vector.shape_cast %172 : vector<16x16x4xf32> to vector<256x4xf32>
    %c1_150 = arith.constant 1 : index
    %c6_151 = arith.constant 6 : index
    %c0_152 = arith.constant 0 : index
    %c0_153 = arith.constant 0 : index
    %174 = vector.load %arg4[%c1_150, %c6_151, %c0_152, %c0_153] : memref<4x9x4x8xf32, #tpu.memory_space<vmem>>, vector<1x1x4x8xf32>
    %175 = vector.shape_cast %174 : vector<1x1x4x8xf32> to vector<4x8xf32>
    %cst_154 = arith.constant dense<0.000000e+00> : vector<256x8xf32>
    %176 = tpu.matmul %173, %175, %cst_154 {dimension_numbers = #tpu.dot_dimension_numbers<[1], [0], [0], [1], [0, 0, 1, 1], [], []>} : vector<256x4xf32>, vector<4x8xf32>, vector<256x8xf32> -> vector<256x8xf32>
    %177 = arith.addf %167, %176 : vector<256x8xf32>
    %c18_i32_155 = arith.constant 18 : i32
    %178 = arith.addi %1, %c18_i32_155 : i32
    %c6_i32_156 = arith.constant 6 : i32
    %179 = arith.addi %178, %c6_i32_156 : i32
    %c0_157 = arith.constant 0 : index
    %180 = arith.index_cast %179 : i32 to index
    %c18_158 = arith.constant 18 : index
    %c0_159 = arith.constant 0 : index
    %181 = vector.load %arg2[%c0_157, %180, %c18_158, %c0_159] : memref<1x52x52x4xf32, #tpu.memory_space<vmem>>, vector<1x16x16x4xf32>
    %182 = vector.shape_cast %181 : vector<1x16x16x4xf32> to vector<16x16x4xf32>
    %183 = vector.shape_cast %182 : vector<16x16x4xf32> to vector<256x4xf32>
    %c1_160 = arith.constant 1 : index
    %c7_161 = arith.constant 7 : index
    %c0_162 = arith.constant 0 : index
    %c0_163 = arith.constant 0 : index
    %184 = vector.load %arg4[%c1_160, %c7_161, %c0_162, %c0_163] : memref<4x9x4x8xf32, #tpu.memory_space<vmem>>, vector<1x1x4x8xf32>
    %185 = vector.shape_cast %184 : vector<1x1x4x8xf32> to vector<4x8xf32>
    %cst_164 = arith.constant dense<0.000000e+00> : vector<256x8xf32>
    %186 = tpu.matmul %183, %185, %cst_164 {dimension_numbers = #tpu.dot_dimension_numbers<[1], [0], [0], [1], [0, 0, 1, 1], [], []>} : vector<256x4xf32>, vector<4x8xf32>, vector<256x8xf32> -> vector<256x8xf32>
    %187 = arith.addf %177, %186 : vector<256x8xf32>
    %c18_i32_165 = arith.constant 18 : i32
    %188 = arith.addi %1, %c18_i32_165 : i32
    %c6_i32_166 = arith.constant 6 : i32
    %189 = arith.addi %188, %c6_i32_166 : i32
    %c0_167 = arith.constant 0 : index
    %190 = arith.index_cast %189 : i32 to index
    %c24_168 = arith.constant 24 : index
    %c0_169 = arith.constant 0 : index
    %191 = vector.load %arg2[%c0_167, %190, %c24_168, %c0_169] : memref<1x52x52x4xf32, #tpu.memory_space<vmem>>, vector<1x16x16x4xf32>
    %192 = vector.shape_cast %191 : vector<1x16x16x4xf32> to vector<16x16x4xf32>
    %193 = vector.shape_cast %192 : vector<16x16x4xf32> to vector<256x4xf32>
    %c1_170 = arith.constant 1 : index
    %c8_171 = arith.constant 8 : index
    %c0_172 = arith.constant 0 : index
    %c0_173 = arith.constant 0 : index
    %194 = vector.load %arg4[%c1_170, %c8_171, %c0_172, %c0_173] : memref<4x9x4x8xf32, #tpu.memory_space<vmem>>, vector<1x1x4x8xf32>
    %195 = vector.shape_cast %194 : vector<1x1x4x8xf32> to vector<4x8xf32>
    %cst_174 = arith.constant dense<0.000000e+00> : vector<256x8xf32>
    %196 = tpu.matmul %193, %195, %cst_174 {dimension_numbers = #tpu.dot_dimension_numbers<[1], [0], [0], [1], [0, 0, 1, 1], [], []>} : vector<256x4xf32>, vector<4x8xf32>, vector<256x8xf32> -> vector<256x8xf32>
    %197 = arith.addf %187, %196 : vector<256x8xf32>
    %c2_175 = arith.constant 2 : index
    %c0_176 = arith.constant 0 : index
    %c0_177 = arith.constant 0 : index
    %198 = vector.load %arg5[%c2_175, %c0_176, %c0_177] : memref<5x1x8xf32, #tpu.memory_space<vmem>>, vector<1x1x8xf32>
    %199 = vector.shape_cast %198 : vector<1x1x8xf32> to vector<1x8xf32>
    %200 = vector.broadcast %199 : vector<1x8xf32> to vector<256x8xf32>
    %201 = arith.mulf %197, %200 : vector<256x8xf32>
    %c2_178 = arith.constant 2 : index
    %c0_179 = arith.constant 0 : index
    %c0_180 = arith.constant 0 : index
    %202 = vector.load %arg6[%c2_178, %c0_179, %c0_180] : memref<5x1x8xf32, #tpu.memory_space<vmem>>, vector<1x1x8xf32>
    %203 = vector.shape_cast %202 : vector<1x1x8xf32> to vector<1x8xf32>
    %204 = vector.broadcast %203 : vector<1x8xf32> to vector<256x8xf32>
    %205 = arith.addf %201, %204 : vector<256x8xf32>
    %cst_181 = arith.constant 0.000000e+00 : f32
    %206 = vector.broadcast %cst_181 : f32 to vector<256x8xf32>
    %207 = arith.maximumf %205, %206 : vector<256x8xf32>
    %c0_182 = arith.constant 0 : index
    %c16 = arith.constant 16 : index
    %208 = vector.load %arg7[%c0_182, %c16] : memref<256x40xf32, #tpu.memory_space<vmem>>, vector<256x8xf32>
    tpu.vector_store %arg7[%c0_182, %c16], %207 {strides = array<i32>} : memref<256x40xf32, #tpu.memory_space<vmem>>, vector<256x8xf32>,
    %c18_i32_183 = arith.constant 18 : i32
    %209 = arith.addi %1, %c18_i32_183 : i32
    %c-12_i32 = arith.constant -12 : i32
    %210 = arith.addi %209, %c-12_i32 : i32
    %c0_184 = arith.constant 0 : index
    %211 = arith.index_cast %210 : i32 to index
    %c6_185 = arith.constant 6 : index
    %c0_186 = arith.constant 0 : index
    %212 = vector.load %arg2[%c0_184, %211, %c6_185, %c0_186] : memref<1x52x52x4xf32, #tpu.memory_space<vmem>>, vector<1x16x16x4xf32>
    %213 = vector.shape_cast %212 : vector<1x16x16x4xf32> to vector<16x16x4xf32>
    %214 = vector.shape_cast %213 : vector<16x16x4xf32> to vector<256x4xf32>
    %c2_187 = arith.constant 2 : index
    %c0_188 = arith.constant 0 : index
    %c0_189 = arith.constant 0 : index
    %c0_190 = arith.constant 0 : index
    %215 = vector.load %arg4[%c2_187, %c0_188, %c0_189, %c0_190] : memref<4x9x4x8xf32, #tpu.memory_space<vmem>>, vector<1x1x4x8xf32>
    %216 = vector.shape_cast %215 : vector<1x1x4x8xf32> to vector<4x8xf32>
    %cst_191 = arith.constant dense<0.000000e+00> : vector<256x8xf32>
    %217 = tpu.matmul %214, %216, %cst_191 {dimension_numbers = #tpu.dot_dimension_numbers<[1], [0], [0], [1], [0, 0, 1, 1], [], []>} : vector<256x4xf32>, vector<4x8xf32>, vector<256x8xf32> -> vector<256x8xf32>
    %c18_i32_192 = arith.constant 18 : i32
    %218 = arith.addi %1, %c18_i32_192 : i32
    %c-12_i32_193 = arith.constant -12 : i32
    %219 = arith.addi %218, %c-12_i32_193 : i32
    %c0_194 = arith.constant 0 : index
    %220 = arith.index_cast %219 : i32 to index
    %c18_195 = arith.constant 18 : index
    %c0_196 = arith.constant 0 : index
    %221 = vector.load %arg2[%c0_194, %220, %c18_195, %c0_196] : memref<1x52x52x4xf32, #tpu.memory_space<vmem>>, vector<1x16x16x4xf32>
    %222 = vector.shape_cast %221 : vector<1x16x16x4xf32> to vector<16x16x4xf32>
    %223 = vector.shape_cast %222 : vector<16x16x4xf32> to vector<256x4xf32>
    %c2_197 = arith.constant 2 : index
    %c1_198 = arith.constant 1 : index
    %c0_199 = arith.constant 0 : index
    %c0_200 = arith.constant 0 : index
    %224 = vector.load %arg4[%c2_197, %c1_198, %c0_199, %c0_200] : memref<4x9x4x8xf32, #tpu.memory_space<vmem>>, vector<1x1x4x8xf32>
    %225 = vector.shape_cast %224 : vector<1x1x4x8xf32> to vector<4x8xf32>
    %cst_201 = arith.constant dense<0.000000e+00> : vector<256x8xf32>
    %226 = tpu.matmul %223, %225, %cst_201 {dimension_numbers = #tpu.dot_dimension_numbers<[1], [0], [0], [1], [0, 0, 1, 1], [], []>} : vector<256x4xf32>, vector<4x8xf32>, vector<256x8xf32> -> vector<256x8xf32>
    %227 = arith.addf %217, %226 : vector<256x8xf32>
    %c18_i32_202 = arith.constant 18 : i32
    %228 = arith.addi %1, %c18_i32_202 : i32
    %c-12_i32_203 = arith.constant -12 : i32
    %229 = arith.addi %228, %c-12_i32_203 : i32
    %c0_204 = arith.constant 0 : index
    %230 = arith.index_cast %229 : i32 to index
    %c30 = arith.constant 30 : index
    %c0_205 = arith.constant 0 : index
    %231 = vector.load %arg2[%c0_204, %230, %c30, %c0_205] : memref<1x52x52x4xf32, #tpu.memory_space<vmem>>, vector<1x16x16x4xf32>
    %232 = vector.shape_cast %231 : vector<1x16x16x4xf32> to vector<16x16x4xf32>
    %233 = vector.shape_cast %232 : vector<16x16x4xf32> to vector<256x4xf32>
    %c2_206 = arith.constant 2 : index
    %c2_207 = arith.constant 2 : index
    %c0_208 = arith.constant 0 : index
    %c0_209 = arith.constant 0 : index
    %234 = vector.load %arg4[%c2_206, %c2_207, %c0_208, %c0_209] : memref<4x9x4x8xf32, #tpu.memory_space<vmem>>, vector<1x1x4x8xf32>
    %235 = vector.shape_cast %234 : vector<1x1x4x8xf32> to vector<4x8xf32>
    %cst_210 = arith.constant dense<0.000000e+00> : vector<256x8xf32>
    %236 = tpu.matmul %233, %235, %cst_210 {dimension_numbers = #tpu.dot_dimension_numbers<[1], [0], [0], [1], [0, 0, 1, 1], [], []>} : vector<256x4xf32>, vector<4x8xf32>, vector<256x8xf32> -> vector<256x8xf32>
    %237 = arith.addf %227, %236 : vector<256x8xf32>
    %c18_i32_211 = arith.constant 18 : i32
    %238 = arith.addi %1, %c18_i32_211 : i32
    %c0_i32_212 = arith.constant 0 : i32
    %239 = arith.addi %238, %c0_i32_212 : i32
    %c0_213 = arith.constant 0 : index
    %240 = arith.index_cast %239 : i32 to index
    %c6_214 = arith.constant 6 : index
    %c0_215 = arith.constant 0 : index
    %241 = vector.load %arg2[%c0_213, %240, %c6_214, %c0_215] : memref<1x52x52x4xf32, #tpu.memory_space<vmem>>, vector<1x16x16x4xf32>
    %242 = vector.shape_cast %241 : vector<1x16x16x4xf32> to vector<16x16x4xf32>
    %243 = vector.shape_cast %242 : vector<16x16x4xf32> to vector<256x4xf32>
    %c2_216 = arith.constant 2 : index
    %c3_217 = arith.constant 3 : index
    %c0_218 = arith.constant 0 : index
    %c0_219 = arith.constant 0 : index
    %244 = vector.load %arg4[%c2_216, %c3_217, %c0_218, %c0_219] : memref<4x9x4x8xf32, #tpu.memory_space<vmem>>, vector<1x1x4x8xf32>
    %245 = vector.shape_cast %244 : vector<1x1x4x8xf32> to vector<4x8xf32>
    %cst_220 = arith.constant dense<0.000000e+00> : vector<256x8xf32>
    %246 = tpu.matmul %243, %245, %cst_220 {dimension_numbers = #tpu.dot_dimension_numbers<[1], [0], [0], [1], [0, 0, 1, 1], [], []>} : vector<256x4xf32>, vector<4x8xf32>, vector<256x8xf32> -> vector<256x8xf32>
    %247 = arith.addf %237, %246 : vector<256x8xf32>
    %c2_221 = arith.constant 2 : index
    %c4_222 = arith.constant 4 : index
    %c0_223 = arith.constant 0 : index
    %c0_224 = arith.constant 0 : index
    %248 = vector.load %arg4[%c2_221, %c4_222, %c0_223, %c0_224] : memref<4x9x4x8xf32, #tpu.memory_space<vmem>>, vector<1x1x4x8xf32>
    %249 = vector.shape_cast %248 : vector<1x1x4x8xf32> to vector<4x8xf32>
    %cst_225 = arith.constant dense<0.000000e+00> : vector<256x8xf32>
    %250 = tpu.matmul %7, %249, %cst_225 {dimension_numbers = #tpu.dot_dimension_numbers<[1], [0], [0], [1], [0, 0, 1, 1], [], []>} : vector<256x4xf32>, vector<4x8xf32>, vector<256x8xf32> -> vector<256x8xf32>
    %251 = arith.addf %247, %250 : vector<256x8xf32>
    %c18_i32_226 = arith.constant 18 : i32
    %252 = arith.addi %1, %c18_i32_226 : i32
    %c0_i32_227 = arith.constant 0 : i32
    %253 = arith.addi %252, %c0_i32_227 : i32
    %c0_228 = arith.constant 0 : index
    %254 = arith.index_cast %253 : i32 to index
    %c30_229 = arith.constant 30 : index
    %c0_230 = arith.constant 0 : index
    %255 = vector.load %arg2[%c0_228, %254, %c30_229, %c0_230] : memref<1x52x52x4xf32, #tpu.memory_space<vmem>>, vector<1x16x16x4xf32>
    %256 = vector.shape_cast %255 : vector<1x16x16x4xf32> to vector<16x16x4xf32>
    %257 = vector.shape_cast %256 : vector<16x16x4xf32> to vector<256x4xf32>
    %c2_231 = arith.constant 2 : index
    %c5_232 = arith.constant 5 : index
    %c0_233 = arith.constant 0 : index
    %c0_234 = arith.constant 0 : index
    %258 = vector.load %arg4[%c2_231, %c5_232, %c0_233, %c0_234] : memref<4x9x4x8xf32, #tpu.memory_space<vmem>>, vector<1x1x4x8xf32>
    %259 = vector.shape_cast %258 : vector<1x1x4x8xf32> to vector<4x8xf32>
    %cst_235 = arith.constant dense<0.000000e+00> : vector<256x8xf32>
    %260 = tpu.matmul %257, %259, %cst_235 {dimension_numbers = #tpu.dot_dimension_numbers<[1], [0], [0], [1], [0, 0, 1, 1], [], []>} : vector<256x4xf32>, vector<4x8xf32>, vector<256x8xf32> -> vector<256x8xf32>
    %261 = arith.addf %251, %260 : vector<256x8xf32>
    %c18_i32_236 = arith.constant 18 : i32
    %262 = arith.addi %1, %c18_i32_236 : i32
    %c12_i32 = arith.constant 12 : i32
    %263 = arith.addi %262, %c12_i32 : i32
    %c0_237 = arith.constant 0 : index
    %264 = arith.index_cast %263 : i32 to index
    %c6_238 = arith.constant 6 : index
    %c0_239 = arith.constant 0 : index
    %265 = vector.load %arg2[%c0_237, %264, %c6_238, %c0_239] : memref<1x52x52x4xf32, #tpu.memory_space<vmem>>, vector<1x16x16x4xf32>
    %266 = vector.shape_cast %265 : vector<1x16x16x4xf32> to vector<16x16x4xf32>
    %267 = vector.shape_cast %266 : vector<16x16x4xf32> to vector<256x4xf32>
    %c2_240 = arith.constant 2 : index
    %c6_241 = arith.constant 6 : index
    %c0_242 = arith.constant 0 : index
    %c0_243 = arith.constant 0 : index
    %268 = vector.load %arg4[%c2_240, %c6_241, %c0_242, %c0_243] : memref<4x9x4x8xf32, #tpu.memory_space<vmem>>, vector<1x1x4x8xf32>
    %269 = vector.shape_cast %268 : vector<1x1x4x8xf32> to vector<4x8xf32>
    %cst_244 = arith.constant dense<0.000000e+00> : vector<256x8xf32>
    %270 = tpu.matmul %267, %269, %cst_244 {dimension_numbers = #tpu.dot_dimension_numbers<[1], [0], [0], [1], [0, 0, 1, 1], [], []>} : vector<256x4xf32>, vector<4x8xf32>, vector<256x8xf32> -> vector<256x8xf32>
    %271 = arith.addf %261, %270 : vector<256x8xf32>
    %c18_i32_245 = arith.constant 18 : i32
    %272 = arith.addi %1, %c18_i32_245 : i32
    %c12_i32_246 = arith.constant 12 : i32
    %273 = arith.addi %272, %c12_i32_246 : i32
    %c0_247 = arith.constant 0 : index
    %274 = arith.index_cast %273 : i32 to index
    %c18_248 = arith.constant 18 : index
    %c0_249 = arith.constant 0 : index
    %275 = vector.load %arg2[%c0_247, %274, %c18_248, %c0_249] : memref<1x52x52x4xf32, #tpu.memory_space<vmem>>, vector<1x16x16x4xf32>
    %276 = vector.shape_cast %275 : vector<1x16x16x4xf32> to vector<16x16x4xf32>
    %277 = vector.shape_cast %276 : vector<16x16x4xf32> to vector<256x4xf32>
    %c2_250 = arith.constant 2 : index
    %c7_251 = arith.constant 7 : index
    %c0_252 = arith.constant 0 : index
    %c0_253 = arith.constant 0 : index
    %278 = vector.load %arg4[%c2_250, %c7_251, %c0_252, %c0_253] : memref<4x9x4x8xf32, #tpu.memory_space<vmem>>, vector<1x1x4x8xf32>
    %279 = vector.shape_cast %278 : vector<1x1x4x8xf32> to vector<4x8xf32>
    %cst_254 = arith.constant dense<0.000000e+00> : vector<256x8xf32>
    %280 = tpu.matmul %277, %279, %cst_254 {dimension_numbers = #tpu.dot_dimension_numbers<[1], [0], [0], [1], [0, 0, 1, 1], [], []>} : vector<256x4xf32>, vector<4x8xf32>, vector<256x8xf32> -> vector<256x8xf32>
    %281 = arith.addf %271, %280 : vector<256x8xf32>
    %c18_i32_255 = arith.constant 18 : i32
    %282 = arith.addi %1, %c18_i32_255 : i32
    %c12_i32_256 = arith.constant 12 : i32
    %283 = arith.addi %282, %c12_i32_256 : i32
    %c0_257 = arith.constant 0 : index
    %284 = arith.index_cast %283 : i32 to index
    %c30_258 = arith.constant 30 : index
    %c0_259 = arith.constant 0 : index
    %285 = vector.load %arg2[%c0_257, %284, %c30_258, %c0_259] : memref<1x52x52x4xf32, #tpu.memory_space<vmem>>, vector<1x16x16x4xf32>
    %286 = vector.shape_cast %285 : vector<1x16x16x4xf32> to vector<16x16x4xf32>
    %287 = vector.shape_cast %286 : vector<16x16x4xf32> to vector<256x4xf32>
    %c2_260 = arith.constant 2 : index
    %c8_261 = arith.constant 8 : index
    %c0_262 = arith.constant 0 : index
    %c0_263 = arith.constant 0 : index
    %288 = vector.load %arg4[%c2_260, %c8_261, %c0_262, %c0_263] : memref<4x9x4x8xf32, #tpu.memory_space<vmem>>, vector<1x1x4x8xf32>
    %289 = vector.shape_cast %288 : vector<1x1x4x8xf32> to vector<4x8xf32>
    %cst_264 = arith.constant dense<0.000000e+00> : vector<256x8xf32>
    %290 = tpu.matmul %287, %289, %cst_264 {dimension_numbers = #tpu.dot_dimension_numbers<[1], [0], [0], [1], [0, 0, 1, 1], [], []>} : vector<256x4xf32>, vector<4x8xf32>, vector<256x8xf32> -> vector<256x8xf32>
    %291 = arith.addf %281, %290 : vector<256x8xf32>
    %c3_265 = arith.constant 3 : index
    %c0_266 = arith.constant 0 : index
    %c0_267 = arith.constant 0 : index
    %292 = vector.load %arg5[%c3_265, %c0_266, %c0_267] : memref<5x1x8xf32, #tpu.memory_space<vmem>>, vector<1x1x8xf32>
    %293 = vector.shape_cast %292 : vector<1x1x8xf32> to vector<1x8xf32>
    %294 = vector.broadcast %293 : vector<1x8xf32> to vector<256x8xf32>
    %295 = arith.mulf %291, %294 : vector<256x8xf32>
    %c3_268 = arith.constant 3 : index
    %c0_269 = arith.constant 0 : index
    %c0_270 = arith.constant 0 : index
    %296 = vector.load %arg6[%c3_268, %c0_269, %c0_270] : memref<5x1x8xf32, #tpu.memory_space<vmem>>, vector<1x1x8xf32>
    %297 = vector.shape_cast %296 : vector<1x1x8xf32> to vector<1x8xf32>
    %298 = vector.broadcast %297 : vector<1x8xf32> to vector<256x8xf32>
    %299 = arith.addf %295, %298 : vector<256x8xf32>
    %cst_271 = arith.constant 0.000000e+00 : f32
    %300 = vector.broadcast %cst_271 : f32 to vector<256x8xf32>
    %301 = arith.maximumf %299, %300 : vector<256x8xf32>
    %c0_272 = arith.constant 0 : index
    %c24_273 = arith.constant 24 : index
    %302 = vector.load %arg7[%c0_272, %c24_273] : memref<256x40xf32, #tpu.memory_space<vmem>>, vector<256x8xf32>
    tpu.vector_store %arg7[%c0_272, %c24_273], %301 {strides = array<i32>} : memref<256x40xf32, #tpu.memory_space<vmem>>, vector<256x8xf32>,
    %c18_i32_274 = arith.constant 18 : i32
    %303 = arith.addi %1, %c18_i32_274 : i32
    %c-18_i32 = arith.constant -18 : i32
    %304 = arith.addi %303, %c-18_i32 : i32
    %c0_275 = arith.constant 0 : index
    %305 = arith.index_cast %304 : i32 to index
    %c0_276 = arith.constant 0 : index
    %c0_277 = arith.constant 0 : index
    %306 = vector.load %arg2[%c0_275, %305, %c0_276, %c0_277] : memref<1x52x52x4xf32, #tpu.memory_space<vmem>>, vector<1x16x16x4xf32>
    %307 = vector.shape_cast %306 : vector<1x16x16x4xf32> to vector<16x16x4xf32>
    %308 = vector.shape_cast %307 : vector<16x16x4xf32> to vector<256x4xf32>
    %c3_278 = arith.constant 3 : index
    %c0_279 = arith.constant 0 : index
    %c0_280 = arith.constant 0 : index
    %c0_281 = arith.constant 0 : index
    %309 = vector.load %arg4[%c3_278, %c0_279, %c0_280, %c0_281] : memref<4x9x4x8xf32, #tpu.memory_space<vmem>>, vector<1x1x4x8xf32>
    %310 = vector.shape_cast %309 : vector<1x1x4x8xf32> to vector<4x8xf32>
    %cst_282 = arith.constant dense<0.000000e+00> : vector<256x8xf32>
    %311 = tpu.matmul %308, %310, %cst_282 {dimension_numbers = #tpu.dot_dimension_numbers<[1], [0], [0], [1], [0, 0, 1, 1], [], []>} : vector<256x4xf32>, vector<4x8xf32>, vector<256x8xf32> -> vector<256x8xf32>
    %c18_i32_283 = arith.constant 18 : i32
    %312 = arith.addi %1, %c18_i32_283 : i32
    %c-18_i32_284 = arith.constant -18 : i32
    %313 = arith.addi %312, %c-18_i32_284 : i32
    %c0_285 = arith.constant 0 : index
    %314 = arith.index_cast %313 : i32 to index
    %c18_286 = arith.constant 18 : index
    %c0_287 = arith.constant 0 : index
    %315 = vector.load %arg2[%c0_285, %314, %c18_286, %c0_287] : memref<1x52x52x4xf32, #tpu.memory_space<vmem>>, vector<1x16x16x4xf32>
    %316 = vector.shape_cast %315 : vector<1x16x16x4xf32> to vector<16x16x4xf32>
    %317 = vector.shape_cast %316 : vector<16x16x4xf32> to vector<256x4xf32>
    %c3_288 = arith.constant 3 : index
    %c1_289 = arith.constant 1 : index
    %c0_290 = arith.constant 0 : index
    %c0_291 = arith.constant 0 : index
    %318 = vector.load %arg4[%c3_288, %c1_289, %c0_290, %c0_291] : memref<4x9x4x8xf32, #tpu.memory_space<vmem>>, vector<1x1x4x8xf32>
    %319 = vector.shape_cast %318 : vector<1x1x4x8xf32> to vector<4x8xf32>
    %cst_292 = arith.constant dense<0.000000e+00> : vector<256x8xf32>
    %320 = tpu.matmul %317, %319, %cst_292 {dimension_numbers = #tpu.dot_dimension_numbers<[1], [0], [0], [1], [0, 0, 1, 1], [], []>} : vector<256x4xf32>, vector<4x8xf32>, vector<256x8xf32> -> vector<256x8xf32>
    %321 = arith.addf %311, %320 : vector<256x8xf32>
    %c18_i32_293 = arith.constant 18 : i32
    %322 = arith.addi %1, %c18_i32_293 : i32
    %c-18_i32_294 = arith.constant -18 : i32
    %323 = arith.addi %322, %c-18_i32_294 : i32
    %c0_295 = arith.constant 0 : index
    %324 = arith.index_cast %323 : i32 to index
    %c36 = arith.constant 36 : index
    %c0_296 = arith.constant 0 : index
    %325 = vector.load %arg2[%c0_295, %324, %c36, %c0_296] : memref<1x52x52x4xf32, #tpu.memory_space<vmem>>, vector<1x16x16x4xf32>
    %326 = vector.shape_cast %325 : vector<1x16x16x4xf32> to vector<16x16x4xf32>
    %327 = vector.shape_cast %326 : vector<16x16x4xf32> to vector<256x4xf32>
    %c3_297 = arith.constant 3 : index
    %c2_298 = arith.constant 2 : index
    %c0_299 = arith.constant 0 : index
    %c0_300 = arith.constant 0 : index
    %328 = vector.load %arg4[%c3_297, %c2_298, %c0_299, %c0_300] : memref<4x9x4x8xf32, #tpu.memory_space<vmem>>, vector<1x1x4x8xf32>
    %329 = vector.shape_cast %328 : vector<1x1x4x8xf32> to vector<4x8xf32>
    %cst_301 = arith.constant dense<0.000000e+00> : vector<256x8xf32>
    %330 = tpu.matmul %327, %329, %cst_301 {dimension_numbers = #tpu.dot_dimension_numbers<[1], [0], [0], [1], [0, 0, 1, 1], [], []>} : vector<256x4xf32>, vector<4x8xf32>, vector<256x8xf32> -> vector<256x8xf32>
    %331 = arith.addf %321, %330 : vector<256x8xf32>
    %c18_i32_302 = arith.constant 18 : i32
    %332 = arith.addi %1, %c18_i32_302 : i32
    %c0_i32_303 = arith.constant 0 : i32
    %333 = arith.addi %332, %c0_i32_303 : i32
    %c0_304 = arith.constant 0 : index
    %334 = arith.index_cast %333 : i32 to index
    %c0_305 = arith.constant 0 : index
    %c0_306 = arith.constant 0 : index
    %335 = vector.load %arg2[%c0_304, %334, %c0_305, %c0_306] : memref<1x52x52x4xf32, #tpu.memory_space<vmem>>, vector<1x16x16x4xf32>
    %336 = vector.shape_cast %335 : vector<1x16x16x4xf32> to vector<16x16x4xf32>
    %337 = vector.shape_cast %336 : vector<16x16x4xf32> to vector<256x4xf32>
    %c3_307 = arith.constant 3 : index
    %c3_308 = arith.constant 3 : index
    %c0_309 = arith.constant 0 : index
    %c0_310 = arith.constant 0 : index
    %338 = vector.load %arg4[%c3_307, %c3_308, %c0_309, %c0_310] : memref<4x9x4x8xf32, #tpu.memory_space<vmem>>, vector<1x1x4x8xf32>
    %339 = vector.shape_cast %338 : vector<1x1x4x8xf32> to vector<4x8xf32>
    %cst_311 = arith.constant dense<0.000000e+00> : vector<256x8xf32>
    %340 = tpu.matmul %337, %339, %cst_311 {dimension_numbers = #tpu.dot_dimension_numbers<[1], [0], [0], [1], [0, 0, 1, 1], [], []>} : vector<256x4xf32>, vector<4x8xf32>, vector<256x8xf32> -> vector<256x8xf32>
    %341 = arith.addf %331, %340 : vector<256x8xf32>
    %c3_312 = arith.constant 3 : index
    %c4_313 = arith.constant 4 : index
    %c0_314 = arith.constant 0 : index
    %c0_315 = arith.constant 0 : index
    %342 = vector.load %arg4[%c3_312, %c4_313, %c0_314, %c0_315] : memref<4x9x4x8xf32, #tpu.memory_space<vmem>>, vector<1x1x4x8xf32>
    %343 = vector.shape_cast %342 : vector<1x1x4x8xf32> to vector<4x8xf32>
    %cst_316 = arith.constant dense<0.000000e+00> : vector<256x8xf32>
    %344 = tpu.matmul %7, %343, %cst_316 {dimension_numbers = #tpu.dot_dimension_numbers<[1], [0], [0], [1], [0, 0, 1, 1], [], []>} : vector<256x4xf32>, vector<4x8xf32>, vector<256x8xf32> -> vector<256x8xf32>
    %345 = arith.addf %341, %344 : vector<256x8xf32>
    %c18_i32_317 = arith.constant 18 : i32
    %346 = arith.addi %1, %c18_i32_317 : i32
    %c0_i32_318 = arith.constant 0 : i32
    %347 = arith.addi %346, %c0_i32_318 : i32
    %c0_319 = arith.constant 0 : index
    %348 = arith.index_cast %347 : i32 to index
    %c36_320 = arith.constant 36 : index
    %c0_321 = arith.constant 0 : index
    %349 = vector.load %arg2[%c0_319, %348, %c36_320, %c0_321] : memref<1x52x52x4xf32, #tpu.memory_space<vmem>>, vector<1x16x16x4xf32>
    %350 = vector.shape_cast %349 : vector<1x16x16x4xf32> to vector<16x16x4xf32>
    %351 = vector.shape_cast %350 : vector<16x16x4xf32> to vector<256x4xf32>
    %c3_322 = arith.constant 3 : index
    %c5_323 = arith.constant 5 : index
    %c0_324 = arith.constant 0 : index
    %c0_325 = arith.constant 0 : index
    %352 = vector.load %arg4[%c3_322, %c5_323, %c0_324, %c0_325] : memref<4x9x4x8xf32, #tpu.memory_space<vmem>>, vector<1x1x4x8xf32>
    %353 = vector.shape_cast %352 : vector<1x1x4x8xf32> to vector<4x8xf32>
    %cst_326 = arith.constant dense<0.000000e+00> : vector<256x8xf32>
    %354 = tpu.matmul %351, %353, %cst_326 {dimension_numbers = #tpu.dot_dimension_numbers<[1], [0], [0], [1], [0, 0, 1, 1], [], []>} : vector<256x4xf32>, vector<4x8xf32>, vector<256x8xf32> -> vector<256x8xf32>
    %355 = arith.addf %345, %354 : vector<256x8xf32>
    %c18_i32_327 = arith.constant 18 : i32
    %356 = arith.addi %1, %c18_i32_327 : i32
    %c18_i32_328 = arith.constant 18 : i32
    %357 = arith.addi %356, %c18_i32_328 : i32
    %c0_329 = arith.constant 0 : index
    %358 = arith.index_cast %357 : i32 to index
    %c0_330 = arith.constant 0 : index
    %c0_331 = arith.constant 0 : index
    %359 = vector.load %arg2[%c0_329, %358, %c0_330, %c0_331] : memref<1x52x52x4xf32, #tpu.memory_space<vmem>>, vector<1x16x16x4xf32>
    %360 = vector.shape_cast %359 : vector<1x16x16x4xf32> to vector<16x16x4xf32>
    %361 = vector.shape_cast %360 : vector<16x16x4xf32> to vector<256x4xf32>
    %c3_332 = arith.constant 3 : index
    %c6_333 = arith.constant 6 : index
    %c0_334 = arith.constant 0 : index
    %c0_335 = arith.constant 0 : index
    %362 = vector.load %arg4[%c3_332, %c6_333, %c0_334, %c0_335] : memref<4x9x4x8xf32, #tpu.memory_space<vmem>>, vector<1x1x4x8xf32>
    %363 = vector.shape_cast %362 : vector<1x1x4x8xf32> to vector<4x8xf32>
    %cst_336 = arith.constant dense<0.000000e+00> : vector<256x8xf32>
    %364 = tpu.matmul %361, %363, %cst_336 {dimension_numbers = #tpu.dot_dimension_numbers<[1], [0], [0], [1], [0, 0, 1, 1], [], []>} : vector<256x4xf32>, vector<4x8xf32>, vector<256x8xf32> -> vector<256x8xf32>
    %365 = arith.addf %355, %364 : vector<256x8xf32>
    %c18_i32_337 = arith.constant 18 : i32
    %366 = arith.addi %1, %c18_i32_337 : i32
    %c18_i32_338 = arith.constant 18 : i32
    %367 = arith.addi %366, %c18_i32_338 : i32
    %c0_339 = arith.constant 0 : index
    %368 = arith.index_cast %367 : i32 to index
    %c18_340 = arith.constant 18 : index
    %c0_341 = arith.constant 0 : index
    %369 = vector.load %arg2[%c0_339, %368, %c18_340, %c0_341] : memref<1x52x52x4xf32, #tpu.memory_space<vmem>>, vector<1x16x16x4xf32>
    %370 = vector.shape_cast %369 : vector<1x16x16x4xf32> to vector<16x16x4xf32>
    %371 = vector.shape_cast %370 : vector<16x16x4xf32> to vector<256x4xf32>
    %c3_342 = arith.constant 3 : index
    %c7_343 = arith.constant 7 : index
    %c0_344 = arith.constant 0 : index
    %c0_345 = arith.constant 0 : index
    %372 = vector.load %arg4[%c3_342, %c7_343, %c0_344, %c0_345] : memref<4x9x4x8xf32, #tpu.memory_space<vmem>>, vector<1x1x4x8xf32>
    %373 = vector.shape_cast %372 : vector<1x1x4x8xf32> to vector<4x8xf32>
    %cst_346 = arith.constant dense<0.000000e+00> : vector<256x8xf32>
    %374 = tpu.matmul %371, %373, %cst_346 {dimension_numbers = #tpu.dot_dimension_numbers<[1], [0], [0], [1], [0, 0, 1, 1], [], []>} : vector<256x4xf32>, vector<4x8xf32>, vector<256x8xf32> -> vector<256x8xf32>
    %375 = arith.addf %365, %374 : vector<256x8xf32>
    %c18_i32_347 = arith.constant 18 : i32
    %376 = arith.addi %1, %c18_i32_347 : i32
    %c18_i32_348 = arith.constant 18 : i32
    %377 = arith.addi %376, %c18_i32_348 : i32
    %c0_349 = arith.constant 0 : index
    %378 = arith.index_cast %377 : i32 to index
    %c36_350 = arith.constant 36 : index
    %c0_351 = arith.constant 0 : index
    %379 = vector.load %arg2[%c0_349, %378, %c36_350, %c0_351] : memref<1x52x52x4xf32, #tpu.memory_space<vmem>>, vector<1x16x16x4xf32>
    %380 = vector.shape_cast %379 : vector<1x16x16x4xf32> to vector<16x16x4xf32>
    %381 = vector.shape_cast %380 : vector<16x16x4xf32> to vector<256x4xf32>
    %c3_352 = arith.constant 3 : index
    %c8_353 = arith.constant 8 : index
    %c0_354 = arith.constant 0 : index
    %c0_355 = arith.constant 0 : index
    %382 = vector.load %arg4[%c3_352, %c8_353, %c0_354, %c0_355] : memref<4x9x4x8xf32, #tpu.memory_space<vmem>>, vector<1x1x4x8xf32>
    %383 = vector.shape_cast %382 : vector<1x1x4x8xf32> to vector<4x8xf32>
    %cst_356 = arith.constant dense<0.000000e+00> : vector<256x8xf32>
    %384 = tpu.matmul %381, %383, %cst_356 {dimension_numbers = #tpu.dot_dimension_numbers<[1], [0], [0], [1], [0, 0, 1, 1], [], []>} : vector<256x4xf32>, vector<4x8xf32>, vector<256x8xf32> -> vector<256x8xf32>
    %385 = arith.addf %375, %384 : vector<256x8xf32>
    %c4_357 = arith.constant 4 : index
    %c0_358 = arith.constant 0 : index
    %c0_359 = arith.constant 0 : index
    %386 = vector.load %arg5[%c4_357, %c0_358, %c0_359] : memref<5x1x8xf32, #tpu.memory_space<vmem>>, vector<1x1x8xf32>
    %387 = vector.shape_cast %386 : vector<1x1x8xf32> to vector<1x8xf32>
    %388 = vector.broadcast %387 : vector<1x8xf32> to vector<256x8xf32>
    %389 = arith.mulf %385, %388 : vector<256x8xf32>
    %c4_360 = arith.constant 4 : index
    %c0_361 = arith.constant 0 : index
    %c0_362 = arith.constant 0 : index
    %390 = vector.load %arg6[%c4_360, %c0_361, %c0_362] : memref<5x1x8xf32, #tpu.memory_space<vmem>>, vector<1x1x8xf32>
    %391 = vector.shape_cast %390 : vector<1x1x8xf32> to vector<1x8xf32>
    %392 = vector.broadcast %391 : vector<1x8xf32> to vector<256x8xf32>
    %393 = arith.addf %389, %392 : vector<256x8xf32>
    %cst_363 = arith.constant 0.000000e+00 : f32
    %394 = vector.broadcast %cst_363 : f32 to vector<256x8xf32>
    %395 = arith.maximumf %393, %394 : vector<256x8xf32>
    %c0_364 = arith.constant 0 : index
    %c32 = arith.constant 32 : index
    %396 = vector.load %arg7[%c0_364, %c32] : memref<256x40xf32, #tpu.memory_space<vmem>>, vector<256x8xf32>
    tpu.vector_store %arg7[%c0_364, %c32], %395 {strides = array<i32>} : memref<256x40xf32, #tpu.memory_space<vmem>>, vector<256x8xf32>,
    return
  }
  func.func @transform_0(%arg0: i32, %arg1: i32) -> (i32, i32, i32, i32) {
    %c0_i32 = arith.constant 0 : i32
    %c0_i32_0 = arith.constant 0 : i32
    %c0_i32_1 = arith.constant 0 : i32
    %c0_i32_2 = arith.constant 0 : i32
    return %arg0, %c0_i32, %c0_i32_0, %c0_i32_1 : i32, i32, i32, i32
  }
  func.func @transform_1(%arg0: i32, %arg1: i32) -> (i32, i32) {
    %c0_i32 = arith.constant 0 : i32
    %c0_i32_0 = arith.constant 0 : i32
    %c0_i32_1 = arith.constant 0 : i32
    return %c0_i32, %c0_i32_0 : i32, i32
  }
  func.func @transform_2(%arg0: i32, %arg1: i32) -> (i32, i32, i32, i32) {
    %c0_i32 = arith.constant 0 : i32
    %c0_i32_0 = arith.constant 0 : i32
    %c0_i32_1 = arith.constant 0 : i32
    %c0_i32_2 = arith.constant 0 : i32
    %c0_i32_3 = arith.constant 0 : i32
    return %c0_i32, %c0_i32_0, %c0_i32_1, %c0_i32_2 : i32, i32, i32, i32
  }
  func.func @transform_3(%arg0: i32, %arg1: i32) -> (i32, i32, i32) {
    %c0_i32 = arith.constant 0 : i32
    %c0_i32_0 = arith.constant 0 : i32
    %c0_i32_1 = arith.constant 0 : i32
    %c0_i32_2 = arith.constant 0 : i32
    return %c0_i32, %c0_i32_0, %c0_i32_1 : i32, i32, i32
  }
  func.func @transform_4(%arg0: i32, %arg1: i32) -> (i32, i32, i32) {
    %c0_i32 = arith.constant 0 : i32
    %c0_i32_0 = arith.constant 0 : i32
    %c0_i32_1 = arith.constant 0 : i32
    %c0_i32_2 = arith.constant 0 : i32
    return %c0_i32, %c0_i32_0, %c0_i32_1 : i32, i32, i32
  }
  func.func @transform_5(%arg0: i32, %arg1: i32) -> (i32, i32) {
    %c1_i32 = arith.constant 1 : i32
    %0 = arith.muli %arg0, %c1_i32 : i32
    %1 = arith.addi %0, %arg1 : i32
    %c0_i32 = arith.constant 0 : i32
    %c0_i32_0 = arith.constant 0 : i32
    return %1, %c0_i32 : i32, i32
  }
}

</mosaic_0001>

<bundles_post_ra>
// kernel: tpu_custom_call.1
= control target key start
LH: loop header
LB: loop body
LE: loop exit
PB: predicated region body
PF: predicated region fallthrough
CT: control target
= control target key end

     0   :  { %s21733_s18 = smov 0   ;;  %s21735_s19 = smov 0   ;;  %s26005_s0 = inlined_call_operand.vmem [shape: f32[2,52,52,4], index: 0, kind: input, shape index: {}]   ;;  %s26006_s1 = inlined_call_operand.vmem [shape: f32[4,8], index: 1, kind: input, shape index: {}]   ;;  %s26007_s2 = inlined_call_operand.vmem [shape: f32[4,9,4,8], index: 2, kind: input, shape index: {}]   ;;  %s26008_s3 = inlined_call_operand.vmem [shape: f32[5,1,8], index: 3, kind: input, shape index: {}]   ;;  %s26009_s4 = inlined_call_operand.vmem [shape: f32[5,1,8], index: 4, kind: input, shape index: {}]   ;;  %s26010_s5 = inlined_call_operand.vmem [shape: f32[512,40], index: 5, kind: output, shape index: {}]  }
   0x1   :  { %s21737_s20 = smov 0  }
   0x2 LB: > { %s27_s21 = sadd.s32 1, %s21693_s19  ;;  %p15241_p0 = scmp.ge.s32.totalorder %s21697_s20, 1  ;;  %s21697_s20 = sphi %s21737_s20, %s15_s20   ;;  %s21693_s19 = sphi %s21735_s19, %s26180_s19   ;;  %s21689_s18 = sphi %s21733_s18, %s26179_s18  }
   0x3   : > { %p29_p1 = scmp.ge.s32.totalorder %s27_s21, 2  ;;  %p201_p2 = scmp.lt.s32.totalorder %s21697_s20, 3 }
   0x5   : > { %s26182_s21 = smov (%p29_p1, %s27_s21), 0  ;;  %p202_p3 = pnand %p15241_p0, %p201_p2 }
   0x7   : > { %205 = sbr.rel (%p202_p3) target bundleno = 1603 (0x643), region = 40 }
   0xe   : > { %v279_v0 = vld [vmem:[%s26006_s1] sm:$0xf]  ;;  %vm377_vm0 = vcmask 1043456   ;;  %p230_p4 = scmp.lt.s32.totalorder %s21689_s18, 1  ;;  %v15376_v1 = vld [vmem:[%s26007_s2 + $0x4] sm:$0xf] }
   0xf   : > { %20552 = vmatprep.subr.msk.mxu1 %vm377_vm0, %v279_v0  ;;  %18702 = vmatprep.subr.msk.mxu0 %vm377_vm0, %v279_v0  ;;  %v15942_v2 = vld [vmem:[%s26007_s2 + $0x28] sm:$0xf]  ;;  %vm280_vm1 = vcmask 31744   ;;  %v21804_v9 = vld [vmem:[%s26007_s2] sm:$0xf]  ;;  %vm716_vm2 = vcmask 64512  }
  0x10   : > { %20553 = vmatpush3.msk.msra.mxu1 %vm377_vm0, %v279_v0  ;;  %18703 = vmatpush3.msk.msra.mxu0 %vm377_vm0, %v279_v0  ;;  %s231_s28 = scalar_select %p230_p4, %s21689_s18, 1  ;;  %v21809_v10 = vld [vmem:[%s26007_s2 + $0x24] sm:$0xf]  ;;  %v21957_v42 = vld [vmem:[%s26007_s2 + $0x8] sm:$0xf]  ;;  %vm4312_vm3 = vcmask 130112  }
  0x11   : > { %18752 = vmatprep.subr.msk.mxu1 %vm377_vm0, %v15376_v1  ;;  %19202 = vmatprep.subr.msk.mxu0 %vm377_vm0, %v15942_v2  ;;  %v21962_v43 = vld [vmem:[%s26007_s2 + $0x2c] sm:$0xf]  ;;  %v22109_v58 = vld [vmem:[%s26007_s2 + $0x30] sm:$0xf]  ;;  %s21699_s16 = smov 8   ;;  %s21700_s17 = smov 16  }
  0x12   : > { %s21578_s29 = smul.u32 2912, %s231_s28  ;;  %v22104_v57 = vld [vmem:[%s26007_s2 + $0xc] sm:$0xf]  ;;  %s15243_s28 = sshll.u32 %s21689_s18, 5  ;;  %vm7909_vm4 = vcmask 195712   ;;  %vm11506_vm5 = vcmask 261312  }
  0x13   : > { %p237_p5 = scmp.lt.s32.totalorder %s15243_s28, 63  ;;  %s21701_s25 = smov 24   ;;  %vm15102_vm6 = vcmask 326912  }
  0x14   : > { %s21773_s7 = scalar_lea.vmem %s26005_s0, %s21578_s29  ;;  %s21702_s26 = smov 32  }
  0x15   : > { %v21776_v3 = vld [vmem:[%s21773_s7 + $0x402] sm:$0xff]  ;;  %v21782_v5 = vld [vmem:[%s21773_s7 + $0x40a] sm:$0xff]  ;;  %v21792_v7 = vld [vmem:[%s21773_s7 + $0x43a] sm:$0xff]  ;;  %s26184_s28 = smov (!%p237_p5, %s15243_s28), 63 }
  0x16   : > { %v21779_v4 = vld [vmem:[%s21773_s7 + $0x5c2] sm:$0xff]  ;;  %18704 = vmatprep.mubr.msk.f32.mxu0 %vm280_vm1, %v21776_v3  ;;  %v21789_v6 = vld [vmem:[%s21773_s7 + $0x5ca] sm:$0xff]  ;;  %v21795_v8 = vld [vmem:[%s21773_s7 + $0x5fa] sm:$0xff]  ;;  %s15244_s8 = sshll.u32 %s26184_s28, 3 }
  0x17   : > { %18728 = vmatprep.mubr.msk.f32.mxu1 %vm280_vm1, %v21779_v4  ;;  %18705 = vmatmul.mubr.msk.f32.vlgmr.msra.gmra.mrb[0].mxu0 %vm280_vm1, %v21782_v5  ;;  %v21815_v11 = vld [vmem:[%s21773_s7 + $0x442] sm:$0xff]  ;;  %v21824_v13 = vld [vmem:[%s21773_s7 + $0x472] sm:$0xff]  ;;  %v21842_v15 = vld [vmem:[%s21773_s7 + $0x47a] sm:$0xff]  ;;  %s22688_s11 = scalar_lea.vmem %s26010_s5, %s15244_s8 }
  0x18   : > { %18729 = vmatmul.mubr.msk.f32.vlgmr.msra.gmra.mrb[0].mxu1 %vm280_vm1, %v21789_v6  ;;  %18707 = vmatprep.mubr.msk.f32.mxu0 %vm280_vm1, %v21792_v7  ;;  %v21818_v12 = vld [vmem:[%s21773_s7 + $0x602] sm:$0xff]  ;;  %v21827_v14 = vld [vmem:[%s21773_s7 + $0x632] sm:$0xff]  ;;  %v21845_v16 = vld [vmem:[%s21773_s7 + $0x63a] sm:$0xff] }
  0x19   : > { %18753 = vmatpush3.msk.msra.mxu1 %vm377_vm0, %v15376_v1  ;;  %18731 = vmatprep.mubr.msk.f32.mxu1 %vm280_vm1, %v21795_v8  ;;  %v21848_v17 = vld [vmem:[%s21773_s7 + $0x4aa] sm:$0xff]  ;;  %v21862_v19 = vld [vmem:[%s21773_s7 + $0x4b2] sm:$0xff]  ;;  %v21868_v21 = vld [vmem:[%s21773_s7 + $0x4e2] sm:$0xff] }
  0x1a   : > { %19203 = vmatpush3.msk.msra.mxu0 %vm377_vm0, %v15942_v2  ;;  %18802 = vmatprep.subr.msk.mxu1 %vm377_vm0, %v21804_v9  ;;  %v21851_v18 = vld [vmem:[%s21773_s7 + $0x66a] sm:$0xff]  ;;  %v21865_v20 = vld [vmem:[%s21773_s7 + $0x672] sm:$0xff]  ;;  %v21871_v22 = vld [vmem:[%s21773_s7 + $0x6a2] sm:$0xff] }
  0x1b   : > { %19252 = vmatprep.subr.msk.mxu0 %vm377_vm0, %v21809_v10  ;;  %18708 = vmatmul.mubr.msk.f32.gmra.mrb[2].mxu0 %vm280_vm1, %v21815_v11  ;;  %v21882_v23 = vld [vmem:[%s21773_s7 + $0x4ea] sm:$0xff]  ;;  %v21888_v25 = vld [vmem:[%s21773_s7 + $0x51a] sm:$0xff]  ;;  %v21902_v27 = vld [vmem:[%s21773_s7 + $0x522] sm:$0xff] }
  0x1c   : > { %18732 = vmatmul.mubr.msk.f32.gmra.mrb[2].mxu1 %vm280_vm1, %v21818_v12  ;;  %18710 = vmatprep.mubr.msk.f32.mxu0 %vm280_vm1, %v21824_v13  ;;  %v21885_v24 = vld [vmem:[%s21773_s7 + $0x6aa] sm:$0xff]  ;;  %v21891_v26 = vld [vmem:[%s21773_s7 + $0x6da] sm:$0xff]  ;;  %v21905_v28 = vld [vmem:[%s21773_s7 + $0x6e2] sm:$0xff] }
  0x1d   : > { %18734 = vmatprep.mubr.msk.f32.mxu1 %vm280_vm1, %v21827_v14  ;;  %v21908_v29 = vld [vmem:[%s21773_s7 + $0x552] sm:$0xff]  ;;  %v21922_v31 = vld [vmem:[%s21773_s7 + $0x55a] sm:$0xff]  ;;  %v21928_v33 = vld [vmem:[%s21773_s7 + $0x58a] sm:$0xff] }
  0x1e   : > { %v21911_v30 = vld [vmem:[%s21773_s7 + $0x712] sm:$0xff]  ;;  %v21925_v32 = vld [vmem:[%s21773_s7 + $0x71a] sm:$0xff]  ;;  %v15275_v34 = vld [vmem:[%s21773_s7 + $0x74a] sm:$0xff] }
  0x1f   : > { %18711 = vmatmul.mubr.msk.f32.gmra.mrb[4].mxu0 %vm280_vm1, %v21842_v15  ;;  %v21939_v35 = vld [vmem:[%s21773_s7 + $0x592] sm:$0xff]  ;;  %v15344_v37 = vld [vmem:[%s21773_s7 + $0x3ca] sm:$0xff]  ;;  %v15911_v40 = vld [vmem:[%s21773_s7 + $0x2ba] sm:$0xff] }
  0x20   : > { %18735 = vmatmul.mubr.msk.f32.gmra.mrb[4].mxu1 %vm280_vm1, %v21845_v16  ;;  %18713 = vmatprep.mubr.msk.f32.mxu0 %vm280_vm1, %v21848_v17  ;;  %v15276_v36 = vld [vmem:[%s21773_s7 + $0x752] sm:$0xff]  ;;  %v15912_v41 = vld [vmem:[%s21773_s7 + $0x2ea] sm:$0xff]  ;;  %v15914_v45 = vld [vmem:[%s21773_s7 + $0x322] sm:$0xff] }
  0x21   : > { %18737 = vmatprep.mubr.msk.f32.mxu1 %vm280_vm1, %v21851_v18  ;;  %v15910_v38 = vld [vmem:[%s21773_s7 + $0x2b2] sm:$0xff]  ;;  %v15915_v46 = vld [vmem:[%s21773_s7 + $0x32a] sm:$0xff]  ;;  %v15916_v47 = vld [vmem:[%s21773_s7 + $0x35a] sm:$0xff] }
  0x22   : > { %v15345_v39 = vld [vmem:[%s21773_s7 + $0x3d2] sm:$0xff]  ;;  %v15917_v48 = vld [vmem:[%s21773_s7 + $0x362] sm:$0xff]  ;;  %v15919_v50 = vld [vmem:[%s21773_s7 + $0x39a] sm:$0xff] }
  0x23   : > { %18714 = vmatmul.mubr.msk.f32.gmra.mrb[6].mxu0 %vm280_vm1, %v21862_v19  ;;  %v15913_v44 = vld [vmem:[%s21773_s7 + $0x2f2] sm:$0xff]  ;;  %v15312_v51 = vld [vmem:[%s21773_s7 + $0x3c9] sm:$0xff]  ;;  %v22096_v55 = vld [vmem:[%s21773_s7 + $0x401] sm:$0xff] }
  0x24   : > { %18738 = vmatmul.mubr.msk.f32.gmra.mrb[6].mxu1 %vm280_vm1, %v21865_v20  ;;  %18716 = vmatprep.mubr.msk.f32.mxu0 %vm280_vm1, %v21868_v21  ;;  %v15918_v49 = vld [vmem:[%s21773_s7 + $0x392] sm:$0xff]  ;;  %v15879_v56 = vld [vmem:[%s21773_s7 + $0x2e4] sm:$0xff]  ;;  %v15881_v62 = vld [vmem:[%s21773_s7 + $0x31c] sm:$0xff] }
  0x25   : > { %18740 = vmatprep.mubr.msk.f32.mxu1 %vm280_vm1, %v21871_v22  ;;  %v15877_v52 = vld [vmem:[%s21773_s7 + $0x2ac] sm:$0xff]  ;;  %v15878_v54 = vld [vmem:[%s21773_s7 + $0x2b4] sm:$0xff]  ;;  %v22137_v63 = vld [vmem:[%s21773_s7 + $0x441] sm:$0xff] }
  0x26   : > { %v15313_v53 = vld [vmem:[%s21773_s7 + $0x3d1] sm:$0xff]  ;;  %v22116_v59 = vld [vmem:[%s21773_s7 + $0x409] sm:$0xff]  ;;  %v22123_v61 = vld [vmem:[%s21773_s7 + $0x439] sm:$0xff] }
  0x27   : > { %18717 = vmatmul.mubr.msk.f32.gmra.mrb[8].mxu0 %vm280_vm1, %v21882_v23  ;;  %v15880_v60 = vld [vmem:[%s21773_s7 + $0x2ec] sm:$0xff]  ;;  %v15882_v0 = vld [vmem:[%s21773_s7 + $0x324] sm:$0xff]  ;;  %v15883_v2 = vld [vmem:[%s21773_s7 + $0x354] sm:$0xff] }
  0x28   : > { %18741 = vmatmul.mubr.msk.f32.gmra.mrb[8].mxu1 %vm280_vm1, %v21885_v24  ;;  %18719 = vmatprep.mubr.msk.f32.mxu0 %vm280_vm1, %v21888_v25  ;;  %v22141_v1 = vld [vmem:[%s21773_s7 + $0x471] sm:$0xff] }
  0x29   : > { %18743 = vmatprep.mubr.msk.f32.mxu1 %vm280_vm1, %v21891_v26 }
  0x2b   : > { %18720 = vmatmul.mubr.msk.f32.gmra.mrb[10].mxu0 %vm280_vm1, %v21902_v27 }
  0x2c   : > { %18744 = vmatmul.mubr.msk.f32.gmra.mrb[10].mxu1 %vm280_vm1, %v21905_v28  ;;  %18722 = vmatprep.mubr.msk.f32.mxu0 %vm280_vm1, %v21908_v29 }
  0x2d   : > { %18746 = vmatprep.mubr.msk.f32.mxu1 %vm280_vm1, %v21911_v30 }
  0x2f   : > { %18723 = vmatmul.mubr.msk.f32.gmra.mrb[12].mxu0 %vm280_vm1, %v21922_v31 }
  0x30   : > { %18747 = vmatmul.mubr.msk.f32.gmra.mrb[12].mxu1 %vm280_vm1, %v21925_v32  ;;  %18725 = vmatprep.mubr.msk.f32.mxu0 %vm280_vm1, %v21928_v33 }
  0x31   : > { %18749 = vmatprep.mubr.msk.f32.mxu1 %vm280_vm1, %v15275_v34  ;;  %v22285_v34 = vld [vmem:[%s21773_s7 + $0x514] sm:$0xff] }
  0x33   : > { %18726 = vmatmul.mubr.msk.f32.gmra.mrb[14].mxu0 %vm280_vm1, %v21939_v35 }
  0x34   : > { %18750 = vmatmul.mubr.msk.f32.gmra.mrb[14].mxu1 %vm280_vm1, %v15276_v36  ;;  %19204 = vmatprep.mubr.msk.f32.mxu0 %vm280_vm1, %v15910_v38  ;;  %v22299_v36 = vld [vmem:[%s21773_s7 + $0x51c] sm:$0xff]  ;;  %v22305_v38 = vld [vmem:[%s21773_s7 + $0x54c] sm:$0xff] }
  0x35   : > { %18754 = vmatprep.mubr.msk.f32.mxu1 %vm280_vm1, %v15344_v37 }
  0x37   : > { %19205 = vmatmul.mubr.msk.f32.vlgmr.msra.gmra.mrb[16].mxu0 %vm280_vm1, %v15911_v40  ;;  %v22319_v40 = vld [vmem:[%s21773_s7 + $0x554] sm:$0xff] }
  0x38   : > { %18755 = vmatmul.mubr.msk.f32.vlgmr.msra.gmra.mrb[16].mxu1 %vm280_vm1, %v15345_v39  ;;  %19207 = vmatprep.mubr.msk.f32.mxu0 %vm280_vm1, %v15912_v41  ;;  %v22322_v41 = vld [vmem:[%s21773_s7 + $0x6a1] sm:$0xff] }
  0x39   : > { %18803 = vmatpush3.msk.msra.mxu1 %vm377_vm0, %v21804_v9  ;;  %18757 = vmatprep.mubr.msk.f32.mxu1 %vm280_vm1, %v21776_v3  ;;  %v22169_v9 = vld [vmem:[%s21773_s7 + $0x4e1] sm:$0xff]  ;;  %26069 = vst [vmem:[#allocation4_spill] sm:$0xff] %v22322_v41 }
  0x3a   : > { %19253 = vmatpush3.msk.msra.mxu0 %vm377_vm0, %v21809_v10  ;;  %18852 = vmatprep.subr.msk.mxu1 %vm377_vm0, %v21957_v42  ;;  %v15887_v10 = vld [vmem:[%s21773_s7 + $0x3c4] sm:$0xff] }
  0x3b   : > { %19302 = vmatprep.subr.msk.mxu0 %vm377_vm0, %v21962_v43  ;;  %19208 = vmatmul.mubr.msk.f32.gmra.mrb[18].mxu0 %vm280_vm1, %v15913_v44  ;;  %v22339_v44 = vld [vmem:[%s21773_s7 + $0x58c] sm:$0xff] }
  0x3c   : > { %18758 = vmatmul.mubr.msk.f32.gmra.mrb[18].mxu1 %vm280_vm1, %v21782_v5  ;;  %19210 = vmatprep.mubr.msk.f32.mxu0 %vm280_vm1, %v15914_v45  ;;  %v22342_v45 = vld [vmem:[%s21773_s7 + $0x6d9] sm:$0xff] }
  0x3d   : > { %18760 = vmatprep.mubr.msk.f32.mxu1 %vm280_vm1, %v21792_v7  ;;  %26071 = vst [vmem:[#allocation6_spill] sm:$0xff] %v22342_v45 }
  0x3f   : > { %19211 = vmatmul.mubr.msk.f32.gmra.mrb[20].mxu0 %vm280_vm1, %v15915_v46  ;;  %v22345_v46 = vld [vmem:[%s21773_s7 + $0x5bc] sm:$0xff] }
  0x40   : > { %18761 = vmatmul.mubr.msk.f32.gmra.mrb[20].mxu1 %vm280_vm1, %v21815_v11  ;;  %19213 = vmatprep.mubr.msk.f32.mxu0 %vm280_vm1, %v15916_v47  ;;  %v22356_v47 = vld [vmem:[%s21773_s7 + $0x6e1] sm:$0xff] }
  0x41   : > { %18763 = vmatprep.mubr.msk.f32.mxu1 %vm280_vm1, %v21824_v13  ;;  %26072 = vst [vmem:[#allocation7_spill] sm:$0xff] %v22356_v47 }
  0x43   : > { %19214 = vmatmul.mubr.msk.f32.gmra.mrb[22].mxu0 %vm280_vm1, %v15917_v48  ;;  %v22359_v48 = vld [vmem:[%s21773_s7 + $0x5c4] sm:$0xff] }
  0x44   : > { %18764 = vmatmul.mubr.msk.f32.gmra.mrb[22].mxu1 %vm280_vm1, %v21842_v15  ;;  %19216 = vmatprep.mubr.msk.f32.mxu0 %vm280_vm1, %v15918_v49  ;;  %v22362_v49 = vld [vmem:[%s21773_s7 + $0x711] sm:$0xff] }
  0x45   : > { %18766 = vmatprep.mubr.msk.f32.mxu1 %vm280_vm1, %v21848_v17  ;;  %26073 = vst [vmem:[#allocation8_spill] sm:$0xff] %v22362_v49 }
  0x47   : > { %19217 = vmatmul.mubr.msk.f32.gmra.mrb[24].mxu0 %vm280_vm1, %v15919_v50  ;;  %v22365_v50 = vld [vmem:[%s21773_s7 + $0x5f4] sm:$0xff] }
  0x48   : > { %18767 = vmatmul.mubr.msk.f32.gmra.mrb[24].mxu1 %vm280_vm1, %v21862_v19  ;;  %19219 = vmatprep.mubr.msk.f32.mxu0 %vm280_vm1, %v15344_v37  ;;  %v22302_v37 = vld [vmem:[%s21773_s7 + $0x669] sm:$0xff] }
  0x49   : > { %18769 = vmatprep.mubr.msk.f32.mxu1 %vm280_vm1, %v21868_v21  ;;  %26067 = vst [vmem:[#allocation2_spill] sm:$0xff] %v22302_v37 }
  0x4b   : > { %19220 = vmatmul.mubr.msk.f32.gmra.mrb[26].mxu0 %vm280_vm1, %v15345_v39  ;;  %v22316_v39 = vld [vmem:[%s21773_s7 + $0x671] sm:$0xff] }
  0x4c   : > { %18770 = vmatmul.mubr.msk.f32.gmra.mrb[26].mxu1 %vm280_vm1, %v21882_v23  ;;  %19222 = vmatprep.mubr.msk.f32.mxu0 %vm280_vm1, %v21776_v3  ;;  %v22151_v3 = vld [vmem:[%s21773_s7 + $0x479] sm:$0xff]  ;;  %26068 = vst [vmem:[#allocation3_spill] sm:$0xff] %v22316_v39 }
  0x4d   : > { %18772 = vmatprep.mubr.msk.f32.mxu1 %vm280_vm1, %v21888_v25 }
  0x4f   : > { %19223 = vmatmul.mubr.msk.f32.gmra.mrb[28].mxu0 %vm280_vm1, %v21782_v5  ;;  %v22155_v5 = vld [vmem:[%s21773_s7 + $0x4a9] sm:$0xff] }
  0x50   : > { %18773 = vmatmul.mubr.msk.f32.gmra.mrb[28].mxu1 %vm280_vm1, %v21902_v27  ;;  %19225 = vmatprep.mubr.msk.f32.mxu0 %vm280_vm1, %v21792_v7  ;;  %v22165_v7 = vld [vmem:[%s21773_s7 + $0x4b1] sm:$0xff] }
  0x51   : > { %18775 = vmatprep.mubr.msk.f32.mxu1 %vm280_vm1, %v21908_v29 }
  0x53   : > { %19226 = vmatmul.mubr.msk.f32.gmra.mrb[30].mxu0 %vm280_vm1, %v21815_v11  ;;  %v22179_v11 = vld [vmem:[%s21773_s7 + $0x4e9] sm:$0xff] }
  0x54   : > { %18776 = vmatmul.mubr.msk.f32.gmra.mrb[30].mxu1 %vm280_vm1, %v21922_v31  ;;  %19228 = vmatprep.mubr.msk.f32.mxu0 %vm280_vm1, %v21824_v13  ;;  %v22183_v13 = vld [vmem:[%s21773_s7 + $0x519] sm:$0xff] }
  0x55   : > { %18778 = vmatprep.mubr.msk.f32.mxu1 %vm280_vm1, %v21928_v33 }
  0x57   : > { %19229 = vmatmul.mubr.msk.f32.gmra.mrb[32].mxu0 %vm280_vm1, %v21842_v15  ;;  %v22196_v15 = vld [vmem:[%s21773_s7 + $0x521] sm:$0xff] }
  0x58   : > { %18779 = vmatmul.mubr.msk.f32.gmra.mrb[32].mxu1 %vm280_vm1, %v21939_v35  ;;  %19231 = vmatprep.mubr.msk.f32.mxu0 %vm280_vm1, %v21848_v17  ;;  %v22202_v17 = vld [vmem:[%s21773_s7 + $0x551] sm:$0xff] }
  0x59   : > { %18781 = vmatprep.mubr.msk.f32.mxu1 %vm280_vm1, %v21779_v4 }
  0x5b   : > { %19232 = vmatmul.mubr.msk.f32.gmra.mrb[34].mxu0 %vm280_vm1, %v21862_v19  ;;  %v22216_v19 = vld [vmem:[%s21773_s7 + $0x559] sm:$0xff] }
  0x5c   : > { %18782 = vmatmul.mubr.msk.f32.gmra.mrb[34].mxu1 %vm280_vm1, %v21789_v6  ;;  %19234 = vmatprep.mubr.msk.f32.mxu0 %vm280_vm1, %v21868_v21  ;;  %v22222_v21 = vld [vmem:[%s21773_s7 + $0x589] sm:$0xff] }
  0x5d   : > { %18784 = vmatprep.mubr.msk.f32.mxu1 %vm280_vm1, %v21795_v8 }
  0x5f   : > { %19235 = vmatmul.mubr.msk.f32.gmra.mrb[36].mxu0 %vm280_vm1, %v21882_v23  ;;  %v22236_v23 = vld [vmem:[%s21773_s7 + $0x591] sm:$0xff] }
  0x60   : > { %18785 = vmatmul.mubr.msk.f32.gmra.mrb[36].mxu1 %vm280_vm1, %v21818_v12  ;;  %19237 = vmatprep.mubr.msk.f32.mxu0 %vm280_vm1, %v21888_v25  ;;  %v22242_v25 = vld [vmem:[%s21773_s7 + $0x5c1] sm:$0xff] }
  0x61   : > { %18787 = vmatprep.mubr.msk.f32.mxu1 %vm280_vm1, %v21827_v14  ;;  %v22186_v14 = vld [vmem:[%s21773_s7 + $0x3fc] sm:$0xff] }
  0x63   : > { %19238 = vmatmul.mubr.msk.f32.gmra.mrb[38].mxu0 %vm280_vm1, %v21902_v27  ;;  %v22256_v27 = vld [vmem:[%s21773_s7 + $0x5c9] sm:$0xff] }
  0x64   : > { %18788 = vmatmul.mubr.msk.f32.gmra.mrb[38].mxu1 %vm280_vm1, %v21845_v16  ;;  %19240 = vmatprep.mubr.msk.f32.mxu0 %vm280_vm1, %v21908_v29  ;;  %v22199_v16 = vld [vmem:[%s21773_s7 + $0x404] sm:$0xff]  ;;  %v22262_v29 = vld [vmem:[%s21773_s7 + $0x5f9] sm:$0xff] }
  0x65   : > { %18790 = vmatprep.mubr.msk.f32.mxu1 %vm280_vm1, %v21851_v18  ;;  %v22205_v18 = vld [vmem:[%s21773_s7 + $0x434] sm:$0xff] }
  0x67   : > { %19241 = vmatmul.mubr.msk.f32.gmra.mrb[40].mxu0 %vm280_vm1, %v21922_v31  ;;  %v22276_v31 = vld [vmem:[%s21773_s7 + $0x601] sm:$0xff] }
  0x68   : > { %18791 = vmatmul.mubr.msk.f32.gmra.mrb[40].mxu1 %vm280_vm1, %v21865_v20  ;;  %19243 = vmatprep.mubr.msk.f32.mxu0 %vm280_vm1, %v21928_v33  ;;  %v22219_v20 = vld [vmem:[%s21773_s7 + $0x43c] sm:$0xff]  ;;  %v22282_v33 = vld [vmem:[%s21773_s7 + $0x631] sm:$0xff] }
  0x69   : > { %18793 = vmatprep.mubr.msk.f32.mxu1 %vm280_vm1, %v21871_v22  ;;  %v22225_v22 = vld [vmem:[%s21773_s7 + $0x46c] sm:$0xff] }
  0x6b   : > { %19244 = vmatmul.mubr.msk.f32.gmra.mrb[42].mxu0 %vm280_vm1, %v21939_v35  ;;  %v22296_v35 = vld [vmem:[%s21773_s7 + $0x639] sm:$0xff] }
  0x6c   : > { %18794 = vmatmul.mubr.msk.f32.gmra.mrb[42].mxu1 %vm280_vm1, %v21885_v24  ;;  %19246 = vmatprep.mubr.msk.f32.mxu0 %vm280_vm1, %v21779_v4  ;;  %v15884_v4 = vld [vmem:[%s21773_s7 + $0x35c] sm:$0xff]  ;;  %v22239_v24 = vld [vmem:[%s21773_s7 + $0x474] sm:$0xff] }
  0x6d   : > { %18796 = vmatprep.mubr.msk.f32.mxu1 %vm280_vm1, %v21891_v26  ;;  %v22245_v26 = vld [vmem:[%s21773_s7 + $0x4a4] sm:$0xff] }
  0x6f   : > { %19247 = vmatmul.mubr.msk.f32.gmra.mrb[44].mxu0 %vm280_vm1, %v21789_v6  ;;  %v15885_v6 = vld [vmem:[%s21773_s7 + $0x38c] sm:$0xff] }
  0x70   : > { %18797 = vmatmul.mubr.msk.f32.gmra.mrb[44].mxu1 %vm280_vm1, %v21905_v28  ;;  %19249 = vmatprep.mubr.msk.f32.mxu0 %vm280_vm1, %v21795_v8  ;;  %v15886_v8 = vld [vmem:[%s21773_s7 + $0x394] sm:$0xff]  ;;  %v22259_v28 = vld [vmem:[%s21773_s7 + $0x4ac] sm:$0xff] }
  0x71   : > { %18799 = vmatprep.mubr.msk.f32.mxu1 %vm280_vm1, %v21911_v30  ;;  %v22265_v30 = vld [vmem:[%s21773_s7 + $0x4dc] sm:$0xff] }
  0x73   : > { %19250 = vmatmul.mubr.msk.f32.gmra.mrb[46].mxu0 %vm280_vm1, %v21818_v12  ;;  %v15888_v12 = vld [vmem:[%s21773_s7 + $0x3cc] sm:$0xff] }
  0x74   : > { %18800 = vmatmul.mubr.msk.f32.gmra.mrb[46].mxu1 %vm280_vm1, %v21925_v32  ;;  %19254 = vmatprep.mubr.msk.f32.mxu0 %vm280_vm1, %v15877_v52  ;;  %v22279_v32 = vld [vmem:[%s21773_s7 + $0x4e4] sm:$0xff]  ;;  %v22379_v52 = vld [vmem:[%s21773_s7 + $0x5fc] sm:$0xff] }
  0x75   : > { %18804 = vmatprep.mubr.msk.f32.mxu1 %vm280_vm1, %v15312_v51  ;;  %v22376_v51 = vld [vmem:[%s21773_s7 + $0x719] sm:$0xff] }
  0x76   : > { %26074 = vst [vmem:[#allocation9_spill] sm:$0xff] %v22376_v51 }
  0x77   : > { %19255 = vmatmul.mubr.msk.f32.vlgmr.msra.gmra.mrb[16].mxu0 %vm280_vm1, %v15878_v54  ;;  %v16009_v54 = vld [vmem:[%s21773_s7 + $0x2b8] sm:$0xff] }
  0x78   : > { %18805 = vmatmul.mubr.msk.f32.vlgmr.msra.gmra.mrb[16].mxu1 %vm280_vm1, %v15313_v53  ;;  %19257 = vmatprep.mubr.msk.f32.mxu0 %vm280_vm1, %v15879_v56  ;;  %v15443_v53 = vld [vmem:[%s21773_s7 + $0x3cb] sm:$0xff]  ;;  %v15444_v56 = vld [vmem:[%s21773_s7 + $0x3d3] sm:$0xff] }
  0x79   : > { %18853 = vmatpush3.msk.msra.mxu1 %vm377_vm0, %v21957_v42  ;;  %18807 = vmatprep.mubr.msk.f32.mxu1 %vm280_vm1, %v22096_v55  ;;  %v22325_v42 = vld [vmem:[%s21773_s7 + $0x584] sm:$0xff] }
  0x7a   : > { %19303 = vmatpush3.msk.msra.mxu0 %vm377_vm0, %v21962_v43  ;;  %18902 = vmatprep.subr.msk.mxu1 %vm377_vm0, %v22104_v57  ;;  %v22336_v43 = vld [vmem:[%s21773_s7 + $0x6a9] sm:$0xff] }
  0x7b   : > { %19352 = vmatprep.subr.msk.mxu0 %vm377_vm0, %v22109_v58  ;;  %19258 = vmatmul.mubr.msk.f32.gmra.mrb[18].mxu0 %vm280_vm1, %v15880_v60  ;;  %26070 = vst [vmem:[#allocation5_spill] sm:$0xff] %v22336_v43  ;;  %v16010_v60 = vld [vmem:[%s21773_s7 + $0x2c0] sm:$0xff] }
  0x7c   : > { %18808 = vmatmul.mubr.msk.f32.gmra.mrb[18].mxu1 %vm280_vm1, %v22116_v59  ;;  %19260 = vmatprep.mubr.msk.f32.mxu0 %vm280_vm1, %v15881_v62  ;;  %v22392_v62 = vld [vmem:[%s21773_s7 + $0x403] sm:$0xff] }
  0x7d   : > { %18810 = vmatprep.mubr.msk.f32.mxu1 %vm280_vm1, %v22123_v61  ;;  %26075 = vst [vmem:[#allocation10_spill] sm:$0xff] %v22392_v62 }
  0x7f   : > { %19261 = vmatmul.mubr.msk.f32.gmra.mrb[20].mxu0 %vm280_vm1, %v15882_v0  ;;  %v16011_v0 = vld [vmem:[%s21773_s7 + $0x2f0] sm:$0xff] }
  0x80   : > { %18811 = vmatmul.mubr.msk.f32.gmra.mrb[20].mxu1 %vm280_vm1, %v22137_v63  ;;  %19263 = vmatprep.mubr.msk.f32.mxu0 %vm280_vm1, %v15883_v2  ;;  %v22400_v2 = vld [vmem:[%s26007_s2 + $0x10] sm:$0xf] }
  0x81   : > { %18813 = vmatprep.mubr.msk.f32.mxu1 %vm280_vm1, %v22141_v1 }
  0x83   : > { %19264 = vmatmul.mubr.msk.f32.gmra.mrb[22].mxu0 %vm280_vm1, %v15884_v4  ;;  %v22405_v4 = vld [vmem:[%s26007_s2 + $0x34] sm:$0xf] }
  0x84   : > { %18814 = vmatmul.mubr.msk.f32.gmra.mrb[22].mxu1 %vm280_vm1, %v22151_v3  ;;  %19266 = vmatprep.mubr.msk.f32.mxu0 %vm280_vm1, %v15885_v6  ;;  %v22412_v6 = vld [vmem:[%s21773_s7 + $0x40b] sm:$0xff] }
  0x85   : > { %18816 = vmatprep.mubr.msk.f32.mxu1 %vm280_vm1, %v22155_v5  ;;  %26076 = vst [vmem:[#allocation11_spill] sm:$0xff] %v22412_v6 }
  0x87   : > { %19267 = vmatmul.mubr.msk.f32.gmra.mrb[24].mxu0 %vm280_vm1, %v15886_v8  ;;  %v16012_v8 = vld [vmem:[%s21773_s7 + $0x2f8] sm:$0xff] }
  0x88   : > { %18817 = vmatmul.mubr.msk.f32.gmra.mrb[24].mxu1 %vm280_vm1, %v22165_v7  ;;  %19269 = vmatprep.mubr.msk.f32.mxu0 %vm280_vm1, %v15887_v10  ;;  %v22419_v10 = vld [vmem:[%s21773_s7 + $0x43b] sm:$0xff] }
  0x89   : > { %18819 = vmatprep.mubr.msk.f32.mxu1 %vm280_vm1, %v22169_v9  ;;  %26077 = vst [vmem:[#allocation12_spill] sm:$0xff] %v22419_v10 }
  0x8b   : > { %19270 = vmatmul.mubr.msk.f32.gmra.mrb[26].mxu0 %vm280_vm1, %v15888_v12  ;;  %v16013_v12 = vld [vmem:[%s21773_s7 + $0x328] sm:$0xff] }
  0x8c   : > { %18820 = vmatmul.mubr.msk.f32.gmra.mrb[26].mxu1 %vm280_vm1, %v22179_v11  ;;  %19272 = vmatprep.mubr.msk.f32.mxu0 %vm280_vm1, %v22186_v14 }
  0x8d   : > { %18822 = vmatprep.mubr.msk.f32.mxu1 %vm280_vm1, %v22183_v13 }
  0x8f   : > { %19273 = vmatmul.mubr.msk.f32.gmra.mrb[28].mxu0 %vm280_vm1, %v22199_v16 }
  0x90   : > { %18823 = vmatmul.mubr.msk.f32.gmra.mrb[28].mxu1 %vm280_vm1, %v22196_v15  ;;  %19275 = vmatprep.mubr.msk.f32.mxu0 %vm280_vm1, %v22205_v18 }
  0x91   : > { %18825 = vmatprep.mubr.msk.f32.mxu1 %vm280_vm1, %v22202_v17 }
  0x93   : > { %19276 = vmatmul.mubr.msk.f32.gmra.mrb[30].mxu0 %vm280_vm1, %v22219_v20 }
  0x94   : > { %18826 = vmatmul.mubr.msk.f32.gmra.mrb[30].mxu1 %vm280_vm1, %v22216_v19  ;;  %19278 = vmatprep.mubr.msk.f32.mxu0 %vm280_vm1, %v22225_v22 }
  0x95   : > { %18828 = vmatprep.mubr.msk.f32.mxu1 %vm280_vm1, %v22222_v21 }
  0x97   : > { %19279 = vmatmul.mubr.msk.f32.gmra.mrb[32].mxu0 %vm280_vm1, %v22239_v24 }
  0x98   : > { %18829 = vmatmul.mubr.msk.f32.gmra.mrb[32].mxu1 %vm280_vm1, %v22236_v23  ;;  %19281 = vmatprep.mubr.msk.f32.mxu0 %vm280_vm1, %v22245_v26 }
  0x99   : > { %18831 = vmatprep.mubr.msk.f32.mxu1 %vm280_vm1, %v22242_v25 }
  0x9b   : > { %19282 = vmatmul.mubr.msk.f32.gmra.mrb[34].mxu0 %vm280_vm1, %v22259_v28 }
  0x9c   : > { %18832 = vmatmul.mubr.msk.f32.gmra.mrb[34].mxu1 %vm280_vm1, %v22256_v27  ;;  %19284 = vmatprep.mubr.msk.f32.mxu0 %vm280_vm1, %v22265_v30 }
  0x9d   : > { %18834 = vmatprep.mubr.msk.f32.mxu1 %vm280_vm1, %v22262_v29 }
  0x9f   : > { %19285 = vmatmul.mubr.msk.f32.gmra.mrb[36].mxu0 %vm280_vm1, %v22279_v32 }
  0xa0   : > { %18835 = vmatmul.mubr.msk.f32.gmra.mrb[36].mxu1 %vm280_vm1, %v22276_v31  ;;  %19287 = vmatprep.mubr.msk.f32.mxu0 %vm280_vm1, %v22285_v34 }
  0xa1   : > { %18837 = vmatprep.mubr.msk.f32.mxu1 %vm280_vm1, %v22282_v33 }
  0xa3   : > { %19288 = vmatmul.mubr.msk.f32.gmra.mrb[38].mxu0 %vm280_vm1, %v22299_v36 }
  0xa4   : > { %18838 = vmatmul.mubr.msk.f32.gmra.mrb[38].mxu1 %vm280_vm1, %v22296_v35  ;;  %19290 = vmatprep.mubr.msk.f32.mxu0 %vm280_vm1, %v22305_v38 }
  0xa5   : > { %18840 = vmatprep.mubr.msk.f32.mxu1 %vm280_vm1, %v22302_v37 }
  0xa7   : > { %19291 = vmatmul.mubr.msk.f32.gmra.mrb[40].mxu0 %vm280_vm1, %v22319_v40 }
  0xa8   : > { %18841 = vmatmul.mubr.msk.f32.gmra.mrb[40].mxu1 %vm280_vm1, %v22316_v39  ;;  %19293 = vmatprep.mubr.msk.f32.mxu0 %vm280_vm1, %v22325_v42 }
  0xa9   : > { %18843 = vmatprep.mubr.msk.f32.mxu1 %vm280_vm1, %v22322_v41 }
  0xab   : > { %19294 = vmatmul.mubr.msk.f32.gmra.mrb[42].mxu0 %vm280_vm1, %v22339_v44 }
  0xac   : > { %18844 = vmatmul.mubr.msk.f32.gmra.mrb[42].mxu1 %vm280_vm1, %v22336_v43  ;;  %19296 = vmatprep.mubr.msk.f32.mxu0 %vm280_vm1, %v22345_v46 }
  0xad   : > { %18846 = vmatprep.mubr.msk.f32.mxu1 %vm280_vm1, %v22342_v45  ;;  %v22681_v45 = vld [vmem:[%s21773_s7 + $0x600] sm:$0xff] }
  0xae   : > { %26122 = vst [vmem:[#allocation57_spill] sm:$0xff] %v22681_v45 }
  0xaf   : > { %19297 = vmatmul.mubr.msk.f32.gmra.mrb[44].mxu0 %vm280_vm1, %v22359_v48 }
  0xb0   : > { %18847 = vmatmul.mubr.msk.f32.gmra.mrb[44].mxu1 %vm280_vm1, %v22356_v47  ;;  %19299 = vmatprep.mubr.msk.f32.mxu0 %vm280_vm1, %v22365_v50  ;;  %v22678_v47 = vld [vmem:[%s21773_s7 + $0x713] sm:$0xff] }
  0xb1   : > { %18849 = vmatprep.mubr.msk.f32.mxu1 %vm280_vm1, %v22362_v49  ;;  %26121 = vst [vmem:[#allocation56_spill] sm:$0xff] %v22678_v47 }
  0xb3   : > { %19300 = vmatmul.mubr.msk.f32.gmra.mrb[46].mxu0 %vm280_vm1, %v22379_v52 }
  0xb4   : > { %18850 = vmatmul.mubr.msk.f32.gmra.mrb[46].mxu1 %vm280_vm1, %v22376_v51  ;;  %19304 = vmatprep.mubr.msk.f32.mxu0 %vm280_vm1, %v16009_v54  ;;  %v16015_v54 = vld [vmem:[%s21773_s7 + $0x360] sm:$0xff] }
  0xb5   : > { %18854 = vmatprep.mubr.msk.f32.mxu1 %vm280_vm1, %v15443_v53  ;;  %v22437_v53 = vld [vmem:[%s21773_s7 + $0x473] sm:$0xff] }
  0xb6   : > { %26079 = vst [vmem:[#allocation14_spill] sm:$0xff] %v22437_v53 }
  0xb7   : > { %19305 = vmatmul.mubr.msk.f32.vlgmr.msra.gmra.mrb[16].mxu0 %vm280_vm1, %v16010_v60  ;;  %v16016_v60 = vld [vmem:[%s21773_s7 + $0x368] sm:$0xff] }
  0xb8   : > { %18855 = vmatmul.mubr.msk.f32.vlgmr.msra.gmra.mrb[16].mxu1 %vm280_vm1, %v15444_v56  ;;  %19307 = vmatprep.mubr.msk.f32.mxu0 %vm280_vm1, %v16011_v0  ;;  %v22447_v56 = vld [vmem:[%s21773_s7 + $0x47b] sm:$0xff]  ;;  %v22451_v0 = vld [vmem:[%s21773_s7 + $0x4ab] sm:$0xff] }
  0xb9   : > { %18903 = vmatpush3.msk.msra.mxu1 %vm377_vm0, %v22104_v57  ;;  %18857 = vmatprep.mubr.msk.f32.mxu1 %vm280_vm1, %v22392_v62  ;;  %v22433_v57 = vld [vmem:[%s21773_s7 + $0x443] sm:$0xff]  ;;  %26080 = vst [vmem:[#allocation15_spill] sm:$0xff] %v22447_v56  ;;  %26081 = vst [vmem:[#allocation16_spill] sm:$0xff] %v22451_v0 }
  0xba   : > { %19353 = vmatpush3.msk.msra.mxu0 %vm377_vm0, %v22109_v58  ;;  %18952 = vmatprep.subr.msk.mxu1 %vm377_vm0, %v22400_v2  ;;  %26078 = vst [vmem:[#allocation13_spill] sm:$0xff] %v22433_v57  ;;  %v16014_v58 = vld [vmem:[%s21773_s7 + $0x330] sm:$0xff] }
  0xbb   : > { %19402 = vmatprep.subr.msk.mxu0 %vm377_vm0, %v22405_v4  ;;  %19308 = vmatmul.mubr.msk.f32.gmra.mrb[18].mxu0 %vm280_vm1, %v16012_v8  ;;  %v16017_v8 = vld [vmem:[%s21773_s7 + $0x398] sm:$0xff] }
  0xbc   : > { %18858 = vmatmul.mubr.msk.f32.gmra.mrb[18].mxu1 %vm280_vm1, %v22412_v6  ;;  %19310 = vmatprep.mubr.msk.f32.mxu0 %vm280_vm1, %v16013_v12  ;;  %v22461_v12 = vld [vmem:[%s21773_s7 + $0x4b3] sm:$0xff] }
  0xbd   : > { %18860 = vmatprep.mubr.msk.f32.mxu1 %vm280_vm1, %v22419_v10  ;;  %26082 = vst [vmem:[#allocation17_spill] sm:$0xff] %v22461_v12  ;;  %v22541_v10 = vld [vmem:[%s21773_s7 + $0x4b0] sm:$0xff] }
  0xbe   : > { %26098 = vst [vmem:[#allocation33_spill] sm:$0xff] %v22541_v10 }
  0xbf   : > { %19311 = vmatmul.mubr.msk.f32.gmra.mrb[20].mxu0 %vm280_vm1, %v16014_v58  ;;  %v16018_v58 = vld [vmem:[%s21773_s7 + $0x3a0] sm:$0xff] }
  0xc0   : > { %18861 = vmatmul.mubr.msk.f32.gmra.mrb[20].mxu1 %vm280_vm1, %v22433_v57  ;;  %19313 = vmatprep.mubr.msk.f32.mxu0 %vm280_vm1, %v16015_v54  ;;  %v22465_v54 = vld [vmem:[%s21773_s7 + $0x4e3] sm:$0xff]  ;;  %v22521_v57 = vld [vmem:[%s21773_s7 + $0x478] sm:$0xff] }
  0xc1   : > { %18863 = vmatprep.mubr.msk.f32.mxu1 %vm280_vm1, %v22437_v53  ;;  %26083 = vst [vmem:[#allocation18_spill] sm:$0xff] %v22465_v54  ;;  %v16019_v53 = vld [vmem:[%s21773_s7 + $0x3d0] sm:$0xff]  ;;  %26094 = vst [vmem:[#allocation29_spill] sm:$0xff] %v22521_v57 }
  0xc3   : > { %19314 = vmatmul.mubr.msk.f32.gmra.mrb[22].mxu0 %vm280_vm1, %v16016_v60  ;;  %v22475_v60 = vld [vmem:[%s21773_s7 + $0x4eb] sm:$0xff] }
  0xc4   : > { %18864 = vmatmul.mubr.msk.f32.gmra.mrb[22].mxu1 %vm280_vm1, %v22447_v56  ;;  %19316 = vmatprep.mubr.msk.f32.mxu0 %vm280_vm1, %v16017_v8  ;;  %26084 = vst [vmem:[#allocation19_spill] sm:$0xff] %v22475_v60  ;;  %v16020_v8 = vld [vmem:[%s21773_s7 + $0x3d8] sm:$0xff]  ;;  %v22482_v56 = vld [vmem:[%s21773_s7 + $0x408] sm:$0xff] }
  0xc5   : > { %18866 = vmatprep.mubr.msk.f32.mxu1 %vm280_vm1, %v22451_v0  ;;  %v22479_v0 = vld [vmem:[%s21773_s7 + $0x51b] sm:$0xff]  ;;  %26086 = vst [vmem:[#allocation21_spill] sm:$0xff] %v22482_v56 }
  0xc6   : > { %26085 = vst [vmem:[#allocation20_spill] sm:$0xff] %v22479_v0 }
  0xc7   : > { %19317 = vmatmul.mubr.msk.f32.gmra.mrb[24].mxu0 %vm280_vm1, %v16018_v58  ;;  %v22495_v58 = vld [vmem:[%s21773_s7 + $0x410] sm:$0xff] }
  0xc8   : > { %18867 = vmatmul.mubr.msk.f32.gmra.mrb[24].mxu1 %vm280_vm1, %v22461_v12  ;;  %19319 = vmatprep.mubr.msk.f32.mxu0 %vm280_vm1, %v16019_v53  ;;  %v22492_v53 = vld [vmem:[%s21773_s7 + $0x523] sm:$0xff]  ;;  %26088 = vst [vmem:[#allocation23_spill] sm:$0xff] %v22495_v58 }
  0xc9   : > { %18869 = vmatprep.mubr.msk.f32.mxu1 %vm280_vm1, %v22465_v54  ;;  %26087 = vst [vmem:[#allocation22_spill] sm:$0xff] %v22492_v53  ;;  %v22498_v54 = vld [vmem:[%s21773_s7 + $0x553] sm:$0xff]  ;;  %v22501_v12 = vld [vmem:[%s21773_s7 + $0x440] sm:$0xff] }
  0xca   : > { %26089 = vst [vmem:[#allocation24_spill] sm:$0xff] %v22498_v54  ;;  %26090 = vst [vmem:[#allocation25_spill] sm:$0xff] %v22501_v12 }
  0xcb   : > { %19320 = vmatmul.mubr.msk.f32.gmra.mrb[26].mxu0 %vm280_vm1, %v16020_v8  ;;  %v22512_v8 = vld [vmem:[%s21773_s7 + $0x55b] sm:$0xff] }
  0xcc   : > { %18870 = vmatmul.mubr.msk.f32.gmra.mrb[26].mxu1 %vm280_vm1, %v22475_v60  ;;  %19322 = vmatprep.mubr.msk.f32.mxu0 %vm280_vm1, %v22482_v56  ;;  %26091 = vst [vmem:[#allocation26_spill] sm:$0xff] %v22512_v8  ;;  %v22518_v60 = vld [vmem:[%s21773_s7 + $0x58b] sm:$0xff] }
  0xcd   : > { %18872 = vmatprep.mubr.msk.f32.mxu1 %vm280_vm1, %v22479_v0  ;;  %v22515_v0 = vld [vmem:[%s21773_s7 + $0x448] sm:$0xff]  ;;  %26093 = vst [vmem:[#allocation28_spill] sm:$0xff] %v22518_v60 }
  0xce   : > { %26092 = vst [vmem:[#allocation27_spill] sm:$0xff] %v22515_v0 }
  0xcf   : > { %19323 = vmatmul.mubr.msk.f32.gmra.mrb[28].mxu0 %vm280_vm1, %v22495_v58  ;;  %v22654_v58 = vld [vmem:[%s26009_s4] ss:$0 sm:$0xff] }
  0xd0   : > { %18873 = vmatmul.mubr.msk.f32.gmra.mrb[28].mxu1 %vm280_vm1, %v22492_v53  ;;  %19325 = vmatprep.mubr.msk.f32.mxu0 %vm280_vm1, %v22501_v12  ;;  %v22535_v53 = vld [vmem:[%s21773_s7 + $0x480] sm:$0xff] }
  0xd1   : > { %18875 = vmatprep.mubr.msk.f32.mxu1 %vm280_vm1, %v22498_v54  ;;  %v22532_v54 = vld [vmem:[%s21773_s7 + $0x593] sm:$0xff]  ;;  %26096 = vst [vmem:[#allocation31_spill] sm:$0xff] %v22535_v53  ;;  %v22538_v12 = vld [vmem:[%s21773_s7 + $0x5c3] sm:$0xff] }
  0xd2   : > { %26095 = vst [vmem:[#allocation30_spill] sm:$0xff] %v22532_v54  ;;  %26097 = vst [vmem:[#allocation32_spill] sm:$0xff] %v22538_v12 }
  0xd3   : > { %19326 = vmatmul.mubr.msk.f32.gmra.mrb[30].mxu0 %vm280_vm1, %v22515_v0  ;;  %v22561_v0 = vld [vmem:[%s21773_s7 + $0x4e8] sm:$0xff] }
  0xd4   : > { %18876 = vmatmul.mubr.msk.f32.gmra.mrb[30].mxu1 %vm280_vm1, %v22512_v8  ;;  %19328 = vmatprep.mubr.msk.f32.mxu0 %vm280_vm1, %v22521_v57  ;;  %v22555_v8 = vld [vmem:[%s21773_s7 + $0x4b8] sm:$0xff]  ;;  %26102 = vst [vmem:[#allocation37_spill] sm:$0xff] %v22561_v0 }
  0xd5   : > { %18878 = vmatprep.mubr.msk.f32.mxu1 %vm280_vm1, %v22518_v60  ;;  %v22552_v60 = vld [vmem:[%s21773_s7 + $0x5cb] sm:$0xff]  ;;  %26100 = vst [vmem:[#allocation35_spill] sm:$0xff] %v22555_v8  ;;  %v22558_v57 = vld [vmem:[%s21773_s7 + $0x5fb] sm:$0xff] }
  0xd6   : > { %26099 = vst [vmem:[#allocation34_spill] sm:$0xff] %v22552_v60  ;;  %26101 = vst [vmem:[#allocation36_spill] sm:$0xff] %v22558_v57 }
  0xd7   : > { %19329 = vmatmul.mubr.msk.f32.gmra.mrb[32].mxu0 %vm280_vm1, %v22535_v53  ;;  %v22581_v53 = vld [vmem:[%s21773_s7 + $0x520] sm:$0xff] }
  0xd8   : > { %18879 = vmatmul.mubr.msk.f32.gmra.mrb[32].mxu1 %vm280_vm1, %v22532_v54  ;;  %19331 = vmatprep.mubr.msk.f32.mxu0 %vm280_vm1, %v22541_v10  ;;  %v22575_v54 = vld [vmem:[%s21773_s7 + $0x4f0] sm:$0xff]  ;;  %26106 = vst [vmem:[#allocation41_spill] sm:$0xff] %v22581_v53 }
  0xd9   : > { %18881 = vmatprep.mubr.msk.f32.mxu1 %vm280_vm1, %v22538_v12  ;;  %v22572_v12 = vld [vmem:[%s21773_s7 + $0x603] sm:$0xff]  ;;  %26104 = vst [vmem:[#allocation39_spill] sm:$0xff] %v22575_v54  ;;  %v22578_v10 = vld [vmem:[%s21773_s7 + $0x633] sm:$0xff] }
  0xda   : > { %26103 = vst [vmem:[#allocation38_spill] sm:$0xff] %v22572_v12  ;;  %26105 = vst [vmem:[#allocation40_spill] sm:$0xff] %v22578_v10 }
  0xdb   : > { %19332 = vmatmul.mubr.msk.f32.gmra.mrb[34].mxu0 %vm280_vm1, %v22555_v8  ;;  %v22602_v8 = vld [vmem:[%s21773_s7 + $0x558] sm:$0xff] }
  0xdc   : > { %18882 = vmatmul.mubr.msk.f32.gmra.mrb[34].mxu1 %vm280_vm1, %v22552_v60  ;;  %19334 = vmatprep.mubr.msk.f32.mxu0 %vm280_vm1, %v22561_v0  ;;  %v22595_v60 = vld [vmem:[%s21773_s7 + $0x528] sm:$0xff]  ;;  %26110 = vst [vmem:[#allocation45_spill] sm:$0xff] %v22602_v8 }
  0xdd   : > { %18884 = vmatprep.mubr.msk.f32.mxu1 %vm280_vm1, %v22558_v57  ;;  %v22592_v57 = vld [vmem:[%s21773_s7 + $0x63b] sm:$0xff]  ;;  %26108 = vst [vmem:[#allocation43_spill] sm:$0xff] %v22595_v60  ;;  %v22599_v0 = vld [vmem:[%s21773_s7 + $0x66b] sm:$0xff] }
  0xde   : > { %26107 = vst [vmem:[#allocation42_spill] sm:$0xff] %v22592_v57  ;;  %26109 = vst [vmem:[#allocation44_spill] sm:$0xff] %v22599_v0 }
  0xdf   : > { %19335 = vmatmul.mubr.msk.f32.gmra.mrb[36].mxu0 %vm280_vm1, %v22575_v54 }
  0xe0   : > { %18885 = vmatmul.mubr.msk.f32.gmra.mrb[36].mxu1 %vm280_vm1, %v22572_v12  ;;  %19337 = vmatprep.mubr.msk.f32.mxu0 %vm280_vm1, %v22581_v53  ;;  %v22616_v12 = vld [vmem:[%s21773_s7 + $0x560] sm:$0xff] }
  0xe1   : > { %18887 = vmatprep.mubr.msk.f32.mxu1 %vm280_vm1, %v22578_v10  ;;  %v22613_v10 = vld [vmem:[%s21773_s7 + $0x673] sm:$0xff]  ;;  %26112 = vst [vmem:[#allocation47_spill] sm:$0xff] %v22616_v12  ;;  %v22619_v53 = vld [vmem:[%s21773_s7 + $0x6a3] sm:$0xff] }
  0xe2   : > { %26111 = vst [vmem:[#allocation46_spill] sm:$0xff] %v22613_v10  ;;  %26113 = vst [vmem:[#allocation48_spill] sm:$0xff] %v22619_v53 }
  0xe3   : > { %19338 = vmatmul.mubr.msk.f32.gmra.mrb[38].mxu0 %vm280_vm1, %v22595_v60  ;;  %v22646_v60 = vld [vmem:[%s21773_s7 + $0x6db] sm:$0xff] }
  0xe4   : > { %18888 = vmatmul.mubr.msk.f32.gmra.mrb[38].mxu1 %vm280_vm1, %v22592_v57  ;;  %19340 = vmatprep.mubr.msk.f32.mxu0 %vm280_vm1, %v22602_v8  ;;  %v22622_v57 = vld [vmem:[%s21773_s7 + $0x590] sm:$0xff]  ;;  %26117 = vst [vmem:[#allocation52_spill] sm:$0xff] %v22646_v60 }
  0xe5   : > { %18890 = vmatprep.mubr.msk.f32.mxu1 %vm280_vm1, %v22599_v0  ;;  %26114 = vst [vmem:[#allocation49_spill] sm:$0xff] %v22622_v57  ;;  %v22633_v0 = vld [vmem:[%s26008_s3] ss:$0 sm:$0xff]  ;;  %v22640_v8 = vld [vmem:[%s21773_s7 + $0x6ab] sm:$0xff] }
  0xe6   : > { %26115 = vst [vmem:[#allocation50_spill] sm:$0xff] %v22640_v8 }
  0xe7   : > { %19341 = vmatmul.mubr.msk.f32.gmra.mrb[40].mxu0 %vm280_vm1, %v22616_v12  ;;  %v22649_v12 = vld [vmem:[%s21773_s7 + $0x5c8] sm:$0xff] }
  0xe8   : > { %18891 = vmatmul.mubr.msk.f32.gmra.mrb[40].mxu1 %vm280_vm1, %v22613_v10  ;;  %19343 = vmatprep.mubr.msk.f32.mxu0 %vm280_vm1, %v22622_v57  ;;  %v22643_v10 = vld [vmem:[%s21773_s7 + $0x598] sm:$0xff]  ;;  %26118 = vst [vmem:[#allocation53_spill] sm:$0xff] %v22649_v12 }
  0xe9   : > { %18893 = vmatprep.mubr.msk.f32.mxu1 %vm280_vm1, %v22619_v53  ;;  %26116 = vst [vmem:[#allocation51_spill] sm:$0xff] %v22643_v10 }
  0xea   : > { %v18706_v53 = vpop.f32.mrb[0].mxu0 }
  0xeb   : > { %v18730_v54 = vpop.f32.mrb[0].mxu1  ;;  %19344 = vmatmul.mubr.msk.f32.gmra.mrb[42].mxu0 %vm280_vm1, %v22643_v10  ;;  %v614_v56 = vmul.f32 %v18706_v53, %v22633_v0  ;;  %v447_v62 = vpop.f32.mrb[1].mxu0 }
  0xec   : > { %v630_v57 = vmul.f32 %v18730_v54, %v22633_v0  ;;  %v527_v6 = vpop.f32.mrb[1].mxu1  ;;  %18894 = vmatmul.mubr.msk.f32.gmra.mrb[42].mxu1 %vm280_vm1, %v22640_v8  ;;  %v613_v49 = vmul.f32 %v22633_v0, %v447_v62  ;;  %19346 = vmatprep.mubr.msk.f32.mxu0 %vm280_vm1, %v22649_v12  ;;  %v22670_v54 = vld [vmem:[%s21773_s7 + $0x6e3] sm:$0xff]  ;;  %v22673_v8 = vld [vmem:[%s21773_s7 + $0x5d0] sm:$0xff] }
  0xed   : > { %v629_v51 = vmul.f32 %v22633_v0, %v527_v6  ;;  %18896 = vmatprep.mubr.msk.f32.mxu1 %vm280_vm1, %v22646_v60  ;;  %26119 = vst [vmem:[#allocation54_spill] sm:$0xff] %v22670_v54  ;;  %26120 = vst [vmem:[#allocation55_spill] sm:$0xff] %v22673_v8  ;;  %v653_v53 = vadd.f32 %v22654_v58, %v614_v56 }
  0xee   : > { %v669_v10 = vadd.f32 %v22654_v58, %v630_v57  ;;  %v652_v6 = vadd.f32 %v22654_v58, %v613_v49  ;;  %v18709_v43 = vpop.f32.mrb[2].mxu0 }
  0xef   : > { %v668_v62 = vadd.f32 %v22654_v58, %v629_v51  ;;  %v18733_v60 = vpop.f32.mrb[2].mxu1  ;;  %v685_v56 = vmax.f32 %v653_v53, 0.0  ;;  %19347 = vmatmul.mubr.msk.f32.gmra.mrb[44].mxu0 %vm280_vm1, %v22673_v8  ;;  %v616_v49 = vmul.f32 %v18709_v43, %v22633_v0  ;;  %v457_v51 = vpop.f32.mrb[3].mxu0  ;;  %v22703_v53 = vld [vmem:[%s21773_s7 + $0x71b] sm:$0xff] }
  0xf0   : > { %v701_v57 = vmax.f32 %v669_v10, 0.0  ;;  %v632_v12 = vmul.f32 %v18733_v60, %v22633_v0  ;;  %v537_v41 = vpop.f32.mrb[3].mxu1  ;;  %18897 = vmatmul.mubr.msk.f32.gmra.mrb[44].mxu1 %vm280_vm1, %v22670_v54  ;;  %v684_v37 = vmax.f32 %v652_v6, 0.0  ;;  %v615_v60 = vmul.f32 %v22633_v0, %v457_v51  ;;  %19349 = vmatprep.mubr.msk.f32.mxu0 %vm280_vm1, %v22681_v45  ;;  %v22706_v54 = vld [vmem:[%s21773_s7 + $0x608] sm:$0xff] }
  0xf1   : > { %v700_v39 = vmax.f32 %v668_v62, 0.0  ;;  %v631_v10 = vmul.f32 %v22633_v0, %v537_v41  ;;  %18899 = vmatprep.mubr.msk.f32.mxu1 %vm280_vm1, %v22678_v47  ;;  %v655_v62 = vadd.f32 %v22654_v58, %v616_v49  ;;  %718 = vst.msk [vmem:[%s22688_s11 + $0x8] sm:$0xff] %vm716_vm2, %v685_v56 }
  0xf2   : > { %v671_v43 = vadd.f32 %v22654_v58, %v632_v12  ;;  %734 = vst.msk [vmem:[%s22688_s11 + $0x88] sm:$0xff] %vm716_vm2, %v701_v57  ;;  %v654_v6 = vadd.f32 %v22654_v58, %v615_v60  ;;  %v18712_v47 = vpop.f32.mrb[4].mxu0  ;;  %717 = vst.msk [vmem:[%s22688_s11] sm:$0xff] %vm716_vm2, %v684_v37 }
  0xf3   : > { %v670_v41 = vadd.f32 %v22654_v58, %v631_v10  ;;  %v18736_v51 = vpop.f32.mrb[4].mxu1  ;;  %733 = vst.msk [vmem:[%s22688_s11 + $0x80] sm:$0xff] %vm716_vm2, %v700_v39  ;;  %v687_v8 = vmax.f32 %v655_v62, 0.0  ;;  %19350 = vmatmul.mubr.msk.f32.gmra.mrb[46].mxu0 %vm280_vm1, %v22706_v54  ;;  %v618_v57 = vmul.f32 %v18712_v47, %v22633_v0  ;;  %v467_v56 = vpop.f32.mrb[5].mxu0 }
  0xf4   : > { %v703_v45 = vmax.f32 %v671_v43, 0.0  ;;  %v634_v12 = vmul.f32 %v18736_v51, %v22633_v0  ;;  %v547_v49 = vpop.f32.mrb[5].mxu1  ;;  %18900 = vmatmul.mubr.msk.f32.gmra.mrb[46].mxu1 %vm280_vm1, %v22703_v53  ;;  %v686_v39 = vmax.f32 %v654_v6, 0.0  ;;  %v617_v60 = vmul.f32 %v22633_v0, %v467_v56  ;;  %19354 = vmatprep.mubr.msk.f32.mxu0 %vm280_vm1, %v22186_v14  ;;  %v22758_v56 = vld [vmem:[%s26007_s2 + $0x38] sm:$0xf] }
  0xf5   : > { %v702_v37 = vmax.f32 %v670_v41, 0.0  ;;  %v633_v10 = vmul.f32 %v22633_v0, %v547_v49  ;;  %18904 = vmatprep.mubr.msk.f32.mxu1 %vm280_vm1, %v22096_v55  ;;  %v657_v62 = vadd.f32 %v22654_v58, %v618_v57  ;;  %720 = vst.msk [vmem:[%s22688_s11 + $0x18] sm:$0xff] %vm716_vm2, %v687_v8  ;;  %v22743_v55 = vld [vmem:[%s26007_s2 + $0x14] sm:$0xf] }
  0xf6   : > { %v673_v43 = vadd.f32 %v22654_v58, %v634_v12  ;;  %736 = vst.msk [vmem:[%s22688_s11 + $0x98] sm:$0xff] %vm716_vm2, %v703_v45  ;;  %v656_v41 = vadd.f32 %v22654_v58, %v617_v60  ;;  %v18715_v51 = vpop.f32.mrb[6].mxu0  ;;  %719 = vst.msk [vmem:[%s22688_s11 + $0x10] sm:$0xff] %vm716_vm2, %v686_v39 }
  0xf7   : > { %v672_v47 = vadd.f32 %v22654_v58, %v633_v10  ;;  %v18739_v6 = vpop.f32.mrb[6].mxu1  ;;  %735 = vst.msk [vmem:[%s22688_s11 + $0x90] sm:$0xff] %vm716_vm2, %v702_v37  ;;  %v689_v12 = vmax.f32 %v657_v62, 0.0  ;;  %19355 = vmatmul.mubr.msk.f32.vlgmr.msra.gmra.mrb[16].mxu0 %vm280_vm1, %v22199_v16  ;;  %v620_v49 = vmul.f32 %v18715_v51, %v22633_v0  ;;  %v477_v57 = vpop.f32.mrb[7].mxu0 }
  0xf8   : > { %v705_v14 = vmax.f32 %v673_v43, 0.0  ;;  %v636_v8 = vmul.f32 %v18739_v6, %v22633_v0  ;;  %v557_v45 = vpop.f32.mrb[7].mxu1  ;;  %18905 = vmatmul.mubr.msk.f32.vlgmr.msra.gmra.mrb[16].mxu1 %vm280_vm1, %v22116_v59  ;;  %v688_v39 = vmax.f32 %v656_v41, 0.0  ;;  %v619_v59 = vmul.f32 %v22633_v0, %v477_v57  ;;  %19357 = vmatprep.mubr.msk.f32.mxu0 %vm280_vm1, %v22205_v18 }
  0xf9   : > { %v704_v37 = vmax.f32 %v672_v47, 0.0  ;;  %v635_v10 = vmul.f32 %v22633_v0, %v557_v45  ;;  %18953 = vmatpush3.msk.msra.mxu1 %vm377_vm0, %v22400_v2  ;;  %18907 = vmatprep.mubr.msk.f32.mxu1 %vm280_vm1, %v22123_v61  ;;  %v659_v60 = vadd.f32 %v22654_v58, %v620_v49  ;;  %722 = vst.msk [vmem:[%s22688_s11 + $0x28] sm:$0xff] %vm716_vm2, %v689_v12 }
  0xfa   : > { %v675_v16 = vadd.f32 %v22654_v58, %v636_v8  ;;  %19403 = vmatpush3.msk.msra.mxu0 %vm377_vm0, %v22405_v4  ;;  %738 = vst.msk [vmem:[%s22688_s11 + $0xa8] sm:$0xff] %vm716_vm2, %v705_v14  ;;  %v658_v43 = vadd.f32 %v22654_v58, %v619_v59  ;;  %v18718_v61 = vpop.f32.mrb[8].mxu0  ;;  %19002 = vmatprep.subr.msk.mxu1 %vm377_vm0, %v22743_v55  ;;  %721 = vst.msk [vmem:[%s22688_s11 + $0x20] sm:$0xff] %vm716_vm2, %v688_v39 }
  0xfb   : > { %v674_v2 = vadd.f32 %v22654_v58, %v635_v10  ;;  %v18742_v62 = vpop.f32.mrb[8].mxu1  ;;  %19452 = vmatprep.subr.msk.mxu0 %vm377_vm0, %v22758_v56  ;;  %737 = vst.msk [vmem:[%s22688_s11 + $0xa0] sm:$0xff] %vm716_vm2, %v704_v37  ;;  %v691_v4 = vmax.f32 %v659_v60, 0.0  ;;  %19358 = vmatmul.mubr.msk.f32.gmra.mrb[18].mxu0 %vm280_vm1, %v22219_v20  ;;  %v622_v6 = vmul.f32 %v18718_v61, %v22633_v0  ;;  %v487_v51 = vpop.f32.mrb[9].mxu0 }
  0xfc   : > { %v707_v18 = vmax.f32 %v675_v16, 0.0  ;;  %v638_v47 = vmul.f32 %v18742_v62, %v22633_v0  ;;  %v567_v41 = vpop.f32.mrb[9].mxu1  ;;  %18908 = vmatmul.mubr.msk.f32.gmra.mrb[18].mxu1 %vm280_vm1, %v22137_v63  ;;  %v690_v12 = vmax.f32 %v658_v43, 0.0  ;;  %v621_v45 = vmul.f32 %v22633_v0, %v487_v51  ;;  %19360 = vmatprep.mubr.msk.f32.mxu0 %vm280_vm1, %v22225_v22 }
  0xfd   : > { %v706_v14 = vmax.f32 %v674_v2, 0.0  ;;  %v637_v8 = vmul.f32 %v22633_v0, %v567_v41  ;;  %18910 = vmatprep.mubr.msk.f32.mxu1 %vm280_vm1, %v22141_v1  ;;  %v661_v20 = vadd.f32 %v22654_v58, %v622_v6  ;;  %724 = vst.msk [vmem:[%s22688_s11 + $0x38] sm:$0xff] %vm716_vm2, %v691_v4 }
  0xfe   : > { %v677_v63 = vadd.f32 %v22654_v58, %v638_v47  ;;  %740 = vst.msk [vmem:[%s22688_s11 + $0xb8] sm:$0xff] %vm716_vm2, %v707_v18  ;;  %v660_v57 = vadd.f32 %v22654_v58, %v621_v45  ;;  %v18721_v39 = vpop.f32.mrb[10].mxu0  ;;  %723 = vst.msk [vmem:[%s22688_s11 + $0x30] sm:$0xff] %vm716_vm2, %v690_v12 }
  0xff   : > { %v676_v49 = vadd.f32 %v22654_v58, %v637_v8  ;;  %v18745_v37 = vpop.f32.mrb[10].mxu1  ;;  %739 = vst.msk [vmem:[%s22688_s11 + $0xb0] sm:$0xff] %vm716_vm2, %v706_v14  ;;  %v693_v22 = vmax.f32 %v661_v20, 0.0  ;;  %19361 = vmatmul.mubr.msk.f32.gmra.mrb[20].mxu0 %vm280_vm1, %v22239_v24  ;;  %v624_v16 = vmul.f32 %v18721_v39, %v22633_v0  ;;  %v497_v60 = vpop.f32.mrb[11].mxu0 }
 0x100   : > { %v709_v1 = vmax.f32 %v677_v63, 0.0  ;;  %v640_v10 = vmul.f32 %v18745_v37, %v22633_v0  ;;  %v577_v59 = vpop.f32.mrb[11].mxu1  ;;  %18911 = vmatmul.mubr.msk.f32.gmra.mrb[20].mxu1 %vm280_vm1, %v22151_v3  ;;  %v692_v43 = vmax.f32 %v660_v57, 0.0  ;;  %v623_v61 = vmul.f32 %v22633_v0, %v497_v60  ;;  %19363 = vmatprep.mubr.msk.f32.mxu0 %vm280_vm1, %v22245_v26 }
 0x101   : > { %v708_v2 = vmax.f32 %v676_v49, 0.0  ;;  %v639_v62 = vmul.f32 %v22633_v0, %v577_v59  ;;  %18913 = vmatprep.mubr.msk.f32.mxu1 %vm280_vm1, %v22155_v5  ;;  %v663_v24 = vadd.f32 %v22654_v58, %v624_v16  ;;  %726 = vst.msk [vmem:[%s22688_s11 + $0x48] sm:$0xff] %vm716_vm2, %v693_v22 }
 0x102   : > { %v679_v3 = vadd.f32 %v22654_v58, %v640_v10  ;;  %742 = vst.msk [vmem:[%s22688_s11 + $0xc8] sm:$0xff] %vm716_vm2, %v709_v1  ;;  %v662_v4 = vadd.f32 %v22654_v58, %v623_v61  ;;  %v18724_v41 = vpop.f32.mrb[12].mxu0  ;;  %725 = vst.msk [vmem:[%s22688_s11 + $0x40] sm:$0xff] %vm716_vm2, %v692_v43 }
 0x103   : > { %v678_v18 = vadd.f32 %v22654_v58, %v639_v62  ;;  %v18748_v47 = vpop.f32.mrb[12].mxu1  ;;  %741 = vst.msk [vmem:[%s22688_s11 + $0xc0] sm:$0xff] %vm716_vm2, %v708_v2  ;;  %v695_v26 = vmax.f32 %v663_v24, 0.0  ;;  %19364 = vmatmul.mubr.msk.f32.gmra.mrb[22].mxu0 %vm280_vm1, %v22259_v28  ;;  %v626_v14 = vmul.f32 %v18724_v41, %v22633_v0  ;;  %v507_v12 = vpop.f32.mrb[13].mxu0  ;;  %v23010_v24 = vld [vmem:[%s21773_s7 + $0x74c] sm:$0xff] }
 0x104   : > { %v711_v5 = vmax.f32 %v679_v3, 0.0  ;;  %v642_v6 = vmul.f32 %v18748_v47, %v22633_v0  ;;  %v587_v51 = vpop.f32.mrb[13].mxu1  ;;  %18914 = vmatmul.mubr.msk.f32.gmra.mrb[22].mxu1 %vm280_vm1, %v22165_v7  ;;  %v694_v45 = vmax.f32 %v662_v4, 0.0  ;;  %v625_v20 = vmul.f32 %v22633_v0, %v507_v12  ;;  %19366 = vmatprep.mubr.msk.f32.mxu0 %vm280_vm1, %v22265_v30  ;;  %v21608_v4 = vld [vmem:[%s21773_s7 + $0x40a] sm:$0xff]  ;;  %v23025_v47 = vld [vmem:[%s26007_s2 + $0x18] sm:$0xf] }
 0x105   : > { %v710_v8 = vmax.f32 %v678_v18, 0.0  ;;  %v641_v63 = vmul.f32 %v22633_v0, %v587_v51  ;;  %18916 = vmatprep.mubr.msk.f32.mxu1 %vm280_vm1, %v22169_v9  ;;  %v665_v28 = vadd.f32 %v22654_v58, %v626_v14  ;;  %728 = vst.msk [vmem:[%s22688_s11 + $0x58] sm:$0xff] %vm716_vm2, %v695_v26  ;;  %v21607_v18 = vld [vmem:[%s21773_s7 + $0x402] sm:$0xff]  ;;  %v23030_v41 = vld [vmem:[%s26007_s2 + $0x3c] sm:$0xf]  ;;  %v21614_v51 = vld [vmem:[%s21773_s7 + $0x4b2] sm:$0xff] }
 0x106   : > { %v681_v7 = vadd.f32 %v22654_v58, %v642_v6  ;;  %744 = vst.msk [vmem:[%s22688_s11 + $0xd8] sm:$0xff] %vm716_vm2, %v711_v5  ;;  %v664_v57 = vadd.f32 %v22654_v58, %v625_v20  ;;  %v18727_v39 = vpop.f32.mrb[14].mxu0  ;;  %727 = vst.msk [vmem:[%s22688_s11 + $0x50] sm:$0xff] %vm716_vm2, %v694_v45  ;;  %v21609_v5 = vld [vmem:[%s21773_s7 + $0x43a] sm:$0xff]  ;;  %v21610_v26 = vld [vmem:[%s21773_s7 + $0x442] sm:$0xff] }
 0x107   : > { %v680_v49 = vadd.f32 %v22654_v58, %v641_v63  ;;  %v18751_v37 = vpop.f32.mrb[14].mxu1  ;;  %743 = vst.msk [vmem:[%s22688_s11 + $0xd0] sm:$0xff] %vm716_vm2, %v710_v8  ;;  %v697_v30 = vmax.f32 %v665_v28, 0.0  ;;  %19367 = vmatmul.mubr.msk.f32.gmra.mrb[24].mxu0 %vm280_vm1, %v22279_v32  ;;  %v628_v10 = vmul.f32 %v18727_v39, %v22633_v0  ;;  %v517_v59 = vpop.f32.mrb[15].mxu0  ;;  %v21613_v6 = vld [vmem:[%s21773_s7 + $0x4aa] sm:$0xff]  ;;  %v21615_v14 = vld [vmem:[%s21773_s7 + $0x4e2] sm:$0xff] }
 0x108   : > { %v713_v9 = vmax.f32 %v681_v7, 0.0  ;;  %v644_v1 = vmul.f32 %v18751_v37, %v22633_v0  ;;  %v597_v22 = vpop.f32.mrb[15].mxu1  ;;  %18917 = vmatmul.mubr.msk.f32.gmra.mrb[24].mxu1 %vm280_vm1, %v22179_v11  ;;  %v696_v60 = vmax.f32 %v664_v57, 0.0  ;;  %v627_v43 = vmul.f32 %v22633_v0, %v517_v59  ;;  %19369 = vmatprep.mubr.msk.f32.mxu0 %vm280_vm1, %v22285_v34  ;;  %v21616_v12 = vld [vmem:[%s21773_s7 + $0x4ea] sm:$0xff]  ;;  %v21617_v8 = vld [vmem:[%s21773_s7 + $0x51a] sm:$0xff]  ;;  %v21618_v45 = vld [vmem:[%s21773_s7 + $0x522] sm:$0xff] }
 0x109   : > { %v712_v16 = vmax.f32 %v680_v49, 0.0  ;;  %v643_v2 = vmul.f32 %v22633_v0, %v597_v22  ;;  %18919 = vmatprep.mubr.msk.f32.mxu1 %vm280_vm1, %v22183_v13  ;;  %v667_v32 = vadd.f32 %v22654_v58, %v628_v10  ;;  %730 = vst.msk [vmem:[%s22688_s11 + $0x68] sm:$0xff] %vm716_vm2, %v697_v30  ;;  %v21619_v63 = vld [vmem:[%s21773_s7 + $0x552] sm:$0xff]  ;;  %v21620_v20 = vld [vmem:[%s21773_s7 + $0x55a] sm:$0xff]  ;;  %v21621_v7 = vld [vmem:[%s21773_s7 + $0x58a] sm:$0xff] }
 0x10a   : > { %v683_v11 = vadd.f32 %v22654_v58, %v644_v1  ;;  %746 = vst.msk [vmem:[%s22688_s11 + $0xe8] sm:$0xff] %vm716_vm2, %v713_v9  ;;  %v666_v62 = vadd.f32 %v22654_v58, %v627_v43  ;;  %729 = vst.msk [vmem:[%s22688_s11 + $0x60] sm:$0xff] %vm716_vm2, %v696_v60  ;;  %v21622_v28 = vld [vmem:[%s21773_s7 + $0x592] sm:$0xff]  ;;  %v21623_v49 = vld [vmem:[%s21773_s7 + $0x5c2] sm:$0xff] }
 0x10b   : > { %v682_v0 = vadd.f32 %v22654_v58, %v643_v2  ;;  %745 = vst.msk [vmem:[%s22688_s11 + $0xe0] sm:$0xff] %vm716_vm2, %v712_v16  ;;  %v699_v34 = vmax.f32 %v667_v32, 0.0  ;;  %19370 = vmatmul.mubr.msk.f32.gmra.mrb[26].mxu0 %vm280_vm1, %v22299_v36  ;;  %v26127_v36 = vld [vmem:[#allocation6_spill] sm:$0xff]  ;;  %v23007_v58 = vld [vmem:[%s21773_s7 + $0x751] sm:$0xff] }
 0x10c   : > { %v715_v13 = vmax.f32 %v683_v11, 0.0  ;;  %18920 = vmatmul.mubr.msk.f32.gmra.mrb[26].mxu1 %vm280_vm1, %v22196_v15  ;;  %v698_v3 = vmax.f32 %v666_v62, 0.0  ;;  %19372 = vmatprep.mubr.msk.f32.mxu0 %vm280_vm1, %v22305_v38  ;;  %v22923_v15 = vld [vmem:[%s21773_s7 + $0x62c] sm:$0xff]  ;;  %v22976_v38 = vld [vmem:[%s21773_s7 + $0x6dc] sm:$0xff] }
 0x10d   : > { %v714_v61 = vmax.f32 %v682_v0, 0.0  ;;  %18922 = vmatprep.mubr.msk.f32.mxu1 %vm280_vm1, %v22202_v17  ;;  %732 = vst.msk [vmem:[%s22688_s11 + $0x78] sm:$0xff] %vm716_vm2, %v699_v34  ;;  %v22934_v17 = vld [vmem:[%s21773_s7 + $0x634] sm:$0xff]  ;;  %v21624_v57 = vld [vmem:[%s21773_s7 + $0x5ca] sm:$0xff]  ;;  %v21626_v39 = vld [vmem:[%s21773_s7 + $0x602] sm:$0xff] }
 0x10e   : > { %748 = vst.msk [vmem:[%s22688_s11 + $0xf8] sm:$0xff] %vm716_vm2, %v715_v13  ;;  %731 = vst.msk [vmem:[%s22688_s11 + $0x70] sm:$0xff] %vm716_vm2, %v698_v3  ;;  %v21625_v37 = vld [vmem:[%s21773_s7 + $0x5fa] sm:$0xff]  ;;  %v21627_v9 = vld [vmem:[%s21773_s7 + $0x632] sm:$0xff] }
 0x10f   : > { %747 = vst.msk [vmem:[%s22688_s11 + $0xf0] sm:$0xff] %vm716_vm2, %v714_v61  ;;  %19373 = vmatmul.mubr.msk.f32.gmra.mrb[28].mxu0 %vm280_vm1, %v22319_v40  ;;  %v22979_v40 = vld [vmem:[%s21773_s7 + $0x70c] sm:$0xff]  ;;  %v21628_v30 = vld [vmem:[%s21773_s7 + $0x63a] sm:$0xff]  ;;  %v21631_v10 = vld [vmem:[%s21773_s7 + $0x6a2] sm:$0xff] }
 0x110   : > { %18923 = vmatmul.mubr.msk.f32.gmra.mrb[28].mxu1 %vm280_vm1, %v22216_v19  ;;  %19375 = vmatprep.mubr.msk.f32.mxu0 %vm280_vm1, %v22325_v42  ;;  %v22937_v19 = vld [vmem:[%s21773_s7 + $0x664] sm:$0xff]  ;;  %v21630_v22 = vld [vmem:[%s21773_s7 + $0x672] sm:$0xff]  ;;  %v21633_v16 = vld [vmem:[%s21773_s7 + $0x6da] sm:$0xff] }
 0x111   : > { %18925 = vmatprep.mubr.msk.f32.mxu1 %vm280_vm1, %v22222_v21  ;;  %v26123_v21 = vld [vmem:[#allocation2_spill] sm:$0xff]  ;;  %v26128_v42 = vld [vmem:[#allocation7_spill] sm:$0xff]  ;;  %v21635_v2 = vld [vmem:[%s21773_s7 + $0x712] sm:$0xff] }
 0x112   : > { %v21629_v1 = vld [vmem:[%s21773_s7 + $0x66a] sm:$0xff]  ;;  %v21634_v60 = vld [vmem:[%s21773_s7 + $0x6e2] sm:$0xff]  ;;  %v21636_v43 = vld [vmem:[%s21773_s7 + $0x71a] sm:$0xff] }
 0x113   : > { %19376 = vmatmul.mubr.msk.f32.gmra.mrb[30].mxu0 %vm280_vm1, %v22339_v44  ;;  %v26129_v44 = vld [vmem:[#allocation8_spill] sm:$0xff]  ;;  %v26131_v0 = vld [vmem:[#allocation10_spill] sm:$0xff]  ;;  %v26132_v62 = vld [vmem:[#allocation21_spill] sm:$0xff] }
 0x114   : > { %18926 = vmatmul.mubr.msk.f32.gmra.mrb[30].mxu1 %vm280_vm1, %v22236_v23  ;;  %19378 = vmatprep.mubr.msk.f32.mxu0 %vm280_vm1, %v22345_v46  ;;  %v22948_v23 = vld [vmem:[%s21773_s7 + $0x66c] sm:$0xff]  ;;  %v22990_v46 = vld [vmem:[%s21773_s7 + $0x714] sm:$0xff]  ;;  %v23141_v61 = vld [vmem:[%s26007_s2 + $0x1c] sm:$0xf] }
 0x115   : > { %18928 = vmatprep.mubr.msk.f32.mxu1 %vm280_vm1, %v22242_v25  ;;  %v22951_v25 = vld [vmem:[%s21773_s7 + $0x69c] sm:$0xff]  ;;  %v21632_v59 = vld [vmem:[%s21773_s7 + $0x6aa] sm:$0xff]  ;;  %v21638_v32 = vld [vmem:[%s21773_s7 + $0x752] sm:$0xff] }
 0x116   : > { %v21637_v11 = vld [vmem:[%s21773_s7 + $0x74a] sm:$0xff]  ;;  %v23146_v3 = vld [vmem:[%s26007_s2 + $0x40] sm:$0xf] }
 0x117   : > { %19379 = vmatmul.mubr.msk.f32.gmra.mrb[32].mxu0 %vm280_vm1, %v22359_v48  ;;  %v22993_v48 = vld [vmem:[%s21773_s7 + $0x749] sm:$0xff] }
 0x118   : > { %18929 = vmatmul.mubr.msk.f32.gmra.mrb[32].mxu1 %vm280_vm1, %v22256_v27  ;;  %19381 = vmatprep.mubr.msk.f32.mxu0 %vm280_vm1, %v22365_v50  ;;  %v26124_v27 = vld [vmem:[#allocation3_spill] sm:$0xff] }
 0x119   : > { %18931 = vmatprep.mubr.msk.f32.mxu1 %vm280_vm1, %v22262_v29  ;;  %v26125_v29 = vld [vmem:[#allocation4_spill] sm:$0xff]  ;;  %v22996_v50 = vld [vmem:[%s21773_s7 + $0x744] sm:$0xff] }
 0x11a   : > { %v26133_v13 = vld [vmem:[#allocation11_spill] sm:$0xff] }
 0x11b   : > { %19382 = vmatmul.mubr.msk.f32.gmra.mrb[34].mxu0 %vm280_vm1, %v22379_v52  ;;  %v26130_v52 = vld [vmem:[#allocation9_spill] sm:$0xff]  ;;  %v26134_v34 = vld [vmem:[#allocation23_spill] sm:$0xff] }
 0x11c   : > { %18932 = vmatmul.mubr.msk.f32.gmra.mrb[34].mxu1 %vm280_vm1, %v22276_v31  ;;  %19384 = vmatprep.mubr.msk.f32.mxu0 %vm280_vm1, %v22923_v15  ;;  %v22962_v31 = vld [vmem:[%s21773_s7 + $0x6a4] sm:$0xff] }
 0x11d   : > { %18934 = vmatprep.mubr.msk.f32.mxu1 %vm280_vm1, %v22282_v33  ;;  %v22965_v33 = vld [vmem:[%s21773_s7 + $0x6d4] sm:$0xff] }
 0x11f   : > { %19385 = vmatmul.mubr.msk.f32.gmra.mrb[36].mxu0 %vm280_vm1, %v22934_v17 }
 0x120   : > { %18935 = vmatmul.mubr.msk.f32.gmra.mrb[36].mxu1 %vm280_vm1, %v22296_v35  ;;  %19387 = vmatprep.mubr.msk.f32.mxu0 %vm280_vm1, %v22937_v19  ;;  %v26126_v35 = vld [vmem:[#allocation5_spill] sm:$0xff] }
 0x121   : > { %18937 = vmatprep.mubr.msk.f32.mxu1 %vm280_vm1, %v26123_v21  ;;  %v26135_v21 = vld [vmem:[#allocation12_spill] sm:$0xff] }
 0x123   : > { %19388 = vmatmul.mubr.msk.f32.gmra.mrb[38].mxu0 %vm280_vm1, %v22948_v23 }
 0x124   : > { %18938 = vmatmul.mubr.msk.f32.gmra.mrb[38].mxu1 %vm280_vm1, %v26124_v27  ;;  %19390 = vmatprep.mubr.msk.f32.mxu0 %vm280_vm1, %v22951_v25  ;;  %v26136_v27 = vld [vmem:[#allocation25_spill] sm:$0xff] }
 0x125   : > { %18940 = vmatprep.mubr.msk.f32.mxu1 %vm280_vm1, %v26125_v29  ;;  %v26137_v29 = vld [vmem:[#allocation13_spill] sm:$0xff] }
 0x127   : > { %19391 = vmatmul.mubr.msk.f32.gmra.mrb[40].mxu0 %vm280_vm1, %v22962_v31 }
 0x128   : > { %18941 = vmatmul.mubr.msk.f32.gmra.mrb[40].mxu1 %vm280_vm1, %v26126_v35  ;;  %19393 = vmatprep.mubr.msk.f32.mxu0 %vm280_vm1, %v22965_v33  ;;  %v26138_v35 = vld [vmem:[#allocation27_spill] sm:$0xff] }
 0x129   : > { %18943 = vmatprep.mubr.msk.f32.mxu1 %vm280_vm1, %v26127_v36  ;;  %v26139_v36 = vld [vmem:[#allocation14_spill] sm:$0xff] }
 0x12b   : > { %19394 = vmatmul.mubr.msk.f32.gmra.mrb[42].mxu0 %vm280_vm1, %v22976_v38 }
 0x12c   : > { %18944 = vmatmul.mubr.msk.f32.gmra.mrb[42].mxu1 %vm280_vm1, %v26128_v42  ;;  %19396 = vmatprep.mubr.msk.f32.mxu0 %vm280_vm1, %v22979_v40  ;;  %v26140_v42 = vld [vmem:[#allocation29_spill] sm:$0xff] }
 0x12d   : > { %18946 = vmatprep.mubr.msk.f32.mxu1 %vm280_vm1, %v26129_v44  ;;  %v26141_v44 = vld [vmem:[#allocation15_spill] sm:$0xff] }
 0x12f   : > { %19397 = vmatmul.mubr.msk.f32.gmra.mrb[44].mxu0 %vm280_vm1, %v22990_v46 }
 0x130   : > { %18947 = vmatmul.mubr.msk.f32.gmra.mrb[44].mxu1 %vm280_vm1, %v26130_v52  ;;  %19399 = vmatprep.mubr.msk.f32.mxu0 %vm280_vm1, %v22996_v50  ;;  %v26142_v52 = vld [vmem:[#allocation31_spill] sm:$0xff] }
 0x131   : > { %18949 = vmatprep.mubr.msk.f32.mxu1 %vm280_vm1, %v22993_v48 }
 0x133   : > { %19400 = vmatmul.mubr.msk.f32.gmra.mrb[46].mxu0 %vm280_vm1, %v23010_v24 }
 0x134   : > { %18950 = vmatmul.mubr.msk.f32.gmra.mrb[46].mxu1 %vm280_vm1, %v23007_v58  ;;  %19404 = vmatprep.mubr.msk.f32.mxu0 %vm280_vm1, %v21607_v18 }
 0x135   : > { %18954 = vmatprep.mubr.msk.f32.mxu1 %vm280_vm1, %v21607_v18  ;;  %v26143_v18 = vld [vmem:[#allocation16_spill] sm:$0xff] }
 0x137   : > { %19405 = vmatmul.mubr.msk.f32.vlgmr.msra.gmra.mrb[16].mxu0 %vm280_vm1, %v21608_v4 }
 0x138   : > { %18955 = vmatmul.mubr.msk.f32.vlgmr.msra.gmra.mrb[16].mxu1 %vm280_vm1, %v21608_v4  ;;  %19407 = vmatprep.mubr.msk.f32.mxu0 %vm280_vm1, %v21609_v5  ;;  %v26144_v4 = vld [vmem:[#allocation33_spill] sm:$0xff] }
 0x139   : > { %19003 = vmatpush3.msk.msra.mxu1 %vm377_vm0, %v22743_v55  ;;  %18957 = vmatprep.mubr.msk.f32.mxu1 %vm280_vm1, %v21609_v5  ;;  %v21611_v55 = vld [vmem:[%s21773_s7 + $0x472] sm:$0xff]  ;;  %v26147_v5 = vld [vmem:[#allocation18_spill] sm:$0xff] }
 0x13a   : > { %19453 = vmatpush3.msk.msra.mxu0 %vm377_vm0, %v22758_v56  ;;  %19052 = vmatprep.subr.msk.mxu1 %vm377_vm0, %v23025_v47  ;;  %v21612_v56 = vld [vmem:[%s21773_s7 + $0x47a] sm:$0xff] }
 0x13b   : > { %19502 = vmatprep.subr.msk.mxu0 %vm377_vm0, %v23030_v41  ;;  %19408 = vmatmul.mubr.msk.f32.gmra.mrb[18].mxu0 %vm280_vm1, %v21610_v26 }
 0x13c   : > { %18958 = vmatmul.mubr.msk.f32.gmra.mrb[18].mxu1 %vm280_vm1, %v21610_v26  ;;  %19410 = vmatprep.mubr.msk.f32.mxu0 %vm280_vm1, %v21611_v55  ;;  %v26148_v26 = vld [vmem:[#allocation37_spill] sm:$0xff] }
 0x13d   : > { %18960 = vmatprep.mubr.msk.f32.mxu1 %vm280_vm1, %v21611_v55  ;;  %v26149_v55 = vld [vmem:[#allocation19_spill] sm:$0xff] }
 0x13f   : > { %19411 = vmatmul.mubr.msk.f32.gmra.mrb[20].mxu0 %vm280_vm1, %v21612_v56 }
 0x140   : > { %18961 = vmatmul.mubr.msk.f32.gmra.mrb[20].mxu1 %vm280_vm1, %v21612_v56  ;;  %19413 = vmatprep.mubr.msk.f32.mxu0 %vm280_vm1, %v21613_v6  ;;  %v26150_v56 = vld [vmem:[#allocation39_spill] sm:$0xff] }
 0x141   : > { %18963 = vmatprep.mubr.msk.f32.mxu1 %vm280_vm1, %v21613_v6  ;;  %v26151_v6 = vld [vmem:[#allocation20_spill] sm:$0xff] }
 0x143   : > { %19414 = vmatmul.mubr.msk.f32.gmra.mrb[22].mxu0 %vm280_vm1, %v21614_v51 }
 0x144   : > { %18964 = vmatmul.mubr.msk.f32.gmra.mrb[22].mxu1 %vm280_vm1, %v21614_v51  ;;  %19416 = vmatprep.mubr.msk.f32.mxu0 %vm280_vm1, %v21615_v14  ;;  %v26152_v51 = vld [vmem:[#allocation41_spill] sm:$0xff] }
 0x145   : > { %18966 = vmatprep.mubr.msk.f32.mxu1 %vm280_vm1, %v21615_v14  ;;  %v26153_v14 = vld [vmem:[#allocation22_spill] sm:$0xff] }
 0x147   : > { %19417 = vmatmul.mubr.msk.f32.gmra.mrb[24].mxu0 %vm280_vm1, %v21616_v12 }
 0x148   : > { %18967 = vmatmul.mubr.msk.f32.gmra.mrb[24].mxu1 %vm280_vm1, %v21616_v12  ;;  %19419 = vmatprep.mubr.msk.f32.mxu0 %vm280_vm1, %v21617_v8  ;;  %v26154_v12 = vld [vmem:[#allocation43_spill] sm:$0xff] }
 0x149   : > { %18969 = vmatprep.mubr.msk.f32.mxu1 %vm280_vm1, %v21617_v8  ;;  %v26155_v8 = vld [vmem:[#allocation24_spill] sm:$0xff] }
 0x14b   : > { %19420 = vmatmul.mubr.msk.f32.gmra.mrb[26].mxu0 %vm280_vm1, %v21618_v45 }
 0x14c   : > { %18970 = vmatmul.mubr.msk.f32.gmra.mrb[26].mxu1 %vm280_vm1, %v21618_v45  ;;  %19422 = vmatprep.mubr.msk.f32.mxu0 %vm280_vm1, %v21619_v63  ;;  %v26156_v45 = vld [vmem:[#allocation45_spill] sm:$0xff] }
 0x14d   : > { %18972 = vmatprep.mubr.msk.f32.mxu1 %vm280_vm1, %v21619_v63  ;;  %v26157_v63 = vld [vmem:[#allocation26_spill] sm:$0xff] }
 0x14f   : > { %19423 = vmatmul.mubr.msk.f32.gmra.mrb[28].mxu0 %vm280_vm1, %v21620_v20 }
 0x150   : > { %18973 = vmatmul.mubr.msk.f32.gmra.mrb[28].mxu1 %vm280_vm1, %v21620_v20  ;;  %19425 = vmatprep.mubr.msk.f32.mxu0 %vm280_vm1, %v21621_v7  ;;  %v26158_v20 = vld [vmem:[#allocation47_spill] sm:$0xff] }
 0x151   : > { %18975 = vmatprep.mubr.msk.f32.mxu1 %vm280_vm1, %v21621_v7  ;;  %v26159_v7 = vld [vmem:[#allocation28_spill] sm:$0xff] }
 0x153   : > { %19426 = vmatmul.mubr.msk.f32.gmra.mrb[30].mxu0 %vm280_vm1, %v21622_v28 }
 0x154   : > { %18976 = vmatmul.mubr.msk.f32.gmra.mrb[30].mxu1 %vm280_vm1, %v21622_v28  ;;  %19428 = vmatprep.mubr.msk.f32.mxu0 %vm280_vm1, %v21623_v49  ;;  %v26160_v28 = vld [vmem:[#allocation49_spill] sm:$0xff] }
 0x155   : > { %18978 = vmatprep.mubr.msk.f32.mxu1 %vm280_vm1, %v21623_v49  ;;  %v26161_v49 = vld [vmem:[#allocation30_spill] sm:$0xff] }
 0x157   : > { %19429 = vmatmul.mubr.msk.f32.gmra.mrb[32].mxu0 %vm280_vm1, %v21624_v57 }
 0x158   : > { %18979 = vmatmul.mubr.msk.f32.gmra.mrb[32].mxu1 %vm280_vm1, %v21624_v57  ;;  %19431 = vmatprep.mubr.msk.f32.mxu0 %vm280_vm1, %v21625_v37  ;;  %v26162_v57 = vld [vmem:[#allocation51_spill] sm:$0xff] }
 0x159   : > { %18981 = vmatprep.mubr.msk.f32.mxu1 %vm280_vm1, %v21625_v37  ;;  %v26163_v37 = vld [vmem:[#allocation32_spill] sm:$0xff] }
 0x15b   : > { %19432 = vmatmul.mubr.msk.f32.gmra.mrb[34].mxu0 %vm280_vm1, %v21626_v39 }
 0x15c   : > { %18982 = vmatmul.mubr.msk.f32.gmra.mrb[34].mxu1 %vm280_vm1, %v21626_v39  ;;  %19434 = vmatprep.mubr.msk.f32.mxu0 %vm280_vm1, %v21627_v9  ;;  %v26164_v39 = vld [vmem:[#allocation53_spill] sm:$0xff] }
 0x15d   : > { %18984 = vmatprep.mubr.msk.f32.mxu1 %vm280_vm1, %v21627_v9  ;;  %v26165_v9 = vld [vmem:[#allocation34_spill] sm:$0xff] }
 0x15f   : > { %19435 = vmatmul.mubr.msk.f32.gmra.mrb[36].mxu0 %vm280_vm1, %v21628_v30 }
 0x160   : > { %18985 = vmatmul.mubr.msk.f32.gmra.mrb[36].mxu1 %vm280_vm1, %v21628_v30  ;;  %19437 = vmatprep.mubr.msk.f32.mxu0 %vm280_vm1, %v21629_v1  ;;  %v26166_v30 = vld [vmem:[#allocation55_spill] sm:$0xff] }
 0x161   : > { %18987 = vmatprep.mubr.msk.f32.mxu1 %vm280_vm1, %v21629_v1  ;;  %v26167_v1 = vld [vmem:[#allocation36_spill] sm:$0xff] }
 0x163   : > { %19438 = vmatmul.mubr.msk.f32.gmra.mrb[38].mxu0 %vm280_vm1, %v21630_v22 }
 0x164   : > { %18988 = vmatmul.mubr.msk.f32.gmra.mrb[38].mxu1 %vm280_vm1, %v21630_v22  ;;  %19440 = vmatprep.mubr.msk.f32.mxu0 %vm280_vm1, %v21631_v10  ;;  %v26168_v22 = vld [vmem:[#allocation57_spill] sm:$0xff] }
 0x165   : > { %18990 = vmatprep.mubr.msk.f32.mxu1 %vm280_vm1, %v21631_v10  ;;  %v23225_v10 = vld [vmem:[%s21773_s7 + $0x638] sm:$0xff] }
 0x167   : > { %19441 = vmatmul.mubr.msk.f32.gmra.mrb[40].mxu0 %vm280_vm1, %v21632_v59 }
 0x168   : > { %18991 = vmatmul.mubr.msk.f32.gmra.mrb[40].mxu1 %vm280_vm1, %v21632_v59  ;;  %19443 = vmatprep.mubr.msk.f32.mxu0 %vm280_vm1, %v21633_v16  ;;  %v26169_v59 = vld [vmem:[#allocation38_spill] sm:$0xff] }
 0x169   : > { %18993 = vmatprep.mubr.msk.f32.mxu1 %vm280_vm1, %v21633_v16  ;;  %v26170_v16 = vld [vmem:[#allocation40_spill] sm:$0xff] }
 0x16b   : > { %19444 = vmatmul.mubr.msk.f32.gmra.mrb[42].mxu0 %vm280_vm1, %v21634_v60 }
 0x16c   : > { %18994 = vmatmul.mubr.msk.f32.gmra.mrb[42].mxu1 %vm280_vm1, %v21634_v60  ;;  %19446 = vmatprep.mubr.msk.f32.mxu0 %vm280_vm1, %v21635_v2  ;;  %v23236_v60 = vld [vmem:[%s21773_s7 + $0x640] sm:$0xff] }
 0x16d   : > { %18996 = vmatprep.mubr.msk.f32.mxu1 %vm280_vm1, %v21635_v2  ;;  %v23239_v2 = vld [vmem:[%s21773_s7 + $0x670] sm:$0xff] }
 0x16f   : > { %19447 = vmatmul.mubr.msk.f32.gmra.mrb[44].mxu0 %vm280_vm1, %v21636_v43 }
 0x170   : > { %18997 = vmatmul.mubr.msk.f32.gmra.mrb[44].mxu1 %vm280_vm1, %v21636_v43  ;;  %19449 = vmatprep.mubr.msk.f32.mxu0 %vm280_vm1, %v21637_v11  ;;  %v26171_v43 = vld [vmem:[#allocation42_spill] sm:$0xff] }
 0x171   : > { %18999 = vmatprep.mubr.msk.f32.mxu1 %vm280_vm1, %v21637_v11  ;;  %v26172_v11 = vld [vmem:[#allocation44_spill] sm:$0xff] }
 0x173   : > { %19450 = vmatmul.mubr.msk.f32.gmra.mrb[46].mxu0 %vm280_vm1, %v21638_v32 }
 0x174   : > { %19000 = vmatmul.mubr.msk.f32.gmra.mrb[46].mxu1 %vm280_vm1, %v21638_v32  ;;  %19454 = vmatprep.mubr.msk.f32.mxu0 %vm280_vm1, %v26132_v62  ;;  %v23253_v32 = vld [vmem:[%s21773_s7 + $0x6a8] sm:$0xff]  ;;  %v26174_v62 = vld [vmem:[#allocation48_spill] sm:$0xff] }
 0x175   : > { %19004 = vmatprep.mubr.msk.f32.mxu1 %vm280_vm1, %v26131_v0  ;;  %v26173_v0 = vld [vmem:[#allocation46_spill] sm:$0xff] }
 0x177   : > { %19455 = vmatmul.mubr.msk.f32.vlgmr.msra.gmra.mrb[16].mxu0 %vm280_vm1, %v26134_v34  ;;  %v23267_v34 = vld [vmem:[%s21773_s7 + $0x6e0] sm:$0xff] }
 0x178   : > { %19005 = vmatmul.mubr.msk.f32.vlgmr.msra.gmra.mrb[16].mxu1 %vm280_vm1, %v26133_v13  ;;  %19457 = vmatprep.mubr.msk.f32.mxu0 %vm280_vm1, %v26136_v27  ;;  %v23264_v13 = vld [vmem:[%s21773_s7 + $0x6b0] sm:$0xff] }
 0x179   : > { %19053 = vmatpush3.msk.msra.mxu1 %vm377_vm0, %v23025_v47  ;;  %19007 = vmatprep.mubr.msk.f32.mxu1 %vm280_vm1, %v26135_v21  ;;  %v26145_v47 = vld [vmem:[#allocation17_spill] sm:$0xff]  ;;  %v26175_v21 = vld [vmem:[#allocation50_spill] sm:$0xff]  ;;  %v26176_v27 = vld [vmem:[#allocation52_spill] sm:$0xff] }
 0x17a   : > { %19503 = vmatpush3.msk.msra.mxu0 %vm377_vm0, %v23030_v41  ;;  %19102 = vmatprep.subr.msk.mxu1 %vm377_vm0, %v23141_v61  ;;  %v26146_v41 = vld [vmem:[#allocation35_spill] sm:$0xff] }
 0x17b   : > { %19552 = vmatprep.subr.msk.mxu0 %vm377_vm0, %v23146_v3  ;;  %19458 = vmatmul.mubr.msk.f32.gmra.mrb[18].mxu0 %vm280_vm1, %v26138_v35  ;;  %v23281_v35 = vld [vmem:[%s21773_s7 + $0x718] sm:$0xff] }
 0x17c   : > { %19008 = vmatmul.mubr.msk.f32.gmra.mrb[18].mxu1 %vm280_vm1, %v26137_v29  ;;  %19460 = vmatprep.mubr.msk.f32.mxu0 %vm280_vm1, %v26140_v42  ;;  %v23278_v29 = vld [vmem:[%s21773_s7 + $0x6e8] sm:$0xff]  ;;  %v26178_v42 = vld [vmem:[#allocation56_spill] sm:$0xff] }
 0x17d   : > { %19010 = vmatprep.mubr.msk.f32.mxu1 %vm280_vm1, %v26139_v36  ;;  %v26177_v36 = vld [vmem:[#allocation54_spill] sm:$0xff] }
 0x17f   : > { %19461 = vmatmul.mubr.msk.f32.gmra.mrb[20].mxu0 %vm280_vm1, %v26142_v52  ;;  %v23295_v52 = vld [vmem:[%s21773_s7 + $0x74b] sm:$0xff] }
 0x180   : > { %19011 = vmatmul.mubr.msk.f32.gmra.mrb[20].mxu1 %vm280_vm1, %v26141_v44  ;;  %19463 = vmatprep.mubr.msk.f32.mxu0 %vm280_vm1, %v26144_v4  ;;  %v23292_v44 = vld [vmem:[%s21773_s7 + $0x720] sm:$0xff]  ;;  %v23309_v4 = vld [vmem:[%s21773_s7 + $0x753] sm:$0xff] }
 0x181   : > { %19013 = vmatprep.mubr.msk.f32.mxu1 %vm280_vm1, %v26143_v18  ;;  %v23298_v18 = vld [vmem:[%s21773_s7 + $0x750] sm:$0xff] }
 0x183   : > { %19464 = vmatmul.mubr.msk.f32.gmra.mrb[22].mxu0 %vm280_vm1, %v26146_v41  ;;  %v15675_v41 = vld [vmem:[%s21773_s7 + $0x439] sm:$0xff] }
 0x184   : > { %19014 = vmatmul.mubr.msk.f32.gmra.mrb[22].mxu1 %vm280_vm1, %v26145_v47  ;;  %19466 = vmatprep.mubr.msk.f32.mxu0 %vm280_vm1, %v26148_v26  ;;  %v23312_v47 = vld [vmem:[%s21773_s7 + $0x758] sm:$0xff] }
 0x185   : > { %19016 = vmatprep.mubr.msk.f32.mxu1 %vm280_vm1, %v26147_v5  ;;  %v16241_v5 = vld [vmem:[%s21773_s7 + $0x54c] sm:$0xff]  ;;  %v16242_v26 = vld [vmem:[%s21773_s7 + $0x554] sm:$0xff] }
 0x187   : > { %19467 = vmatmul.mubr.msk.f32.gmra.mrb[24].mxu0 %vm280_vm1, %v26150_v56  ;;  %v16243_v56 = vld [vmem:[%s21773_s7 + $0x584] sm:$0xff] }
 0x188   : > { %19017 = vmatmul.mubr.msk.f32.gmra.mrb[24].mxu1 %vm280_vm1, %v26149_v55  ;;  %19469 = vmatprep.mubr.msk.f32.mxu0 %vm280_vm1, %v26152_v51  ;;  %v15677_v55 = vld [vmem:[%s21773_s7 + $0x471] sm:$0xff]  ;;  %v23336_v51 = vld [vmem:[%s26007_s2 + $0x44] sm:$0xf] }
 0x189   : > { %19019 = vmatprep.mubr.msk.f32.mxu1 %vm280_vm1, %v26151_v6  ;;  %v23331_v6 = vld [vmem:[%s26007_s2 + $0x20] sm:$0xf] }
 0x18b   : > { %19470 = vmatmul.mubr.msk.f32.gmra.mrb[26].mxu0 %vm280_vm1, %v26154_v12  ;;  %v16244_v12 = vld [vmem:[%s21773_s7 + $0x58c] sm:$0xff] }
 0x18c   : > { %19020 = vmatmul.mubr.msk.f32.gmra.mrb[26].mxu1 %vm280_vm1, %v26153_v14  ;;  %19472 = vmatprep.mubr.msk.f32.mxu0 %vm280_vm1, %v26156_v45  ;;  %v15678_v14 = vld [vmem:[%s21773_s7 + $0x479] sm:$0xff] }
 0x18d   : > { %19022 = vmatprep.mubr.msk.f32.mxu1 %vm280_vm1, %v26155_v8  ;;  %v15679_v8 = vld [vmem:[%s21773_s7 + $0x4a9] sm:$0xff]  ;;  %v16245_v45 = vld [vmem:[%s21773_s7 + $0x5bc] sm:$0xff] }
 0x18f   : > { %19473 = vmatmul.mubr.msk.f32.gmra.mrb[28].mxu0 %vm280_vm1, %v26158_v20  ;;  %v16247_v20 = vld [vmem:[%s21773_s7 + $0x5f4] sm:$0xff] }
 0x190   : > { %19023 = vmatmul.mubr.msk.f32.gmra.mrb[28].mxu1 %vm280_vm1, %v26157_v63  ;;  %19475 = vmatprep.mubr.msk.f32.mxu0 %vm280_vm1, %v26160_v28  ;;  %v15681_v63 = vld [vmem:[%s21773_s7 + $0x4e1] sm:$0xff] }
 0x191   : > { %19025 = vmatprep.mubr.msk.f32.mxu1 %vm280_vm1, %v26159_v7  ;;  %v15682_v7 = vld [vmem:[%s21773_s7 + $0x4e9] sm:$0xff]  ;;  %v16248_v28 = vld [vmem:[%s21773_s7 + $0x5fc] sm:$0xff] }
 0x193   : > { %19476 = vmatmul.mubr.msk.f32.gmra.mrb[30].mxu0 %vm280_vm1, %v26162_v57  ;;  %v15684_v57 = vld [vmem:[%s21773_s7 + $0x521] sm:$0xff] }
 0x194   : > { %19026 = vmatmul.mubr.msk.f32.gmra.mrb[30].mxu1 %vm280_vm1, %v26161_v49  ;;  %19478 = vmatprep.mubr.msk.f32.mxu0 %vm280_vm1, %v26164_v39  ;;  %v15683_v49 = vld [vmem:[%s21773_s7 + $0x519] sm:$0xff] }
 0x195   : > { %19028 = vmatprep.mubr.msk.f32.mxu1 %vm280_vm1, %v26163_v37  ;;  %v15685_v37 = vld [vmem:[%s21773_s7 + $0x551] sm:$0xff]  ;;  %v15686_v39 = vld [vmem:[%s21773_s7 + $0x559] sm:$0xff] }
 0x197   : > { %19479 = vmatmul.mubr.msk.f32.gmra.mrb[32].mxu0 %vm280_vm1, %v26166_v30  ;;  %v16262_v30 = vld [vmem:[%s21773_s7 + $0x784] sm:$0xff] }
 0x198   : > { %19029 = vmatmul.mubr.msk.f32.gmra.mrb[32].mxu1 %vm280_vm1, %v26165_v9  ;;  %19481 = vmatprep.mubr.msk.f32.mxu0 %vm280_vm1, %v26168_v22  ;;  %v15687_v9 = vld [vmem:[%s21773_s7 + $0x589] sm:$0xff]  ;;  %v16264_v22 = vld [vmem:[%s21773_s7 + $0x7bc] sm:$0xff] }
 0x199   : > { %19031 = vmatprep.mubr.msk.f32.mxu1 %vm280_vm1, %v26167_v1  ;;  %v16263_v1 = vld [vmem:[%s21773_s7 + $0x7b4] sm:$0xff] }
 0x19b   : > { %19482 = vmatmul.mubr.msk.f32.gmra.mrb[34].mxu0 %vm280_vm1, %v22706_v54  ;;  %v23250_v54 = vld [vmem:[%s21773_s7 + $0x678] sm:$0xff] }
 0x19c   : > { %19032 = vmatmul.mubr.msk.f32.gmra.mrb[34].mxu1 %vm280_vm1, %v26169_v59  ;;  %19484 = vmatprep.mubr.msk.f32.mxu0 %vm280_vm1, %v23225_v10  ;;  %v15699_v59 = vld [vmem:[%s21773_s7 + $0x6d9] sm:$0xff] }
 0x19d   : > { %19034 = vmatprep.mubr.msk.f32.mxu1 %vm280_vm1, %v26170_v16  ;;  %v16265_v16 = vld [vmem:[%s21773_s7 + $0x7ec] sm:$0xff] }
 0x19f   : > { %19485 = vmatmul.mubr.msk.f32.gmra.mrb[36].mxu0 %vm280_vm1, %v23236_v60 }
 0x1a0   : > { %19035 = vmatmul.mubr.msk.f32.gmra.mrb[36].mxu1 %vm280_vm1, %v26171_v43  ;;  %19487 = vmatprep.mubr.msk.f32.mxu0 %vm280_vm1, %v23239_v2  ;;  %v15700_v43 = vld [vmem:[%s21773_s7 + $0x6e1] sm:$0xff] }
 0x1a1   : > { %19037 = vmatprep.mubr.msk.f32.mxu1 %vm280_vm1, %v26172_v11  ;;  %v16266_v11 = vld [vmem:[%s21773_s7 + $0x7f4] sm:$0xff] }
 0x1a3   : > { %19488 = vmatmul.mubr.msk.f32.gmra.mrb[38].mxu0 %vm280_vm1, %v23250_v54 }
 0x1a4   : > { %19038 = vmatmul.mubr.msk.f32.gmra.mrb[38].mxu1 %vm280_vm1, %v26173_v0  ;;  %19490 = vmatprep.mubr.msk.f32.mxu0 %vm280_vm1, %v23253_v32  ;;  %v15701_v0 = vld [vmem:[%s21773_s7 + $0x711] sm:$0xff] }
 0x1a5   : > { %19040 = vmatprep.mubr.msk.f32.mxu1 %vm280_vm1, %v26174_v62  ;;  %v16267_v62 = vld [vmem:[%s21773_s7 + $0x824] sm:$0xff] }
 0x1a7   : > { %19491 = vmatmul.mubr.msk.f32.gmra.mrb[40].mxu0 %vm280_vm1, %v23264_v13 }
 0x1a8   : > { %19041 = vmatmul.mubr.msk.f32.gmra.mrb[40].mxu1 %vm280_vm1, %v26175_v21  ;;  %19493 = vmatprep.mubr.msk.f32.mxu0 %vm280_vm1, %v23267_v34  ;;  %v15702_v21 = vld [vmem:[%s21773_s7 + $0x719] sm:$0xff] }
 0x1a9   : > { %19043 = vmatprep.mubr.msk.f32.mxu1 %vm280_vm1, %v26176_v27  ;;  %v16268_v27 = vld [vmem:[%s21773_s7 + $0x82c] sm:$0xff] }
 0x1ab   : > { %19494 = vmatmul.mubr.msk.f32.gmra.mrb[42].mxu0 %vm280_vm1, %v23278_v29 }
 0x1ac   : > { %19044 = vmatmul.mubr.msk.f32.gmra.mrb[42].mxu1 %vm280_vm1, %v26177_v36  ;;  %19496 = vmatprep.mubr.msk.f32.mxu0 %vm280_vm1, %v23281_v35  ;;  %v16269_v36 = vld [vmem:[%s21773_s7 + $0x85c] sm:$0xff] }
 0x1ad   : > { %19046 = vmatprep.mubr.msk.f32.mxu1 %vm280_vm1, %v26178_v42  ;;  %v16270_v42 = vld [vmem:[%s21773_s7 + $0x864] sm:$0xff] }
 0x1af   : > { %19497 = vmatmul.mubr.msk.f32.gmra.mrb[44].mxu0 %vm280_vm1, %v23292_v44 }
 0x1b0   : > { %19047 = vmatmul.mubr.msk.f32.gmra.mrb[44].mxu1 %vm280_vm1, %v22703_v53  ;;  %19499 = vmatprep.mubr.msk.f32.mxu0 %vm280_vm1, %v23298_v18  ;;  %v15676_v53 = vld [vmem:[%s21773_s7 + $0x441] sm:$0xff] }
 0x1b1   : > { %19049 = vmatprep.mubr.msk.f32.mxu1 %vm280_vm1, %v23295_v52 }
 0x1b3   : > { %19500 = vmatmul.mubr.msk.f32.gmra.mrb[46].mxu0 %vm280_vm1, %v23312_v47 }
 0x1b4   : > { %19050 = vmatmul.mubr.msk.f32.gmra.mrb[46].mxu1 %vm280_vm1, %v23309_v4  ;;  %19504 = vmatprep.mubr.msk.f32.mxu0 %vm280_vm1, %v16241_v5  ;;  %v16271_v5 = vld [vmem:[%s21773_s7 + $0x894] sm:$0xff] }
 0x1b5   : > { %19054 = vmatprep.mubr.msk.f32.mxu1 %vm280_vm1, %v15675_v41  ;;  %v15705_v41 = vld [vmem:[%s21773_s7 + $0x781] sm:$0xff] }
 0x1b7   : > { %19505 = vmatmul.mubr.msk.f32.vlgmr.msra.gmra.mrb[16].mxu0 %vm280_vm1, %v16242_v26  ;;  %v23463_v26 = vld [vmem:[%s21773_s7 + $0x43a] sm:$0xff] }
 0x1b8   : > { %19055 = vmatmul.mubr.msk.f32.vlgmr.msra.gmra.mrb[16].mxu1 %vm280_vm1, %v15676_v53  ;;  %19507 = vmatprep.mubr.msk.f32.mxu0 %vm280_vm1, %v16243_v56  ;;  %v15706_v53 = vld [vmem:[%s21773_s7 + $0x789] sm:$0xff]  ;;  %v16308_v56 = vld [vmem:[%s21773_s7 + $0x55a] sm:$0xff] }
 0x1b9   : > { %19103 = vmatpush3.msk.msra.mxu1 %vm377_vm0, %v23141_v61  ;;  %19057 = vmatprep.mubr.msk.f32.mxu1 %vm280_vm1, %v15677_v55  ;;  %v15680_v61 = vld [vmem:[%s21773_s7 + $0x4b1] sm:$0xff] }
 0x1ba   : > { %19553 = vmatpush3.msk.msra.mxu0 %vm377_vm0, %v23146_v3  ;;  %19152 = vmatprep.subr.msk.mxu1 %vm377_vm0, %v23331_v6  ;;  %v16246_v3 = vld [vmem:[%s21773_s7 + $0x5c4] sm:$0xff]  ;;  %v16307_v55 = vld [vmem:[%s21773_s7 + $0x552] sm:$0xff] }
 0x1bb   : > { %19602 = vmatprep.subr.msk.mxu0 %vm377_vm0, %v23336_v51  ;;  %19508 = vmatmul.mubr.msk.f32.gmra.mrb[18].mxu0 %vm280_vm1, %v16244_v12  ;;  %v16309_v12 = vld [vmem:[%s21773_s7 + $0x58a] sm:$0xff] }
 0x1bc   : > { %19058 = vmatmul.mubr.msk.f32.gmra.mrb[18].mxu1 %vm280_vm1, %v15678_v14  ;;  %19510 = vmatprep.mubr.msk.f32.mxu0 %vm280_vm1, %v16245_v45  ;;  %v23476_v14 = vld [vmem:[%s21773_s7 + $0x472] sm:$0xff] }
 0x1bd   : > { %19060 = vmatprep.mubr.msk.f32.mxu1 %vm280_vm1, %v15679_v8  ;;  %v23485_v8 = vld [vmem:[%s26007_s2 + $0x4c] sm:$0xf]  ;;  %v23490_v45 = vld [vmem:[%s26007_s2 + $0x70] sm:$0xf] }
 0x1bf   : > { %19511 = vmatmul.mubr.msk.f32.gmra.mrb[20].mxu0 %vm280_vm1, %v16246_v3  ;;  %v16310_v3 = vld [vmem:[%s21773_s7 + $0x592] sm:$0xff] }
 0x1c0   : > { %19061 = vmatmul.mubr.msk.f32.gmra.mrb[20].mxu1 %vm280_vm1, %v15680_v61  ;;  %19513 = vmatprep.mubr.msk.f32.mxu0 %vm280_vm1, %v16247_v20  ;;  %v23497_v61 = vld [vmem:[%s21773_s7 + $0x47a] sm:$0xff]  ;;  %v16311_v20 = vld [vmem:[%s21773_s7 + $0x5c2] sm:$0xff] }
 0x1c1   : > { %19063 = vmatprep.mubr.msk.f32.mxu1 %vm280_vm1, %v15681_v63  ;;  %v23504_v63 = vld [vmem:[%s21773_s7 + $0x4aa] sm:$0xff] }
 0x1c3   : > { %19514 = vmatmul.mubr.msk.f32.gmra.mrb[22].mxu0 %vm280_vm1, %v16248_v28  ;;  %v16313_v28 = vld [vmem:[%s21773_s7 + $0x5fa] sm:$0xff] }
 0x1c4   : > { %19064 = vmatmul.mubr.msk.f32.gmra.mrb[22].mxu1 %vm280_vm1, %v15682_v7  ;;  %19516 = vmatprep.mubr.msk.f32.mxu0 %vm280_vm1, %v22923_v15  ;;  %v15688_v15 = vld [vmem:[%s21773_s7 + $0x591] sm:$0xff]  ;;  %v15747_v7 = vld [vmem:[%s21773_s7 + $0x4e2] sm:$0xff] }
 0x1c5   : > { %19066 = vmatprep.mubr.msk.f32.mxu1 %vm280_vm1, %v15683_v49  ;;  %v15748_v49 = vld [vmem:[%s21773_s7 + $0x4ea] sm:$0xff] }
 0x1c7   : > { %19517 = vmatmul.mubr.msk.f32.gmra.mrb[24].mxu0 %vm280_vm1, %v22934_v17  ;;  %v15689_v17 = vld [vmem:[%s21773_s7 + $0x5c1] sm:$0xff] }
 0x1c8   : > { %19067 = vmatmul.mubr.msk.f32.gmra.mrb[24].mxu1 %vm280_vm1, %v15684_v57  ;;  %19519 = vmatprep.mubr.msk.f32.mxu0 %vm280_vm1, %v22937_v19  ;;  %v15690_v19 = vld [vmem:[%s21773_s7 + $0x5c9] sm:$0xff] }
 0x1c9   : > { %19069 = vmatprep.mubr.msk.f32.mxu1 %vm280_vm1, %v15685_v37  ;;  %v16314_v57 = vld [vmem:[%s21773_s7 + $0x602] sm:$0xff]  ;;  %v15749_v37 = vld [vmem:[%s21773_s7 + $0x51a] sm:$0xff] }
 0x1cb   : > { %19520 = vmatmul.mubr.msk.f32.gmra.mrb[26].mxu0 %vm280_vm1, %v22948_v23  ;;  %v15691_v23 = vld [vmem:[%s21773_s7 + $0x5f9] sm:$0xff] }
 0x1cc   : > { %19070 = vmatmul.mubr.msk.f32.gmra.mrb[26].mxu1 %vm280_vm1, %v15686_v39  ;;  %19522 = vmatprep.mubr.msk.f32.mxu0 %vm280_vm1, %v22951_v25  ;;  %v15692_v25 = vld [vmem:[%s21773_s7 + $0x601] sm:$0xff]  ;;  %v16315_v39 = vld [vmem:[%s21773_s7 + $0x632] sm:$0xff] }
 0x1cd   : > { %19072 = vmatprep.mubr.msk.f32.mxu1 %vm280_vm1, %v15687_v9  ;;  %v15750_v9 = vld [vmem:[%s21773_s7 + $0x522] sm:$0xff] }
 0x1cf   : > { %19523 = vmatmul.mubr.msk.f32.gmra.mrb[28].mxu0 %vm280_vm1, %v22962_v31  ;;  %v15693_v31 = vld [vmem:[%s21773_s7 + $0x631] sm:$0xff] }
 0x1d0   : > { %19073 = vmatmul.mubr.msk.f32.gmra.mrb[28].mxu1 %vm280_vm1, %v15688_v15  ;;  %19525 = vmatprep.mubr.msk.f32.mxu0 %vm280_vm1, %v22965_v33  ;;  %v15694_v33 = vld [vmem:[%s21773_s7 + $0x639] sm:$0xff] }
 0x1d1   : > { %19075 = vmatprep.mubr.msk.f32.mxu1 %vm280_vm1, %v15689_v17  ;;  %v16316_v15 = vld [vmem:[%s21773_s7 + $0x63a] sm:$0xff]  ;;  %v16317_v17 = vld [vmem:[%s21773_s7 + $0x66a] sm:$0xff] }
 0x1d3   : > { %19526 = vmatmul.mubr.msk.f32.gmra.mrb[30].mxu0 %vm280_vm1, %v22976_v38  ;;  %v15695_v38 = vld [vmem:[%s21773_s7 + $0x669] sm:$0xff] }
 0x1d4   : > { %19076 = vmatmul.mubr.msk.f32.gmra.mrb[30].mxu1 %vm280_vm1, %v15690_v19  ;;  %19528 = vmatprep.mubr.msk.f32.mxu0 %vm280_vm1, %v22979_v40  ;;  %v16261_v40 = vld [vmem:[%s21773_s7 + $0x77c] sm:$0xff]  ;;  %v16318_v19 = vld [vmem:[%s21773_s7 + $0x672] sm:$0xff] }
 0x1d5   : > { %19078 = vmatprep.mubr.msk.f32.mxu1 %vm280_vm1, %v15691_v23  ;;  %v16319_v23 = vld [vmem:[%s21773_s7 + $0x6a2] sm:$0xff] }
 0x1d7   : > { %19529 = vmatmul.mubr.msk.f32.gmra.mrb[32].mxu0 %vm280_vm1, %v22990_v46  ;;  %v15696_v46 = vld [vmem:[%s21773_s7 + $0x671] sm:$0xff] }
 0x1d8   : > { %19079 = vmatmul.mubr.msk.f32.gmra.mrb[32].mxu1 %vm280_vm1, %v15692_v25  ;;  %19531 = vmatprep.mubr.msk.f32.mxu0 %vm280_vm1, %v22996_v50  ;;  %v15697_v50 = vld [vmem:[%s21773_s7 + $0x6a1] sm:$0xff]  ;;  %v16320_v25 = vld [vmem:[%s21773_s7 + $0x6aa] sm:$0xff] }
 0x1d9   : > { %19081 = vmatprep.mubr.msk.f32.mxu1 %vm280_vm1, %v15693_v31  ;;  %v16321_v31 = vld [vmem:[%s21773_s7 + $0x6da] sm:$0xff] }
 0x1db   : > { %19532 = vmatmul.mubr.msk.f32.gmra.mrb[34].mxu0 %vm280_vm1, %v23010_v24  ;;  %v15698_v24 = vld [vmem:[%s21773_s7 + $0x6a9] sm:$0xff] }
 0x1dc   : > { %19082 = vmatmul.mubr.msk.f32.gmra.mrb[34].mxu1 %vm280_vm1, %v15694_v33  ;;  %19534 = vmatprep.mubr.msk.f32.mxu0 %vm280_vm1, %v16261_v40  ;;  %v16322_v33 = vld [vmem:[%s21773_s7 + $0x6e2] sm:$0xff]  ;;  %v16324_v40 = vld [vmem:[%s21773_s7 + $0x71a] sm:$0xff] }
 0x1dd   : > { %19084 = vmatprep.mubr.msk.f32.mxu1 %vm280_vm1, %v15695_v38  ;;  %v16323_v38 = vld [vmem:[%s21773_s7 + $0x712] sm:$0xff] }
 0x1df   : > { %19535 = vmatmul.mubr.msk.f32.gmra.mrb[36].mxu0 %vm280_vm1, %v16262_v30  ;;  %v16326_v30 = vld [vmem:[%s21773_s7 + $0x752] sm:$0xff] }
 0x1e0   : > { %19085 = vmatmul.mubr.msk.f32.gmra.mrb[36].mxu1 %vm280_vm1, %v15696_v46  ;;  %19537 = vmatprep.mubr.msk.f32.mxu0 %vm280_vm1, %v16263_v1  ;;  %v16325_v46 = vld [vmem:[%s21773_s7 + $0x74a] sm:$0xff] }
 0x1e1   : > { %19087 = vmatprep.mubr.msk.f32.mxu1 %vm280_vm1, %v15697_v50  ;;  %v16327_v50 = vld [vmem:[%s21773_s7 + $0x782] sm:$0xff]  ;;  %v16328_v1 = vld [vmem:[%s21773_s7 + $0x78a] sm:$0xff] }
 0x1e3   : > { %19538 = vmatmul.mubr.msk.f32.gmra.mrb[38].mxu0 %vm280_vm1, %v16264_v22  ;;  %v16330_v22 = vld [vmem:[%s21773_s7 + $0x7c2] sm:$0xff] }
 0x1e4   : > { %19088 = vmatmul.mubr.msk.f32.gmra.mrb[38].mxu1 %vm280_vm1, %v15698_v24  ;;  %19540 = vmatprep.mubr.msk.f32.mxu0 %vm280_vm1, %v16265_v16  ;;  %v16329_v24 = vld [vmem:[%s21773_s7 + $0x7ba] sm:$0xff] }
 0x1e5   : > { %19090 = vmatprep.mubr.msk.f32.mxu1 %vm280_vm1, %v15699_v59  ;;  %v16331_v59 = vld [vmem:[%s21773_s7 + $0x7f2] sm:$0xff]  ;;  %v16332_v16 = vld [vmem:[%s21773_s7 + $0x7fa] sm:$0xff] }
 0x1e7   : > { %19541 = vmatmul.mubr.msk.f32.gmra.mrb[40].mxu0 %vm280_vm1, %v16266_v11  ;;  %v16334_v11 = vld [vmem:[%s21773_s7 + $0x832] sm:$0xff] }
 0x1e8   : > { %19091 = vmatmul.mubr.msk.f32.gmra.mrb[40].mxu1 %vm280_vm1, %v15700_v43  ;;  %19543 = vmatprep.mubr.msk.f32.mxu0 %vm280_vm1, %v16267_v62  ;;  %v16333_v43 = vld [vmem:[%s21773_s7 + $0x82a] sm:$0xff] }
 0x1e9   : > { %19093 = vmatprep.mubr.msk.f32.mxu1 %vm280_vm1, %v15701_v0  ;;  %v16335_v0 = vld [vmem:[%s21773_s7 + $0x862] sm:$0xff]  ;;  %v16336_v62 = vld [vmem:[%s21773_s7 + $0x86a] sm:$0xff] }
 0x1eb   : > { %19544 = vmatmul.mubr.msk.f32.gmra.mrb[42].mxu0 %vm280_vm1, %v16268_v27  ;;  %v16338_v27 = vld [vmem:[%s21773_s7 + $0x8a2] sm:$0xff] }
 0x1ec   : > { %19094 = vmatmul.mubr.msk.f32.gmra.mrb[42].mxu1 %vm280_vm1, %v15702_v21  ;;  %19546 = vmatprep.mubr.msk.f32.mxu0 %vm280_vm1, %v16269_v36  ;;  %v16337_v21 = vld [vmem:[%s21773_s7 + $0x89a] sm:$0xff] }
 0x1ed   : > { %19096 = vmatprep.mubr.msk.f32.mxu1 %vm280_vm1, %v22993_v48  ;;  %v16272_v48 = vld [vmem:[%s21773_s7 + $0x89c] sm:$0xff] }
 0x1ee   : > { %v15807_v36 = vld [vmem:[%s21773_s7 + $0x43b] sm:$0xff] }
 0x1ef   : > { %19547 = vmatmul.mubr.msk.f32.gmra.mrb[44].mxu0 %vm280_vm1, %v16270_v42  ;;  %v16373_v42 = vld [vmem:[%s21773_s7 + $0x558] sm:$0xff] }
 0x1f0   : > { %19097 = vmatmul.mubr.msk.f32.gmra.mrb[44].mxu1 %vm280_vm1, %v23007_v58  ;;  %19549 = vmatprep.mubr.msk.f32.mxu0 %vm280_vm1, %v16271_v5  ;;  %v23472_v58 = vld [vmem:[%s21773_s7 + $0x442] sm:$0xff] }
 0x1f1   : > { %19099 = vmatprep.mubr.msk.f32.mxu1 %vm280_vm1, %v15705_v41  ;;  %v15808_v41 = vld [vmem:[%s21773_s7 + $0x443] sm:$0xff] }
 0x1f2   : > { %v16374_v5 = vld [vmem:[%s21773_s7 + $0x560] sm:$0xff] }
 0x1f3   : > { %19550 = vmatmul.mubr.msk.f32.gmra.mrb[46].mxu0 %vm280_vm1, %v16272_v48  ;;  %v16375_v48 = vld [vmem:[%s21773_s7 + $0x590] sm:$0xff] }
 0x1f4   : > { %19100 = vmatmul.mubr.msk.f32.gmra.mrb[46].mxu1 %vm280_vm1, %v15706_v53  ;;  %19554 = vmatprep.mubr.msk.f32.mxu0 %vm280_vm1, %v16307_v55  ;;  %v15809_v53 = vld [vmem:[%s21773_s7 + $0x473] sm:$0xff] }
 0x1f5   : > { %19104 = vmatprep.mubr.msk.f32.mxu1 %vm280_vm1, %v23463_v26 }
 0x1f7   : > { %19555 = vmatmul.mubr.msk.f32.vlgmr.msra.gmra.mrb[16].mxu0 %vm280_vm1, %v16308_v56 }
 0x1f8   : > { %19105 = vmatmul.mubr.msk.f32.vlgmr.msra.gmra.mrb[16].mxu1 %vm280_vm1, %v23472_v58  ;;  %19557 = vmatprep.mubr.msk.f32.mxu0 %vm280_vm1, %v16309_v12 }
 0x1f9   : > { %19153 = vmatpush3.msk.msra.mxu1 %vm377_vm0, %v23331_v6  ;;  %19107 = vmatprep.mubr.msk.f32.mxu1 %vm280_vm1, %v23476_v14  ;;  %v23518_v6 = vld [vmem:[%s21773_s7 + $0x4b2] sm:$0xff] }
 0x1fa   : > { %19603 = vmatpush3.msk.msra.mxu0 %vm377_vm0, %v23336_v51  ;;  %19652 = vmatprep.subr.msk.mxu1 %vm377_vm0, %v23485_v8  ;;  %v16312_v51 = vld [vmem:[%s21773_s7 + $0x5ca] sm:$0xff] }
 0x1fb   : > { %20102 = vmatprep.subr.msk.mxu0 %vm377_vm0, %v23490_v45  ;;  %19558 = vmatmul.mubr.msk.f32.gmra.mrb[18].mxu0 %vm280_vm1, %v16310_v3 }
 0x1fc   : > { %19108 = vmatmul.mubr.msk.f32.gmra.mrb[18].mxu1 %vm280_vm1, %v23497_v61  ;;  %19560 = vmatprep.mubr.msk.f32.mxu0 %vm280_vm1, %v16311_v20 }
 0x1fd   : > { %19110 = vmatprep.mubr.msk.f32.mxu1 %vm280_vm1, %v23504_v63 }
 0x1ff   : > { %19561 = vmatmul.mubr.msk.f32.gmra.mrb[20].mxu0 %vm280_vm1, %v16312_v51 }
 0x200   : > { %19111 = vmatmul.mubr.msk.f32.gmra.mrb[20].mxu1 %vm280_vm1, %v23518_v6  ;;  %19563 = vmatprep.mubr.msk.f32.mxu0 %vm280_vm1, %v16313_v28 }
 0x201   : > { %19113 = vmatprep.mubr.msk.f32.mxu1 %vm280_vm1, %v15747_v7  ;;  %v15813_v7 = vld [vmem:[%s21773_s7 + $0x4e3] sm:$0xff] }
 0x203   : > { %19564 = vmatmul.mubr.msk.f32.gmra.mrb[22].mxu0 %vm280_vm1, %v16314_v57 }
 0x204   : > { %19114 = vmatmul.mubr.msk.f32.gmra.mrb[22].mxu1 %vm280_vm1, %v15748_v49  ;;  %19566 = vmatprep.mubr.msk.f32.mxu0 %vm280_vm1, %v16315_v39  ;;  %v15814_v49 = vld [vmem:[%s21773_s7 + $0x4eb] sm:$0xff] }
 0x205   : > { %19116 = vmatprep.mubr.msk.f32.mxu1 %vm280_vm1, %v15749_v37  ;;  %v15815_v37 = vld [vmem:[%s21773_s7 + $0x51b] sm:$0xff] }
 0x207   : > { %19567 = vmatmul.mubr.msk.f32.gmra.mrb[24].mxu0 %vm280_vm1, %v16316_v15 }
 0x208   : > { %19117 = vmatmul.mubr.msk.f32.gmra.mrb[24].mxu1 %vm280_vm1, %v15750_v9  ;;  %19569 = vmatprep.mubr.msk.f32.mxu0 %vm280_vm1, %v16317_v17  ;;  %v15817_v9 = vld [vmem:[%s21773_s7 + $0x553] sm:$0xff] }
 0x209   : > { %19119 = vmatprep.mubr.msk.f32.mxu1 %vm280_vm1, %v16307_v55  ;;  %v23619_v55 = vld [vmem:[%s26007_s2 + $0x48] sm:$0xf] }
 0x20b   : > { %19570 = vmatmul.mubr.msk.f32.gmra.mrb[26].mxu0 %vm280_vm1, %v16318_v19 }
 0x20c   : > { %19120 = vmatmul.mubr.msk.f32.gmra.mrb[26].mxu1 %vm280_vm1, %v16308_v56  ;;  %19572 = vmatprep.mubr.msk.f32.mxu0 %vm280_vm1, %v16319_v23  ;;  %v23624_v56 = vld [vmem:[%s26007_s2 + $0x6c] sm:$0xf] }
 0x20d   : > { %19122 = vmatprep.mubr.msk.f32.mxu1 %vm280_vm1, %v16309_v12  ;;  %v15810_v12 = vld [vmem:[%s21773_s7 + $0x47b] sm:$0xff] }
 0x20f   : > { %19573 = vmatmul.mubr.msk.f32.gmra.mrb[28].mxu0 %vm280_vm1, %v16320_v25 }
 0x210   : > { %19123 = vmatmul.mubr.msk.f32.gmra.mrb[28].mxu1 %vm280_vm1, %v16310_v3  ;;  %19575 = vmatprep.mubr.msk.f32.mxu0 %vm280_vm1, %v16321_v31  ;;  %v16376_v3 = vld [vmem:[%s21773_s7 + $0x598] sm:$0xff] }
 0x211   : > { %19125 = vmatprep.mubr.msk.f32.mxu1 %vm280_vm1, %v16311_v20  ;;  %v15811_v20 = vld [vmem:[%s21773_s7 + $0x4ab] sm:$0xff] }
 0x213   : > { %19576 = vmatmul.mubr.msk.f32.gmra.mrb[30].mxu0 %vm280_vm1, %v16322_v33 }
 0x214   : > { %19126 = vmatmul.mubr.msk.f32.gmra.mrb[30].mxu1 %vm280_vm1, %v16312_v51  ;;  %19578 = vmatprep.mubr.msk.f32.mxu0 %vm280_vm1, %v16323_v38  ;;  %v16377_v51 = vld [vmem:[%s21773_s7 + $0x5c8] sm:$0xff] }
 0x215   : > { %19128 = vmatprep.mubr.msk.f32.mxu1 %vm280_vm1, %v16313_v28  ;;  %v16379_v28 = vld [vmem:[%s21773_s7 + $0x600] sm:$0xff] }
 0x217   : > { %19579 = vmatmul.mubr.msk.f32.gmra.mrb[32].mxu0 %vm280_vm1, %v16324_v40 }
 0x218   : > { %19129 = vmatmul.mubr.msk.f32.gmra.mrb[32].mxu1 %vm280_vm1, %v16314_v57  ;;  %19581 = vmatprep.mubr.msk.f32.mxu0 %vm280_vm1, %v16325_v46  ;;  %v16380_v57 = vld [vmem:[%s21773_s7 + $0x608] sm:$0xff] }
 0x219   : > { %19131 = vmatprep.mubr.msk.f32.mxu1 %vm280_vm1, %v16315_v39  ;;  %v15816_v39 = vld [vmem:[%s21773_s7 + $0x523] sm:$0xff] }
 0x21b   : > { %19582 = vmatmul.mubr.msk.f32.gmra.mrb[34].mxu0 %vm280_vm1, %v16326_v30 }
 0x21c   : > { %19132 = vmatmul.mubr.msk.f32.gmra.mrb[34].mxu1 %vm280_vm1, %v16316_v15  ;;  %19584 = vmatprep.mubr.msk.f32.mxu0 %vm280_vm1, %v16327_v50  ;;  %v15818_v15 = vld [vmem:[%s21773_s7 + $0x55b] sm:$0xff] }
 0x21d   : > { %19134 = vmatprep.mubr.msk.f32.mxu1 %vm280_vm1, %v16317_v17  ;;  %v15819_v17 = vld [vmem:[%s21773_s7 + $0x58b] sm:$0xff] }
 0x21f   : > { %19585 = vmatmul.mubr.msk.f32.gmra.mrb[36].mxu0 %vm280_vm1, %v16328_v1 }
 0x220   : > { %19135 = vmatmul.mubr.msk.f32.gmra.mrb[36].mxu1 %vm280_vm1, %v16318_v19  ;;  %19587 = vmatprep.mubr.msk.f32.mxu0 %vm280_vm1, %v16329_v24  ;;  %v16394_v19 = vld [vmem:[%s21773_s7 + $0x790] sm:$0xff]  ;;  %v16401_v24 = vld [vmem:[%s21773_s7 + $0x868] sm:$0xff] }
 0x221   : > { %19137 = vmatprep.mubr.msk.f32.mxu1 %vm280_vm1, %v16319_v23  ;;  %v16395_v23 = vld [vmem:[%s21773_s7 + $0x7c0] sm:$0xff] }
 0x223   : > { %19588 = vmatmul.mubr.msk.f32.gmra.mrb[38].mxu0 %vm280_vm1, %v16330_v22  ;;  %v16402_v22 = vld [vmem:[%s21773_s7 + $0x870] sm:$0xff] }
 0x224   : > { %19138 = vmatmul.mubr.msk.f32.gmra.mrb[38].mxu1 %vm280_vm1, %v16320_v25  ;;  %19590 = vmatprep.mubr.msk.f32.mxu0 %vm280_vm1, %v16331_v59  ;;  %v16396_v25 = vld [vmem:[%s21773_s7 + $0x7c8] sm:$0xff] }
 0x225   : > { %19140 = vmatprep.mubr.msk.f32.mxu1 %vm280_vm1, %v16321_v31  ;;  %v15831_v31 = vld [vmem:[%s21773_s7 + $0x6db] sm:$0xff]  ;;  %v15837_v59 = vld [vmem:[%s21773_s7 + $0x783] sm:$0xff] }
 0x227   : > { %19591 = vmatmul.mubr.msk.f32.gmra.mrb[40].mxu0 %vm280_vm1, %v16332_v16  ;;  %v16403_v16 = vld [vmem:[%s21773_s7 + $0x8a0] sm:$0xff] }
 0x228   : > { %19141 = vmatmul.mubr.msk.f32.gmra.mrb[40].mxu1 %vm280_vm1, %v16322_v33  ;;  %19593 = vmatprep.mubr.msk.f32.mxu0 %vm280_vm1, %v16333_v43  ;;  %v16397_v33 = vld [vmem:[%s21773_s7 + $0x7f8] sm:$0xff]  ;;  %v15838_v43 = vld [vmem:[%s21773_s7 + $0x78b] sm:$0xff] }
 0x229   : > { %19143 = vmatprep.mubr.msk.f32.mxu1 %vm280_vm1, %v16323_v38  ;;  %v15832_v38 = vld [vmem:[%s21773_s7 + $0x6e3] sm:$0xff] }
 0x22b   : > { %19594 = vmatmul.mubr.msk.f32.gmra.mrb[42].mxu0 %vm280_vm1, %v16334_v11  ;;  %v16476_v11 = vld [vmem:[%s21773_s7 + $0x162] sm:$0xff] }
 0x22c   : > { %19144 = vmatmul.mubr.msk.f32.gmra.mrb[42].mxu1 %vm280_vm1, %v16324_v40  ;;  %19596 = vmatprep.mubr.msk.f32.mxu0 %vm280_vm1, %v16335_v0  ;;  %v16398_v40 = vld [vmem:[%s21773_s7 + $0x800] sm:$0xff]  ;;  %v11575_v0 = vld [vmem:[%s21773_s7 + $0x12] sm:$0xff] }
 0x22d   : > { %19146 = vmatprep.mubr.msk.f32.mxu1 %vm280_vm1, %v16325_v46  ;;  %v15833_v46 = vld [vmem:[%s21773_s7 + $0x713] sm:$0xff] }
 0x22f   : > { %19597 = vmatmul.mubr.msk.f32.gmra.mrb[44].mxu0 %vm280_vm1, %v16336_v62  ;;  %v11576_v62 = vld [vmem:[%s21773_s7 + $0x1a] sm:$0xff] }
 0x230   : > { %19147 = vmatmul.mubr.msk.f32.gmra.mrb[44].mxu1 %vm280_vm1, %v16326_v30  ;;  %19599 = vmatprep.mubr.msk.f32.mxu0 %vm280_vm1, %v16337_v21  ;;  %v16399_v30 = vld [vmem:[%s21773_s7 + $0x830] sm:$0xff]  ;;  %v16478_v21 = vld [vmem:[%s21773_s7 + $0x19a] sm:$0xff] }
 0x231   : > { %19149 = vmatprep.mubr.msk.f32.mxu1 %vm280_vm1, %v16327_v50  ;;  %v15834_v50 = vld [vmem:[%s21773_s7 + $0x71b] sm:$0xff] }
 0x233   : > { %19600 = vmatmul.mubr.msk.f32.gmra.mrb[46].mxu0 %vm280_vm1, %v16338_v27  ;;  %v11577_v27 = vld [vmem:[%s21773_s7 + $0x4a] sm:$0xff] }
 0x234   : > { %19150 = vmatmul.mubr.msk.f32.gmra.mrb[46].mxu1 %vm280_vm1, %v16328_v1  ;;  %19604 = vmatprep.mubr.msk.f32.mxu0 %vm280_vm1, %v16373_v42  ;;  %v16400_v1 = vld [vmem:[%s21773_s7 + $0x838] sm:$0xff]  ;;  %v23770_v42 = vld [vmem:[%s26007_s2 + $0x74] sm:$0xf] }
 0x235   : > { %19154 = vmatprep.mubr.msk.f32.mxu1 %vm280_vm1, %v15807_v36  ;;  %v23765_v36 = vld [vmem:[%s26007_s2 + $0x50] sm:$0xf] }
 0x237   : > { %19605 = vmatmul.mubr.msk.f32.vlgmr.msra.gmra.mrb[16].mxu0 %vm280_vm1, %v16374_v5  ;;  %v11578_v5 = vld [vmem:[%s21773_s7 + $0x52] sm:$0xff] }
 0x238   : > { %19155 = vmatmul.mubr.msk.f32.vlgmr.msra.gmra.mrb[16].mxu1 %vm280_vm1, %v15808_v41  ;;  %19607 = vmatprep.mubr.msk.f32.mxu0 %vm280_vm1, %v16375_v48  ;;  %v16479_v41 = vld [vmem:[%s21773_s7 + $0x1a2] sm:$0xff] }
 0x239   : > { %19653 = vmatpush3.msk.msra.mxu1 %vm377_vm0, %v23485_v8  ;;  %19157 = vmatprep.mubr.msk.f32.mxu1 %vm280_vm1, %v15809_v53  ;;  %v15812_v8 = vld [vmem:[%s21773_s7 + $0x4b3] sm:$0xff]  ;;  %v11579_v48 = vld [vmem:[%s21773_s7 + $0x82] sm:$0xff] }
 0x23a   : > { %20103 = vmatpush3.msk.msra.mxu0 %vm377_vm0, %v23490_v45  ;;  %19702 = vmatprep.subr.msk.mxu1 %vm377_vm0, %v23619_v55  ;;  %v16378_v45 = vld [vmem:[%s21773_s7 + $0x5d0] sm:$0xff] }
 0x23b   : > { %20152 = vmatprep.subr.msk.mxu0 %vm377_vm0, %v23624_v56  ;;  %19608 = vmatmul.mubr.msk.f32.gmra.mrb[18].mxu0 %vm280_vm1, %v16376_v3  ;;  %v16480_v53 = vld [vmem:[%s21773_s7 + $0x1d2] sm:$0xff]  ;;  %v11581_v3 = vld [vmem:[%s21773_s7 + $0xba] sm:$0xff] }
 0x23c   : > { %19158 = vmatmul.mubr.msk.f32.gmra.mrb[18].mxu1 %vm280_vm1, %v15810_v12  ;;  %19610 = vmatprep.mubr.msk.f32.mxu0 %vm280_vm1, %v16377_v51  ;;  %v16482_v12 = vld [vmem:[%s21773_s7 + $0x20a] sm:$0xff]  ;;  %v11582_v51 = vld [vmem:[%s21773_s7 + $0xc2] sm:$0xff] }
 0x23d   : > { %19160 = vmatprep.mubr.msk.f32.mxu1 %vm280_vm1, %v15811_v20  ;;  %v16483_v20 = vld [vmem:[%s21773_s7 + $0x212] sm:$0xff] }
 0x23f   : > { %19611 = vmatmul.mubr.msk.f32.gmra.mrb[20].mxu0 %vm280_vm1, %v16378_v45  ;;  %v11583_v45 = vld [vmem:[%s21773_s7 + $0xf2] sm:$0xff] }
 0x240   : > { %19161 = vmatmul.mubr.msk.f32.gmra.mrb[20].mxu1 %vm280_vm1, %v15812_v8  ;;  %19613 = vmatprep.mubr.msk.f32.mxu0 %vm280_vm1, %v16379_v28  ;;  %v16484_v8 = vld [vmem:[%s21773_s7 + $0x242] sm:$0xff]  ;;  %v11584_v28 = vld [vmem:[%s21773_s7 + $0xfa] sm:$0xff] }
 0x241   : > { %19163 = vmatprep.mubr.msk.f32.mxu1 %vm280_vm1, %v15813_v7  ;;  %v16485_v7 = vld [vmem:[%s21773_s7 + $0x24a] sm:$0xff] }
 0x243   : > { %19614 = vmatmul.mubr.msk.f32.gmra.mrb[22].mxu0 %vm280_vm1, %v16380_v57  ;;  %v11585_v57 = vld [vmem:[%s21773_s7 + $0x12a] sm:$0xff] }
 0x244   : > { %19164 = vmatmul.mubr.msk.f32.gmra.mrb[22].mxu1 %vm280_vm1, %v15814_v49  ;;  %19616 = vmatprep.mubr.msk.f32.mxu0 %vm280_vm1, %v23225_v10  ;;  %v15820_v10 = vld [vmem:[%s21773_s7 + $0x593] sm:$0xff] }
 0x245   : > { %19166 = vmatprep.mubr.msk.f32.mxu1 %vm280_vm1, %v15815_v37  ;;  %v16486_v49 = vld [vmem:[%s21773_s7 + $0x27a] sm:$0xff]  ;;  %v16487_v37 = vld [vmem:[%s21773_s7 + $0x282] sm:$0xff] }
 0x247   : > { %19617 = vmatmul.mubr.msk.f32.gmra.mrb[24].mxu0 %vm280_vm1, %v23236_v60  ;;  %v15821_v60 = vld [vmem:[%s21773_s7 + $0x5c3] sm:$0xff] }
 0x248   : > { %19167 = vmatmul.mubr.msk.f32.gmra.mrb[24].mxu1 %vm280_vm1, %v15816_v39  ;;  %19619 = vmatprep.mubr.msk.f32.mxu0 %vm280_vm1, %v23239_v2  ;;  %v15822_v2 = vld [vmem:[%s21773_s7 + $0x5cb] sm:$0xff] }
 0x249   : > { %19169 = vmatprep.mubr.msk.f32.mxu1 %vm280_vm1, %v15817_v9  ;;  %v11586_v39 = vld [vmem:[%s21773_s7 + $0x132] sm:$0xff] }
 0x24a   : > { %v16488_v9 = vld [vmem:[%s21773_s7 + $0x2b2] sm:$0xff] }
 0x24b   : > { %19620 = vmatmul.mubr.msk.f32.gmra.mrb[26].mxu0 %vm280_vm1, %v23250_v54  ;;  %v15823_v54 = vld [vmem:[%s21773_s7 + $0x5fb] sm:$0xff] }
 0x24c   : > { %19170 = vmatmul.mubr.msk.f32.gmra.mrb[26].mxu1 %vm280_vm1, %v15818_v15  ;;  %19622 = vmatprep.mubr.msk.f32.mxu0 %vm280_vm1, %v23253_v32  ;;  %v15824_v32 = vld [vmem:[%s21773_s7 + $0x603] sm:$0xff]  ;;  %v16489_v15 = vld [vmem:[%s21773_s7 + $0x2ba] sm:$0xff] }
 0x24d   : > { %19172 = vmatprep.mubr.msk.f32.mxu1 %vm280_vm1, %v15819_v17  ;;  %v16490_v17 = vld [vmem:[%s21773_s7 + $0x2ea] sm:$0xff] }
 0x24f   : > { %19623 = vmatmul.mubr.msk.f32.gmra.mrb[28].mxu0 %vm280_vm1, %v23264_v13  ;;  %v15825_v13 = vld [vmem:[%s21773_s7 + $0x633] sm:$0xff] }
 0x250   : > { %19173 = vmatmul.mubr.msk.f32.gmra.mrb[28].mxu1 %vm280_vm1, %v15820_v10  ;;  %19625 = vmatprep.mubr.msk.f32.mxu0 %vm280_vm1, %v23267_v34  ;;  %v15826_v34 = vld [vmem:[%s21773_s7 + $0x63b] sm:$0xff]  ;;  %v16491_v10 = vld [vmem:[%s21773_s7 + $0x2f2] sm:$0xff] }
 0x251   : > { %19175 = vmatprep.mubr.msk.f32.mxu1 %vm280_vm1, %v15821_v60  ;;  %v16492_v60 = vld [vmem:[%s21773_s7 + $0x322] sm:$0xff] }
 0x253   : > { %19626 = vmatmul.mubr.msk.f32.gmra.mrb[30].mxu0 %vm280_vm1, %v23278_v29  ;;  %v15827_v29 = vld [vmem:[%s21773_s7 + $0x66b] sm:$0xff] }
 0x254   : > { %19176 = vmatmul.mubr.msk.f32.gmra.mrb[30].mxu1 %vm280_vm1, %v15822_v2  ;;  %19628 = vmatprep.mubr.msk.f32.mxu0 %vm280_vm1, %v23281_v35  ;;  %v16393_v35 = vld [vmem:[%s21773_s7 + $0x788] sm:$0xff] }
 0x255   : > { %19178 = vmatprep.mubr.msk.f32.mxu1 %vm280_vm1, %v15823_v54  ;;  %v16493_v2 = vld [vmem:[%s21773_s7 + $0x32a] sm:$0xff]  ;;  %v16494_v54 = vld [vmem:[%s21773_s7 + $0x35a] sm:$0xff] }
 0x257   : > { %19629 = vmatmul.mubr.msk.f32.gmra.mrb[32].mxu0 %vm280_vm1, %v23292_v44  ;;  %v15828_v44 = vld [vmem:[%s21773_s7 + $0x673] sm:$0xff] }
 0x258   : > { %19179 = vmatmul.mubr.msk.f32.gmra.mrb[32].mxu1 %vm280_vm1, %v15824_v32  ;;  %19631 = vmatprep.mubr.msk.f32.mxu0 %vm280_vm1, %v23298_v18  ;;  %v15829_v18 = vld [vmem:[%s21773_s7 + $0x6a3] sm:$0xff] }
 0x259   : > { %19181 = vmatprep.mubr.msk.f32.mxu1 %vm280_vm1, %v15825_v13  ;;  %v16495_v32 = vld [vmem:[%s21773_s7 + $0x362] sm:$0xff]  ;;  %v16496_v13 = vld [vmem:[%s21773_s7 + $0x392] sm:$0xff] }
 0x25b   : > { %19632 = vmatmul.mubr.msk.f32.gmra.mrb[34].mxu0 %vm280_vm1, %v23312_v47  ;;  %v15830_v47 = vld [vmem:[%s21773_s7 + $0x6ab] sm:$0xff] }
 0x25c   : > { %19182 = vmatmul.mubr.msk.f32.gmra.mrb[34].mxu1 %vm280_vm1, %v15826_v34  ;;  %19634 = vmatprep.mubr.msk.f32.mxu0 %vm280_vm1, %v16393_v35  ;;  %v16497_v34 = vld [vmem:[%s21773_s7 + $0x39a] sm:$0xff]  ;;  %v16499_v35 = vld [vmem:[%s21773_s7 + $0x3d2] sm:$0xff] }
 0x25d   : > { %19184 = vmatprep.mubr.msk.f32.mxu1 %vm280_vm1, %v15827_v29  ;;  %v16498_v29 = vld [vmem:[%s21773_s7 + $0x3ca] sm:$0xff] }
 0x25f   : > { %19635 = vmatmul.mubr.msk.f32.gmra.mrb[36].mxu0 %vm280_vm1, %v16394_v19  ;;  %v16501_v19 = vld [vmem:[%s21773_s7 + $0x40a] sm:$0xff] }
 0x260   : > { %19185 = vmatmul.mubr.msk.f32.gmra.mrb[36].mxu1 %vm280_vm1, %v15828_v44  ;;  %19637 = vmatprep.mubr.msk.f32.mxu0 %vm280_vm1, %v16395_v23  ;;  %v16500_v44 = vld [vmem:[%s21773_s7 + $0x402] sm:$0xff]  ;;  %v23896_v23 = vld [vmem:[%s26007_s2 + $0x78] sm:$0xf] }
 0x261   : > { %19187 = vmatprep.mubr.msk.f32.mxu1 %vm280_vm1, %v15829_v18  ;;  %v11543_v18 = vld [vmem:[%s21773_s7 + $0x38] sm:$0xff] }
 0x263   : > { %19638 = vmatmul.mubr.msk.f32.gmra.mrb[38].mxu0 %vm280_vm1, %v16396_v25  ;;  %v11544_v25 = vld [vmem:[%s21773_s7 + $0x40] sm:$0xff] }
 0x264   : > { %19188 = vmatmul.mubr.msk.f32.gmra.mrb[38].mxu1 %vm280_vm1, %v15830_v47  ;;  %19640 = vmatprep.mubr.msk.f32.mxu0 %vm280_vm1, %v16397_v33  ;;  %v16446_v47 = vld [vmem:[%s21773_s7 + $0x196] sm:$0xff] }
 0x265   : > { %19190 = vmatprep.mubr.msk.f32.mxu1 %vm280_vm1, %v15831_v31  ;;  %v16447_v31 = vld [vmem:[%s21773_s7 + $0x1c6] sm:$0xff]  ;;  %v11545_v33 = vld [vmem:[%s21773_s7 + $0x70] sm:$0xff] }
 0x267   : > { %19641 = vmatmul.mubr.msk.f32.gmra.mrb[40].mxu0 %vm280_vm1, %v16398_v40  ;;  %v11546_v40 = vld [vmem:[%s21773_s7 + $0x78] sm:$0xff] }
 0x268   : > { %19191 = vmatmul.mubr.msk.f32.gmra.mrb[40].mxu1 %vm280_vm1, %v15832_v38  ;;  %19643 = vmatprep.mubr.msk.f32.mxu0 %vm280_vm1, %v16399_v30  ;;  %v16448_v38 = vld [vmem:[%s21773_s7 + $0x1ce] sm:$0xff] }
 0x269   : > { %19193 = vmatprep.mubr.msk.f32.mxu1 %vm280_vm1, %v15833_v46  ;;  %v16449_v46 = vld [vmem:[%s21773_s7 + $0x1fe] sm:$0xff]  ;;  %v11547_v30 = vld [vmem:[%s21773_s7 + $0xa8] sm:$0xff] }
 0x26b   : > { %19644 = vmatmul.mubr.msk.f32.gmra.mrb[42].mxu0 %vm280_vm1, %v16400_v1  ;;  %v11548_v1 = vld [vmem:[%s21773_s7 + $0xb0] sm:$0xff] }
 0x26c   : > { %19194 = vmatmul.mubr.msk.f32.gmra.mrb[42].mxu1 %vm280_vm1, %v15834_v50  ;;  %19646 = vmatprep.mubr.msk.f32.mxu0 %vm280_vm1, %v16401_v24  ;;  %v16450_v50 = vld [vmem:[%s21773_s7 + $0x206] sm:$0xff]  ;;  %v16451_v24 = vld [vmem:[%s21773_s7 + $0x236] sm:$0xff] }
 0x26d   : > { %19196 = vmatprep.mubr.msk.f32.mxu1 %vm280_vm1, %v23295_v52  ;;  %v16404_v52 = vld [vmem:[%s21773_s7 + $0x8a8] sm:$0xff] }
 0x26f   : > { %19647 = vmatmul.mubr.msk.f32.gmra.mrb[44].mxu0 %vm280_vm1, %v16402_v22  ;;  %v11549_v22 = vld [vmem:[%s21773_s7 + $0xe0] sm:$0xff] }
 0x270   : > { %19197 = vmatmul.mubr.msk.f32.gmra.mrb[44].mxu1 %vm280_vm1, %v23309_v4  ;;  %19649 = vmatprep.mubr.msk.f32.mxu0 %vm280_vm1, %v16403_v16  ;;  %v16477_v4 = vld [vmem:[%s21773_s7 + $0x16a] sm:$0xff] }
 0x271   : > { %19199 = vmatprep.mubr.msk.f32.mxu1 %vm280_vm1, %v15837_v59  ;;  %v16452_v59 = vld [vmem:[%s21773_s7 + $0x23e] sm:$0xff]  ;;  %v11550_v16 = vld [vmem:[%s21773_s7 + $0xe8] sm:$0xff] }
 0x273   : > { %19650 = vmatmul.mubr.msk.f32.gmra.mrb[46].mxu0 %vm280_vm1, %v16404_v52  ;;  %v11551_v52 = vld [vmem:[%s21773_s7 + $0x118] sm:$0xff] }
 0x274   : > { %19200 = vmatmul.mubr.msk.f32.gmra.mrb[46].mxu1 %vm280_vm1, %v15838_v43  ;;  %20104 = vmatprep.mubr.msk.f32.mxu0 %vm280_vm1, %v11575_v0  ;;  %v16453_v43 = vld [vmem:[%s21773_s7 + $0x26e] sm:$0xff]  ;;  %v11552_v0 = vld [vmem:[%s21773_s7 + $0x120] sm:$0xff] }
 0x275   : > { %19654 = vmatprep.mubr.msk.f32.mxu1 %vm280_vm1, %v16476_v11 }
 0x277   : > { %20105 = vmatmul.mubr.msk.f32.vlgmr.msra.gmra.mrb[48].mxu0 %vm280_vm1, %v11576_v62  ;;  %v11553_v62 = vld [vmem:[%s21773_s7 + $0x150] sm:$0xff] }
 0x278   : > { %19655 = vmatmul.mubr.msk.f32.vlgmr.msra.gmra.mrb[48].mxu1 %vm280_vm1, %v16477_v4  ;;  %20107 = vmatprep.mubr.msk.f32.mxu0 %vm280_vm1, %v11577_v27  ;;  %v11554_v27 = vld [vmem:[%s21773_s7 + $0x158] sm:$0xff] }
 0x279   : > { %19703 = vmatpush3.msk.msra.mxu1 %vm377_vm0, %v23619_v55  ;;  %19657 = vmatprep.mubr.msk.f32.mxu1 %vm280_vm1, %v16478_v21  ;;  %v16481_v55 = vld [vmem:[%s21773_s7 + $0x1da] sm:$0xff] }
 0x27a   : > { %20153 = vmatpush3.msk.msra.mxu0 %vm377_vm0, %v23624_v56  ;;  %19752 = vmatprep.subr.msk.mxu1 %vm377_vm0, %v23765_v36  ;;  %v11580_v56 = vld [vmem:[%s21773_s7 + $0x8a] sm:$0xff] }
 0x27b   : > { %20202 = vmatprep.subr.msk.mxu0 %vm377_vm0, %v23770_v42  ;;  %20108 = vmatmul.mubr.msk.f32.gmra.mrb[50].mxu0 %vm280_vm1, %v11578_v5  ;;  %v11556_v5 = vld [vmem:[%s21773_s7 + $0x190] sm:$0xff] }
 0x27c   : > { %19658 = vmatmul.mubr.msk.f32.gmra.mrb[50].mxu1 %vm280_vm1, %v16479_v41  ;;  %20110 = vmatprep.mubr.msk.f32.mxu0 %vm280_vm1, %v11579_v48  ;;  %v11557_v48 = vld [vmem:[%s21773_s7 + $0x1c0] sm:$0xff] }
 0x27d   : > { %19660 = vmatprep.mubr.msk.f32.mxu1 %vm280_vm1, %v16480_v53 }
 0x27f   : > { %20111 = vmatmul.mubr.msk.f32.gmra.mrb[52].mxu0 %vm280_vm1, %v11580_v56  ;;  %v11558_v56 = vld [vmem:[%s21773_s7 + $0x1c8] sm:$0xff] }
 0x280   : > { %19661 = vmatmul.mubr.msk.f32.gmra.mrb[52].mxu1 %vm280_vm1, %v16481_v55  ;;  %20113 = vmatprep.mubr.msk.f32.mxu0 %vm280_vm1, %v11581_v3  ;;  %v11559_v3 = vld [vmem:[%s21773_s7 + $0x1f8] sm:$0xff] }
 0x281   : > { %19663 = vmatprep.mubr.msk.f32.mxu1 %vm280_vm1, %v16482_v12 }
 0x283   : > { %20114 = vmatmul.mubr.msk.f32.gmra.mrb[54].mxu0 %vm280_vm1, %v11582_v51  ;;  %v11560_v51 = vld [vmem:[%s21773_s7 + $0x200] sm:$0xff] }
 0x284   : > { %19664 = vmatmul.mubr.msk.f32.gmra.mrb[54].mxu1 %vm280_vm1, %v16483_v20  ;;  %20116 = vmatprep.mubr.msk.f32.mxu0 %vm280_vm1, %v11583_v45  ;;  %v11561_v45 = vld [vmem:[%s21773_s7 + $0x230] sm:$0xff] }
 0x285   : > { %19666 = vmatprep.mubr.msk.f32.mxu1 %vm280_vm1, %v16484_v8 }
 0x287   : > { %20117 = vmatmul.mubr.msk.f32.gmra.mrb[56].mxu0 %vm280_vm1, %v11584_v28  ;;  %v11562_v28 = vld [vmem:[%s21773_s7 + $0x238] sm:$0xff] }
 0x288   : > { %19667 = vmatmul.mubr.msk.f32.gmra.mrb[56].mxu1 %vm280_vm1, %v16485_v7  ;;  %20119 = vmatprep.mubr.msk.f32.mxu0 %vm280_vm1, %v11585_v57  ;;  %v11563_v57 = vld [vmem:[%s21773_s7 + $0x268] sm:$0xff] }
 0x289   : > { %19669 = vmatprep.mubr.msk.f32.mxu1 %vm280_vm1, %v16486_v49 }
 0x28b   : > { %20120 = vmatmul.mubr.msk.f32.gmra.mrb[58].mxu0 %vm280_vm1, %v11586_v39  ;;  %v11564_v39 = vld [vmem:[%s21773_s7 + $0x270] sm:$0xff] }
 0x28c   : > { %19670 = vmatmul.mubr.msk.f32.gmra.mrb[58].mxu1 %vm280_vm1, %v16487_v37  ;;  %20122 = vmatprep.mubr.msk.f32.mxu0 %vm280_vm1, %v16476_v11  ;;  %v16454_v11 = vld [vmem:[%s21773_s7 + $0x276] sm:$0xff] }
 0x28d   : > { %19672 = vmatprep.mubr.msk.f32.mxu1 %vm280_vm1, %v16488_v9 }
 0x28f   : > { %20123 = vmatmul.mubr.msk.f32.gmra.mrb[60].mxu0 %vm280_vm1, %v16477_v4  ;;  %v16455_v4 = vld [vmem:[%s21773_s7 + $0x2a6] sm:$0xff] }
 0x290   : > { %19673 = vmatmul.mubr.msk.f32.gmra.mrb[60].mxu1 %vm280_vm1, %v16489_v15  ;;  %20125 = vmatprep.mubr.msk.f32.mxu0 %vm280_vm1, %v16478_v21  ;;  %v16456_v21 = vld [vmem:[%s21773_s7 + $0x2ae] sm:$0xff] }
 0x291   : > { %19675 = vmatprep.mubr.msk.f32.mxu1 %vm280_vm1, %v16490_v17 }
 0x293   : > { %20126 = vmatmul.mubr.msk.f32.gmra.mrb[62].mxu0 %vm280_vm1, %v16479_v41  ;;  %v16458_v41 = vld [vmem:[%s21773_s7 + $0x2e6] sm:$0xff] }
 0x294   : > { %19676 = vmatmul.mubr.msk.f32.gmra.mrb[62].mxu1 %vm280_vm1, %v16491_v10  ;;  %20128 = vmatprep.mubr.msk.f32.mxu0 %vm280_vm1, %v16480_v53  ;;  %v16459_v53 = vld [vmem:[%s21773_s7 + $0x316] sm:$0xff] }
 0x295   : > { %19678 = vmatprep.mubr.msk.f32.mxu1 %vm280_vm1, %v16492_v60 }
 0x297   : > { %20129 = vmatmul.mubr.msk.f32.gmra.mrb[64].mxu0 %vm280_vm1, %v16481_v55  ;;  %v16460_v55 = vld [vmem:[%s21773_s7 + $0x31e] sm:$0xff] }
 0x298   : > { %19679 = vmatmul.mubr.msk.f32.gmra.mrb[64].mxu1 %vm280_vm1, %v16493_v2  ;;  %20131 = vmatprep.mubr.msk.f32.mxu0 %vm280_vm1, %v16482_v12  ;;  %v16461_v12 = vld [vmem:[%s21773_s7 + $0x34e] sm:$0xff] }
 0x299   : > { %19681 = vmatprep.mubr.msk.f32.mxu1 %vm280_vm1, %v16494_v54 }
 0x29b   : > { %20132 = vmatmul.mubr.msk.f32.gmra.mrb[66].mxu0 %vm280_vm1, %v16483_v20  ;;  %v16462_v20 = vld [vmem:[%s21773_s7 + $0x356] sm:$0xff] }
 0x29c   : > { %19682 = vmatmul.mubr.msk.f32.gmra.mrb[66].mxu1 %vm280_vm1, %v16495_v32  ;;  %20134 = vmatprep.mubr.msk.f32.mxu0 %vm280_vm1, %v16484_v8  ;;  %v16463_v8 = vld [vmem:[%s21773_s7 + $0x386] sm:$0xff] }
 0x29d   : > { %19684 = vmatprep.mubr.msk.f32.mxu1 %vm280_vm1, %v16496_v13  ;;  %v24018_v13 = vld [vmem:[%s21773_s7 + $0x466] sm:$0xff] }
 0x29f   : > { %20135 = vmatmul.mubr.msk.f32.gmra.mrb[68].mxu0 %vm280_vm1, %v16485_v7  ;;  %v16464_v7 = vld [vmem:[%s21773_s7 + $0x38e] sm:$0xff] }
 0x2a0   : > { %19685 = vmatmul.mubr.msk.f32.gmra.mrb[68].mxu1 %vm280_vm1, %v16497_v34  ;;  %20137 = vmatprep.mubr.msk.f32.mxu0 %vm280_vm1, %v16486_v49  ;;  %v16465_v49 = vld [vmem:[%s21773_s7 + $0x3be] sm:$0xff]  ;;  %v11569_v34 = vld [vmem:[%s21773_s7 + $0x310] sm:$0xff] }
 0x2a1   : > { %19687 = vmatprep.mubr.msk.f32.mxu1 %vm280_vm1, %v16498_v29  ;;  %v24028_v29 = vld [vmem:[%s21773_s7 + $0x46e] sm:$0xff] }
 0x2a3   : > { %20138 = vmatmul.mubr.msk.f32.gmra.mrb[70].mxu0 %vm280_vm1, %v16487_v37  ;;  %v16466_v37 = vld [vmem:[%s21773_s7 + $0x3c6] sm:$0xff] }
 0x2a4   : > { %19688 = vmatmul.mubr.msk.f32.gmra.mrb[70].mxu1 %vm280_vm1, %v16499_v35  ;;  %20140 = vmatprep.mubr.msk.f32.mxu0 %vm280_vm1, %v16488_v9  ;;  %v23991_v9 = vld [vmem:[%s21773_s7 + $0x3f6] sm:$0xff] }
 0x2a5   : > { %19690 = vmatprep.mubr.msk.f32.mxu1 %vm280_vm1, %v16500_v44  ;;  %v11570_v35 = vld [vmem:[%s21773_s7 + $0x318] sm:$0xff] }
 0x2a6   : > { %v24032_v44 = vld [vmem:[%s21773_s7 + $0x49e] sm:$0xff] }
 0x2a7   : > { %20141 = vmatmul.mubr.msk.f32.gmra.mrb[72].mxu0 %vm280_vm1, %v16489_v15  ;;  %v11565_v15 = vld [vmem:[%s21773_s7 + $0x2a0] sm:$0xff] }
 0x2a8   : > { %19691 = vmatmul.mubr.msk.f32.gmra.mrb[72].mxu1 %vm280_vm1, %v16501_v19  ;;  %20143 = vmatprep.mubr.msk.f32.mxu0 %vm280_vm1, %v16490_v17  ;;  %v24000_v17 = vld [vmem:[%s21773_s7 + $0x3fe] sm:$0xff]  ;;  %v11571_v19 = vld [vmem:[%s21773_s7 + $0x348] sm:$0xff] }
 0x2a9   : > { %19693 = vmatprep.mubr.msk.f32.mxu1 %vm280_vm1, %v23463_v26  ;;  %v16443_v26 = vld [vmem:[%s21773_s7 + $0x156] sm:$0xff] }
 0x2ab   : > { %20144 = vmatmul.mubr.msk.f32.gmra.mrb[74].mxu0 %vm280_vm1, %v16491_v10  ;;  %v11566_v10 = vld [vmem:[%s21773_s7 + $0x2a8] sm:$0xff] }
 0x2ac   : > { %19694 = vmatmul.mubr.msk.f32.gmra.mrb[74].mxu1 %vm280_vm1, %v23472_v58  ;;  %20146 = vmatprep.mubr.msk.f32.mxu0 %vm280_vm1, %v16492_v60  ;;  %v11541_v58 = vld [vmem:[%s21773_s7] sm:$0xff]  ;;  %v24004_v60 = vld [vmem:[%s21773_s7 + $0x42e] sm:$0xff] }
 0x2ad   : > { %19696 = vmatprep.mubr.msk.f32.mxu1 %vm280_vm1, %v23476_v14  ;;  %v16444_v14 = vld [vmem:[%s21773_s7 + $0x15e] sm:$0xff] }
 0x2af   : > { %20147 = vmatmul.mubr.msk.f32.gmra.mrb[76].mxu0 %vm280_vm1, %v16493_v2  ;;  %v11567_v2 = vld [vmem:[%s21773_s7 + $0x2d8] sm:$0xff] }
 0x2b0   : > { %19697 = vmatmul.mubr.msk.f32.gmra.mrb[76].mxu1 %vm280_vm1, %v23497_v61  ;;  %20149 = vmatprep.mubr.msk.f32.mxu0 %vm280_vm1, %v16494_v54  ;;  %v11542_v61 = vld [vmem:[%s21773_s7 + $0x8] sm:$0xff]  ;;  %v24014_v54 = vld [vmem:[%s21773_s7 + $0x436] sm:$0xff] }
 0x2b1   : > { %19699 = vmatprep.mubr.msk.f32.mxu1 %vm280_vm1, %v23504_v63  ;;  %v16445_v63 = vld [vmem:[%s21773_s7 + $0x18e] sm:$0xff] }
 0x2b3   : > { %20150 = vmatmul.mubr.msk.f32.gmra.mrb[78].mxu0 %vm280_vm1, %v16495_v32  ;;  %v11568_v32 = vld [vmem:[%s21773_s7 + $0x2e0] sm:$0xff] }
 0x2b4   : > { %19700 = vmatmul.mubr.msk.f32.gmra.mrb[78].mxu1 %vm280_vm1, %v23518_v6  ;;  %20154 = vmatprep.mubr.msk.f32.mxu0 %vm280_vm1, %v11541_v58  ;;  %v23891_v6 = vld [vmem:[%s26007_s2 + $0x54] sm:$0xf] }
 0x2b5   : > { %19704 = vmatprep.mubr.msk.f32.mxu1 %vm280_vm1, %v16443_v26  ;;  %v24042_v26 = vld [vmem:[%s21773_s7 + $0x4a6] sm:$0xff]  ;;  %v11572_v58 = vld [vmem:[%s21773_s7 + $0x350] sm:$0xff] }
 0x2b7   : > { %20155 = vmatmul.mubr.msk.f32.vlgmr.msra.gmra.mrb[48].mxu0 %vm280_vm1, %v11542_v61  ;;  %v12257_v61 = vld [vmem:[%s21773_s7 + $0x24] sm:$0xff] }
 0x2b8   : > { %19705 = vmatmul.mubr.msk.f32.vlgmr.msra.gmra.mrb[48].mxu1 %vm280_vm1, %v16444_v14  ;;  %20157 = vmatprep.mubr.msk.f32.mxu0 %vm280_vm1, %v11543_v18  ;;  %v16575_v14 = vld [vmem:[%s21773_s7 + $0x16e] sm:$0xff] }
 0x2b9   : > { %19753 = vmatpush3.msk.msra.mxu1 %vm377_vm0, %v23765_v36  ;;  %19707 = vmatprep.mubr.msk.f32.mxu1 %vm280_vm1, %v16445_v63  ;;  %v16457_v36 = vld [vmem:[%s21773_s7 + $0x2de] sm:$0xff]  ;;  %v16576_v63 = vld [vmem:[%s21773_s7 + $0x176] sm:$0xff]  ;;  %v12258_v18 = vld [vmem:[%s21773_s7 + $0x2c] sm:$0xff] }
 0x2ba   : > { %20203 = vmatpush3.msk.msra.mxu0 %vm377_vm0, %v23770_v42  ;;  %19802 = vmatprep.subr.msk.mxu1 %vm377_vm0, %v23891_v6  ;;  %v11555_v42 = vld [vmem:[%s21773_s7 + $0x188] sm:$0xff] }
 0x2bb   : > { %20252 = vmatprep.subr.msk.mxu0 %vm377_vm0, %v23896_v23  ;;  %20158 = vmatmul.mubr.msk.f32.gmra.mrb[50].mxu0 %vm280_vm1, %v11544_v25  ;;  %v12259_v25 = vld [vmem:[%s21773_s7 + $0x5c] sm:$0xff] }
 0x2bc   : > { %19708 = vmatmul.mubr.msk.f32.gmra.mrb[50].mxu1 %vm280_vm1, %v16446_v47  ;;  %20160 = vmatprep.mubr.msk.f32.mxu0 %vm280_vm1, %v11545_v33  ;;  %v16577_v47 = vld [vmem:[%s21773_s7 + $0x1a6] sm:$0xff]  ;;  %v24066_v33 = vld [vmem:[%s26007_s2 + $0x7c] sm:$0xf] }
 0x2bd   : > { %19710 = vmatprep.mubr.msk.f32.mxu1 %vm280_vm1, %v16447_v31  ;;  %v24061_v31 = vld [vmem:[%s26007_s2 + $0x58] sm:$0xf] }
 0x2bf   : > { %20161 = vmatmul.mubr.msk.f32.gmra.mrb[52].mxu0 %vm280_vm1, %v11546_v40  ;;  %v12260_v40 = vld [vmem:[%s21773_s7 + $0x64] sm:$0xff] }
 0x2c0   : > { %19711 = vmatmul.mubr.msk.f32.gmra.mrb[52].mxu1 %vm280_vm1, %v16448_v38  ;;  %20163 = vmatprep.mubr.msk.f32.mxu0 %vm280_vm1, %v11547_v30  ;;  %v16578_v38 = vld [vmem:[%s21773_s7 + $0x1ae] sm:$0xff] }
 0x2c1   : > { %19713 = vmatprep.mubr.msk.f32.mxu1 %vm280_vm1, %v16449_v46  ;;  %v16579_v46 = vld [vmem:[%s21773_s7 + $0x1de] sm:$0xff]  ;;  %v12261_v30 = vld [vmem:[%s21773_s7 + $0x94] sm:$0xff] }
 0x2c3   : > { %20164 = vmatmul.mubr.msk.f32.gmra.mrb[54].mxu0 %vm280_vm1, %v11548_v1  ;;  %v12263_v1 = vld [vmem:[%s21773_s7 + $0xcc] sm:$0xff] }
 0x2c4   : > { %19714 = vmatmul.mubr.msk.f32.gmra.mrb[54].mxu1 %vm280_vm1, %v16450_v50  ;;  %20166 = vmatprep.mubr.msk.f32.mxu0 %vm280_vm1, %v11549_v22  ;;  %v16581_v50 = vld [vmem:[%s21773_s7 + $0x216] sm:$0xff] }
 0x2c5   : > { %19716 = vmatprep.mubr.msk.f32.mxu1 %vm280_vm1, %v16451_v24  ;;  %v16582_v24 = vld [vmem:[%s21773_s7 + $0x21e] sm:$0xff]  ;;  %v12264_v22 = vld [vmem:[%s21773_s7 + $0xd4] sm:$0xff] }
 0x2c7   : > { %20167 = vmatmul.mubr.msk.f32.gmra.mrb[56].mxu0 %vm280_vm1, %v11550_v16  ;;  %v12265_v16 = vld [vmem:[%s21773_s7 + $0x104] sm:$0xff] }
 0x2c8   : > { %19717 = vmatmul.mubr.msk.f32.gmra.mrb[56].mxu1 %vm280_vm1, %v16452_v59  ;;  %20169 = vmatprep.mubr.msk.f32.mxu0 %vm280_vm1, %v11551_v52  ;;  %v16583_v59 = vld [vmem:[%s21773_s7 + $0x24e] sm:$0xff] }
 0x2c9   : > { %19719 = vmatprep.mubr.msk.f32.mxu1 %vm280_vm1, %v16453_v43  ;;  %v16584_v43 = vld [vmem:[%s21773_s7 + $0x256] sm:$0xff]  ;;  %v12266_v52 = vld [vmem:[%s21773_s7 + $0x10c] sm:$0xff] }
 0x2cb   : > { %20170 = vmatmul.mubr.msk.f32.gmra.mrb[58].mxu0 %vm280_vm1, %v11552_v0  ;;  %v12267_v0 = vld [vmem:[%s21773_s7 + $0x13c] sm:$0xff] }
 0x2cc   : > { %19720 = vmatmul.mubr.msk.f32.gmra.mrb[58].mxu1 %vm280_vm1, %v16454_v11  ;;  %20172 = vmatprep.mubr.msk.f32.mxu0 %vm280_vm1, %v11553_v62  ;;  %v16585_v11 = vld [vmem:[%s21773_s7 + $0x286] sm:$0xff]  ;;  %v24116_v62 = vld [vmem:[%s26008_s3 + $0x2] ss:$0 sm:$0xff] }
 0x2cd   : > { %19722 = vmatprep.mubr.msk.f32.mxu1 %vm280_vm1, %v16455_v4  ;;  %v24111_v4 = vld [vmem:[%s26008_s3 + $0x1] ss:$0 sm:$0xff] }
 0x2cf   : > { %20173 = vmatmul.mubr.msk.f32.gmra.mrb[60].mxu0 %vm280_vm1, %v11554_v27  ;;  %v12268_v27 = vld [vmem:[%s21773_s7 + $0x144] sm:$0xff] }
 0x2d0   : > { %19723 = vmatmul.mubr.msk.f32.gmra.mrb[60].mxu1 %vm280_vm1, %v16456_v21  ;;  %20175 = vmatprep.mubr.msk.f32.mxu0 %vm280_vm1, %v11555_v42  ;;  %v16586_v21 = vld [vmem:[%s21773_s7 + $0x28e] sm:$0xff] }
 0x2d1   : > { %19725 = vmatprep.mubr.msk.f32.mxu1 %vm280_vm1, %v16457_v36  ;;  %v16587_v36 = vld [vmem:[%s21773_s7 + $0x2be] sm:$0xff]  ;;  %v12269_v42 = vld [vmem:[%s21773_s7 + $0x174] sm:$0xff] }
 0x2d3   : > { %20176 = vmatmul.mubr.msk.f32.gmra.mrb[62].mxu0 %vm280_vm1, %v11556_v5 }
 0x2d4   : > { %19726 = vmatmul.mubr.msk.f32.gmra.mrb[62].mxu1 %vm280_vm1, %v16458_v41  ;;  %20178 = vmatprep.mubr.msk.f32.mxu0 %vm280_vm1, %v11557_v48  ;;  %v24132_v48 = vld [vmem:[%s26009_s4 + $0x2] ss:$0 sm:$0xff] }
 0x2d5   : > { %19728 = vmatprep.mubr.msk.f32.mxu1 %vm280_vm1, %v16459_v53  ;;  %v24127_v53 = vld [vmem:[%s26009_s4 + $0x1] ss:$0 sm:$0xff] }
 0x2d7   : > { %20179 = vmatmul.mubr.msk.f32.gmra.mrb[64].mxu0 %vm280_vm1, %v11558_v56 }
 0x2d8   : > { %19729 = vmatmul.mubr.msk.f32.gmra.mrb[64].mxu1 %vm280_vm1, %v16460_v55  ;;  %20181 = vmatprep.mubr.msk.f32.mxu0 %vm280_vm1, %v11559_v3 }
 0x2d9   : > { %19731 = vmatprep.mubr.msk.f32.mxu1 %vm280_vm1, %v16461_v12 }
 0x2db   : > { %20182 = vmatmul.mubr.msk.f32.gmra.mrb[66].mxu0 %vm280_vm1, %v11560_v51  ;;  %v16588_v51 = vld [vmem:[%s21773_s7 + $0x2c6] sm:$0xff] }
 0x2dc   : > { %19732 = vmatmul.mubr.msk.f32.gmra.mrb[66].mxu1 %vm280_vm1, %v16462_v20  ;;  %20184 = vmatprep.mubr.msk.f32.mxu0 %vm280_vm1, %v11561_v45 }
 0x2dd   : > { %19734 = vmatprep.mubr.msk.f32.mxu1 %vm280_vm1, %v16463_v8  ;;  %v12270_v8 = vld [vmem:[%s21773_s7 + $0x17c] sm:$0xff] }
 0x2df   : > { %20185 = vmatmul.mubr.msk.f32.gmra.mrb[68].mxu0 %vm280_vm1, %v11562_v28  ;;  %v16589_v28 = vld [vmem:[%s21773_s7 + $0x2f6] sm:$0xff] }
 0x2e0   : > { %19735 = vmatmul.mubr.msk.f32.gmra.mrb[68].mxu1 %vm280_vm1, %v16464_v7  ;;  %20187 = vmatprep.mubr.msk.f32.mxu0 %vm280_vm1, %v11563_v57 }
 0x2e1   : > { %19737 = vmatprep.mubr.msk.f32.mxu1 %vm280_vm1, %v16465_v49  ;;  %v12271_v49 = vld [vmem:[%s21773_s7 + $0x1ac] sm:$0xff] }
 0x2e3   : > { %20188 = vmatmul.mubr.msk.f32.gmra.mrb[70].mxu0 %vm280_vm1, %v11564_v39 }
 0x2e4   : > { %19738 = vmatmul.mubr.msk.f32.gmra.mrb[70].mxu1 %vm280_vm1, %v16466_v37  ;;  %20190 = vmatprep.mubr.msk.f32.mxu0 %vm280_vm1, %v11565_v15 }
 0x2e5   : > { %19740 = vmatprep.mubr.msk.f32.mxu1 %vm280_vm1, %v23991_v9 }
 0x2e7   : > { %20191 = vmatmul.mubr.msk.f32.gmra.mrb[72].mxu0 %vm280_vm1, %v11566_v10 }
 0x2e8   : > { %19741 = vmatmul.mubr.msk.f32.gmra.mrb[72].mxu1 %vm280_vm1, %v24000_v17  ;;  %20193 = vmatprep.mubr.msk.f32.mxu0 %vm280_vm1, %v11567_v2 }
 0x2e9   : > { %19743 = vmatprep.mubr.msk.f32.mxu1 %vm280_vm1, %v24004_v60 }
 0x2eb   : > { %20194 = vmatmul.mubr.msk.f32.gmra.mrb[74].mxu0 %vm280_vm1, %v11568_v32 }
 0x2ec   : > { %19744 = vmatmul.mubr.msk.f32.gmra.mrb[74].mxu1 %vm280_vm1, %v24014_v54  ;;  %20196 = vmatprep.mubr.msk.f32.mxu0 %vm280_vm1, %v11569_v34 }
 0x2ed   : > { %19746 = vmatprep.mubr.msk.f32.mxu1 %vm280_vm1, %v24018_v13 }
 0x2ef   : > { %20197 = vmatmul.mubr.msk.f32.gmra.mrb[76].mxu0 %vm280_vm1, %v11570_v35 }
 0x2f0   : > { %19747 = vmatmul.mubr.msk.f32.gmra.mrb[76].mxu1 %vm280_vm1, %v24028_v29  ;;  %20199 = vmatprep.mubr.msk.f32.mxu0 %vm280_vm1, %v11571_v19 }
 0x2f1   : > { %19749 = vmatprep.mubr.msk.f32.mxu1 %vm280_vm1, %v24032_v44 }
 0x2f3   : > { %20200 = vmatmul.mubr.msk.f32.gmra.mrb[78].mxu0 %vm280_vm1, %v11572_v58  ;;  %v16590_v58 = vld [vmem:[%s21773_s7 + $0x2fe] sm:$0xff] }
 0x2f4   : > { %19750 = vmatmul.mubr.msk.f32.gmra.mrb[78].mxu1 %vm280_vm1, %v24042_v26  ;;  %20204 = vmatprep.mubr.msk.f32.mxu0 %vm280_vm1, %v12257_v61 }
 0x2f5   : > { %19754 = vmatprep.mubr.msk.f32.mxu1 %vm280_vm1, %v16575_v14  ;;  %v12272_v14 = vld [vmem:[%s21773_s7 + $0x1b4] sm:$0xff] }
 0x2f7   : > { %20205 = vmatmul.mubr.msk.f32.vlgmr.msra.gmra.mrb[48].mxu0 %vm280_vm1, %v12258_v18  ;;  %v12273_v18 = vld [vmem:[%s21773_s7 + $0x1e4] sm:$0xff] }
 0x2f8   : > { %19755 = vmatmul.mubr.msk.f32.vlgmr.msra.gmra.mrb[48].mxu1 %vm280_vm1, %v16576_v63  ;;  %20207 = vmatprep.mubr.msk.f32.mxu0 %vm280_vm1, %v12259_v25  ;;  %v16591_v63 = vld [vmem:[%s21773_s7 + $0x32e] sm:$0xff] }
 0x2f9   : > { %19803 = vmatpush3.msk.msra.mxu1 %vm377_vm0, %v23891_v6  ;;  %19757 = vmatprep.mubr.msk.f32.mxu1 %vm280_vm1, %v16577_v47  ;;  %v16580_v6 = vld [vmem:[%s21773_s7 + $0x1e6] sm:$0xff] }
 0x2fa   : > { %20253 = vmatpush3.msk.msra.mxu0 %vm377_vm0, %v23896_v23  ;;  %19852 = vmatprep.subr.msk.mxu1 %vm377_vm0, %v24061_v31  ;;  %v12262_v23 = vld [vmem:[%s21773_s7 + $0x9c] sm:$0xff] }
 0x2fb   : > { %20302 = vmatprep.subr.msk.mxu0 %vm377_vm0, %v24066_v33  ;;  %20208 = vmatmul.mubr.msk.f32.gmra.mrb[50].mxu0 %vm280_vm1, %v12260_v40 }
 0x2fc   : > { %19758 = vmatmul.mubr.msk.f32.gmra.mrb[50].mxu1 %vm280_vm1, %v16578_v38  ;;  %20210 = vmatprep.mubr.msk.f32.mxu0 %vm280_vm1, %v12261_v30 }
 0x2fd   : > { %19760 = vmatprep.mubr.msk.f32.mxu1 %vm280_vm1, %v16579_v46 }
 0x2ff   : > { %20211 = vmatmul.mubr.msk.f32.gmra.mrb[52].mxu0 %vm280_vm1, %v12262_v23 }
 0x300   : > { %19761 = vmatmul.mubr.msk.f32.gmra.mrb[52].mxu1 %vm280_vm1, %v16580_v6  ;;  %20213 = vmatprep.mubr.msk.f32.mxu0 %vm280_vm1, %v12263_v1 }
 0x301   : > { %19763 = vmatprep.mubr.msk.f32.mxu1 %vm280_vm1, %v16581_v50 }
 0x303   : > { %20214 = vmatmul.mubr.msk.f32.gmra.mrb[54].mxu0 %vm280_vm1, %v12264_v22  ;;  %v12274_v22 = vld [vmem:[%s21773_s7 + $0x1ec] sm:$0xff] }
 0x304   : > { %19764 = vmatmul.mubr.msk.f32.gmra.mrb[54].mxu1 %vm280_vm1, %v16582_v24  ;;  %20216 = vmatprep.mubr.msk.f32.mxu0 %vm280_vm1, %v12265_v16  ;;  %v16592_v24 = vld [vmem:[%s21773_s7 + $0x336] sm:$0xff] }
 0x305   : > { %19766 = vmatprep.mubr.msk.f32.mxu1 %vm280_vm1, %v16583_v59  ;;  %v16593_v59 = vld [vmem:[%s21773_s7 + $0x366] sm:$0xff]  ;;  %v12275_v16 = vld [vmem:[%s21773_s7 + $0x21c] sm:$0xff] }
 0x307   : > { %20217 = vmatmul.mubr.msk.f32.gmra.mrb[56].mxu0 %vm280_vm1, %v12266_v52 }
 0x308   : > { %19767 = vmatmul.mubr.msk.f32.gmra.mrb[56].mxu1 %vm280_vm1, %v16584_v43  ;;  %20219 = vmatprep.mubr.msk.f32.mxu0 %vm280_vm1, %v12267_v0 }
 0x309   : > { %19769 = vmatprep.mubr.msk.f32.mxu1 %vm280_vm1, %v16585_v11 }
 0x30a   : > { %v19606_v5 = vpop.f32.mrb[16].mxu0 }
 0x30b   : > { %v19156_v41 = vpop.f32.mrb[16].mxu1  ;;  %v7678_v56 = vmul.f32 %v19606_v5, %v24116_v62  ;;  %v7478_v3 = vpop.f32.mrb[17].mxu0  ;;  %20220 = vmatmul.mubr.msk.f32.gmra.mrb[58].mxu0 %vm280_vm1, %v12268_v27 }
 0x30c   : > { %v4081_v55 = vmul.f32 %v19156_v41, %v24111_v4  ;;  %v3881_v12 = vpop.f32.mrb[17].mxu1  ;;  %19770 = vmatmul.mubr.msk.f32.gmra.mrb[58].mxu1 %vm280_vm1, %v16586_v21  ;;  %20222 = vmatprep.mubr.msk.f32.mxu0 %vm280_vm1, %v12269_v42  ;;  %v7677_v37 = vmul.f32 %v24116_v62, %v7478_v3  ;;  %v12277_v3 = vld [vmem:[%s21773_s7 + $0x254] sm:$0xff] }
 0x30d   : > { %v4080_v20 = vmul.f32 %v24111_v4, %v3881_v12  ;;  %19772 = vmatprep.mubr.msk.f32.mxu1 %vm280_vm1, %v16587_v36  ;;  %v7718_v7 = vadd.f32 %v24132_v48, %v7678_v56  ;;  %v12276_v56 = vld [vmem:[%s21773_s7 + $0x224] sm:$0xff] }
 0x30e   : > { %v4121_v45 = vadd.f32 %v24127_v53, %v4081_v55  ;;  %v19609_v15 = vpop.f32.mrb[18].mxu0  ;;  %v7717_v47 = vadd.f32 %v24132_v48, %v7677_v37  ;;  %v16594_v55 = vld [vmem:[%s21773_s7 + $0x36e] sm:$0xff]  ;;  %v16595_v12 = vld [vmem:[%s21773_s7 + $0x39e] sm:$0xff] }
 0x30f   : > { %v4120_v57 = vadd.f32 %v24127_v53, %v4080_v20  ;;  %v19159_v39 = vpop.f32.mrb[18].mxu1  ;;  %v7680_v2 = vmul.f32 %v19609_v15, %v24116_v62  ;;  %v7488_v34 = vpop.f32.mrb[19].mxu0  ;;  %20223 = vmatmul.mubr.msk.f32.gmra.mrb[60].mxu0 %vm280_vm1, %v12270_v8  ;;  %v7750_v19 = vmax.f32 %v7718_v7, 0.0  ;;  %v16596_v15 = vld [vmem:[%s21773_s7 + $0x3a6] sm:$0xff] }
 0x310   : > { %v4083_v10 = vmul.f32 %v19159_v39, %v24111_v4  ;;  %v3891_v32 = vpop.f32.mrb[19].mxu1  ;;  %19773 = vmatmul.mubr.msk.f32.gmra.mrb[60].mxu1 %vm280_vm1, %v16588_v51  ;;  %v4153_v35 = vmax.f32 %v4121_v45, 0.0  ;;  %20225 = vmatprep.mubr.msk.f32.mxu0 %vm280_vm1, %v12271_v49  ;;  %v7679_v23 = vmul.f32 %v24116_v62, %v7488_v34  ;;  %v7749_v43 = vmax.f32 %v7717_v47, 0.0 }
 0x311   : > { %19775 = vmatprep.mubr.msk.f32.mxu1 %vm280_vm1, %v16589_v28  ;;  %7815 = vrot.lane.b32.xlu1 %v7750_v19, %s21700_s17  ;;  %v4082_v25 = vmul.f32 %v24111_v4, %v3891_v32  ;;  %v4152_v46 = vmax.f32 %v4120_v57, 0.0  ;;  %v7720_v6 = vadd.f32 %v24132_v48, %v7680_v2  ;;  %v16597_v2 = vld [vmem:[%s21773_s7 + $0x3d6] sm:$0xff]  ;;  %v12279_v32 = vld [vmem:[%s21773_s7 + $0x28c] sm:$0xff] }
 0x312   : > { %v4123_v61 = vadd.f32 %v24127_v53, %v4083_v10  ;;  %4218 = vrot.lane.b32.xlu0 %v4153_v35, %s21699_s16  ;;  %v19612_v40 = vpop.f32.mrb[20].mxu0  ;;  %v7719_v27 = vadd.f32 %v24132_v48, %v7679_v23  ;;  %v12278_v10 = vld [vmem:[%s21773_s7 + $0x25c] sm:$0xff] }
 0x313   : > { %v19162_v38 = vpop.f32.mrb[20].mxu1  ;;  %v7498_v1 = vpop.f32.mrb[21].mxu0  ;;  %20226 = vmatmul.mubr.msk.f32.gmra.mrb[62].mxu0 %vm280_vm1, %v12272_v14  ;;  %v4122_v52 = vadd.f32 %v24127_v53, %v4082_v25  ;;  %v7752_v21 = vmax.f32 %v7720_v6, 0.0  ;;  %v7682_v20 = vmul.f32 %v19612_v40, %v24116_v62  ;;  %v12280_v40 = vld [vmem:[%s21773_s7 + $0x294] sm:$0xff] }
 0x314   : > { %v4155_v30 = vmax.f32 %v4123_v61, 0.0  ;;  %v3901_v50 = vpop.f32.mrb[21].mxu1  ;;  %19776 = vmatmul.mubr.msk.f32.gmra.mrb[62].mxu1 %vm280_vm1, %v16590_v58  ;;  %20228 = vmatprep.mubr.msk.f32.mxu0 %vm280_vm1, %v12273_v18  ;;  %v4085_v36 = vmul.f32 %v19162_v38, %v24111_v4  ;;  %v7681_v51 = vmul.f32 %v24116_v62, %v7498_v1  ;;  %v7751_v28 = vmax.f32 %v7719_v27, 0.0  ;;  %v16598_v38 = vld [vmem:[%s21773_s7 + $0x3de] sm:$0xff] }
 0x315   : > { %19778 = vmatprep.mubr.msk.f32.mxu1 %vm280_vm1, %v16591_v63  ;;  %v4084_v42 = vmul.f32 %v24111_v4, %v3901_v50  ;;  %v4154_v7 = vmax.f32 %v4122_v52, 0.0  ;;  %v7722_v34 = vadd.f32 %v24132_v48, %v7682_v20  ;;  %v12283_v27 = vld [vmem:[%s21773_s7 + $0x2fc] sm:$0xff] }
 0x316   : > { %4216 = vrot.lane.b32.xlu0 %v4152_v46, %s21699_s16  ;;  %4222 = vrot.lane.b32.xlu1 %v4155_v30, %s21699_s16  ;;  %v19615_v0 = vpop.f32.mrb[22].mxu0  ;;  %v4125_v49 = vadd.f32 %v24127_v53, %v4085_v36  ;;  %v7721_v35 = vadd.f32 %v24132_v48, %v7681_v51  ;;  %v16599_v46 = vld [vmem:[%s21773_s7 + $0x40e] sm:$0xff]  ;;  %v12281_v30 = vld [vmem:[%s21773_s7 + $0x2c4] sm:$0xff] }
 0x317   : > { %v19165_v11 = vpop.f32.mrb[22].mxu1  ;;  %v7508_v5 = vpop.f32.mrb[23].mxu0  ;;  %20229 = vmatmul.mubr.msk.f32.gmra.mrb[64].mxu0 %vm280_vm1, %v12274_v22  ;;  %v4124_v57 = vadd.f32 %v24127_v53, %v4084_v42  ;;  %v7754_v6 = vmax.f32 %v7722_v34, 0.0  ;;  %v7684_v23 = vmul.f32 %v19615_v0, %v24116_v62  ;;  %v12282_v0 = vld [vmem:[%s21773_s7 + $0x2cc] sm:$0xff] }
 0x318   : > { %v3911_v41 = vpop.f32.mrb[23].mxu1  ;;  %19779 = vmatmul.mubr.msk.f32.gmra.mrb[64].mxu1 %vm280_vm1, %v16592_v24  ;;  %20231 = vmatprep.mubr.msk.f32.mxu0 %vm280_vm1, %v12275_v16  ;;  %v4157_v14 = vmax.f32 %v4125_v49, 0.0  ;;  %v4087_v63 = vmul.f32 %v19165_v11, %v24111_v4  ;;  %v7753_v24 = vmax.f32 %v7721_v35, 0.0  ;;  %v7683_v16 = vmul.f32 %v24116_v62, %v7508_v5  ;;  %v16600_v11 = vld [vmem:[%s21773_s7 + $0x416] sm:$0xff] }
 0x319   : > { %19781 = vmatprep.mubr.msk.f32.mxu1 %vm280_vm1, %v16593_v59  ;;  %v4156_v61 = vmax.f32 %v4124_v57, 0.0  ;;  %v4086_v18 = vmul.f32 %v24111_v4, %v3911_v41  ;;  %v7724_v36 = vadd.f32 %v24132_v48, %v7684_v23  ;;  %v16603_v57 = vld [vmem:[%s21773_s7 + $0x47e] sm:$0xff] }
 0x31a   : > { %7813 = vrot.lane.b32.xlu0 %v7749_v43, %s21700_s17  ;;  %7819 = vrot.lane.b32.xlu1 %v7752_v21, %s21700_s17  ;;  %v24192_v45 = vpop.f32.mrb[24].mxu0  ;;  %v4127_v22 = vadd.f32 %v24127_v53, %v4087_v63  ;;  %v16601_v21 = vld [vmem:[%s21773_s7 + $0x446] sm:$0xff] }
 0x31b   : > { %v19168_v8 = vpop.f32.mrb[24].mxu1  ;;  %v24196_v39 = vpop.f32.mrb[25].mxu0  ;;  %20232 = vmatmul.mubr.msk.f32.gmra.mrb[66].mxu0 %vm280_vm1, %v12276_v56  ;;  %v4126_v59 = vadd.f32 %v24127_v53, %v4086_v18 }
 0x31c   : > { %v3921_v37 = vpop.f32.mrb[25].mxu1  ;;  %19782 = vmatmul.mubr.msk.f32.gmra.mrb[66].mxu1 %vm280_vm1, %v16594_v55  ;;  %20234 = vmatprep.mubr.msk.f32.mxu0 %vm280_vm1, %v12277_v3  ;;  %v4089_v42 = vmul.f32 %v19168_v8, %v24111_v4  ;;  %v4159_v55 = vmax.f32 %v4127_v22, 0.0  ;;  %v7686_v8 = vmul.f32 %v24192_v45, %v24116_v62  ;;  %v7685_v49 = vmul.f32 %v24116_v62, %v24196_v39  ;;  %v12287_v22 = vld [vmem:[%s21773_s7 + $0x36c] sm:$0xff] }
 0x31d   : > { %19784 = vmatprep.mubr.msk.f32.mxu1 %vm280_vm1, %v16595_v12  ;;  %v4158_v56 = vmax.f32 %v4126_v59, 0.0  ;;  %v7723_v12 = vadd.f32 %v24132_v48, %v7683_v16  ;;  %v4088_v3 = vmul.f32 %v24111_v4, %v3921_v37  ;;  %v12285_v37 = vld [vmem:[%s21773_s7 + $0x334] sm:$0xff] }
 0x31e   : > { %4220 = vrot.lane.b32.xlu1 %v4154_v7, %s21699_s16  ;;  %7817 = vrot.lane.b32.xlu0 %v7751_v28, %s21700_s17  ;;  %v24212_v58 = vpop.f32.mrb[26].mxu0  ;;  %v16602_v7 = vld [vmem:[%s21773_s7 + $0x44e] sm:$0xff]  ;;  %v12284_v28 = vld [vmem:[%s21773_s7 + $0x304] sm:$0xff]  ;;  %v24285_v63 = vadd.f32 %v24132_v48, %v7686_v8 }
 0x31f   : > { %v24210_v19 = vpop.f32.mrb[26].mxu1  ;;  %v24218_v25 = vpop.f32.mrb[27].mxu0  ;;  %20235 = vmatmul.mubr.msk.f32.gmra.mrb[68].mxu0 %vm280_vm1, %v12278_v10  ;;  %v4129_v10 = vadd.f32 %v24127_v53, %v4089_v42  ;;  %v4128_v34 = vadd.f32 %v24127_v53, %v4088_v3  ;;  %v7688_v3 = vmul.f32 %v24212_v58, %v24116_v62 }
 0x320   : > { %v24216_v47 = vpop.f32.mrb[27].mxu1  ;;  %19785 = vmatmul.mubr.msk.f32.gmra.mrb[68].mxu1 %vm280_vm1, %v16596_v15  ;;  %20237 = vmatprep.mubr.msk.f32.mxu0 %vm280_vm1, %v12279_v32  ;;  %v7756_v15 = vmax.f32 %v7724_v36, 0.0  ;;  %v7755_v32 = vmax.f32 %v7723_v12, 0.0  ;;  %v4091_v16 = vmul.f32 %v24210_v19, %v24111_v4 }
 0x321   : > { %19787 = vmatprep.mubr.msk.f32.mxu1 %vm280_vm1, %v16597_v2  ;;  %v4161_v59 = vmax.f32 %v4129_v10, 0.0  ;;  %v4160_v36 = vmax.f32 %v4128_v34, 0.0  ;;  %v4090_v42 = vmul.f32 %v24111_v4, %v24216_v47  ;;  %v24331_v47 = vld [vmem:[%s21773_s7 + $0x4be] sm:$0xff] }
 0x322   : > { %4226 = vrot.lane.b32.xlu1 %v4157_v14, %s21699_s16  ;;  %4224 = vrot.lane.b32.xlu0 %v4156_v61, %s21699_s16  ;;  %v24233_v1 = vpop.f32.mrb[28].mxu0  ;;  %v4131_v10 = vadd.f32 %v24127_v53, %v4091_v16 }
 0x323   : > { %v24231_v50 = vpop.f32.mrb[28].mxu1  ;;  %v24240_v52 = vpop.f32.mrb[29].mxu0  ;;  %20238 = vmatmul.mubr.msk.f32.gmra.mrb[70].mxu0 %vm280_vm1, %v12280_v40  ;;  %v24292_v40 = vld [vmem:[%s21773_s7 + $0x486] sm:$0xff] }
 0x324   : > { %v24238_v43 = vpop.f32.mrb[29].mxu1  ;;  %19788 = vmatmul.mubr.msk.f32.gmra.mrb[70].mxu1 %vm280_vm1, %v16598_v38  ;;  %20240 = vmatprep.mubr.msk.f32.mxu0 %vm280_vm1, %v12281_v30  ;;  %v7725_v30 = vadd.f32 %v24132_v48, %v7685_v49  ;;  %v7687_v49 = vmul.f32 %v24116_v62, %v24218_v25 }
 0x325   : > { %19790 = vmatprep.mubr.msk.f32.mxu1 %vm280_vm1, %v16599_v46  ;;  %v12286_v46 = vld [vmem:[%s21773_s7 + $0x33c] sm:$0xff] }
 0x326   : > { %7823 = vrot.lane.b32.xlu1 %v7754_v6, %s21700_s17  ;;  %7821 = vrot.lane.b32.xlu0 %v7753_v24, %s21700_s17  ;;  %v24256_v5 = vpop.f32.mrb[30].mxu0  ;;  %v24305_v24 = vld [vmem:[%s21773_s7 + $0x4b6] sm:$0xff]  ;;  %v7757_v34 = vmax.f32 %v7725_v30, 0.0 }
 0x327   : > { %v24254_v41 = vpop.f32.mrb[30].mxu1  ;;  %v24262_v51 = vpop.f32.mrb[31].mxu0  ;;  %20241 = vmatmul.mubr.msk.f32.gmra.mrb[72].mxu0 %vm280_vm1, %v12282_v0  ;;  %v17112_v30 = vld [vmem:[%s21773_s7 + $0x3f8] sm:$0xff] }
 0x328   : > { %v24260_v20 = vpop.f32.mrb[31].mxu1  ;;  %19791 = vmatmul.mubr.msk.f32.gmra.mrb[72].mxu1 %vm280_vm1, %v16600_v11  ;;  %20243 = vmatprep.mubr.msk.f32.mxu0 %vm280_vm1, %v12283_v27 }
 0x329   : > { %19793 = vmatprep.mubr.msk.f32.mxu1 %vm280_vm1, %v16601_v21 }
 0x32a   : > { %4230 = vrot.lane.b32.xlu1 %v4159_v55, %s21699_s16  ;;  %4228 = vrot.lane.b32.xlu0 %v4158_v56, %s21699_s16  ;;  %v19630_v2 = vpop.f32.mrb[32].mxu0 }
 0x32b   : > { %v19180_v45 = vpop.f32.mrb[32].mxu1  ;;  %v7694_v39 = vmul.f32 %v19630_v2, %v24116_v62  ;;  %v7558_v61 = vpop.f32.mrb[33].mxu0  ;;  %20244 = vmatmul.mubr.msk.f32.gmra.mrb[74].mxu0 %vm280_vm1, %v12284_v28  ;;  %v12288_v28 = vld [vmem:[%s21773_s7 + $0x374] sm:$0xff] }
 0x32c   : > { %v4097_v35 = vmul.f32 %v19180_v45, %v24111_v4  ;;  %v3961_v14 = vpop.f32.mrb[33].mxu1  ;;  %19794 = vmatmul.mubr.msk.f32.gmra.mrb[74].mxu1 %vm280_vm1, %v16602_v7  ;;  %v7693_v38 = vmul.f32 %v24116_v62, %v7558_v61  ;;  %20246 = vmatprep.mubr.msk.f32.mxu0 %vm280_vm1, %v12285_v37  ;;  %v17111_v37 = vld [vmem:[%s21773_s7 + $0x3f0] sm:$0xff] }
 0x32d   : > { %v4096_v18 = vmul.f32 %v24111_v4, %v3961_v14  ;;  %19796 = vmatprep.mubr.msk.f32.mxu1 %vm280_vm1, %v16603_v57  ;;  %v24300_v23 = vadd.f32 %v24132_v48, %v7694_v39 }
 0x32e   : > { %v24297_v6 = vadd.f32 %v24127_v53, %v4097_v35  ;;  %7827 = vrot.lane.b32.xlu1 %v7756_v15, %s21700_s17  ;;  %7825 = vrot.lane.b32.xlu0 %v7755_v32, %s21700_s17  ;;  %v24314_v0 = vadd.f32 %v24132_v48, %v7693_v38  ;;  %v19633_v27 = vpop.f32.mrb[34].mxu0  ;;  %v7758_v15 = vmax.f32 %v24285_v63, 0.0  ;;  %v4130_v35 = vadd.f32 %v24127_v53, %v4090_v42 }
 0x32f   : > { %v24311_v11 = vadd.f32 %v24127_v53, %v4096_v18  ;;  %v19183_v21 = vpop.f32.mrb[34].mxu1  ;;  %v7696_v56 = vmul.f32 %v19633_v27, %v24116_v62  ;;  %v7568_v19 = vpop.f32.mrb[35].mxu0  ;;  %20247 = vmatmul.mubr.msk.f32.gmra.mrb[76].mxu0 %vm280_vm1, %v12286_v46  ;;  %v24360_v18 = vadd.f32 %v24132_v48, %v7688_v3 }
 0x330   : > { %v4099_v55 = vmul.f32 %v19183_v21, %v24111_v4  ;;  %v3971_v12 = vpop.f32.mrb[35].mxu1  ;;  %19797 = vmatmul.mubr.msk.f32.gmra.mrb[76].mxu1 %vm280_vm1, %v24292_v40  ;;  %v7695_v7 = vmul.f32 %v24116_v62, %v7568_v19  ;;  %20249 = vmatprep.mubr.msk.f32.mxu0 %vm280_vm1, %v12287_v22  ;;  %v7727_v22 = vadd.f32 %v24132_v48, %v7687_v49  ;;  %v4163_v21 = vmax.f32 %v4131_v10, 0.0 }
 0x331   : > { %v4098_v8 = vmul.f32 %v24111_v4, %v3971_v12  ;;  %19799 = vmatprep.mubr.msk.f32.mxu1 %vm280_vm1, %v24305_v24  ;;  %v24340_v58 = vadd.f32 %v24132_v48, %v7696_v56  ;;  %v4162_v56 = vmax.f32 %v4130_v35, 0.0  ;;  %v4092_v12 = vmul.f32 %v24111_v4, %v24238_v43  ;;  %v24427_v35 = vld [vmem:[%s26007_s2 + $0x5c] sm:$0xf] }
 0x332   : > { %v24337_v57 = vadd.f32 %v24127_v53, %v4099_v55  ;;  %4234 = vrot.lane.b32.xlu1 %v4161_v59, %s21699_s16  ;;  %4232 = vrot.lane.b32.xlu0 %v4160_v36, %s21699_s16  ;;  %v24351_v25 = vadd.f32 %v24132_v48, %v7695_v7  ;;  %v19636_v32 = vpop.f32.mrb[36].mxu0  ;;  %v17113_v7 = vld [vmem:[%s21773_s7 + $0x428] sm:$0xff] }
 0x333   : > { %v24348_v45 = vadd.f32 %v24127_v53, %v4098_v8  ;;  %v19186_v2 = vpop.f32.mrb[36].mxu1  ;;  %v7698_v14 = vmul.f32 %v19636_v32, %v24116_v62  ;;  %v7578_v63 = vpop.f32.mrb[37].mxu0  ;;  %20250 = vmatmul.mubr.msk.f32.gmra.mrb[78].mxu0 %vm280_vm1, %v12288_v28  ;;  %v7690_v28 = vmul.f32 %v24233_v1, %v24116_v62  ;;  %v17115_v1 = vld [vmem:[%s21773_s7 + $0x460] sm:$0xff] }
 0x334   : > { %v4101_v39 = vmul.f32 %v19186_v2, %v24111_v4  ;;  %v3981_v61 = vpop.f32.mrb[37].mxu1  ;;  %19800 = vmatmul.mubr.msk.f32.gmra.mrb[78].mxu1 %vm280_vm1, %v24331_v47  ;;  %v7697_v46 = vmul.f32 %v24116_v62, %v7578_v63  ;;  %20254 = vmatprep.mubr.msk.f32.mxu0 %vm280_vm1, %v17111_v37  ;;  %v17114_v37 = vld [vmem:[%s21773_s7 + $0x430] sm:$0xff] }
 0x335   : > { %v4100_v38 = vmul.f32 %v24111_v4, %v3981_v61  ;;  %19804 = vmatprep.mubr.msk.f32.mxu1 %vm280_vm1, %v23991_v9  ;;  %v24373_v16 = vadd.f32 %v24132_v48, %v7698_v14  ;;  %v4093_v9 = vmul.f32 %v24231_v50, %v24111_v4  ;;  %v4132_v14 = vadd.f32 %v24127_v53, %v4092_v12 }
 0x336   : > { %v24370_v59 = vadd.f32 %v24127_v53, %v4101_v39  ;;  %7831 = vrot.lane.b32.xlu1 %v7758_v15, %s21700_s17  ;;  %7829 = vrot.lane.b32.xlu0 %v7757_v34, %s21700_s17  ;;  %v24383_v36 = vadd.f32 %v24132_v48, %v7697_v46  ;;  %v19639_v55 = vpop.f32.mrb[38].mxu0  ;;  %v7759_v39 = vmax.f32 %v7727_v22, 0.0  ;;  %v24441_v46 = vadd.f32 %v24132_v48, %v7690_v28 }
 0x337   : > { %v24380_v27 = vadd.f32 %v24127_v53, %v4100_v38  ;;  %v19189_v42 = vpop.f32.mrb[38].mxu1  ;;  %v7700_v3 = vmul.f32 %v19639_v55, %v24116_v62  ;;  %v7588_v50 = vpop.f32.mrb[39].mxu0  ;;  %20255 = vmatmul.mubr.msk.f32.vlgmr.msra.gmra.mrb[48].mxu0 %vm280_vm1, %v17112_v30  ;;  %v4133_v2 = vadd.f32 %v24127_v53, %v4093_v9  ;;  %v17117_v55 = vld [vmem:[%s21773_s7 + $0x498] sm:$0xff] }
 0x338   : > { %v4103_v19 = vmul.f32 %v19189_v42, %v24111_v4  ;;  %v3991_v8 = vpop.f32.mrb[39].mxu1  ;;  %19805 = vmatmul.mubr.msk.f32.vlgmr.msra.gmra.mrb[48].mxu1 %vm280_vm1, %v24000_v17  ;;  %v7699_v43 = vmul.f32 %v24116_v62, %v7588_v50  ;;  %v7689_v17 = vmul.f32 %v24116_v62, %v24240_v52  ;;  %20257 = vmatprep.mubr.msk.f32.mxu0 %vm280_vm1, %v17113_v7  ;;  %v4164_v50 = vmax.f32 %v4132_v14, 0.0 }
 0x339   : > { %v4102_v49 = vmul.f32 %v24111_v4, %v3991_v8  ;;  %19853 = vmatpush3.msk.msra.mxu1 %vm377_vm0, %v24061_v31  ;;  %19807 = vmatprep.mubr.msk.f32.mxu1 %vm280_vm1, %v24004_v60  ;;  %v24408_v10 = vadd.f32 %v24132_v48, %v7700_v3  ;;  %v7760_v31 = vmax.f32 %v24360_v18, 0.0  ;;  %v4094_v7 = vmul.f32 %v24111_v4, %v24260_v20  ;;  %v17118_v20 = vld [vmem:[%s21773_s7 + $0x4a0] sm:$0xff] }
 0x33a   : > { %v24405_v15 = vadd.f32 %v24127_v53, %v4103_v19  ;;  %4238 = vrot.lane.b32.xlu1 %v4163_v21, %s21699_s16  ;;  %4236 = vrot.lane.b32.xlu0 %v4162_v56, %s21699_s16  ;;  %v24419_v52 = vadd.f32 %v24132_v48, %v7699_v43  ;;  %v19642_v34 = vpop.f32.mrb[40].mxu0  ;;  %v7729_v21 = vadd.f32 %v24132_v48, %v7689_v17  ;;  %v4165_v56 = vmax.f32 %v4133_v2, 0.0 }
 0x33b   : > { %v24416_v60 = vadd.f32 %v24127_v53, %v4102_v49  ;;  %v19192_v32 = vpop.f32.mrb[40].mxu1  ;;  %20303 = vmatpush3.msk.msra.mxu0 %vm377_vm0, %v24066_v33  ;;  %v7702_v63 = vmul.f32 %v19642_v34, %v24116_v62  ;;  %v7598_v38 = vpop.f32.mrb[41].mxu0  ;;  %v24438_v33 = vld [vmem:[%s26007_s2 + $0x80] sm:$0xf]  ;;  %19902 = vmatprep.subr.msk.mxu1 %vm377_vm0, %v24427_v35 }
 0x33c   : > { %v4105_v61 = vmul.f32 %v19192_v32, %v24111_v4  ;;  %v4001_v18 = vpop.f32.mrb[41].mxu1  ;;  %19808 = vmatmul.mubr.msk.f32.gmra.mrb[50].mxu1 %vm280_vm1, %v24014_v54  ;;  %20258 = vmatmul.mubr.msk.f32.gmra.mrb[50].mxu0 %vm280_vm1, %v17114_v37  ;;  %v7701_v22 = vmul.f32 %v24116_v62, %v7598_v38  ;;  %v17116_v54 = vld [vmem:[%s21773_s7 + $0x468] sm:$0xff]  ;;  %v16649_v32 = vld [vmem:[%s21773_s7 + $0x4d6] sm:$0xff]  ;;  %v4134_v38 = vadd.f32 %v24127_v53, %v4094_v7 }
 0x33d   : > { %v4104_v30 = vmul.f32 %v24111_v4, %v4001_v18  ;;  %19810 = vmatprep.mubr.msk.f32.mxu1 %vm280_vm1, %v24018_v13  ;;  %20260 = vmatprep.mubr.msk.f32.mxu0 %vm280_vm1, %v17115_v1  ;;  %v24454_v42 = vadd.f32 %v24132_v48, %v7702_v63  ;;  %v4095_v13 = vmul.f32 %v24254_v41, %v24111_v4  ;;  %v7762_v1 = vmax.f32 %v24441_v46, 0.0 }
 0x33e   : > { %v24451_v9 = vadd.f32 %v24127_v53, %v4105_v61  ;;  %7835 = vrot.lane.b32.xlu1 %v7760_v31, %s21700_s17  ;;  %7833 = vrot.lane.b32.xlu0 %v7759_v39, %s21700_s17  ;;  %v24465_v19 = vadd.f32 %v24132_v48, %v7701_v22  ;;  %v19645_v8 = vpop.f32.mrb[42].mxu0  ;;  %v7692_v31 = vmul.f32 %v24256_v5, %v24116_v62  ;;  %v7761_v18 = vmax.f32 %v7729_v21, 0.0  ;;  %v16650_v21 = vld [vmem:[%s21773_s7 + $0x4de] sm:$0xff] }
 0x33f   : > { %v24462_v12 = vadd.f32 %v24127_v53, %v4104_v30  ;;  %v19195_v3 = vpop.f32.mrb[42].mxu1  ;;  %20352 = vmatprep.subr.msk.mxu0 %vm377_vm0, %v24438_v33  ;;  %v7704_v28 = vmul.f32 %v19645_v8, %v24116_v62  ;;  %v7608_v43 = vpop.f32.mrb[43].mxu0  ;;  %v4135_v34 = vadd.f32 %v24127_v53, %v4095_v13  ;;  %v7691_v39 = vmul.f32 %v24116_v62, %v24262_v51  ;;  %v17121_v8 = vld [vmem:[%s21773_s7 + $0x508] sm:$0xff] }
 0x340   : > { %v4107_v41 = vmul.f32 %v19195_v3, %v24111_v4  ;;  %v4011_v49 = vpop.f32.mrb[43].mxu1  ;;  %19811 = vmatmul.mubr.msk.f32.gmra.mrb[52].mxu1 %vm280_vm1, %v24028_v29  ;;  %20261 = vmatmul.mubr.msk.f32.gmra.mrb[52].mxu0 %vm280_vm1, %v17116_v54  ;;  %v7703_v17 = vmul.f32 %v24116_v62, %v7608_v43 }
 0x341   : > { %v4106_v37 = vmul.f32 %v24111_v4, %v4011_v49  ;;  %19813 = vmatprep.mubr.msk.f32.mxu1 %vm280_vm1, %v24032_v44  ;;  %20263 = vmatprep.mubr.msk.f32.mxu0 %vm280_vm1, %v17117_v55  ;;  %v24491_v29 = vadd.f32 %v24132_v48, %v7704_v28  ;;  %v17119_v44 = vld [vmem:[%s21773_s7 + $0x4d0] sm:$0xff]  ;;  %v7731_v7 = vadd.f32 %v24132_v48, %v7691_v39 }
 0x342   : > { %v24488_v2 = vadd.f32 %v24127_v53, %v4107_v41  ;;  %4242 = vrot.lane.b32.xlu1 %v4165_v56, %s21699_s16  ;;  %4240 = vrot.lane.b32.xlu0 %v4164_v50, %s21699_s16  ;;  %v24504_v5 = vadd.f32 %v24132_v48, %v7703_v17  ;;  %v19648_v63 = vpop.f32.mrb[44].mxu0  ;;  %v17120_v56 = vld [vmem:[%s21773_s7 + $0x4d8] sm:$0xff]  ;;  %v7732_v50 = vadd.f32 %v24132_v48, %v7692_v31  ;;  %v4166_v17 = vmax.f32 %v4134_v38, 0.0 }
 0x343   : > { %v24501_v14 = vadd.f32 %v24127_v53, %v4106_v37  ;;  %v19198_v61 = vpop.f32.mrb[44].mxu1  ;;  %v7706_v30 = vmul.f32 %v19648_v63, %v24116_v62  ;;  %v7618_v22 = vpop.f32.mrb[45].mxu0  ;;  %v4167_v37 = vmax.f32 %v4135_v34, 0.0  ;;  %v16652_v34 = vld [vmem:[%s21773_s7 + $0x516] sm:$0xff] }
 0x344   : > { %v4109_v46 = vmul.f32 %v19198_v61, %v24111_v4  ;;  %v4021_v51 = vpop.f32.mrb[45].mxu1  ;;  %19814 = vmatmul.mubr.msk.f32.gmra.mrb[54].mxu1 %vm280_vm1, %v24042_v26  ;;  %20264 = vmatmul.mubr.msk.f32.gmra.mrb[54].mxu0 %vm280_vm1, %v17118_v20  ;;  %v7705_v55 = vmul.f32 %v24116_v62, %v7618_v22  ;;  %v16651_v26 = vld [vmem:[%s21773_s7 + $0x50e] sm:$0xff] }
 0x345   : > { %v4108_v54 = vmul.f32 %v24111_v4, %v4021_v51  ;;  %19816 = vmatprep.mubr.msk.f32.mxu1 %vm280_vm1, %v16649_v32  ;;  %20266 = vmatprep.mubr.msk.f32.mxu0 %vm280_vm1, %v17119_v44  ;;  %v24522_v3 = vadd.f32 %v24132_v48, %v7706_v30  ;;  %v17122_v61 = vld [vmem:[%s21773_s7 + $0x510] sm:$0xff]  ;;  %v7764_v30 = vmax.f32 %v7732_v50, 0.0  ;;  %v7763_v51 = vmax.f32 %v7731_v7, 0.0  ;;  %v16658_v7 = vld [vmem:[%s21773_s7 + $0x5be] sm:$0xff] }
 0x346   : > { %v24519_v13 = vadd.f32 %v24127_v53, %v4109_v46  ;;  %7839 = vrot.lane.b32.xlu1 %v7762_v1, %s21700_s17  ;;  %7837 = vrot.lane.b32.xlu0 %v7761_v18, %s21700_s17  ;;  %v24534_v28 = vadd.f32 %v24132_v48, %v7705_v55  ;;  %v19651_v43 = vpop.f32.mrb[46].mxu0  ;;  %v16654_v22 = vld [vmem:[%s21773_s7 + $0x54e] sm:$0xff]  ;;  %v4169_v55 = vmax.f32 %v24297_v6, 0.0  ;;  %v16657_v6 = vld [vmem:[%s21773_s7 + $0x5b6] sm:$0xff]  ;;  %v7765_v50 = vmax.f32 %v24314_v0, 0.0 }
 0x347   : > { %v24531_v41 = vadd.f32 %v24127_v53, %v4108_v54  ;;  %v19201_v49 = vpop.f32.mrb[46].mxu1  ;;  %v7708_v1 = vmul.f32 %v19651_v43, %v24116_v62  ;;  %v7628_v32 = vpop.f32.mrb[47].mxu0  ;;  %v17124_v54 = vld [vmem:[%s21773_s7 + $0x548] sm:$0xff]  ;;  %v4171_v43 = vmax.f32 %v24337_v57, 0.0 }
 0x348   : > { %v4111_v20 = vmul.f32 %v19201_v49, %v24111_v4  ;;  %v4031_v31 = vpop.f32.mrb[47].mxu1  ;;  %19817 = vmatmul.mubr.msk.f32.gmra.mrb[56].mxu1 %vm280_vm1, %v16650_v21  ;;  %20267 = vmatmul.mubr.msk.f32.gmra.mrb[56].mxu0 %vm280_vm1, %v17120_v56  ;;  %v7707_v39 = vmul.f32 %v24116_v62, %v7628_v32  ;;  %v17123_v62 = vld [vmem:[%s21773_s7 + $0x540] sm:$0xff]  ;;  %v4168_v21 = vmax.f32 %v24311_v11, 0.0  ;;  %v17127_v11 = vld [vmem:[%s21773_s7 + $0x5b0] sm:$0xff]  ;;  %v17128_v49 = vld [vmem:[%s21773_s7 + $0x5b8] sm:$0xff] }
 0x349   : > { %v4110_v44 = vmul.f32 %v24111_v4, %v4031_v31  ;;  %19819 = vmatprep.mubr.msk.f32.mxu1 %vm280_vm1, %v16651_v26  ;;  %20269 = vmatprep.mubr.msk.f32.mxu0 %vm280_vm1, %v17121_v8  ;;  %v24550_v18 = vadd.f32 %v24132_v48, %v7708_v1  ;;  %v16653_v4 = vld [vmem:[%s21773_s7 + $0x546] sm:$0xff]  ;;  %v7766_v8 = vmax.f32 %v24300_v23, 0.0  ;;  %v16659_v23 = vld [vmem:[%s21773_s7 + $0x5ee] sm:$0xff]  ;;  %v7768_v1 = vmax.f32 %v24340_v58, 0.0  ;;  %v16663_v58 = vld [vmem:[%s21773_s7 + $0x65e] sm:$0xff] }
 0x34a   : > { %v24547_v63 = vadd.f32 %v24127_v53, %v4111_v20  ;;  %4246 = vrot.lane.b32.xlu1 %v4167_v37, %s21699_s16  ;;  %4244 = vrot.lane.b32.xlu0 %v4166_v17, %s21699_s16  ;;  %v24560_v46 = vadd.f32 %v24132_v48, %v7707_v39  ;;  %v17125_v48 = vld [vmem:[%s21773_s7 + $0x578] sm:$0xff]  ;;  %v16656_v56 = vld [vmem:[%s21773_s7 + $0x586] sm:$0xff]  ;;  %v4170_v37 = vmax.f32 %v24348_v45, 0.0  ;;  %v7767_v31 = vmax.f32 %v24351_v25, 0.0 }
 0x34b   : > { %v24557_v38 = vadd.f32 %v24127_v53, %v4110_v44  ;;  %v16655_v53 = vld [vmem:[%s21773_s7 + $0x57e] sm:$0xff]  ;;  %v17129_v0 = vld [vmem:[%s21773_s7 + $0x5e8] sm:$0xff]  ;;  %v16660_v17 = vld [vmem:[%s21773_s7 + $0x5f6] sm:$0xff]  ;;  %v4173_v39 = vmax.f32 %v24370_v59, 0.0 }
 0x34c   : > { %19820 = vmatmul.mubr.msk.f32.gmra.mrb[58].mxu1 %vm280_vm1, %v16652_v34  ;;  %20270 = vmatmul.mubr.msk.f32.gmra.mrb[58].mxu0 %vm280_vm1, %v17122_v61  ;;  %v17126_v26 = vld [vmem:[%s21773_s7 + $0x580] sm:$0xff]  ;;  %v17130_v20 = vld [vmem:[%s21773_s7 + $0x5f0] sm:$0xff]  ;;  %v17132_v44 = vld [vmem:[%s21773_s7 + $0x628] sm:$0xff]  ;;  %v4172_v34 = vmax.f32 %v24380_v27, 0.0 }
 0x34d   : > { %19822 = vmatprep.mubr.msk.f32.mxu1 %vm280_vm1, %v16653_v4  ;;  %20272 = vmatprep.mubr.msk.f32.mxu0 %vm280_vm1, %v17123_v62  ;;  %v16661_v57 = vld [vmem:[%s21773_s7 + $0x626] sm:$0xff]  ;;  %v16662_v32 = vld [vmem:[%s21773_s7 + $0x62e] sm:$0xff]  ;;  %v17133_v25 = vld [vmem:[%s21773_s7 + $0x658] sm:$0xff]  ;;  %v7770_v62 = vmax.f32 %v24373_v16, 0.0 }
 0x34e   : > { %7843 = vrot.lane.b32.xlu1 %v7764_v30, %s21700_s17  ;;  %7841 = vrot.lane.b32.xlu0 %v7763_v51, %s21700_s17  ;;  %v17131_v45 = vld [vmem:[%s21773_s7 + $0x620] sm:$0xff]  ;;  %v24631_v59 = vld [vmem:[%s21773_s7 + $0x696] sm:$0xff]  ;;  %v7769_v30 = vmax.f32 %v24383_v36, 0.0 }
 0x34f   : > { %v16664_v61 = vld [vmem:[%s21773_s7 + $0x666] sm:$0xff]  ;;  %v17135_v27 = vld [vmem:[%s21773_s7 + $0x690] sm:$0xff]  ;;  %v24642_v51 = vld [vmem:[%s21773_s7 + $0x69e] sm:$0xff] }
 0x350   : > { %19823 = vmatmul.mubr.msk.f32.gmra.mrb[60].mxu1 %vm280_vm1, %v16654_v22  ;;  %20273 = vmatmul.mubr.msk.f32.gmra.mrb[60].mxu0 %vm280_vm1, %v17124_v54  ;;  %v17134_v4 = vld [vmem:[%s21773_s7 + $0x660] sm:$0xff]  ;;  %v17136_v22 = vld [vmem:[%s21773_s7 + $0x698] sm:$0xff]  ;;  %v24648_v16 = vld [vmem:[%s21773_s7 + $0x6ce] sm:$0xff]  ;;  %v4175_v54 = vmax.f32 %v24405_v15, 0.0 }
 0x351   : > { %19825 = vmatprep.mubr.msk.f32.mxu1 %vm280_vm1, %v16655_v53  ;;  %20275 = vmatprep.mubr.msk.f32.mxu0 %vm280_vm1, %v17125_v48  ;;  %v17137_v36 = vld [vmem:[%s21773_s7 + $0x6c8] sm:$0xff]  ;;  %v4174_v53 = vmax.f32 %v24416_v60, 0.0  ;;  %v24660_v48 = vld [vmem:[%s21773_s7 + $0x6d6] sm:$0xff]  ;;  %v17139_v60 = vld [vmem:[%s21773_s7 + $0x700] sm:$0xff] }
 0x352   : > { %4250 = vrot.lane.b32.xlu1 %v4169_v55, %s21699_s16  ;;  %4248 = vrot.lane.b32.xlu0 %v4168_v21, %s21699_s16  ;;  %v17138_v55 = vld [vmem:[%s21773_s7 + $0x6d0] sm:$0xff]  ;;  %v24666_v15 = vld [vmem:[%s21773_s7 + $0x706] sm:$0xff]  ;;  %v7772_v21 = vmax.f32 %v24408_v10, 0.0 }
 0x353   : > { %v24684_v10 = vld [vmem:[%s21773_s7 + $0x73e] sm:$0xff] }
 0x354   : > { %19826 = vmatmul.mubr.msk.f32.gmra.mrb[62].mxu1 %vm280_vm1, %v16656_v56  ;;  %20276 = vmatmul.mubr.msk.f32.gmra.mrb[62].mxu0 %vm280_vm1, %v17126_v26  ;;  %v7771_v56 = vmax.f32 %v24419_v52, 0.0  ;;  %v24678_v26 = vld [vmem:[%s21773_s7 + $0x70e] sm:$0xff]  ;;  %v17141_v52 = vld [vmem:[%s21773_s7 + $0x738] sm:$0xff] }
 0x355   : > { %19828 = vmatprep.mubr.msk.f32.mxu1 %vm280_vm1, %v16657_v6  ;;  %20278 = vmatprep.mubr.msk.f32.mxu0 %vm280_vm1, %v17127_v11  ;;  %v17140_v6 = vld [vmem:[%s21773_s7 + $0x708] sm:$0xff]  ;;  %v4177_v11 = vmax.f32 %v24451_v9, 0.0  ;;  %v7774_v9 = vmax.f32 %v24454_v42, 0.0  ;;  %v4178_v42 = vmax.f32 %v24501_v14, 0.0  ;;  %v7775_v14 = vmax.f32 %v24504_v5, 0.0 }
 0x356   : > { %7847 = vrot.lane.b32.xlu1 %v7766_v8, %s21700_s17  ;;  %7845 = vrot.lane.b32.xlu0 %v7765_v50, %s21700_s17  ;;  %v4176_v8 = vmax.f32 %v24462_v12, 0.0  ;;  %v24696_v50 = vld [vmem:[%s21773_s7 + $0x746] sm:$0xff]  ;;  %v7773_v12 = vmax.f32 %v24465_v19, 0.0  ;;  %v4181_v5 = vmax.f32 %v24519_v13, 0.0  ;;  %v7778_v13 = vmax.f32 %v24522_v3, 0.0 }
 0x357   : > { %v21640_v19 = vld [vmem:[%s21773_s7 + $0x40a] sm:$0xff]  ;;  %v4183_v3 = vmax.f32 %v24547_v63, 0.0  ;;  %v7780_v63 = vmax.f32 %v24550_v18, 0.0  ;;  %v21652_v18 = vld [vmem:[%s21773_s7 + $0x55a] sm:$0xff] }
 0x358   : > { %19829 = vmatmul.mubr.msk.f32.gmra.mrb[64].mxu1 %vm280_vm1, %v16658_v7  ;;  %20279 = vmatmul.mubr.msk.f32.gmra.mrb[64].mxu0 %vm280_vm1, %v17128_v49  ;;  %v17142_v7 = vld [vmem:[%s21773_s7 + $0x740] sm:$0xff] }
 0x359   : > { %19831 = vmatprep.mubr.msk.f32.mxu1 %vm280_vm1, %v16659_v23  ;;  %20281 = vmatprep.mubr.msk.f32.mxu0 %vm280_vm1, %v17129_v0  ;;  %v21639_v49 = vld [vmem:[%s21773_s7 + $0x402] sm:$0xff]  ;;  %v4179_v23 = vmax.f32 %v24488_v2, 0.0  ;;  %v21641_v0 = vld [vmem:[%s21773_s7 + $0x43a] sm:$0xff]  ;;  %v7776_v2 = vmax.f32 %v24491_v29, 0.0  ;;  %v21643_v29 = vld [vmem:[%s21773_s7 + $0x472] sm:$0xff] }
 0x35a   : > { %4254 = vrot.lane.b32.xlu1 %v4171_v43, %s21699_s16  ;;  %4252 = vrot.lane.b32.xlu0 %v4170_v37, %s21699_s16  ;;  %v21642_v43 = vld [vmem:[%s21773_s7 + $0x442] sm:$0xff]  ;;  %v4180_v37 = vmax.f32 %v24531_v41, 0.0  ;;  %v7777_v41 = vmax.f32 %v24534_v28, 0.0  ;;  %v4182_v28 = vmax.f32 %v24557_v38, 0.0  ;;  %v7779_v38 = vmax.f32 %v24560_v46, 0.0 }
 0x35c   : > { %19832 = vmatmul.mubr.msk.f32.gmra.mrb[66].mxu1 %vm280_vm1, %v16660_v17  ;;  %20282 = vmatmul.mubr.msk.f32.gmra.mrb[66].mxu0 %vm280_vm1, %v17130_v20  ;;  %v21644_v17 = vld [vmem:[%s21773_s7 + $0x47a] sm:$0xff]  ;;  %v21645_v20 = vld [vmem:[%s21773_s7 + $0x4aa] sm:$0xff] }
 0x35d   : > { %19834 = vmatprep.mubr.msk.f32.mxu1 %vm280_vm1, %v16661_v57  ;;  %20284 = vmatprep.mubr.msk.f32.mxu0 %vm280_vm1, %v17131_v45  ;;  %v21646_v57 = vld [vmem:[%s21773_s7 + $0x4b2] sm:$0xff] }
 0x35e   : > { %7851 = vrot.lane.b32.xlu1 %v7768_v1, %s21700_s17  ;;  %7849 = vrot.lane.b32.xlu0 %v7767_v31, %s21700_s17  ;;  %v21647_v31 = vld [vmem:[%s21773_s7 + $0x4e2] sm:$0xff] }
 0x360   : > { %19835 = vmatmul.mubr.msk.f32.gmra.mrb[68].mxu1 %vm280_vm1, %v16662_v32  ;;  %20285 = vmatmul.mubr.msk.f32.gmra.mrb[68].mxu0 %vm280_vm1, %v17132_v44  ;;  %v21648_v32 = vld [vmem:[%s21773_s7 + $0x4ea] sm:$0xff] }
 0x361   : > { %19837 = vmatprep.mubr.msk.f32.mxu1 %vm280_vm1, %v16663_v58  ;;  %20287 = vmatprep.mubr.msk.f32.mxu0 %vm280_vm1, %v17133_v25  ;;  %v21649_v25 = vld [vmem:[%s21773_s7 + $0x51a] sm:$0xff] }
 0x362   : > { %4258 = vrot.lane.b32.xlu1 %v4173_v39, %s21699_s16  ;;  %4256 = vrot.lane.b32.xlu0 %v4172_v34, %s21699_s16  ;;  %v21650_v39 = vld [vmem:[%s21773_s7 + $0x522] sm:$0xff] }
 0x364   : > { %19838 = vmatmul.mubr.msk.f32.gmra.mrb[70].mxu1 %vm280_vm1, %v16664_v61  ;;  %20288 = vmatmul.mubr.msk.f32.gmra.mrb[70].mxu0 %vm280_vm1, %v17134_v4  ;;  %v21651_v4 = vld [vmem:[%s21773_s7 + $0x552] sm:$0xff] }
 0x365   : > { %19840 = vmatprep.mubr.msk.f32.mxu1 %vm280_vm1, %v24631_v59  ;;  %20290 = vmatprep.mubr.msk.f32.mxu0 %vm280_vm1, %v17135_v27 }
 0x366   : > { %7855 = vrot.lane.b32.xlu1 %v7770_v62, %s21700_s17  ;;  %7853 = vrot.lane.b32.xlu0 %v7769_v30, %s21700_s17  ;;  %v21653_v62 = vld [vmem:[%s21773_s7 + $0x58a] sm:$0xff]  ;;  %v21654_v30 = vld [vmem:[%s21773_s7 + $0x592] sm:$0xff] }
 0x368   : > { %19841 = vmatmul.mubr.msk.f32.gmra.mrb[72].mxu1 %vm280_vm1, %v24642_v51  ;;  %20291 = vmatmul.mubr.msk.f32.gmra.mrb[72].mxu0 %vm280_vm1, %v17136_v22 }
 0x369   : > { %19843 = vmatprep.mubr.msk.f32.mxu1 %vm280_vm1, %v24648_v16  ;;  %20293 = vmatprep.mubr.msk.f32.mxu0 %vm280_vm1, %v17137_v36 }
 0x36a   : > { %4262 = vrot.lane.b32.xlu1 %v4175_v54, %s21699_s16  ;;  %4260 = vrot.lane.b32.xlu0 %v4174_v53, %s21699_s16  ;;  %v21655_v54 = vld [vmem:[%s21773_s7 + $0x5c2] sm:$0xff]  ;;  %v21656_v53 = vld [vmem:[%s21773_s7 + $0x5ca] sm:$0xff] }
 0x36c   : > { %19844 = vmatmul.mubr.msk.f32.gmra.mrb[74].mxu1 %vm280_vm1, %v24660_v48  ;;  %20294 = vmatmul.mubr.msk.f32.gmra.mrb[74].mxu0 %vm280_vm1, %v17138_v55 }
 0x36d   : > { %19846 = vmatprep.mubr.msk.f32.mxu1 %vm280_vm1, %v24666_v15  ;;  %20296 = vmatprep.mubr.msk.f32.mxu0 %vm280_vm1, %v17139_v60 }
 0x36e   : > { %7859 = vrot.lane.b32.xlu1 %v7772_v21, %s21700_s17  ;;  %7857 = vrot.lane.b32.xlu0 %v7771_v56, %s21700_s17  ;;  %v21657_v21 = vld [vmem:[%s21773_s7 + $0x5fa] sm:$0xff]  ;;  %v21658_v56 = vld [vmem:[%s21773_s7 + $0x602] sm:$0xff] }
 0x370   : > { %19847 = vmatmul.mubr.msk.f32.gmra.mrb[76].mxu1 %vm280_vm1, %v24678_v26  ;;  %20297 = vmatmul.mubr.msk.f32.gmra.mrb[76].mxu0 %vm280_vm1, %v17140_v6 }
 0x371   : > { %19849 = vmatprep.mubr.msk.f32.mxu1 %vm280_vm1, %v24684_v10  ;;  %20299 = vmatprep.mubr.msk.f32.mxu0 %vm280_vm1, %v17141_v52 }
 0x372   : > { %4266 = vrot.lane.b32.xlu1 %v4177_v11, %s21699_s16  ;;  %4264 = vrot.lane.b32.xlu0 %v4176_v8, %s21699_s16  ;;  %v21659_v11 = vld [vmem:[%s21773_s7 + $0x632] sm:$0xff]  ;;  %v21660_v8 = vld [vmem:[%s21773_s7 + $0x63a] sm:$0xff] }
 0x374   : > { %19850 = vmatmul.mubr.msk.f32.gmra.mrb[78].mxu1 %vm280_vm1, %v24696_v50  ;;  %20300 = vmatmul.mubr.msk.f32.gmra.mrb[78].mxu0 %vm280_vm1, %v17142_v7 }
 0x375   : > { %19854 = vmatprep.mubr.msk.f32.mxu1 %vm280_vm1, %v21639_v49  ;;  %20304 = vmatprep.mubr.msk.f32.mxu0 %vm280_vm1, %v21639_v49  ;;  %v21662_v49 = vld [vmem:[%s21773_s7 + $0x672] sm:$0xff] }
 0x376   : > { %7863 = vrot.lane.b32.xlu1 %v7774_v9, %s21700_s17  ;;  %7861 = vrot.lane.b32.xlu0 %v7773_v12, %s21700_s17  ;;  %v21661_v12 = vld [vmem:[%s21773_s7 + $0x66a] sm:$0xff] }
 0x378   : > { %19855 = vmatmul.mubr.msk.f32.vlgmr.msra.gmra.mrb[48].mxu1 %vm280_vm1, %v21640_v19  ;;  %20305 = vmatmul.mubr.msk.f32.vlgmr.msra.gmra.mrb[48].mxu0 %vm280_vm1, %v21640_v19  ;;  %v21663_v19 = vld [vmem:[%s21773_s7 + $0x6a2] sm:$0xff] }
 0x379   : > { %19903 = vmatpush3.msk.msra.mxu1 %vm377_vm0, %v24427_v35  ;;  %19857 = vmatprep.mubr.msk.f32.mxu1 %vm280_vm1, %v21641_v0  ;;  %v24733_v35 = vld [vmem:[%s26007_s2 + $0x60] sm:$0xf] }
 0x37a   : > { %4270 = vrot.lane.b32.xlu1 %v4179_v23, %s21699_s16  ;;  %4268 = vrot.lane.b32.xlu0 %v4178_v42, %s21699_s16 }
 0x37b   : > { %20307 = vmatprep.mubr.msk.f32.mxu0 %vm280_vm1, %v21641_v0  ;;  %20353 = vmatpush3.msk.msra.mxu0 %vm377_vm0, %v24438_v33  ;;  %v24738_v33 = vld [vmem:[%s26007_s2 + $0x84] sm:$0xf]  ;;  %v21664_v0 = vld [vmem:[%s21773_s7 + $0x6aa] sm:$0xff] }
 0x37c   : > { %19858 = vmatmul.mubr.msk.f32.gmra.mrb[50].mxu1 %vm280_vm1, %v21642_v43  ;;  %20308 = vmatmul.mubr.msk.f32.gmra.mrb[50].mxu0 %vm280_vm1, %v21642_v43  ;;  %v21665_v43 = vld [vmem:[%s21773_s7 + $0x6da] sm:$0xff] }
 0x37d   : > { %19860 = vmatprep.mubr.msk.f32.mxu1 %vm280_vm1, %v21643_v29  ;;  %20310 = vmatprep.mubr.msk.f32.mxu0 %vm280_vm1, %v21643_v29  ;;  %v21666_v29 = vld [vmem:[%s21773_s7 + $0x6e2] sm:$0xff] }
 0x37e   : > { %7867 = vrot.lane.b32.xlu1 %v7776_v2, %s21700_s17  ;;  %7865 = vrot.lane.b32.xlu0 %v7775_v14, %s21700_s17 }
 0x37f   : > { %19952 = vmatprep.subr.msk.mxu1 %vm377_vm0, %v24733_v35  ;;  %20402 = vmatprep.subr.msk.mxu0 %vm377_vm0, %v24738_v33 }
 0x380   : > { %19861 = vmatmul.mubr.msk.f32.gmra.mrb[52].mxu1 %vm280_vm1, %v21644_v17  ;;  %20311 = vmatmul.mubr.msk.f32.gmra.mrb[52].mxu0 %vm280_vm1, %v21644_v17  ;;  %v21667_v17 = vld [vmem:[%s21773_s7 + $0x712] sm:$0xff] }
 0x381   : > { %19863 = vmatprep.mubr.msk.f32.mxu1 %vm280_vm1, %v21645_v20  ;;  %20313 = vmatprep.mubr.msk.f32.mxu0 %vm280_vm1, %v21645_v20  ;;  %v21668_v20 = vld [vmem:[%s21773_s7 + $0x71a] sm:$0xff] }
 0x382   : > { %4274 = vrot.lane.b32.xlu1 %v4181_v5, %s21699_s16  ;;  %4272 = vrot.lane.b32.xlu0 %v4180_v37, %s21699_s16 }
 0x383   : > { %v7816_v1 = vpop.permute.xlu1 %7815 }
 0x384   : > { %19864 = vmatmul.mubr.msk.f32.gmra.mrb[54].mxu1 %vm280_vm1, %v21646_v57  ;;  %v4219_v45 = vpop.permute.xlu0 %4218  ;;  %20314 = vmatmul.mubr.msk.f32.gmra.mrb[54].mxu0 %vm280_vm1, %v21646_v57  ;;  %v21669_v57 = vld [vmem:[%s21773_s7 + $0x74a] sm:$0xff] }
 0x385   : > { %4314 = vst.msk [vmem:[%s22688_s11 + $0x8] sm:$0xff] %vm4312_vm3, %v4219_v45  ;;  %19866 = vmatprep.mubr.msk.f32.mxu1 %vm280_vm1, %v21647_v31  ;;  %20316 = vmatprep.mubr.msk.f32.mxu0 %vm280_vm1, %v21647_v31  ;;  %v16741_v45 = vld [vmem:[%s21773_s7 + $0x40e] sm:$0xff] }
 0x386   : > { %7911 = vst.msk [vmem:[%s22688_s11 + $0x8] sm:$0xff] %vm7909_vm4, %v7816_v1  ;;  %7871 = vrot.lane.b32.xlu1 %v7778_v13, %s21700_s17  ;;  %7869 = vrot.lane.b32.xlu0 %v7777_v41, %s21700_s17  ;;  %v17211_v1 = vld [vmem:[%s21773_s7 + $0x414] sm:$0xff] }
 0x387   : > { %v21670_v31 = vld [vmem:[%s21773_s7 + $0x752] sm:$0xff] }
 0x388   : > { %19867 = vmatmul.mubr.msk.f32.gmra.mrb[56].mxu1 %vm280_vm1, %v21648_v32  ;;  %v4217_v44 = vpop.permute.xlu0 %4216  ;;  %20317 = vmatmul.mubr.msk.f32.gmra.mrb[56].mxu0 %vm280_vm1, %v21648_v32  ;;  %v4223_v58 = vpop.permute.xlu1 %4222  ;;  %v17212_v32 = vld [vmem:[%s21773_s7 + $0x41c] sm:$0xff] }
 0x389   : > { %4313 = vst.msk [vmem:[%s22688_s11] sm:$0xff] %vm4312_vm3, %v4217_v44  ;;  %4316 = vst.msk [vmem:[%s22688_s11 + $0x18] sm:$0xff] %vm4312_vm3, %v4223_v58  ;;  %19869 = vmatprep.mubr.msk.f32.mxu1 %vm280_vm1, %v21649_v25  ;;  %20319 = vmatprep.mubr.msk.f32.mxu0 %vm280_vm1, %v21649_v25  ;;  %v17213_v44 = vld [vmem:[%s21773_s7 + $0x44c] sm:$0xff]  ;;  %v21671_v58 = vld [vmem:[%s21773_s7 + $0x416] sm:$0xff] }
 0x38a   : > { %4278 = vrot.lane.b32.xlu1 %v4183_v3, %s21699_s16  ;;  %4276 = vrot.lane.b32.xlu0 %v4182_v28, %s21699_s16 }
 0x38c   : > { %19870 = vmatmul.mubr.msk.f32.gmra.mrb[58].mxu1 %vm280_vm1, %v21650_v39  ;;  %20320 = vmatmul.mubr.msk.f32.gmra.mrb[58].mxu0 %vm280_vm1, %v21650_v39  ;;  %v7814_v34 = vpop.permute.xlu0 %7813  ;;  %v7820_v61 = vpop.permute.xlu1 %7819  ;;  %v24915_v39 = vld [vmem:[%s26007_s2 + $0x88] sm:$0xf] }
 0x38d   : > { %7910 = vst.msk [vmem:[%s22688_s11] sm:$0xff] %vm7909_vm4, %v7814_v34  ;;  %7913 = vst.msk [vmem:[%s22688_s11 + $0x18] sm:$0xff] %vm7909_vm4, %v7820_v61  ;;  %19872 = vmatprep.mubr.msk.f32.mxu1 %vm280_vm1, %v21651_v4  ;;  %20322 = vmatprep.mubr.msk.f32.mxu0 %vm280_vm1, %v21651_v4  ;;  %v21672_v34 = vld [vmem:[%s21773_s7 + $0x446] sm:$0xff]  ;;  %v17214_v61 = vld [vmem:[%s21773_s7 + $0x454] sm:$0xff] }
 0x38e   : > { %7875 = vrot.lane.b32.xlu1 %v7780_v63, %s21700_s17  ;;  %7873 = vrot.lane.b32.xlu0 %v7779_v38, %s21700_s17  ;;  %v24910_v38 = vld [vmem:[%s26007_s2 + $0x64] sm:$0xf] }
 0x38f   : > { %v17215_v4 = vld [vmem:[%s21773_s7 + $0x484] sm:$0xff] }
 0x390   : > { %19873 = vmatmul.mubr.msk.f32.gmra.mrb[60].mxu1 %vm280_vm1, %v21652_v18  ;;  %20323 = vmatmul.mubr.msk.f32.gmra.mrb[60].mxu0 %vm280_vm1, %v21652_v18  ;;  %v4221_v46 = vpop.permute.xlu1 %4220  ;;  %v7818_v27 = vpop.permute.xlu0 %7817 }
 0x391   : > { %4315 = vst.msk [vmem:[%s22688_s11 + $0x10] sm:$0xff] %vm4312_vm3, %v4221_v46  ;;  %19875 = vmatprep.mubr.msk.f32.mxu1 %vm280_vm1, %v21653_v62  ;;  %20325 = vmatprep.mubr.msk.f32.mxu0 %vm280_vm1, %v21653_v62  ;;  %v17217_v62 = vld [vmem:[%s21773_s7 + $0x4bc] sm:$0xff] }
 0x392   : > { %7912 = vst.msk [vmem:[%s22688_s11 + $0x10] sm:$0xff] %vm7909_vm4, %v7818_v27  ;;  %v17216_v27 = vld [vmem:[%s21773_s7 + $0x48c] sm:$0xff] }
 0x394   : > { %19876 = vmatmul.mubr.msk.f32.gmra.mrb[62].mxu1 %vm280_vm1, %v21654_v30  ;;  %20326 = vmatmul.mubr.msk.f32.gmra.mrb[62].mxu0 %vm280_vm1, %v21654_v30  ;;  %v4227_v22 = vpop.permute.xlu1 %4226  ;;  %v4225_v36 = vpop.permute.xlu0 %4224 }
 0x395   : > { %4318 = vst.msk [vmem:[%s22688_s11 + $0x28] sm:$0xff] %vm4312_vm3, %v4227_v22  ;;  %4317 = vst.msk [vmem:[%s22688_s11 + $0x20] sm:$0xff] %vm4312_vm3, %v4225_v36  ;;  %19878 = vmatprep.mubr.msk.f32.mxu1 %vm280_vm1, %v21655_v54  ;;  %20328 = vmatprep.mubr.msk.f32.mxu0 %vm280_vm1, %v21655_v54  ;;  %v17218_v36 = vld [vmem:[%s21773_s7 + $0x4c4] sm:$0xff]  ;;  %v17219_v54 = vld [vmem:[%s21773_s7 + $0x4f4] sm:$0xff] }
 0x398   : > { %19879 = vmatmul.mubr.msk.f32.gmra.mrb[64].mxu1 %vm280_vm1, %v21656_v53  ;;  %20329 = vmatmul.mubr.msk.f32.gmra.mrb[64].mxu0 %vm280_vm1, %v21656_v53  ;;  %v7824_v55 = vpop.permute.xlu1 %7823  ;;  %v7822_v60 = vpop.permute.xlu0 %7821 }
 0x399   : > { %7915 = vst.msk [vmem:[%s22688_s11 + $0x28] sm:$0xff] %vm7909_vm4, %v7824_v55  ;;  %7914 = vst.msk [vmem:[%s22688_s11 + $0x20] sm:$0xff] %vm7909_vm4, %v7822_v60  ;;  %19881 = vmatprep.mubr.msk.f32.mxu1 %vm280_vm1, %v21657_v21  ;;  %20331 = vmatprep.mubr.msk.f32.mxu0 %vm280_vm1, %v21657_v21  ;;  %v16751_v60 = vld [vmem:[%s21773_s7 + $0x526] sm:$0xff] }
 0x39a   : > { %v17221_v21 = vld [vmem:[%s21773_s7 + $0x52c] sm:$0xff] }
 0x39c   : > { %19882 = vmatmul.mubr.msk.f32.gmra.mrb[66].mxu1 %vm280_vm1, %v21658_v56  ;;  %20332 = vmatmul.mubr.msk.f32.gmra.mrb[66].mxu0 %vm280_vm1, %v21658_v56  ;;  %v4231_v6 = vpop.permute.xlu1 %4230  ;;  %v4229_v52 = vpop.permute.xlu0 %4228 }
 0x39d   : > { %4320 = vst.msk [vmem:[%s22688_s11 + $0x38] sm:$0xff] %vm4312_vm3, %v4231_v6  ;;  %4319 = vst.msk [vmem:[%s22688_s11 + $0x30] sm:$0xff] %vm4312_vm3, %v4229_v52  ;;  %19884 = vmatprep.mubr.msk.f32.mxu1 %vm280_vm1, %v21659_v11  ;;  %20334 = vmatprep.mubr.msk.f32.mxu0 %vm280_vm1, %v21659_v11  ;;  %v16752_v52 = vld [vmem:[%s21773_s7 + $0x52e] sm:$0xff] }
 0x39e   : > { %v17222_v11 = vld [vmem:[%s21773_s7 + $0x534] sm:$0xff] }
 0x3a0   : > { %19885 = vmatmul.mubr.msk.f32.gmra.mrb[68].mxu1 %vm280_vm1, %v21660_v8  ;;  %20335 = vmatmul.mubr.msk.f32.gmra.mrb[68].mxu0 %vm280_vm1, %v21660_v8  ;;  %v7828_v7 = vpop.permute.xlu1 %7827  ;;  %v7826_v9 = vpop.permute.xlu0 %7825  ;;  %v16753_v8 = vld [vmem:[%s21773_s7 + $0x55e] sm:$0xff] }
 0x3a1   : > { %7917 = vst.msk [vmem:[%s22688_s11 + $0x38] sm:$0xff] %vm7909_vm4, %v7828_v7  ;;  %7916 = vst.msk [vmem:[%s22688_s11 + $0x30] sm:$0xff] %vm7909_vm4, %v7826_v9  ;;  %19887 = vmatprep.mubr.msk.f32.mxu1 %vm280_vm1, %v21661_v12  ;;  %20337 = vmatprep.mubr.msk.f32.mxu0 %vm280_vm1, %v21661_v12  ;;  %v17223_v7 = vld [vmem:[%s21773_s7 + $0x564] sm:$0xff] }
 0x3a4   : > { %19888 = vmatmul.mubr.msk.f32.gmra.mrb[70].mxu1 %vm280_vm1, %v21662_v49  ;;  %20338 = vmatmul.mubr.msk.f32.gmra.mrb[70].mxu0 %vm280_vm1, %v21662_v49  ;;  %v4235_v23 = vpop.permute.xlu1 %4234  ;;  %v4233_v42 = vpop.permute.xlu0 %4232  ;;  %v16754_v49 = vld [vmem:[%s21773_s7 + $0x566] sm:$0xff] }
 0x3a5   : > { %4322 = vst.msk [vmem:[%s22688_s11 + $0x48] sm:$0xff] %vm4312_vm3, %v4235_v23  ;;  %4321 = vst.msk [vmem:[%s22688_s11 + $0x40] sm:$0xff] %vm4312_vm3, %v4233_v42  ;;  %19890 = vmatprep.mubr.msk.f32.mxu1 %vm280_vm1, %v21663_v19  ;;  %20340 = vmatprep.mubr.msk.f32.mxu0 %vm280_vm1, %v21663_v19  ;;  %v17224_v23 = vld [vmem:[%s21773_s7 + $0x56c] sm:$0xff]  ;;  %v16755_v42 = vld [vmem:[%s21773_s7 + $0x596] sm:$0xff] }
 0x3a6   : > { %v17225_v19 = vld [vmem:[%s21773_s7 + $0x59c] sm:$0xff] }
 0x3a8   : > { %19891 = vmatmul.mubr.msk.f32.gmra.mrb[72].mxu1 %vm280_vm1, %v21664_v0  ;;  %20341 = vmatmul.mubr.msk.f32.gmra.mrb[72].mxu0 %vm280_vm1, %v21664_v0  ;;  %v7832_v2 = vpop.permute.xlu1 %7831  ;;  %v7830_v14 = vpop.permute.xlu0 %7829 }
 0x3a9   : > { %7919 = vst.msk [vmem:[%s22688_s11 + $0x48] sm:$0xff] %vm7909_vm4, %v7832_v2  ;;  %7918 = vst.msk [vmem:[%s22688_s11 + $0x40] sm:$0xff] %vm7909_vm4, %v7830_v14  ;;  %19893 = vmatprep.mubr.msk.f32.mxu1 %vm280_vm1, %v21665_v43  ;;  %20343 = vmatprep.mubr.msk.f32.mxu0 %vm280_vm1, %v21665_v43  ;;  %v16756_v14 = vld [vmem:[%s21773_s7 + $0x59e] sm:$0xff] }
 0x3aa   : > { %v17226_v43 = vld [vmem:[%s21773_s7 + $0x5a4] sm:$0xff] }
 0x3ac   : > { %19894 = vmatmul.mubr.msk.f32.gmra.mrb[74].mxu1 %vm280_vm1, %v21666_v29  ;;  %20344 = vmatmul.mubr.msk.f32.gmra.mrb[74].mxu0 %vm280_vm1, %v21666_v29  ;;  %v4239_v5 = vpop.permute.xlu1 %4238  ;;  %v4237_v37 = vpop.permute.xlu0 %4236  ;;  %v16757_v29 = vld [vmem:[%s21773_s7 + $0x5ce] sm:$0xff] }
 0x3ad   : > { %4324 = vst.msk [vmem:[%s22688_s11 + $0x58] sm:$0xff] %vm4312_vm3, %v4239_v5  ;;  %4323 = vst.msk [vmem:[%s22688_s11 + $0x50] sm:$0xff] %vm4312_vm3, %v4237_v37  ;;  %19896 = vmatprep.mubr.msk.f32.mxu1 %vm280_vm1, %v21667_v17  ;;  %20346 = vmatprep.mubr.msk.f32.mxu0 %vm280_vm1, %v21667_v17  ;;  %v17227_v5 = vld [vmem:[%s21773_s7 + $0x5d4] sm:$0xff] }
 0x3b0   : > { %19897 = vmatmul.mubr.msk.f32.gmra.mrb[76].mxu1 %vm280_vm1, %v21668_v20  ;;  %20347 = vmatmul.mubr.msk.f32.gmra.mrb[76].mxu0 %vm280_vm1, %v21668_v20  ;;  %v7836_v13 = vpop.permute.xlu1 %7835  ;;  %v7834_v41 = vpop.permute.xlu0 %7833  ;;  %v16758_v20 = vld [vmem:[%s21773_s7 + $0x5d6] sm:$0xff] }
 0x3b1   : > { %7921 = vst.msk [vmem:[%s22688_s11 + $0x58] sm:$0xff] %vm7909_vm4, %v7836_v13  ;;  %7920 = vst.msk [vmem:[%s22688_s11 + $0x50] sm:$0xff] %vm7909_vm4, %v7834_v41  ;;  %19899 = vmatprep.mubr.msk.f32.mxu1 %vm280_vm1, %v21669_v57  ;;  %20349 = vmatprep.mubr.msk.f32.mxu0 %vm280_vm1, %v21669_v57  ;;  %v17228_v13 = vld [vmem:[%s21773_s7 + $0x5dc] sm:$0xff]  ;;  %v16759_v41 = vld [vmem:[%s21773_s7 + $0x606] sm:$0xff] }
 0x3b2   : > { %v17229_v57 = vld [vmem:[%s21773_s7 + $0x60c] sm:$0xff] }
 0x3b4   : > { %19900 = vmatmul.mubr.msk.f32.gmra.mrb[78].mxu1 %vm280_vm1, %v21670_v31  ;;  %20350 = vmatmul.mubr.msk.f32.gmra.mrb[78].mxu0 %vm280_vm1, %v21670_v31  ;;  %v4243_v3 = vpop.permute.xlu1 %4242  ;;  %v4241_v28 = vpop.permute.xlu0 %4240  ;;  %v16760_v31 = vld [vmem:[%s21773_s7 + $0x60e] sm:$0xff] }
 0x3b5   : > { %4326 = vst.msk [vmem:[%s22688_s11 + $0x68] sm:$0xff] %vm4312_vm3, %v4243_v3  ;;  %4325 = vst.msk [vmem:[%s22688_s11 + $0x60] sm:$0xff] %vm4312_vm3, %v4241_v28  ;;  %19904 = vmatprep.mubr.msk.f32.mxu1 %vm280_vm1, %v16741_v45  ;;  %20354 = vmatprep.mubr.msk.f32.mxu0 %vm280_vm1, %v17211_v1  ;;  %v17230_v3 = vld [vmem:[%s21773_s7 + $0x614] sm:$0xff]  ;;  %v16761_v28 = vld [vmem:[%s21773_s7 + $0x63e] sm:$0xff] }
 0x3b8   : > { %19905 = vmatmul.mubr.msk.f32.vlgmr.msra.gmra.mrb[48].mxu1 %vm280_vm1, %v21671_v58  ;;  %20355 = vmatmul.mubr.msk.f32.vlgmr.msra.gmra.mrb[48].mxu0 %vm280_vm1, %v17212_v32  ;;  %v7840_v25 = vpop.permute.xlu1 %7839  ;;  %v7838_v63 = vpop.permute.xlu0 %7837  ;;  %v17231_v32 = vld [vmem:[%s21773_s7 + $0x644] sm:$0xff] }
 0x3b9   : > { %19953 = vmatpush3.msk.msra.mxu1 %vm377_vm0, %v24733_v35  ;;  %7923 = vst.msk [vmem:[%s22688_s11 + $0x68] sm:$0xff] %vm7909_vm4, %v7840_v25  ;;  %7922 = vst.msk [vmem:[%s22688_s11 + $0x60] sm:$0xff] %vm7909_vm4, %v7838_v63  ;;  %19907 = vmatprep.mubr.msk.f32.mxu1 %vm280_vm1, %v21672_v34  ;;  %v21673_v35 = vld [vmem:[%s21773_s7 + $0x44e] sm:$0xff]  ;;  %v16762_v25 = vld [vmem:[%s21773_s7 + $0x646] sm:$0xff] }
 0x3ba   : > { %20357 = vmatprep.mubr.msk.f32.mxu0 %vm280_vm1, %v17213_v44  ;;  %20403 = vmatpush3.msk.msra.mxu0 %vm377_vm0, %v24738_v33  ;;  %v21674_v33 = vld [vmem:[%s21773_s7 + $0x47e] sm:$0xff]  ;;  %v17232_v63 = vld [vmem:[%s21773_s7 + $0x64c] sm:$0xff]  ;;  %v16763_v34 = vld [vmem:[%s21773_s7 + $0x676] sm:$0xff] }
 0x3bb   : > { %20002 = vmatprep.subr.msk.mxu1 %vm377_vm0, %v24910_v38  ;;  %20452 = vmatprep.subr.msk.mxu0 %vm377_vm0, %v24915_v39 }
 0x3bc   : > { %19908 = vmatmul.mubr.msk.f32.gmra.mrb[50].mxu1 %vm280_vm1, %v21673_v35  ;;  %20358 = vmatmul.mubr.msk.f32.gmra.mrb[50].mxu0 %vm280_vm1, %v17214_v61  ;;  %v4247_v18 = vpop.permute.xlu1 %4246  ;;  %v4245_v46 = vpop.permute.xlu0 %4244  ;;  %v17233_v61 = vld [vmem:[%s21773_s7 + $0x67c] sm:$0xff] }
 0x3bd   : > { %4328 = vst.msk [vmem:[%s22688_s11 + $0x78] sm:$0xff] %vm4312_vm3, %v4247_v18  ;;  %4327 = vst.msk [vmem:[%s22688_s11 + $0x70] sm:$0xff] %vm4312_vm3, %v4245_v46  ;;  %19910 = vmatprep.mubr.msk.f32.mxu1 %vm280_vm1, %v21674_v33  ;;  %20360 = vmatprep.mubr.msk.f32.mxu0 %vm280_vm1, %v17215_v4  ;;  %v16764_v18 = vld [vmem:[%s21773_s7 + $0x67e] sm:$0xff]  ;;  %v25055_v33 = vld [vmem:[%s21773_s7 + $0x6ae] sm:$0xff] }
 0x3be   : > { %v17234_v46 = vld [vmem:[%s21773_s7 + $0x684] sm:$0xff] }
 0x3c0   : > { %19911 = vmatmul.mubr.msk.f32.gmra.mrb[52].mxu1 %vm280_vm1, %v24292_v40  ;;  %20361 = vmatmul.mubr.msk.f32.gmra.mrb[52].mxu0 %vm280_vm1, %v17216_v27  ;;  %v7844_v30 = vpop.permute.xlu1 %7843  ;;  %v7842_v22 = vpop.permute.xlu0 %7841  ;;  %v16749_v40 = vld [vmem:[%s21773_s7 + $0x4ee] sm:$0xff] }
 0x3c1   : > { %7925 = vst.msk [vmem:[%s22688_s11 + $0x78] sm:$0xff] %vm7909_vm4, %v7844_v30  ;;  %7924 = vst.msk [vmem:[%s22688_s11 + $0x70] sm:$0xff] %vm7909_vm4, %v7842_v22  ;;  %19913 = vmatprep.mubr.msk.f32.mxu1 %vm280_vm1, %v24305_v24  ;;  %20363 = vmatprep.mubr.msk.f32.mxu0 %vm280_vm1, %v17217_v62  ;;  %v16750_v24 = vld [vmem:[%s21773_s7 + $0x4f6] sm:$0xff] }
 0x3c2   : > { %v17235_v27 = vld [vmem:[%s21773_s7 + $0x6b4] sm:$0xff] }
 0x3c3   : > { %v25068_v22 = vld [vmem:[%s21773_s7 + $0x6b6] sm:$0xff] }
 0x3c4   : > { %19914 = vmatmul.mubr.msk.f32.gmra.mrb[54].mxu1 %vm280_vm1, %v24331_v47  ;;  %20364 = vmatmul.mubr.msk.f32.gmra.mrb[54].mxu0 %vm280_vm1, %v17218_v36  ;;  %v4251_v53 = vpop.permute.xlu1 %4250  ;;  %v4249_v55 = vpop.permute.xlu0 %4248  ;;  %v17220_v47 = vld [vmem:[%s21773_s7 + $0x4fc] sm:$0xff] }
 0x3c5   : > { %4330 = vst.msk [vmem:[%s22688_s11 + $0x88] sm:$0xff] %vm4312_vm3, %v4251_v53  ;;  %4329 = vst.msk [vmem:[%s22688_s11 + $0x80] sm:$0xff] %vm4312_vm3, %v4249_v55  ;;  %19916 = vmatprep.mubr.msk.f32.mxu1 %vm280_vm1, %v16749_v40  ;;  %20366 = vmatprep.mubr.msk.f32.mxu0 %vm280_vm1, %v17219_v54  ;;  %v17236_v36 = vld [vmem:[%s21773_s7 + $0x6bc] sm:$0xff]  ;;  %v25072_v40 = vld [vmem:[%s21773_s7 + $0x6e6] sm:$0xff] }
 0x3c6   : > { %v17237_v54 = vld [vmem:[%s21773_s7 + $0x6ec] sm:$0xff] }
 0x3c8   : > { %19917 = vmatmul.mubr.msk.f32.gmra.mrb[56].mxu1 %vm280_vm1, %v16750_v24  ;;  %20367 = vmatmul.mubr.msk.f32.gmra.mrb[56].mxu0 %vm280_vm1, %v17220_v47  ;;  %v7848_v56 = vpop.permute.xlu1 %7847  ;;  %v7846_v6 = vpop.permute.xlu0 %7845  ;;  %v25086_v24 = vld [vmem:[%s21773_s7 + $0x6ee] sm:$0xff] }
 0x3c9   : > { %7927 = vst.msk [vmem:[%s22688_s11 + $0x88] sm:$0xff] %vm7909_vm4, %v7848_v56  ;;  %7926 = vst.msk [vmem:[%s22688_s11 + $0x80] sm:$0xff] %vm7909_vm4, %v7846_v6  ;;  %19919 = vmatprep.mubr.msk.f32.mxu1 %vm280_vm1, %v16751_v60  ;;  %20369 = vmatprep.mubr.msk.f32.mxu0 %vm280_vm1, %v17221_v21  ;;  %v17238_v47 = vld [vmem:[%s21773_s7 + $0x6f4] sm:$0xff]  ;;  %v25090_v60 = vld [vmem:[%s21773_s7 + $0x71e] sm:$0xff] }
 0x3ca   : > { %v17239_v21 = vld [vmem:[%s21773_s7 + $0x724] sm:$0xff] }
 0x3cc   : > { %19920 = vmatmul.mubr.msk.f32.gmra.mrb[58].mxu1 %vm280_vm1, %v16752_v52  ;;  %20370 = vmatmul.mubr.msk.f32.gmra.mrb[58].mxu0 %vm280_vm1, %v17222_v11  ;;  %v4255_v9 = vpop.permute.xlu1 %4254  ;;  %v4253_v12 = vpop.permute.xlu0 %4252  ;;  %v25104_v52 = vld [vmem:[%s21773_s7 + $0x726] sm:$0xff] }
 0x3cd   : > { %4332 = vst.msk [vmem:[%s22688_s11 + $0x98] sm:$0xff] %vm4312_vm3, %v4255_v9  ;;  %4331 = vst.msk [vmem:[%s22688_s11 + $0x90] sm:$0xff] %vm4312_vm3, %v4253_v12  ;;  %19922 = vmatprep.mubr.msk.f32.mxu1 %vm280_vm1, %v16753_v8  ;;  %20372 = vmatprep.mubr.msk.f32.mxu0 %vm280_vm1, %v17223_v7  ;;  %v17240_v11 = vld [vmem:[%s21773_s7 + $0x72c] sm:$0xff]  ;;  %v25108_v8 = vld [vmem:[%s21773_s7 + $0x756] sm:$0xff] }
 0x3ce   : > { %v17241_v7 = vld [vmem:[%s21773_s7 + $0x75c] sm:$0xff] }
 0x3d0   : > { %19923 = vmatmul.mubr.msk.f32.gmra.mrb[60].mxu1 %vm280_vm1, %v16754_v49  ;;  %20373 = vmatmul.mubr.msk.f32.gmra.mrb[60].mxu0 %vm280_vm1, %v17224_v23  ;;  %v7852_v0 = vpop.permute.xlu1 %7851  ;;  %v7850_v2 = vpop.permute.xlu0 %7849  ;;  %v25122_v49 = vld [vmem:[%s21773_s7 + $0x75e] sm:$0xff] }
 0x3d1   : > { %7929 = vst.msk [vmem:[%s22688_s11 + $0x98] sm:$0xff] %vm7909_vm4, %v7852_v0  ;;  %7928 = vst.msk [vmem:[%s22688_s11 + $0x90] sm:$0xff] %vm7909_vm4, %v7850_v2  ;;  %19925 = vmatprep.mubr.msk.f32.mxu1 %vm280_vm1, %v16755_v42  ;;  %20375 = vmatprep.mubr.msk.f32.mxu0 %vm280_vm1, %v17225_v19  ;;  %v17242_v23 = vld [vmem:[%s21773_s7 + $0x764] sm:$0xff] }
 0x3d2   : > { %v17277_v42 = vld [vmem:[%s21773_s7 + $0x7e0] sm:$0xff]  ;;  %v17278_v2 = vld [vmem:[%s21773_s7 + $0x7e8] sm:$0xff] }
 0x3d4   : > { %19926 = vmatmul.mubr.msk.f32.gmra.mrb[62].mxu1 %vm280_vm1, %v16756_v14  ;;  %20376 = vmatmul.mubr.msk.f32.gmra.mrb[62].mxu0 %vm280_vm1, %v17226_v43  ;;  %v4259_v37 = vpop.permute.xlu1 %4258  ;;  %v4257_v17 = vpop.permute.xlu0 %4256  ;;  %v17279_v14 = vld [vmem:[%s21773_s7 + $0x818] sm:$0xff] }
 0x3d5   : > { %4334 = vst.msk [vmem:[%s22688_s11 + $0xa8] sm:$0xff] %vm4312_vm3, %v4259_v37  ;;  %4333 = vst.msk [vmem:[%s22688_s11 + $0xa0] sm:$0xff] %vm4312_vm3, %v4257_v17  ;;  %19928 = vmatprep.mubr.msk.f32.mxu1 %vm280_vm1, %v16757_v29  ;;  %20378 = vmatprep.mubr.msk.f32.mxu0 %vm280_vm1, %v17227_v5  ;;  %v25144_v5 = vld [vmem:[%s26007_s2 + $0x68] sm:$0xf]  ;;  %v17281_v37 = vld [vmem:[%s21773_s7 + $0x850] sm:$0xff] }
 0x3d6   : > { %v17283_v17 = vld [vmem:[%s21773_s7 + $0x888] sm:$0xff] }
 0x3d8   : > { %19929 = vmatmul.mubr.msk.f32.gmra.mrb[64].mxu1 %vm280_vm1, %v16758_v20  ;;  %20379 = vmatmul.mubr.msk.f32.gmra.mrb[64].mxu0 %vm280_vm1, %v17228_v13  ;;  %v7856_v45 = vpop.permute.xlu1 %7855  ;;  %v7854_v1 = vpop.permute.xlu0 %7853  ;;  %v17285_v13 = vld [vmem:[%s21773_s7 + $0x8c0] sm:$0xff] }
 0x3d9   : > { %7931 = vst.msk [vmem:[%s22688_s11 + $0xa8] sm:$0xff] %vm7909_vm4, %v7856_v45  ;;  %7930 = vst.msk [vmem:[%s22688_s11 + $0xa0] sm:$0xff] %vm7909_vm4, %v7854_v1  ;;  %19931 = vmatprep.mubr.msk.f32.mxu1 %vm280_vm1, %v16759_v41  ;;  %20381 = vmatprep.mubr.msk.f32.mxu0 %vm280_vm1, %v17229_v57  ;;  %v16816_v41 = vld [vmem:[%s21773_s7 + $0x77e] sm:$0xff]  ;;  %v16817_v57 = vld [vmem:[%s21773_s7 + $0x7ae] sm:$0xff] }
 0x3da   : > { %v17287_v45 = vld [vmem:[%s21773_s7 + $0x8f8] sm:$0xff]  ;;  %v17288_v1 = vld [vmem:[%s21773_s7 + $0x900] sm:$0xff] }
 0x3dc   : > { %19932 = vmatmul.mubr.msk.f32.gmra.mrb[66].mxu1 %vm280_vm1, %v16760_v31  ;;  %20382 = vmatmul.mubr.msk.f32.gmra.mrb[66].mxu0 %vm280_vm1, %v17230_v3  ;;  %v4263_v44 = vpop.permute.xlu1 %4262  ;;  %v4261_v58 = vpop.permute.xlu0 %4260  ;;  %v16819_v31 = vld [vmem:[%s21773_s7 + $0x7e6] sm:$0xff]  ;;  %v17289_v3 = vld [vmem:[%s21773_s7 + $0x930] sm:$0xff] }
 0x3dd   : > { %4336 = vst.msk [vmem:[%s22688_s11 + $0xb8] sm:$0xff] %vm4312_vm3, %v4263_v44  ;;  %4335 = vst.msk [vmem:[%s22688_s11 + $0xb0] sm:$0xff] %vm4312_vm3, %v4261_v58  ;;  %19934 = vmatprep.mubr.msk.f32.mxu1 %vm280_vm1, %v16761_v28  ;;  %20384 = vmatprep.mubr.msk.f32.mxu0 %vm280_vm1, %v17231_v32  ;;  %v16820_v28 = vld [vmem:[%s21773_s7 + $0x7ee] sm:$0xff]  ;;  %v17290_v32 = vld [vmem:[%s21773_s7 + $0x938] sm:$0xff] }
 0x3de   : > { %v16821_v44 = vld [vmem:[%s21773_s7 + $0x81e] sm:$0xff]  ;;  %v17291_v58 = vld [vmem:[%s21773_s7 + $0x968] sm:$0xff] }
 0x3e0   : > { %19935 = vmatmul.mubr.msk.f32.gmra.mrb[68].mxu1 %vm280_vm1, %v16762_v25  ;;  %20385 = vmatmul.mubr.msk.f32.gmra.mrb[68].mxu0 %vm280_vm1, %v17232_v63  ;;  %v7860_v4 = vpop.permute.xlu1 %7859  ;;  %v7858_v35 = vpop.permute.xlu0 %7857  ;;  %v16822_v25 = vld [vmem:[%s21773_s7 + $0x826] sm:$0xff]  ;;  %v17292_v63 = vld [vmem:[%s21773_s7 + $0x970] sm:$0xff] }
 0x3e1   : > { %7933 = vst.msk [vmem:[%s22688_s11 + $0xb8] sm:$0xff] %vm7909_vm4, %v7860_v4  ;;  %7932 = vst.msk [vmem:[%s22688_s11 + $0xb0] sm:$0xff] %vm7909_vm4, %v7858_v35  ;;  %19937 = vmatprep.mubr.msk.f32.mxu1 %vm280_vm1, %v16763_v34  ;;  %20387 = vmatprep.mubr.msk.f32.mxu0 %vm280_vm1, %v17233_v61  ;;  %v16823_v34 = vld [vmem:[%s21773_s7 + $0x856] sm:$0xff]  ;;  %v17293_v61 = vld [vmem:[%s21773_s7 + $0x9a0] sm:$0xff] }
 0x3e2   : > { %v16824_v4 = vld [vmem:[%s21773_s7 + $0x85e] sm:$0xff]  ;;  %v17294_v35 = vld [vmem:[%s21773_s7 + $0x9a8] sm:$0xff] }
 0x3e4   : > { %19938 = vmatmul.mubr.msk.f32.gmra.mrb[70].mxu1 %vm280_vm1, %v16764_v18  ;;  %20388 = vmatmul.mubr.msk.f32.gmra.mrb[70].mxu0 %vm280_vm1, %v17234_v46  ;;  %v4267_v62 = vpop.permute.xlu1 %4266  ;;  %v4265_v30 = vpop.permute.xlu0 %4264  ;;  %v16825_v18 = vld [vmem:[%s21773_s7 + $0x88e] sm:$0xff]  ;;  %v17295_v46 = vld [vmem:[%s21773_s7 + $0x9d8] sm:$0xff] }
 0x3e5   : > { %4338 = vst.msk [vmem:[%s22688_s11 + $0xc8] sm:$0xff] %vm4312_vm3, %v4267_v62  ;;  %4337 = vst.msk [vmem:[%s22688_s11 + $0xc0] sm:$0xff] %vm4312_vm3, %v4265_v30  ;;  %19940 = vmatprep.mubr.msk.f32.mxu1 %vm280_vm1, %v25055_v33  ;;  %20390 = vmatprep.mubr.msk.f32.mxu0 %vm280_vm1, %v17235_v27  ;;  %v16826_v27 = vld [vmem:[%s21773_s7 + $0x896] sm:$0xff]  ;;  %v17296_v62 = vld [vmem:[%s21773_s7 + $0x9e0] sm:$0xff] }
 0x3e6   : > { %v16827_v30 = vld [vmem:[%s21773_s7 + $0x8c6] sm:$0xff] }
 0x3e8   : > { %19941 = vmatmul.mubr.msk.f32.gmra.mrb[72].mxu1 %vm280_vm1, %v25068_v22  ;;  %20391 = vmatmul.mubr.msk.f32.gmra.mrb[72].mxu0 %vm280_vm1, %v17236_v36  ;;  %v7864_v53 = vpop.permute.xlu1 %7863  ;;  %v7862_v55 = vpop.permute.xlu0 %7861  ;;  %v17297_v36 = vld [vmem:[%s21773_s7 + $0xa10] sm:$0xff] }
 0x3e9   : > { %7935 = vst.msk [vmem:[%s22688_s11 + $0xc8] sm:$0xff] %vm7909_vm4, %v7864_v53  ;;  %7934 = vst.msk [vmem:[%s22688_s11 + $0xc0] sm:$0xff] %vm7909_vm4, %v7862_v55  ;;  %19943 = vmatprep.mubr.msk.f32.mxu1 %vm280_vm1, %v25072_v40  ;;  %20393 = vmatprep.mubr.msk.f32.mxu0 %vm280_vm1, %v17237_v54  ;;  %v16828_v54 = vld [vmem:[%s21773_s7 + $0x8ce] sm:$0xff]  ;;  %v17298_v53 = vld [vmem:[%s21773_s7 + $0xa18] sm:$0xff] }
 0x3ea   : > { %v16829_v55 = vld [vmem:[%s21773_s7 + $0x8fe] sm:$0xff] }
 0x3ec   : > { %19944 = vmatmul.mubr.msk.f32.gmra.mrb[74].mxu1 %vm280_vm1, %v25086_v24  ;;  %20394 = vmatmul.mubr.msk.f32.gmra.mrb[74].mxu0 %vm280_vm1, %v17238_v47  ;;  %v4271_v56 = vpop.permute.xlu1 %4270  ;;  %v4269_v6 = vpop.permute.xlu0 %4268  ;;  %v17299_v47 = vld [vmem:[%s21773_s7 + $0xa48] sm:$0xff] }
 0x3ed   : > { %4340 = vst.msk [vmem:[%s22688_s11 + $0xd8] sm:$0xff] %vm4312_vm3, %v4271_v56  ;;  %4339 = vst.msk [vmem:[%s22688_s11 + $0xd0] sm:$0xff] %vm4312_vm3, %v4269_v6  ;;  %19946 = vmatprep.mubr.msk.f32.mxu1 %vm280_vm1, %v25090_v60  ;;  %20396 = vmatprep.mubr.msk.f32.mxu0 %vm280_vm1, %v17239_v21  ;;  %v16830_v21 = vld [vmem:[%s21773_s7 + $0x906] sm:$0xff]  ;;  %v17300_v56 = vld [vmem:[%s21773_s7 + $0xa50] sm:$0xff] }
 0x3ee   : > { %v16831_v6 = vld [vmem:[%s21773_s7 + $0x936] sm:$0xff] }
 0x3f0   : > { %19947 = vmatmul.mubr.msk.f32.gmra.mrb[76].mxu1 %vm280_vm1, %v25104_v52  ;;  %20397 = vmatmul.mubr.msk.f32.gmra.mrb[76].mxu0 %vm280_vm1, %v17240_v11  ;;  %v7868_v9 = vpop.permute.xlu1 %7867  ;;  %v7866_v12 = vpop.permute.xlu0 %7865  ;;  %v17301_v11 = vld [vmem:[%s21773_s7 + $0xa80] sm:$0xff] }
 0x3f1   : > { %7937 = vst.msk [vmem:[%s22688_s11 + $0xd8] sm:$0xff] %vm7909_vm4, %v7868_v9  ;;  %7936 = vst.msk [vmem:[%s22688_s11 + $0xd0] sm:$0xff] %vm7909_vm4, %v7866_v12  ;;  %19949 = vmatprep.mubr.msk.f32.mxu1 %vm280_vm1, %v25108_v8  ;;  %20399 = vmatprep.mubr.msk.f32.mxu0 %vm280_vm1, %v17241_v7  ;;  %v16832_v7 = vld [vmem:[%s21773_s7 + $0x93e] sm:$0xff]  ;;  %v17302_v9 = vld [vmem:[%s21773_s7 + $0xa88] sm:$0xff] }
 0x3f2   : > { %v16833_v12 = vld [vmem:[%s21773_s7 + $0x96e] sm:$0xff] }
 0x3f4   : > { %19950 = vmatmul.mubr.msk.f32.gmra.mrb[78].mxu1 %vm280_vm1, %v25122_v49  ;;  %20400 = vmatmul.mubr.msk.f32.gmra.mrb[78].mxu0 %vm280_vm1, %v17242_v23  ;;  %v4275_v19 = vpop.permute.xlu1 %4274  ;;  %v4273_v0 = vpop.permute.xlu0 %4272  ;;  %v17303_v23 = vld [vmem:[%s21773_s7 + $0xab8] sm:$0xff] }
 0x3f5   : > { %4342 = vst.msk [vmem:[%s22688_s11 + $0xe8] sm:$0xff] %vm4312_vm3, %v4275_v19  ;;  %4341 = vst.msk [vmem:[%s22688_s11 + $0xe0] sm:$0xff] %vm4312_vm3, %v4273_v0  ;;  %19954 = vmatprep.mubr.msk.f32.mxu1 %vm280_vm1, %v24631_v59  ;;  %20404 = vmatprep.mubr.msk.f32.mxu0 %vm280_vm1, %v17277_v42  ;;  %v25149_v59 = vld [vmem:[%s26007_s2 + $0x8c] sm:$0xf]  ;;  %v16834_v42 = vld [vmem:[%s21773_s7 + $0x976] sm:$0xff] }
 0x3f6   : > { %v17304_v19 = vld [vmem:[%s21773_s7 + $0xac0] sm:$0xff] }
 0x3f7   : > { %v16835_v0 = vld [vmem:[%s21773_s7 + $0x9a6] sm:$0xff] }
 0x3f8   : > { %19955 = vmatmul.mubr.msk.f32.vlgmr.msra.gmra.mrb[48].mxu1 %vm280_vm1, %v24642_v51  ;;  %20405 = vmatmul.mubr.msk.f32.vlgmr.msra.gmra.mrb[48].mxu0 %vm280_vm1, %v17278_v2  ;;  %v7872_v43 = vpop.permute.xlu1 %7871  ;;  %v7870_v29 = vpop.permute.xlu0 %7869  ;;  %v17280_v51 = vld [vmem:[%s21773_s7 + $0x820] sm:$0xff]  ;;  %v17305_v2 = vld [vmem:[%s21773_s7 + $0xaf0] sm:$0xff] }
 0x3f9   : > { %20003 = vmatpush3.msk.msra.mxu1 %vm377_vm0, %v24910_v38  ;;  %7939 = vst.msk [vmem:[%s22688_s11 + $0xe8] sm:$0xff] %vm7909_vm4, %v7872_v43  ;;  %7938 = vst.msk [vmem:[%s22688_s11 + $0xe0] sm:$0xff] %vm7909_vm4, %v7870_v29  ;;  %19957 = vmatprep.mubr.msk.f32.mxu1 %vm280_vm1, %v24648_v16  ;;  %v17306_v43 = vld [vmem:[%s21773_s7 + $0xaf8] sm:$0xff] }
 0x3fa   : > { %20407 = vmatprep.mubr.msk.f32.mxu0 %vm280_vm1, %v17279_v14  ;;  %20453 = vmatpush3.msk.msra.mxu0 %vm377_vm0, %v24915_v39  ;;  %v17282_v39 = vld [vmem:[%s21773_s7 + $0x858] sm:$0xff]  ;;  %v16836_v14 = vld [vmem:[%s21773_s7 + $0x9ae] sm:$0xff] }
 0x3fb   : > { %20052 = vmatprep.subr.msk.mxu1 %vm377_vm0, %v25144_v5  ;;  %20502 = vmatprep.subr.msk.mxu0 %vm377_vm0, %v25149_v59  ;;  %v16837_v29 = vld [vmem:[%s21773_s7 + $0x9de] sm:$0xff] }
 0x3fc   : > { %19958 = vmatmul.mubr.msk.f32.gmra.mrb[50].mxu1 %vm280_vm1, %v24660_v48  ;;  %20408 = vmatmul.mubr.msk.f32.gmra.mrb[50].mxu0 %vm280_vm1, %v17280_v51  ;;  %v4279_v16 = vpop.permute.xlu1 %4278  ;;  %v4277_v38 = vpop.permute.xlu0 %4276  ;;  %v17307_v51 = vld [vmem:[%s21773_s7 + $0xb28] sm:$0xff] }
 0x3fd   : > { %4344 = vst.msk [vmem:[%s22688_s11 + $0xf8] sm:$0xff] %vm4312_vm3, %v4279_v16  ;;  %4343 = vst.msk [vmem:[%s22688_s11 + $0xf0] sm:$0xff] %vm4312_vm3, %v4277_v38  ;;  %19960 = vmatprep.mubr.msk.f32.mxu1 %vm280_vm1, %v24666_v15  ;;  %20410 = vmatprep.mubr.msk.f32.mxu0 %vm280_vm1, %v17281_v37  ;;  %v17284_v15 = vld [vmem:[%s21773_s7 + $0x890] sm:$0xff]  ;;  %v16838_v37 = vld [vmem:[%s21773_s7 + $0x9e6] sm:$0xff] }
 0x3fe   : > { %v17308_v16 = vld [vmem:[%s21773_s7 + $0xb30] sm:$0xff]  ;;  %v16873_v38 = vld [vmem:[%s21773_s7 + $0x6a2] sm:$0xff] }
 0x400   : > { %19961 = vmatmul.mubr.msk.f32.gmra.mrb[52].mxu1 %vm280_vm1, %v24678_v26  ;;  %20411 = vmatmul.mubr.msk.f32.gmra.mrb[52].mxu0 %vm280_vm1, %v17282_v39  ;;  %v7876_v48 = vpop.permute.xlu1 %7875  ;;  %v7874_v20 = vpop.permute.xlu0 %7873  ;;  %v16815_v26 = vld [vmem:[%s21773_s7 + $0x776] sm:$0xff] }
 0x401   : > { %7941 = vst.msk [vmem:[%s22688_s11 + $0xf8] sm:$0xff] %vm7909_vm4, %v7876_v48  ;;  %7940 = vst.msk [vmem:[%s22688_s11 + $0xf0] sm:$0xff] %vm7909_vm4, %v7874_v20  ;;  %19963 = vmatprep.mubr.msk.f32.mxu1 %vm280_vm1, %v24684_v10  ;;  %20413 = vmatprep.mubr.msk.f32.mxu0 %vm280_vm1, %v17283_v17  ;;  %v17286_v10 = vld [vmem:[%s21773_s7 + $0x8c8] sm:$0xff]  ;;  %v17343_v39 = vld [vmem:[%s21773_s7 + $0x7f2] sm:$0xff] }
 0x402   : > { %v16874_v17 = vld [vmem:[%s21773_s7 + $0x6aa] sm:$0xff]  ;;  %v17344_v48 = vld [vmem:[%s21773_s7 + $0x7fa] sm:$0xff] }
 0x403   : > { %v16875_v20 = vld [vmem:[%s21773_s7 + $0x6da] sm:$0xff] }
 0x404   : > { %19964 = vmatmul.mubr.msk.f32.gmra.mrb[54].mxu1 %vm280_vm1, %v24696_v50  ;;  %20414 = vmatmul.mubr.msk.f32.gmra.mrb[54].mxu0 %vm280_vm1, %v17284_v15  ;;  %v16818_v50 = vld [vmem:[%s21773_s7 + $0x7b6] sm:$0xff]  ;;  %v17345_v15 = vld [vmem:[%s21773_s7 + $0x82a] sm:$0xff] }
 0x405   : > { %19966 = vmatprep.mubr.msk.f32.mxu1 %vm280_vm1, %v16815_v26  ;;  %20416 = vmatprep.mubr.msk.f32.mxu0 %vm280_vm1, %v17285_v13  ;;  %v16876_v26 = vld [vmem:[%s21773_s7 + $0x6e2] sm:$0xff]  ;;  %v17346_v13 = vld [vmem:[%s21773_s7 + $0x832] sm:$0xff] }
 0x408   : > { %19967 = vmatmul.mubr.msk.f32.gmra.mrb[56].mxu1 %vm280_vm1, %v16816_v41  ;;  %20417 = vmatmul.mubr.msk.f32.gmra.mrb[56].mxu0 %vm280_vm1, %v17286_v10  ;;  %v16877_v41 = vld [vmem:[%s21773_s7 + $0x712] sm:$0xff]  ;;  %v17347_v10 = vld [vmem:[%s21773_s7 + $0x862] sm:$0xff] }
 0x409   : > { %19969 = vmatprep.mubr.msk.f32.mxu1 %vm280_vm1, %v16817_v57  ;;  %20419 = vmatprep.mubr.msk.f32.mxu0 %vm280_vm1, %v17287_v45  ;;  %v17348_v57 = vld [vmem:[%s21773_s7 + $0x86a] sm:$0xff] }
 0x40a   : > { %v16879_v45 = vld [vmem:[%s21773_s7 + $0x74a] sm:$0xff] }
 0x40c   : > { %19970 = vmatmul.mubr.msk.f32.gmra.mrb[58].mxu1 %vm280_vm1, %v16818_v50  ;;  %20420 = vmatmul.mubr.msk.f32.gmra.mrb[58].mxu0 %vm280_vm1, %v17288_v1  ;;  %v16880_v50 = vld [vmem:[%s21773_s7 + $0x752] sm:$0xff]  ;;  %v17350_v1 = vld [vmem:[%s21773_s7 + $0x8a2] sm:$0xff] }
 0x40d   : > { %19972 = vmatprep.mubr.msk.f32.mxu1 %vm280_vm1, %v16819_v31  ;;  %20422 = vmatprep.mubr.msk.f32.mxu0 %vm280_vm1, %v17289_v3  ;;  %v16881_v31 = vld [vmem:[%s21773_s7 + $0x782] sm:$0xff]  ;;  %v17351_v3 = vld [vmem:[%s21773_s7 + $0x8d2] sm:$0xff] }
 0x410   : > { %19973 = vmatmul.mubr.msk.f32.gmra.mrb[60].mxu1 %vm280_vm1, %v16820_v28  ;;  %20423 = vmatmul.mubr.msk.f32.gmra.mrb[60].mxu0 %vm280_vm1, %v17290_v32  ;;  %v16882_v28 = vld [vmem:[%s21773_s7 + $0x78a] sm:$0xff]  ;;  %v17352_v32 = vld [vmem:[%s21773_s7 + $0x8da] sm:$0xff] }
 0x411   : > { %19975 = vmatprep.mubr.msk.f32.mxu1 %vm280_vm1, %v16821_v44  ;;  %20425 = vmatprep.mubr.msk.f32.mxu0 %vm280_vm1, %v17291_v58  ;;  %v16883_v44 = vld [vmem:[%s21773_s7 + $0x7ba] sm:$0xff]  ;;  %v17353_v58 = vld [vmem:[%s21773_s7 + $0x90a] sm:$0xff] }
 0x414   : > { %19976 = vmatmul.mubr.msk.f32.gmra.mrb[62].mxu1 %vm280_vm1, %v16822_v25  ;;  %20426 = vmatmul.mubr.msk.f32.gmra.mrb[62].mxu0 %vm280_vm1, %v17292_v63  ;;  %v16884_v25 = vld [vmem:[%s21773_s7 + $0x7c2] sm:$0xff]  ;;  %v17354_v63 = vld [vmem:[%s21773_s7 + $0x912] sm:$0xff] }
 0x415   : > { %19978 = vmatprep.mubr.msk.f32.mxu1 %vm280_vm1, %v16823_v34  ;;  %20428 = vmatprep.mubr.msk.f32.mxu0 %vm280_vm1, %v17293_v61  ;;  %v17355_v34 = vld [vmem:[%s21773_s7 + $0x942] sm:$0xff]  ;;  %v17356_v61 = vld [vmem:[%s21773_s7 + $0x94a] sm:$0xff] }
 0x418   : > { %19979 = vmatmul.mubr.msk.f32.gmra.mrb[64].mxu1 %vm280_vm1, %v16824_v4  ;;  %20429 = vmatmul.mubr.msk.f32.gmra.mrb[64].mxu0 %vm280_vm1, %v17294_v35  ;;  %v17357_v4 = vld [vmem:[%s21773_s7 + $0x97a] sm:$0xff]  ;;  %v17358_v35 = vld [vmem:[%s21773_s7 + $0x982] sm:$0xff] }
 0x419   : > { %19981 = vmatprep.mubr.msk.f32.mxu1 %vm280_vm1, %v16825_v18  ;;  %20431 = vmatprep.mubr.msk.f32.mxu0 %vm280_vm1, %v17295_v46  ;;  %v17359_v18 = vld [vmem:[%s21773_s7 + $0x9b2] sm:$0xff]  ;;  %v17360_v46 = vld [vmem:[%s21773_s7 + $0x9ba] sm:$0xff] }
 0x41c   : > { %19982 = vmatmul.mubr.msk.f32.gmra.mrb[66].mxu1 %vm280_vm1, %v16826_v27  ;;  %20432 = vmatmul.mubr.msk.f32.gmra.mrb[66].mxu0 %vm280_vm1, %v17296_v62  ;;  %v17361_v27 = vld [vmem:[%s21773_s7 + $0x9ea] sm:$0xff]  ;;  %v17362_v62 = vld [vmem:[%s21773_s7 + $0x9f2] sm:$0xff] }
 0x41d   : > { %19984 = vmatprep.mubr.msk.f32.mxu1 %vm280_vm1, %v16827_v30  ;;  %20434 = vmatprep.mubr.msk.f32.mxu0 %vm280_vm1, %v17297_v36  ;;  %v17363_v30 = vld [vmem:[%s21773_s7 + $0xa22] sm:$0xff]  ;;  %v17364_v36 = vld [vmem:[%s21773_s7 + $0xa2a] sm:$0xff] }
 0x420   : > { %19985 = vmatmul.mubr.msk.f32.gmra.mrb[68].mxu1 %vm280_vm1, %v16828_v54  ;;  %20435 = vmatmul.mubr.msk.f32.gmra.mrb[68].mxu0 %vm280_vm1, %v17298_v53  ;;  %v17365_v54 = vld [vmem:[%s21773_s7 + $0xa5a] sm:$0xff]  ;;  %v17366_v53 = vld [vmem:[%s21773_s7 + $0xa62] sm:$0xff] }
 0x421   : > { %19987 = vmatprep.mubr.msk.f32.mxu1 %vm280_vm1, %v16829_v55  ;;  %20437 = vmatprep.mubr.msk.f32.mxu0 %vm280_vm1, %v17299_v47  ;;  %v17367_v55 = vld [vmem:[%s21773_s7 + $0xa92] sm:$0xff]  ;;  %v17368_v47 = vld [vmem:[%s21773_s7 + $0xa9a] sm:$0xff] }
 0x424   : > { %19988 = vmatmul.mubr.msk.f32.gmra.mrb[70].mxu1 %vm280_vm1, %v16830_v21  ;;  %20438 = vmatmul.mubr.msk.f32.gmra.mrb[70].mxu0 %vm280_vm1, %v17300_v56  ;;  %v17369_v21 = vld [vmem:[%s21773_s7 + $0xaca] sm:$0xff]  ;;  %v17370_v56 = vld [vmem:[%s21773_s7 + $0xad2] sm:$0xff] }
 0x425   : > { %19990 = vmatprep.mubr.msk.f32.mxu1 %vm280_vm1, %v16831_v6  ;;  %20440 = vmatprep.mubr.msk.f32.mxu0 %vm280_vm1, %v17301_v11  ;;  %v17371_v6 = vld [vmem:[%s21773_s7 + $0xb02] sm:$0xff]  ;;  %v17372_v11 = vld [vmem:[%s21773_s7 + $0xb0a] sm:$0xff] }
 0x428   : > { %19991 = vmatmul.mubr.msk.f32.gmra.mrb[72].mxu1 %vm280_vm1, %v16832_v7  ;;  %20441 = vmatmul.mubr.msk.f32.gmra.mrb[72].mxu0 %vm280_vm1, %v17302_v9  ;;  %v17373_v7 = vld [vmem:[%s21773_s7 + $0xb3a] sm:$0xff]  ;;  %v17374_v9 = vld [vmem:[%s21773_s7 + $0xb42] sm:$0xff] }
 0x429   : > { %19993 = vmatprep.mubr.msk.f32.mxu1 %vm280_vm1, %v16833_v12  ;;  %20443 = vmatprep.mubr.msk.f32.mxu0 %vm280_vm1, %v17303_v23  ;;  %v17409_v12 = vld [vmem:[%s21773_s7 + $0x804] sm:$0xff]  ;;  %v17410_v23 = vld [vmem:[%s21773_s7 + $0x80c] sm:$0xff] }
 0x42c   : > { %19994 = vmatmul.mubr.msk.f32.gmra.mrb[74].mxu1 %vm280_vm1, %v16834_v42  ;;  %20444 = vmatmul.mubr.msk.f32.gmra.mrb[74].mxu0 %vm280_vm1, %v17304_v19  ;;  %v17411_v42 = vld [vmem:[%s21773_s7 + $0x83c] sm:$0xff]  ;;  %v17412_v19 = vld [vmem:[%s21773_s7 + $0x844] sm:$0xff] }
 0x42d   : > { %19996 = vmatprep.mubr.msk.f32.mxu1 %vm280_vm1, %v16835_v0  ;;  %20446 = vmatprep.mubr.msk.f32.mxu0 %vm280_vm1, %v17305_v2  ;;  %v17413_v0 = vld [vmem:[%s21773_s7 + $0x874] sm:$0xff]  ;;  %v16949_v2 = vld [vmem:[%s21773_s7 + $0x7c6] sm:$0xff] }
 0x430   : > { %19997 = vmatmul.mubr.msk.f32.gmra.mrb[76].mxu1 %vm280_vm1, %v16836_v14  ;;  %20447 = vmatmul.mubr.msk.f32.gmra.mrb[76].mxu0 %vm280_vm1, %v17306_v43  ;;  %v17419_v14 = vld [vmem:[%s21773_s7 + $0x91c] sm:$0xff]  ;;  %v17420_v43 = vld [vmem:[%s21773_s7 + $0x924] sm:$0xff] }
 0x431   : > { %19999 = vmatprep.mubr.msk.f32.mxu1 %vm280_vm1, %v16837_v29  ;;  %20449 = vmatprep.mubr.msk.f32.mxu0 %vm280_vm1, %v17307_v51  ;;  %v16951_v29 = vld [vmem:[%s21773_s7 + $0x7fe] sm:$0xff]  ;;  %v17421_v51 = vld [vmem:[%s21773_s7 + $0x954] sm:$0xff] }
 0x434   : > { %20000 = vmatmul.mubr.msk.f32.gmra.mrb[78].mxu1 %vm280_vm1, %v16838_v37  ;;  %20450 = vmatmul.mubr.msk.f32.gmra.mrb[78].mxu0 %vm280_vm1, %v17308_v16  ;;  %v16952_v37 = vld [vmem:[%s21773_s7 + $0x806] sm:$0xff]  ;;  %v17422_v16 = vld [vmem:[%s21773_s7 + $0x95c] sm:$0xff] }
 0x435   : > { %20004 = vmatprep.mubr.msk.f32.mxu1 %vm280_vm1, %v16873_v38  ;;  %20454 = vmatprep.mubr.msk.f32.mxu0 %vm280_vm1, %v17343_v39  ;;  %v16953_v38 = vld [vmem:[%s21773_s7 + $0x836] sm:$0xff] }
 0x438   : > { %20005 = vmatmul.mubr.msk.f32.vlgmr.msra.gmra.mrb[48].mxu1 %vm280_vm1, %v16874_v17  ;;  %20455 = vmatmul.mubr.msk.f32.vlgmr.msra.gmra.mrb[48].mxu0 %vm280_vm1, %v17344_v48  ;;  %v16954_v17 = vld [vmem:[%s21773_s7 + $0x83e] sm:$0xff] }
 0x439   : > { %20053 = vmatpush3.msk.msra.mxu1 %vm377_vm0, %v25144_v5  ;;  %20007 = vmatprep.mubr.msk.f32.mxu1 %vm280_vm1, %v16875_v20  ;;  %v16878_v5 = vld [vmem:[%s21773_s7 + $0x71a] sm:$0xff]  ;;  %v16955_v20 = vld [vmem:[%s21773_s7 + $0x86e] sm:$0xff] }
 0x43a   : > { %20457 = vmatprep.mubr.msk.f32.mxu0 %vm280_vm1, %v17345_v15  ;;  %20503 = vmatpush3.msk.msra.mxu0 %vm377_vm0, %v25149_v59  ;;  %v17349_v59 = vld [vmem:[%s21773_s7 + $0x89a] sm:$0xff] }
 0x43c   : > { %20008 = vmatmul.mubr.msk.f32.gmra.mrb[50].mxu1 %vm280_vm1, %v16876_v26  ;;  %20458 = vmatmul.mubr.msk.f32.gmra.mrb[50].mxu0 %vm280_vm1, %v17346_v13  ;;  %v16956_v26 = vld [vmem:[%s21773_s7 + $0x876] sm:$0xff] }
 0x43d   : > { %20010 = vmatprep.mubr.msk.f32.mxu1 %vm280_vm1, %v16877_v41  ;;  %20460 = vmatprep.mubr.msk.f32.mxu0 %vm280_vm1, %v17347_v10  ;;  %v16957_v41 = vld [vmem:[%s21773_s7 + $0x8a6] sm:$0xff] }
 0x440   : > { %20011 = vmatmul.mubr.msk.f32.gmra.mrb[52].mxu1 %vm280_vm1, %v16878_v5  ;;  %20461 = vmatmul.mubr.msk.f32.gmra.mrb[52].mxu0 %vm280_vm1, %v17348_v57  ;;  %v16958_v5 = vld [vmem:[%s21773_s7 + $0x8ae] sm:$0xff] }
 0x441   : > { %20013 = vmatprep.mubr.msk.f32.mxu1 %vm280_vm1, %v16879_v45  ;;  %20463 = vmatprep.mubr.msk.f32.mxu0 %vm280_vm1, %v17349_v59  ;;  %v16959_v45 = vld [vmem:[%s21773_s7 + $0x8de] sm:$0xff] }
 0x444   : > { %20014 = vmatmul.mubr.msk.f32.gmra.mrb[54].mxu1 %vm280_vm1, %v16880_v50  ;;  %20464 = vmatmul.mubr.msk.f32.gmra.mrb[54].mxu0 %vm280_vm1, %v17350_v1  ;;  %v16960_v50 = vld [vmem:[%s21773_s7 + $0x8e6] sm:$0xff] }
 0x445   : > { %20016 = vmatprep.mubr.msk.f32.mxu1 %vm280_vm1, %v16881_v31  ;;  %20466 = vmatprep.mubr.msk.f32.mxu0 %vm280_vm1, %v17351_v3  ;;  %v16961_v31 = vld [vmem:[%s21773_s7 + $0x916] sm:$0xff] }
 0x448   : > { %20017 = vmatmul.mubr.msk.f32.gmra.mrb[56].mxu1 %vm280_vm1, %v16882_v28  ;;  %20467 = vmatmul.mubr.msk.f32.gmra.mrb[56].mxu0 %vm280_vm1, %v17352_v32  ;;  %v16962_v28 = vld [vmem:[%s21773_s7 + $0x91e] sm:$0xff] }
 0x449   : > { %20019 = vmatprep.mubr.msk.f32.mxu1 %vm280_vm1, %v16883_v44  ;;  %20469 = vmatprep.mubr.msk.f32.mxu0 %vm280_vm1, %v17353_v58  ;;  %v16963_v44 = vld [vmem:[%s21773_s7 + $0x94e] sm:$0xff] }
 0x44c   : > { %20020 = vmatmul.mubr.msk.f32.gmra.mrb[58].mxu1 %vm280_vm1, %v16884_v25  ;;  %20470 = vmatmul.mubr.msk.f32.gmra.mrb[58].mxu0 %vm280_vm1, %v17354_v63  ;;  %v16964_v25 = vld [vmem:[%s21773_s7 + $0x956] sm:$0xff] }
 0x44d   : > { %20022 = vmatprep.mubr.msk.f32.mxu1 %vm280_vm1, %v17343_v39  ;;  %20472 = vmatprep.mubr.msk.f32.mxu0 %vm280_vm1, %v17355_v34  ;;  %v17423_v39 = vld [vmem:[%s21773_s7 + $0x98c] sm:$0xff] }
 0x450   : > { %20023 = vmatmul.mubr.msk.f32.gmra.mrb[60].mxu1 %vm280_vm1, %v17344_v48  ;;  %20473 = vmatmul.mubr.msk.f32.gmra.mrb[60].mxu0 %vm280_vm1, %v17356_v61  ;;  %v17424_v48 = vld [vmem:[%s21773_s7 + $0x994] sm:$0xff] }
 0x451   : > { %20025 = vmatprep.mubr.msk.f32.mxu1 %vm280_vm1, %v17345_v15  ;;  %20475 = vmatprep.mubr.msk.f32.mxu0 %vm280_vm1, %v17357_v4  ;;  %v17425_v15 = vld [vmem:[%s21773_s7 + $0x9c4] sm:$0xff] }
 0x454   : > { %20026 = vmatmul.mubr.msk.f32.gmra.mrb[62].mxu1 %vm280_vm1, %v17346_v13  ;;  %20476 = vmatmul.mubr.msk.f32.gmra.mrb[62].mxu0 %vm280_vm1, %v17358_v35  ;;  %v17426_v13 = vld [vmem:[%s21773_s7 + $0x9cc] sm:$0xff] }
 0x455   : > { %20028 = vmatprep.mubr.msk.f32.mxu1 %vm280_vm1, %v17347_v10  ;;  %20478 = vmatprep.mubr.msk.f32.mxu0 %vm280_vm1, %v17359_v18  ;;  %v17427_v10 = vld [vmem:[%s21773_s7 + $0x9fc] sm:$0xff] }
 0x458   : > { %20029 = vmatmul.mubr.msk.f32.gmra.mrb[64].mxu1 %vm280_vm1, %v17348_v57  ;;  %20479 = vmatmul.mubr.msk.f32.gmra.mrb[64].mxu0 %vm280_vm1, %v17360_v46  ;;  %v17428_v57 = vld [vmem:[%s21773_s7 + $0xa04] sm:$0xff] }
 0x459   : > { %20031 = vmatprep.mubr.msk.f32.mxu1 %vm280_vm1, %v17349_v59  ;;  %20481 = vmatprep.mubr.msk.f32.mxu0 %vm280_vm1, %v17361_v27  ;;  %v17429_v59 = vld [vmem:[%s21773_s7 + $0xa34] sm:$0xff] }
 0x45c   : > { %20032 = vmatmul.mubr.msk.f32.gmra.mrb[66].mxu1 %vm280_vm1, %v17350_v1  ;;  %20482 = vmatmul.mubr.msk.f32.gmra.mrb[66].mxu0 %vm280_vm1, %v17362_v62  ;;  %v17430_v1 = vld [vmem:[%s21773_s7 + $0xa3c] sm:$0xff] }
 0x45d   : > { %20034 = vmatprep.mubr.msk.f32.mxu1 %vm280_vm1, %v17351_v3  ;;  %20484 = vmatprep.mubr.msk.f32.mxu0 %vm280_vm1, %v17363_v30  ;;  %v17431_v3 = vld [vmem:[%s21773_s7 + $0xa6c] sm:$0xff]  ;;  %v16969_v30 = vld [vmem:[%s21773_s7 + $0x9f6] sm:$0xff] }
 0x460   : > { %20035 = vmatmul.mubr.msk.f32.gmra.mrb[68].mxu1 %vm280_vm1, %v17352_v32  ;;  %20485 = vmatmul.mubr.msk.f32.gmra.mrb[68].mxu0 %vm280_vm1, %v17364_v36  ;;  %v17432_v32 = vld [vmem:[%s21773_s7 + $0xa74] sm:$0xff]  ;;  %v17439_v36 = vld [vmem:[%s21773_s7 + $0xb4c] sm:$0xff] }
 0x461   : > { %20037 = vmatprep.mubr.msk.f32.mxu1 %vm280_vm1, %v17353_v58  ;;  %20487 = vmatprep.mubr.msk.f32.mxu0 %vm280_vm1, %v17365_v54  ;;  %v17433_v58 = vld [vmem:[%s21773_s7 + $0xaa4] sm:$0xff] }
 0x462   : > { %v16970_v54 = vld [vmem:[%s21773_s7 + $0x9fe] sm:$0xff] }
 0x464   : > { %20038 = vmatmul.mubr.msk.f32.gmra.mrb[70].mxu1 %vm280_vm1, %v17354_v63  ;;  %20488 = vmatmul.mubr.msk.f32.gmra.mrb[70].mxu0 %vm280_vm1, %v17366_v53  ;;  %v17434_v63 = vld [vmem:[%s21773_s7 + $0xaac] sm:$0xff]  ;;  %v17440_v53 = vld [vmem:[%s21773_s7 + $0xb54] sm:$0xff] }
 0x465   : > { %20040 = vmatprep.mubr.msk.f32.mxu1 %vm280_vm1, %v17355_v34  ;;  %20490 = vmatprep.mubr.msk.f32.mxu0 %vm280_vm1, %v17367_v55  ;;  %v16965_v34 = vld [vmem:[%s21773_s7 + $0x986] sm:$0xff]  ;;  %v25533_v55 = vld [vmem:[%s26008_s3 + $0x3] ss:$0 sm:$0xff] }
 0x468   : > { %20041 = vmatmul.mubr.msk.f32.gmra.mrb[72].mxu1 %vm280_vm1, %v17356_v61  ;;  %20491 = vmatmul.mubr.msk.f32.gmra.mrb[72].mxu0 %vm280_vm1, %v17368_v47  ;;  %v17435_v61 = vld [vmem:[%s21773_s7 + $0xadc] sm:$0xff]  ;;  %v25538_v47 = vld [vmem:[%s26008_s3 + $0x4] ss:$0 sm:$0xff] }
 0x469   : > { %20043 = vmatprep.mubr.msk.f32.mxu1 %vm280_vm1, %v17357_v4  ;;  %20493 = vmatprep.mubr.msk.f32.mxu0 %vm280_vm1, %v17369_v21  ;;  %v16966_v4 = vld [vmem:[%s21773_s7 + $0x98e] sm:$0xff] }
 0x46c   : > { %20044 = vmatmul.mubr.msk.f32.gmra.mrb[74].mxu1 %vm280_vm1, %v17358_v35  ;;  %20494 = vmatmul.mubr.msk.f32.gmra.mrb[74].mxu0 %vm280_vm1, %v17370_v56  ;;  %v17436_v35 = vld [vmem:[%s21773_s7 + $0xae4] sm:$0xff]  ;;  %v25543_v56 = vld [vmem:[%s26009_s4 + $0x3] ss:$0 sm:$0xff] }
 0x46d   : > { %20046 = vmatprep.mubr.msk.f32.mxu1 %vm280_vm1, %v17359_v18  ;;  %20496 = vmatprep.mubr.msk.f32.mxu0 %vm280_vm1, %v17371_v6  ;;  %v16967_v18 = vld [vmem:[%s21773_s7 + $0x9be] sm:$0xff] }
 0x470   : > { %20047 = vmatmul.mubr.msk.f32.gmra.mrb[76].mxu1 %vm280_vm1, %v17360_v46  ;;  %20497 = vmatmul.mubr.msk.f32.gmra.mrb[76].mxu0 %vm280_vm1, %v17372_v11  ;;  %v17437_v46 = vld [vmem:[%s21773_s7 + $0xb14] sm:$0xff] }
 0x471   : > { %20049 = vmatprep.mubr.msk.f32.mxu1 %vm280_vm1, %v17361_v27  ;;  %20499 = vmatprep.mubr.msk.f32.mxu0 %vm280_vm1, %v17373_v7  ;;  %v16968_v27 = vld [vmem:[%s21773_s7 + $0x9c6] sm:$0xff] }
 0x474   : > { %20050 = vmatmul.mubr.msk.f32.gmra.mrb[78].mxu1 %vm280_vm1, %v17362_v62  ;;  %20500 = vmatmul.mubr.msk.f32.gmra.mrb[78].mxu0 %vm280_vm1, %v17374_v9  ;;  %v17438_v62 = vld [vmem:[%s21773_s7 + $0xb1c] sm:$0xff] }
 0x475   : > { %20054 = vmatprep.mubr.msk.f32.mxu1 %vm280_vm1, %v25055_v33  ;;  %20504 = vmatprep.mubr.msk.f32.mxu0 %vm280_vm1, %v17409_v12  ;;  %v17414_v33 = vld [vmem:[%s21773_s7 + $0x87c] sm:$0xff] }
 0x478   : > { %20055 = vmatmul.mubr.msk.f32.vlgmr.msra.gmra.mrb[48].mxu1 %vm280_vm1, %v25068_v22  ;;  %20505 = vmatmul.mubr.msk.f32.vlgmr.msra.gmra.mrb[48].mxu0 %vm280_vm1, %v17410_v23  ;;  %v17415_v22 = vld [vmem:[%s21773_s7 + $0x8ac] sm:$0xff]  ;;  %v25550_v23 = vld [vmem:[%s26009_s4 + $0x4] ss:$0 sm:$0xff] }
 0x479   : > { %20057 = vmatprep.mubr.msk.f32.mxu1 %vm280_vm1, %v25072_v40  ;;  %20507 = vmatprep.mubr.msk.f32.mxu0 %vm280_vm1, %v17411_v42  ;;  %v17416_v40 = vld [vmem:[%s21773_s7 + $0x8b4] sm:$0xff] }
 0x47c   : > { %20058 = vmatmul.mubr.msk.f32.gmra.mrb[50].mxu1 %vm280_vm1, %v25086_v24  ;;  %20508 = vmatmul.mubr.msk.f32.gmra.mrb[50].mxu0 %vm280_vm1, %v17412_v19  ;;  %v16947_v24 = vld [vmem:[%s21773_s7 + $0x78e] sm:$0xff] }
 0x47d   : > { %20060 = vmatprep.mubr.msk.f32.mxu1 %vm280_vm1, %v25090_v60  ;;  %20510 = vmatprep.mubr.msk.f32.mxu0 %vm280_vm1, %v17413_v0  ;;  %v17417_v60 = vld [vmem:[%s21773_s7 + $0x8e4] sm:$0xff] }
 0x480   : > { %20061 = vmatmul.mubr.msk.f32.gmra.mrb[52].mxu1 %vm280_vm1, %v25104_v52  ;;  %20511 = vmatmul.mubr.msk.f32.gmra.mrb[52].mxu0 %vm280_vm1, %v17414_v33  ;;  %v16948_v52 = vld [vmem:[%s21773_s7 + $0x796] sm:$0xff] }
 0x481   : > { %20063 = vmatprep.mubr.msk.f32.mxu1 %vm280_vm1, %v25108_v8  ;;  %20513 = vmatprep.mubr.msk.f32.mxu0 %vm280_vm1, %v17415_v22  ;;  %v17418_v8 = vld [vmem:[%s21773_s7 + $0x8ec] sm:$0xff] }
 0x484   : > { %20064 = vmatmul.mubr.msk.f32.gmra.mrb[54].mxu1 %vm280_vm1, %v25122_v49  ;;  %20514 = vmatmul.mubr.msk.f32.gmra.mrb[54].mxu0 %vm280_vm1, %v17416_v40  ;;  %v16950_v49 = vld [vmem:[%s21773_s7 + $0x7ce] sm:$0xff] }
 0x485   : > { %20066 = vmatprep.mubr.msk.f32.mxu1 %vm280_vm1, %v16947_v24  ;;  %20516 = vmatprep.mubr.msk.f32.mxu0 %vm280_vm1, %v17417_v60 }
 0x488   : > { %20067 = vmatmul.mubr.msk.f32.gmra.mrb[56].mxu1 %vm280_vm1, %v16948_v52  ;;  %20517 = vmatmul.mubr.msk.f32.gmra.mrb[56].mxu0 %vm280_vm1, %v17418_v8 }
 0x489   : > { %20069 = vmatprep.mubr.msk.f32.mxu1 %vm280_vm1, %v16949_v2  ;;  %20519 = vmatprep.mubr.msk.f32.mxu0 %vm280_vm1, %v17419_v14 }
 0x48c   : > { %20070 = vmatmul.mubr.msk.f32.gmra.mrb[58].mxu1 %vm280_vm1, %v16950_v49  ;;  %20520 = vmatmul.mubr.msk.f32.gmra.mrb[58].mxu0 %vm280_vm1, %v17420_v43 }
 0x48d   : > { %20072 = vmatprep.mubr.msk.f32.mxu1 %vm280_vm1, %v16951_v29  ;;  %20522 = vmatprep.mubr.msk.f32.mxu0 %vm280_vm1, %v17421_v51 }
 0x490   : > { %20073 = vmatmul.mubr.msk.f32.gmra.mrb[60].mxu1 %vm280_vm1, %v16952_v37  ;;  %20523 = vmatmul.mubr.msk.f32.gmra.mrb[60].mxu0 %vm280_vm1, %v17422_v16 }
 0x491   : > { %20075 = vmatprep.mubr.msk.f32.mxu1 %vm280_vm1, %v16953_v38  ;;  %20525 = vmatprep.mubr.msk.f32.mxu0 %vm280_vm1, %v17423_v39 }
 0x494   : > { %20076 = vmatmul.mubr.msk.f32.gmra.mrb[62].mxu1 %vm280_vm1, %v16954_v17  ;;  %20526 = vmatmul.mubr.msk.f32.gmra.mrb[62].mxu0 %vm280_vm1, %v17424_v48 }
 0x495   : > { %20078 = vmatprep.mubr.msk.f32.mxu1 %vm280_vm1, %v16955_v20  ;;  %20528 = vmatprep.mubr.msk.f32.mxu0 %vm280_vm1, %v17425_v15 }
 0x498   : > { %20079 = vmatmul.mubr.msk.f32.gmra.mrb[64].mxu1 %vm280_vm1, %v16956_v26  ;;  %20529 = vmatmul.mubr.msk.f32.gmra.mrb[64].mxu0 %vm280_vm1, %v17426_v13 }
 0x499   : > { %20081 = vmatprep.mubr.msk.f32.mxu1 %vm280_vm1, %v16957_v41  ;;  %20531 = vmatprep.mubr.msk.f32.mxu0 %vm280_vm1, %v17427_v10 }
 0x49c   : > { %20082 = vmatmul.mubr.msk.f32.gmra.mrb[66].mxu1 %vm280_vm1, %v16958_v5  ;;  %20532 = vmatmul.mubr.msk.f32.gmra.mrb[66].mxu0 %vm280_vm1, %v17428_v57 }
 0x49d   : > { %20084 = vmatprep.mubr.msk.f32.mxu1 %vm280_vm1, %v16959_v45  ;;  %20534 = vmatprep.mubr.msk.f32.mxu0 %vm280_vm1, %v17429_v59 }
 0x4a0   : > { %20085 = vmatmul.mubr.msk.f32.gmra.mrb[68].mxu1 %vm280_vm1, %v16960_v50  ;;  %20535 = vmatmul.mubr.msk.f32.gmra.mrb[68].mxu0 %vm280_vm1, %v17430_v1 }
 0x4a1   : > { %20087 = vmatprep.mubr.msk.f32.mxu1 %vm280_vm1, %v16961_v31  ;;  %20537 = vmatprep.mubr.msk.f32.mxu0 %vm280_vm1, %v17431_v3 }
 0x4a4   : > { %20088 = vmatmul.mubr.msk.f32.gmra.mrb[70].mxu1 %vm280_vm1, %v16962_v28  ;;  %20538 = vmatmul.mubr.msk.f32.gmra.mrb[70].mxu0 %vm280_vm1, %v17432_v32 }
 0x4a5   : > { %20090 = vmatprep.mubr.msk.f32.mxu1 %vm280_vm1, %v16963_v44  ;;  %20540 = vmatprep.mubr.msk.f32.mxu0 %vm280_vm1, %v17433_v58 }
 0x4a8   : > { %20091 = vmatmul.mubr.msk.f32.gmra.mrb[72].mxu1 %vm280_vm1, %v16964_v25  ;;  %20541 = vmatmul.mubr.msk.f32.gmra.mrb[72].mxu0 %vm280_vm1, %v17434_v63 }
 0x4a9   : > { %20093 = vmatprep.mubr.msk.f32.mxu1 %vm280_vm1, %v16965_v34  ;;  %20543 = vmatprep.mubr.msk.f32.mxu0 %vm280_vm1, %v17435_v61 }
 0x4ac   : > { %20094 = vmatmul.mubr.msk.f32.gmra.mrb[74].mxu1 %vm280_vm1, %v16966_v4  ;;  %20544 = vmatmul.mubr.msk.f32.gmra.mrb[74].mxu0 %vm280_vm1, %v17436_v35 }
 0x4ad   : > { %20096 = vmatprep.mubr.msk.f32.mxu1 %vm280_vm1, %v16967_v18  ;;  %20546 = vmatprep.mubr.msk.f32.mxu0 %vm280_vm1, %v17437_v46 }
 0x4b0   : > { %20097 = vmatmul.mubr.msk.f32.gmra.mrb[76].mxu1 %vm280_vm1, %v16968_v27  ;;  %20547 = vmatmul.mubr.msk.f32.gmra.mrb[76].mxu0 %vm280_vm1, %v17438_v62 }
 0x4b1   : > { %20099 = vmatprep.mubr.msk.f32.mxu1 %vm280_vm1, %v16969_v30  ;;  %20549 = vmatprep.mubr.msk.f32.mxu0 %vm280_vm1, %v17439_v36 }
 0x4b4   : > { %20100 = vmatmul.mubr.msk.f32.gmra.mrb[78].mxu1 %vm280_vm1, %v16970_v54  ;;  %20550 = vmatmul.mubr.msk.f32.gmra.mrb[78].mxu0 %vm280_vm1, %v17440_v53 }
 0x54b   : > { %v20056_v21 = vpop.f32.mrb[48].mxu1  ;;  %v20506_v6 = vpop.f32.mrb[48].mxu0 }
 0x54c   : > { %v11275_v11 = vmul.f32 %v20056_v21, %v25533_v55  ;;  %v14871_v7 = vmul.f32 %v20506_v6, %v25538_v47  ;;  %v11075_v9 = vpop.f32.mrb[49].mxu1  ;;  %v14671_v12 = vpop.f32.mrb[49].mxu0 }
 0x54d   : > { %v11274_v42 = vmul.f32 %v25533_v55, %v11075_v9  ;;  %v14870_v19 = vmul.f32 %v25538_v47, %v14671_v12 }
 0x54e   : > { %v11315_v0 = vadd.f32 %v25543_v56, %v11275_v11  ;;  %v14911_v60 = vadd.f32 %v25550_v23, %v14871_v7 }
 0x54f   : > { %v11314_v33 = vadd.f32 %v25543_v56, %v11274_v42  ;;  %v20059_v22 = vpop.f32.mrb[50].mxu1  ;;  %v20509_v40 = vpop.f32.mrb[50].mxu0  ;;  %v14910_v49 = vadd.f32 %v25550_v23, %v14870_v19 }
 0x550   : > { %v11347_v24 = vmax.f32 %v11315_v0, 0.0  ;;  %v11277_v52 = vmul.f32 %v20059_v22, %v25533_v55  ;;  %v11085_v8 = vpop.f32.mrb[51].mxu1  ;;  %v14681_v2 = vpop.f32.mrb[51].mxu0  ;;  %v14943_v37 = vmax.f32 %v14911_v60, 0.0  ;;  %v14873_v38 = vmul.f32 %v20509_v40, %v25538_v47 }
 0x551   : > { %v11346_v14 = vmax.f32 %v11314_v33, 0.0  ;;  %v11276_v43 = vmul.f32 %v25533_v55, %v11085_v8  ;;  %v14942_v48 = vmax.f32 %v14910_v49, 0.0  ;;  %v14872_v15 = vmul.f32 %v25538_v47, %v14681_v2 }
 0x552   : > { %11412 = vrot.lane.b32.xlu1 %v11347_v24, %s21701_s25  ;;  %v11317_v16 = vadd.f32 %v25543_v56, %v11277_v52  ;;  %v14913_v10 = vadd.f32 %v25550_v23, %v14873_v38 }
 0x553   : > { %v20062_v29 = vpop.f32.mrb[52].mxu1  ;;  %v20512_v51 = vpop.f32.mrb[52].mxu0  ;;  %11410 = vrot.lane.b32.xlu0 %v11346_v14, %s21701_s25  ;;  %v11316_v20 = vadd.f32 %v25543_v56, %v11276_v43  ;;  %v14912_v50 = vadd.f32 %v25550_v23, %v14872_v15 }
 0x554   : > { %v11095_v39 = vpop.f32.mrb[53].mxu1  ;;  %v14691_v17 = vpop.f32.mrb[53].mxu0  ;;  %v11349_v41 = vmax.f32 %v11317_v16, 0.0  ;;  %v11279_v5 = vmul.f32 %v20062_v29, %v25533_v55  ;;  %v14945_v28 = vmax.f32 %v14913_v10, 0.0  ;;  %v14875_v44 = vmul.f32 %v20512_v51, %v25538_v47 }
 0x555   : > { %v11348_v59 = vmax.f32 %v11316_v20, 0.0  ;;  %v11278_v1 = vmul.f32 %v25533_v55, %v11095_v39  ;;  %v14944_v63 = vmax.f32 %v14912_v50, 0.0  ;;  %v14874_v61 = vmul.f32 %v25538_v47, %v14691_v17 }
 0x556   : > { %15008 = vrot.lane.b32.xlu1 %v14943_v37, %s21702_s26  ;;  %v11319_v32 = vadd.f32 %v25543_v56, %v11279_v5  ;;  %v14915_v46 = vadd.f32 %v25550_v23, %v14875_v44 }
 0x557   : > { %v20065_v26 = vpop.f32.mrb[54].mxu1  ;;  %v20515_v13 = vpop.f32.mrb[54].mxu0  ;;  %15006 = vrot.lane.b32.xlu0 %v14942_v48, %s21702_s26  ;;  %v11318_v34 = vadd.f32 %v25543_v56, %v11278_v1  ;;  %v14914_v54 = vadd.f32 %v25550_v23, %v14874_v61 }
 0x558   : > { %v11105_v57 = vpop.f32.mrb[55].mxu1  ;;  %v14701_v45 = vpop.f32.mrb[55].mxu0  ;;  %v11351_v18 = vmax.f32 %v11319_v32, 0.0  ;;  %v11281_v27 = vmul.f32 %v20065_v26, %v25533_v55  ;;  %v14947_v11 = vmax.f32 %v14915_v46, 0.0  ;;  %v14877_v9 = vmul.f32 %v20515_v13, %v25538_v47 }
 0x559   : > { %v11350_v36 = vmax.f32 %v11318_v34, 0.0  ;;  %v11280_v53 = vmul.f32 %v25533_v55, %v11105_v57  ;;  %v14946_v19 = vmax.f32 %v14914_v54, 0.0  ;;  %v14876_v33 = vmul.f32 %v25538_v47, %v14701_v45 }
 0x55a   : > { %11416 = vrot.lane.b32.xlu1 %v11349_v41, %s21701_s25  ;;  %v11321_v7 = vadd.f32 %v25543_v56, %v11281_v27  ;;  %v14917_v60 = vadd.f32 %v25550_v23, %v14877_v9 }
 0x55b   : > { %v20068_v31 = vpop.f32.mrb[56].mxu1  ;;  %v20518_v3 = vpop.f32.mrb[56].mxu0  ;;  %11414 = vrot.lane.b32.xlu0 %v11348_v59, %s21701_s25  ;;  %v11320_v0 = vadd.f32 %v25543_v56, %v11280_v53  ;;  %v14916_v49 = vadd.f32 %v25550_v23, %v14876_v33 }
 0x55c   : > { %v11115_v58 = vpop.f32.mrb[57].mxu1  ;;  %v14711_v25 = vpop.f32.mrb[57].mxu0  ;;  %v11353_v24 = vmax.f32 %v11321_v7, 0.0  ;;  %v11283_v52 = vmul.f32 %v20068_v31, %v25533_v55  ;;  %v14879_v29 = vmul.f32 %v20518_v3, %v25538_v47  ;;  %v14949_v38 = vmax.f32 %v14917_v60, 0.0 }
 0x55d   : > { %v11352_v14 = vmax.f32 %v11320_v0, 0.0  ;;  %v11282_v43 = vmul.f32 %v25533_v55, %v11115_v58  ;;  %v14878_v51 = vmul.f32 %v25538_v47, %v14711_v25  ;;  %v14948_v26 = vmax.f32 %v14916_v49, 0.0 }
 0x55e   : > { %15012 = vrot.lane.b32.xlu1 %v14945_v28, %s21702_s26  ;;  %v11323_v39 = vadd.f32 %v25543_v56, %v11283_v52  ;;  %v14919_v45 = vadd.f32 %v25550_v23, %v14879_v29 }
 0x55f   : > { %v20071_v4 = vpop.f32.mrb[58].mxu1  ;;  %v25579_v35 = vpop.f32.mrb[58].mxu0  ;;  %15010 = vrot.lane.b32.xlu0 %v14944_v63, %s21702_s26  ;;  %v11322_v13 = vadd.f32 %v25543_v56, %v11282_v43  ;;  %v14918_v59 = vadd.f32 %v25550_v23, %v14878_v51 }
 0x560   : > { %v11125_v62 = vpop.f32.mrb[59].mxu1  ;;  %v25584_v30 = vpop.f32.mrb[59].mxu0  ;;  %v11355_v28 = vmax.f32 %v11323_v39, 0.0  ;;  %v11285_v32 = vmul.f32 %v20071_v4, %v25533_v55  ;;  %v14881_v4 = vmul.f32 %v25579_v35, %v25538_v47  ;;  %v14951_v9 = vmax.f32 %v14919_v45, 0.0 }
 0x561   : > { %v11354_v34 = vmax.f32 %v11322_v13, 0.0  ;;  %v11284_v61 = vmul.f32 %v25533_v55, %v11125_v62  ;;  %v14880_v54 = vmul.f32 %v25538_v47, %v25584_v30  ;;  %v14950_v30 = vmax.f32 %v14918_v59, 0.0 }
 0x562   : > { %11420 = vrot.lane.b32.xlu1 %v11351_v18, %s21701_s25  ;;  %v14921_v29 = vadd.f32 %v25550_v23, %v14881_v4 }
 0x563   : > { %v25589_v21 = vpop.f32.mrb[60].mxu1  ;;  %v25591_v6 = vpop.f32.mrb[60].mxu0  ;;  %11418 = vrot.lane.b32.xlu0 %v11350_v36, %s21701_s25  ;;  %v11324_v60 = vadd.f32 %v25543_v56, %v11284_v61  ;;  %v14920_v51 = vadd.f32 %v25550_v23, %v14880_v54 }
 0x564   : > { %v25596_v12 = vpop.f32.mrb[61].mxu1  ;;  %v25598_v42 = vpop.f32.mrb[61].mxu0 }
 0x566   : > { %15016 = vrot.lane.b32.xlu1 %v14947_v11, %s21702_s26 }
 0x567   : > { %v25603_v22 = vpop.f32.mrb[62].mxu1  ;;  %v25605_v40 = vpop.f32.mrb[62].mxu0  ;;  %15014 = vrot.lane.b32.xlu0 %v14946_v19, %s21702_s26  ;;  %v11325_v19 = vadd.f32 %v25543_v56, %v11285_v32 }
 0x568   : > { %v25610_v8 = vpop.f32.mrb[63].mxu1  ;;  %v25612_v2 = vpop.f32.mrb[63].mxu0 }
 0x56a   : > { %11424 = vrot.lane.b32.xlu1 %v11353_v24, %s21701_s25 }
 0x56b   : > { %v20080_v37 = vpop.f32.mrb[64].mxu1  ;;  %v20530_v16 = vpop.f32.mrb[64].mxu0  ;;  %11422 = vrot.lane.b32.xlu0 %v11352_v14, %s21701_s25 }
 0x56c   : > { %v11291_v17 = vmul.f32 %v20080_v37, %v25533_v55  ;;  %v14887_v48 = vmul.f32 %v20530_v16, %v25538_v47  ;;  %v11155_v20 = vpop.f32.mrb[65].mxu1  ;;  %v14751_v15 = vpop.f32.mrb[65].mxu0 }
 0x56d   : > { %v11290_v41 = vmul.f32 %v25533_v55, %v11155_v20  ;;  %v14886_v10 = vmul.f32 %v25538_v47, %v14751_v15 }
 0x56e   : > { %v25627_v5 = vadd.f32 %v25543_v56, %v11291_v17  ;;  %v25630_v57 = vadd.f32 %v25550_v23, %v14887_v48  ;;  %15020 = vrot.lane.b32.xlu1 %v14949_v38, %s21702_s26  ;;  %v11357_v17 = vmax.f32 %v11325_v19, 0.0  ;;  %v11287_v48 = vmul.f32 %v25589_v21, %v25533_v55 }
 0x56f   : > { %v25636_v50 = vadd.f32 %v25543_v56, %v11290_v41  ;;  %v25639_v1 = vadd.f32 %v25550_v23, %v14886_v10  ;;  %v20083_v31 = vpop.f32.mrb[66].mxu1  ;;  %v20533_v3 = vpop.f32.mrb[66].mxu0  ;;  %15018 = vrot.lane.b32.xlu0 %v14948_v26, %s21702_s26  ;;  %v11356_v41 = vmax.f32 %v11324_v60, 0.0  ;;  %v11286_v10 = vmul.f32 %v25533_v55, %v25596_v12 }
 0x570   : > { %v11293_v44 = vmul.f32 %v20083_v31, %v25533_v55  ;;  %v14889_v58 = vmul.f32 %v20533_v3, %v25538_v47  ;;  %v11165_v25 = vpop.f32.mrb[67].mxu1  ;;  %v14761_v63 = vpop.f32.mrb[67].mxu0  ;;  %v14883_v21 = vmul.f32 %v25591_v6, %v25538_v47  ;;  %v11289_v60 = vmul.f32 %v25603_v22, %v25533_v55 }
 0x571   : > { %v11292_v18 = vmul.f32 %v25533_v55, %v11165_v25  ;;  %v14888_v46 = vmul.f32 %v25538_v47, %v14761_v63  ;;  %v14953_v25 = vmax.f32 %v14921_v29, 0.0  ;;  %v11327_v63 = vadd.f32 %v25543_v56, %v11287_v48 }
 0x572   : > { %v25649_v27 = vadd.f32 %v25543_v56, %v11293_v44  ;;  %v25652_v36 = vadd.f32 %v25550_v23, %v14889_v58  ;;  %11428 = vrot.lane.b32.xlu1 %v11355_v28, %s21701_s25  ;;  %v14882_v28 = vmul.f32 %v25538_v47, %v25598_v42  ;;  %v14952_v42 = vmax.f32 %v14920_v51, 0.0 }
 0x573   : > { %v25660_v62 = vadd.f32 %v25543_v56, %v11292_v18  ;;  %v25663_v53 = vadd.f32 %v25550_v23, %v14888_v46  ;;  %v20086_v11 = vpop.f32.mrb[68].mxu1  ;;  %v20536_v7 = vpop.f32.mrb[68].mxu0  ;;  %11426 = vrot.lane.b32.xlu0 %v11354_v34, %s21701_s25  ;;  %v11326_v46 = vadd.f32 %v25543_v56, %v11286_v10 }
 0x574   : > { %v11295_v0 = vmul.f32 %v20086_v11, %v25533_v55  ;;  %v14891_v35 = vmul.f32 %v20536_v7, %v25538_v47  ;;  %v11175_v33 = vpop.f32.mrb[69].mxu1  ;;  %v14771_v24 = vpop.f32.mrb[69].mxu0  ;;  %v14922_v19 = vadd.f32 %v25550_v23, %v14882_v28 }
 0x575   : > { %v11294_v52 = vmul.f32 %v25533_v55, %v11175_v33  ;;  %v14890_v14 = vmul.f32 %v25538_v47, %v14771_v24 }
 0x576   : > { %v25673_v49 = vadd.f32 %v25543_v56, %v11295_v0  ;;  %v25676_v43 = vadd.f32 %v25550_v23, %v14891_v35  ;;  %15024 = vrot.lane.b32.xlu1 %v14951_v9, %s21702_s26  ;;  %v14923_v9 = vadd.f32 %v25550_v23, %v14883_v21 }
 0x577   : > { %v25682_v37 = vadd.f32 %v25543_v56, %v11294_v52  ;;  %v25685_v16 = vadd.f32 %v25550_v23, %v14890_v14  ;;  %v20089_v38 = vpop.f32.mrb[70].mxu1  ;;  %v20539_v39 = vpop.f32.mrb[70].mxu0  ;;  %15022 = vrot.lane.b32.xlu0 %v14950_v30, %s21702_s26  ;;  %v11359_v30 = vmax.f32 %v11327_v63, 0.0 }
 0x578   : > { %v11297_v20 = vmul.f32 %v20089_v38, %v25533_v55  ;;  %v14893_v15 = vmul.f32 %v20539_v39, %v25538_v47  ;;  %v11185_v26 = vpop.f32.mrb[71].mxu1  ;;  %v14781_v13 = vpop.f32.mrb[71].mxu0  ;;  %v11358_v38 = vmax.f32 %v11326_v46, 0.0  ;;  %v11288_v39 = vmul.f32 %v25533_v55, %v25610_v8 }
 0x579   : > { %v11296_v45 = vmul.f32 %v25533_v55, %v11185_v26  ;;  %v14892_v59 = vmul.f32 %v25538_v47, %v14781_v13  ;;  %v14955_v22 = vmax.f32 %v14923_v9, 0.0  ;;  %v14885_v26 = vmul.f32 %v25605_v40, %v25538_v47 }
 0x57a   : > { %v25697_v31 = vadd.f32 %v25543_v56, %v11297_v20  ;;  %v25700_v3 = vadd.f32 %v25550_v23, %v14893_v15  ;;  %11432 = vrot.lane.b32.xlu1 %v11357_v17, %s21701_s25  ;;  %v11328_v40 = vadd.f32 %v25543_v56, %v11288_v39 }
 0x57b   : > { %v25708_v12 = vadd.f32 %v25543_v56, %v11296_v45  ;;  %v25711_v32 = vadd.f32 %v25550_v23, %v14892_v59  ;;  %v20092_v44 = vpop.f32.mrb[72].mxu1  ;;  %v20542_v58 = vpop.f32.mrb[72].mxu0  ;;  %11430 = vrot.lane.b32.xlu0 %v11356_v41, %s21701_s25  ;;  %v14954_v45 = vmax.f32 %v14922_v19, 0.0  ;;  %v11329_v59 = vadd.f32 %v25543_v56, %v11289_v60 }
 0x57c   : > { %v11299_v34 = vmul.f32 %v20092_v44, %v25533_v55  ;;  %v14895_v6 = vmul.f32 %v20542_v58, %v25538_v47  ;;  %v11195_v61 = vpop.f32.mrb[73].mxu1  ;;  %v14791_v18 = vpop.f32.mrb[73].mxu0 }
 0x57d   : > { %v11298_v4 = vmul.f32 %v25533_v55, %v11195_v61  ;;  %v14894_v54 = vmul.f32 %v25538_v47, %v14791_v18 }
 0x57e   : > { %v25721_v11 = vadd.f32 %v25543_v56, %v11299_v34  ;;  %v25724_v7 = vadd.f32 %v25550_v23, %v14895_v6  ;;  %15028 = vrot.lane.b32.xlu1 %v14953_v25, %s21702_s26  ;;  %v14884_v25 = vmul.f32 %v25538_v47, %v25612_v2 }
 0x57f   : > { %v25730_v0 = vadd.f32 %v25543_v56, %v11298_v4  ;;  %v25733_v35 = vadd.f32 %v25550_v23, %v14894_v54  ;;  %v20095_v33 = vpop.f32.mrb[74].mxu1  ;;  %v20545_v24 = vpop.f32.mrb[74].mxu0  ;;  %15026 = vrot.lane.b32.xlu0 %v14952_v42, %s21702_s26  ;;  %v11361_v4 = vmax.f32 %v11329_v59, 0.0  ;;  %v14925_v54 = vadd.f32 %v25550_v23, %v14885_v26 }
 0x580   : > { %v11301_v52 = vmul.f32 %v20095_v33, %v25533_v55  ;;  %v14897_v14 = vmul.f32 %v20545_v24, %v25538_v47  ;;  %v11205_v29 = vpop.f32.mrb[75].mxu1  ;;  %v14801_v51 = vpop.f32.mrb[75].mxu0  ;;  %v14924_v60 = vadd.f32 %v25550_v23, %v14884_v25  ;;  %v11364_v26 = vmax.f32 %v25660_v62, 0.0 }
 0x581   : > { %v11300_v17 = vmul.f32 %v25533_v55, %v11205_v29  ;;  %v14896_v48 = vmul.f32 %v25538_v47, %v14801_v51  ;;  %v14962_v62 = vmax.f32 %v25685_v16, 0.0  ;;  %v11370_v16 = vmax.f32 %v25730_v0, 0.0 }
 0x582   : > { %v25745_v20 = vadd.f32 %v25543_v56, %v11301_v52  ;;  %v25748_v15 = vadd.f32 %v25550_v23, %v14897_v14  ;;  %11436 = vrot.lane.b32.xlu1 %v11359_v30, %s21701_s25  ;;  %v11360_v30 = vmax.f32 %v11328_v40, 0.0 }
 0x583   : > { %v25754_v13 = vadd.f32 %v25543_v56, %v11300_v17  ;;  %v25757_v8 = vadd.f32 %v25550_v23, %v14896_v48  ;;  %v20098_v41 = vpop.f32.mrb[76].mxu1  ;;  %v20548_v10 = vpop.f32.mrb[76].mxu0  ;;  %11434 = vrot.lane.b32.xlu0 %v11358_v38, %s21701_s25  ;;  %v14957_v17 = vmax.f32 %v14925_v54, 0.0  ;;  %v11362_v48 = vmax.f32 %v25636_v50, 0.0 }
 0x584   : > { %v11303_v21 = vmul.f32 %v20098_v41, %v25533_v55  ;;  %v14899_v28 = vmul.f32 %v20548_v10, %v25538_v47  ;;  %v11215_v44 = vpop.f32.mrb[77].mxu1  ;;  %v14811_v58 = vpop.f32.mrb[77].mxu0  ;;  %v14960_v50 = vmax.f32 %v25663_v53, 0.0  ;;  %v11368_v53 = vmax.f32 %v25708_v12, 0.0 }
 0x585   : > { %v11302_v63 = vmul.f32 %v25533_v55, %v11215_v44  ;;  %v14898_v34 = vmul.f32 %v25538_v47, %v14811_v58  ;;  %v14966_v12 = vmax.f32 %v25733_v35, 0.0 }
 0x586   : > { %v25769_v6 = vadd.f32 %v25543_v56, %v11303_v21  ;;  %v25772_v61 = vadd.f32 %v25550_v23, %v14899_v28  ;;  %15032 = vrot.lane.b32.xlu1 %v14955_v22, %s21702_s26  ;;  %v11365_v22 = vmax.f32 %v25649_v27, 0.0  ;;  %v14963_v27 = vmax.f32 %v25676_v43, 0.0 }
 0x587   : > { %v25776_v18 = vadd.f32 %v25543_v56, %v11302_v63  ;;  %v25779_v42 = vadd.f32 %v25550_v23, %v14898_v34  ;;  %v20101_v46 = vpop.f32.mrb[78].mxu1  ;;  %v20551_v2 = vpop.f32.mrb[78].mxu0  ;;  %15030 = vrot.lane.b32.xlu0 %v14954_v45, %s21702_s26  ;;  %v11371_v43 = vmax.f32 %v25721_v11, 0.0  ;;  %v14969_v11 = vmax.f32 %v25748_v15, 0.0 }
 0x588   : > { %v11305_v9 = vmul.f32 %v20101_v46, %v25533_v55  ;;  %v14901_v19 = vmul.f32 %v20551_v2, %v25538_v47  ;;  %v11225_v33 = vpop.f32.mrb[79].mxu1  ;;  %v14821_v24 = vpop.f32.mrb[79].mxu0  ;;  %v11375_v0 = vmax.f32 %v25769_v6, 0.0 }
 0x589   : > { %v11304_v52 = vmul.f32 %v25533_v55, %v11225_v33  ;;  %v14900_v14 = vmul.f32 %v25538_v47, %v14821_v24  ;;  %v14956_v55 = vmax.f32 %v14924_v60, 0.0  ;;  %v11363_v47 = vmax.f32 %v25627_v5, 0.0 }
 0x58a   : > { %v25789_v29 = vadd.f32 %v25543_v56, %v11305_v9  ;;  %v25792_v51 = vadd.f32 %v25550_v23, %v14901_v19  ;;  %11440 = vrot.lane.b32.xlu1 %v11361_v4, %s21701_s25  ;;  %v14961_v5 = vmax.f32 %v25652_v36, 0.0  ;;  %v11369_v36 = vmax.f32 %v25697_v31, 0.0 }
 0x58b   : > { %v25796_v38 = vadd.f32 %v25543_v56, %v11304_v52  ;;  %v25799_v39 = vadd.f32 %v25550_v23, %v14900_v14  ;;  %11438 = vrot.lane.b32.xlu0 %v11360_v30, %s21701_s25  ;;  %v14959_v56 = vmax.f32 %v25630_v57, 0.0  ;;  %v14958_v23 = vmax.f32 %v25639_v1, 0.0 }
 0x58c   : > { %v11367_v57 = vmax.f32 %v25673_v49, 0.0  ;;  %v11366_v1 = vmax.f32 %v25682_v37, 0.0  ;;  %v14965_v49 = vmax.f32 %v25700_v3, 0.0  ;;  %v14964_v37 = vmax.f32 %v25711_v32, 0.0 }
 0x58d   : > { %v14967_v31 = vmax.f32 %v25724_v7, 0.0  ;;  %v11373_v3 = vmax.f32 %v25745_v20, 0.0  ;;  %v11372_v32 = vmax.f32 %v25754_v13, 0.0  ;;  %v14968_v7 = vmax.f32 %v25757_v8, 0.0 }
 0x58e   : > { %15036 = vrot.lane.b32.xlu1 %v14957_v17, %s21702_s26  ;;  %v11374_v35 = vmax.f32 %v25776_v18, 0.0  ;;  %v14971_v20 = vmax.f32 %v25772_v61, 0.0  ;;  %v14970_v13 = vmax.f32 %v25779_v42, 0.0  ;;  %v11377_v41 = vmax.f32 %v25789_v29, 0.0 }
 0x58f   : > { %15034 = vrot.lane.b32.xlu0 %v14956_v55, %s21702_s26  ;;  %v11376_v45 = vmax.f32 %v25796_v38, 0.0  ;;  %v14973_v21 = vmax.f32 %v25792_v51, 0.0  ;;  %v14972_v44 = vmax.f32 %v25799_v39, 0.0 }
 0x592   : > { %11444 = vrot.lane.b32.xlu1 %v11363_v47, %s21701_s25 }
 0x593   : > { %11442 = vrot.lane.b32.xlu0 %v11362_v48, %s21701_s25 }
 0x596   : > { %15040 = vrot.lane.b32.xlu1 %v14959_v56, %s21702_s26 }
 0x597   : > { %15038 = vrot.lane.b32.xlu0 %v14958_v23, %s21702_s26 }
 0x59a   : > { %11448 = vrot.lane.b32.xlu1 %v11365_v22, %s21701_s25 }
 0x59b   : > { %11446 = vrot.lane.b32.xlu0 %v11364_v26, %s21701_s25 }
 0x59e   : > { %15044 = vrot.lane.b32.xlu1 %v14961_v5, %s21702_s26 }
 0x59f   : > { %15042 = vrot.lane.b32.xlu0 %v14960_v50, %s21702_s26 }
 0x5a2   : > { %11452 = vrot.lane.b32.xlu1 %v11367_v57, %s21701_s25 }
 0x5a3   : > { %11450 = vrot.lane.b32.xlu0 %v11366_v1, %s21701_s25 }
 0x5a6   : > { %15048 = vrot.lane.b32.xlu1 %v14963_v27, %s21702_s26 }
 0x5a7   : > { %15046 = vrot.lane.b32.xlu0 %v14962_v62, %s21702_s26 }
 0x5aa   : > { %11456 = vrot.lane.b32.xlu1 %v11369_v36, %s21701_s25 }
 0x5ab   : > { %11454 = vrot.lane.b32.xlu0 %v11368_v53, %s21701_s25 }
 0x5ae   : > { %15052 = vrot.lane.b32.xlu1 %v14965_v49, %s21702_s26 }
 0x5af   : > { %15050 = vrot.lane.b32.xlu0 %v14964_v37, %s21702_s26 }
 0x5b2   : > { %11460 = vrot.lane.b32.xlu1 %v11371_v43, %s21701_s25 }
 0x5b3   : > { %11458 = vrot.lane.b32.xlu0 %v11370_v16, %s21701_s25 }
 0x5b6   : > { %15056 = vrot.lane.b32.xlu1 %v14967_v31, %s21702_s26 }
 0x5b7   : > { %15054 = vrot.lane.b32.xlu0 %v14966_v12, %s21702_s26 }
 0x5ba   : > { %11464 = vrot.lane.b32.xlu1 %v11373_v3, %s21701_s25 }
 0x5bb   : > { %11462 = vrot.lane.b32.xlu0 %v11372_v32, %s21701_s25 }
 0x5be   : > { %15060 = vrot.lane.b32.xlu1 %v14969_v11, %s21702_s26 }
 0x5bf   : > { %15058 = vrot.lane.b32.xlu0 %v14968_v7, %s21702_s26 }
 0x5c2   : > { %11468 = vrot.lane.b32.xlu1 %v11375_v0, %s21701_s25 }
 0x5c3   : > { %11466 = vrot.lane.b32.xlu0 %v11374_v35, %s21701_s25 }
 0x5c4   : > { %v11413_v15 = vpop.permute.xlu1 %11412 }
 0x5c5   : > { %11508 = vst.msk [vmem:[%s22688_s11 + $0x8] sm:$0xff] %vm11506_vm5, %v11413_v15  ;;  %v11411_v8 = vpop.permute.xlu0 %11410 }
 0x5c6   : > { %11507 = vst.msk [vmem:[%s22688_s11] sm:$0xff] %vm11506_vm5, %v11411_v8  ;;  %15064 = vrot.lane.b32.xlu1 %v14971_v20, %s21702_s26 }
 0x5c7   : > { %15062 = vrot.lane.b32.xlu0 %v14970_v13, %s21702_s26 }
 0x5c8   : > { %v15009_v10 = vpop.permute.xlu1 %15008 }
 0x5c9   : > { %15104 = vst.msk [vmem:[%s22688_s11 + $0x8] sm:$0xff] %vm15102_vm6, %v15009_v10  ;;  %v15007_v59 = vpop.permute.xlu0 %15006 }
 0x5ca   : > { %15103 = vst.msk [vmem:[%s22688_s11] sm:$0xff] %vm15102_vm6, %v15007_v59  ;;  %11472 = vrot.lane.b32.xlu1 %v11377_v41, %s21701_s25 }
 0x5cb   : > { %11470 = vrot.lane.b32.xlu0 %v11376_v45, %s21701_s25 }
 0x5cc   : > { %v11417_v28 = vpop.permute.xlu1 %11416 }
 0x5cd   : > { %11510 = vst.msk [vmem:[%s22688_s11 + $0x18] sm:$0xff] %vm11506_vm5, %v11417_v28  ;;  %v11415_v58 = vpop.permute.xlu0 %11414 }
 0x5ce   : > { %11509 = vst.msk [vmem:[%s22688_s11 + $0x10] sm:$0xff] %vm11506_vm5, %v11415_v58  ;;  %15068 = vrot.lane.b32.xlu1 %v14973_v21, %s21702_s26 }
 0x5cf   : > { %15066 = vrot.lane.b32.xlu0 %v14972_v44, %s21702_s26 }
 0x5d0   : > { %v15013_v40 = vpop.permute.xlu1 %15012 }
 0x5d1   : > { %15106 = vst.msk [vmem:[%s22688_s11 + $0x18] sm:$0xff] %vm15102_vm6, %v15013_v40  ;;  %v15011_v25 = vpop.permute.xlu0 %15010 }
 0x5d2   : > { %15105 = vst.msk [vmem:[%s22688_s11 + $0x10] sm:$0xff] %vm15102_vm6, %v15011_v25 }
 0x5d4   : > { %v11421_v63 = vpop.permute.xlu1 %11420 }
 0x5d5   : > { %11512 = vst.msk [vmem:[%s22688_s11 + $0x28] sm:$0xff] %vm11506_vm5, %v11421_v63  ;;  %v11419_v34 = vpop.permute.xlu0 %11418 }
 0x5d6   : > { %11511 = vst.msk [vmem:[%s22688_s11 + $0x20] sm:$0xff] %vm11506_vm5, %v11419_v34 }
 0x5d8   : > { %v15017_v6 = vpop.permute.xlu1 %15016 }
 0x5d9   : > { %15108 = vst.msk [vmem:[%s22688_s11 + $0x28] sm:$0xff] %vm15102_vm6, %v15017_v6  ;;  %v15015_v61 = vpop.permute.xlu0 %15014 }
 0x5da   : > { %15107 = vst.msk [vmem:[%s22688_s11 + $0x20] sm:$0xff] %vm15102_vm6, %v15015_v61 }
 0x5dc   : > { %v11425_v18 = vpop.permute.xlu1 %11424 }
 0x5dd   : > { %11514 = vst.msk [vmem:[%s22688_s11 + $0x38] sm:$0xff] %vm11506_vm5, %v11425_v18  ;;  %v11423_v42 = vpop.permute.xlu0 %11422 }
 0x5de   : > { %11513 = vst.msk [vmem:[%s22688_s11 + $0x30] sm:$0xff] %vm11506_vm5, %v11423_v42 }
 0x5e0   : > { %v15021_v46 = vpop.permute.xlu1 %15020 }
 0x5e1   : > { %15110 = vst.msk [vmem:[%s22688_s11 + $0x38] sm:$0xff] %vm15102_vm6, %v15021_v46  ;;  %v15019_v2 = vpop.permute.xlu0 %15018 }
 0x5e2   : > { %15109 = vst.msk [vmem:[%s22688_s11 + $0x30] sm:$0xff] %vm15102_vm6, %v15019_v2 }
 0x5e4   : > { %v11429_v4 = vpop.permute.xlu1 %11428 }
 0x5e5   : > { %11516 = vst.msk [vmem:[%s22688_s11 + $0x48] sm:$0xff] %vm11506_vm5, %v11429_v4  ;;  %v11427_v54 = vpop.permute.xlu0 %11426 }
 0x5e6   : > { %11515 = vst.msk [vmem:[%s22688_s11 + $0x40] sm:$0xff] %vm11506_vm5, %v11427_v54 }
 0x5e8   : > { %v15025_v9 = vpop.permute.xlu1 %15024 }
 0x5e9   : > { %15112 = vst.msk [vmem:[%s22688_s11 + $0x48] sm:$0xff] %vm15102_vm6, %v15025_v9  ;;  %v15023_v19 = vpop.permute.xlu0 %15022 }
 0x5ea   : > { %15111 = vst.msk [vmem:[%s22688_s11 + $0x40] sm:$0xff] %vm15102_vm6, %v15023_v19 }
 0x5ec   : > { %v11433_v33 = vpop.permute.xlu1 %11432 }
 0x5ed   : > { %11518 = vst.msk [vmem:[%s22688_s11 + $0x58] sm:$0xff] %vm11506_vm5, %v11433_v33  ;;  %v11431_v24 = vpop.permute.xlu0 %11430 }
 0x5ee   : > { %11517 = vst.msk [vmem:[%s22688_s11 + $0x50] sm:$0xff] %vm11506_vm5, %v11431_v24 }
 0x5f0   : > { %v15029_v30 = vpop.permute.xlu1 %15028 }
 0x5f1   : > { %15114 = vst.msk [vmem:[%s22688_s11 + $0x58] sm:$0xff] %vm15102_vm6, %v15029_v30  ;;  %v15027_v60 = vpop.permute.xlu0 %15026 }
 0x5f2   : > { %15113 = vst.msk [vmem:[%s22688_s11 + $0x50] sm:$0xff] %vm15102_vm6, %v15027_v60 }
 0x5f4   : > { %v11437_v52 = vpop.permute.xlu1 %11436 }
 0x5f5   : > { %11520 = vst.msk [vmem:[%s22688_s11 + $0x68] sm:$0xff] %vm11506_vm5, %v11437_v52  ;;  %v11435_v14 = vpop.permute.xlu0 %11434 }
 0x5f6   : > { %11519 = vst.msk [vmem:[%s22688_s11 + $0x60] sm:$0xff] %vm11506_vm5, %v11435_v14 }
 0x5f8   : > { %v15033_v29 = vpop.permute.xlu1 %15032 }
 0x5f9   : > { %15116 = vst.msk [vmem:[%s22688_s11 + $0x68] sm:$0xff] %vm15102_vm6, %v15033_v29  ;;  %v15031_v51 = vpop.permute.xlu0 %15030 }
 0x5fa   : > { %15115 = vst.msk [vmem:[%s22688_s11 + $0x60] sm:$0xff] %vm15102_vm6, %v15031_v51 }
 0x5fc   : > { %v11441_v38 = vpop.permute.xlu1 %11440 }
 0x5fd   : > { %11522 = vst.msk [vmem:[%s22688_s11 + $0x78] sm:$0xff] %vm11506_vm5, %v11441_v38  ;;  %v11439_v39 = vpop.permute.xlu0 %11438 }
 0x5fe   : > { %11521 = vst.msk [vmem:[%s22688_s11 + $0x70] sm:$0xff] %vm11506_vm5, %v11439_v39 }
 0x600   : > { %v15037_v17 = vpop.permute.xlu1 %15036 }
 0x601   : > { %15118 = vst.msk [vmem:[%s22688_s11 + $0x78] sm:$0xff] %vm15102_vm6, %v15037_v17  ;;  %v15035_v55 = vpop.permute.xlu0 %15034 }
 0x602   : > { %15117 = vst.msk [vmem:[%s22688_s11 + $0x70] sm:$0xff] %vm15102_vm6, %v15035_v55 }
 0x604   : > { %v11445_v47 = vpop.permute.xlu1 %11444 }
 0x605   : > { %11524 = vst.msk [vmem:[%s22688_s11 + $0x88] sm:$0xff] %vm11506_vm5, %v11445_v47  ;;  %v11443_v48 = vpop.permute.xlu0 %11442 }
 0x606   : > { %11523 = vst.msk [vmem:[%s22688_s11 + $0x80] sm:$0xff] %vm11506_vm5, %v11443_v48 }
 0x608   : > { %v15041_v56 = vpop.permute.xlu1 %15040 }
 0x609   : > { %15120 = vst.msk [vmem:[%s22688_s11 + $0x88] sm:$0xff] %vm15102_vm6, %v15041_v56  ;;  %v15039_v23 = vpop.permute.xlu0 %15038 }
 0x60a   : > { %15119 = vst.msk [vmem:[%s22688_s11 + $0x80] sm:$0xff] %vm15102_vm6, %v15039_v23 }
 0x60c   : > { %v11449_v22 = vpop.permute.xlu1 %11448 }
 0x60d   : > { %11526 = vst.msk [vmem:[%s22688_s11 + $0x98] sm:$0xff] %vm11506_vm5, %v11449_v22  ;;  %v11447_v26 = vpop.permute.xlu0 %11446 }
 0x60e   : > { %11525 = vst.msk [vmem:[%s22688_s11 + $0x90] sm:$0xff] %vm11506_vm5, %v11447_v26 }
 0x610   : > { %v15045_v5 = vpop.permute.xlu1 %15044 }
 0x611   : > { %15122 = vst.msk [vmem:[%s22688_s11 + $0x98] sm:$0xff] %vm15102_vm6, %v15045_v5  ;;  %v15043_v50 = vpop.permute.xlu0 %15042 }
 0x612   : > { %15121 = vst.msk [vmem:[%s22688_s11 + $0x90] sm:$0xff] %vm15102_vm6, %v15043_v50 }
 0x614   : > { %v11453_v57 = vpop.permute.xlu1 %11452 }
 0x615   : > { %11528 = vst.msk [vmem:[%s22688_s11 + $0xa8] sm:$0xff] %vm11506_vm5, %v11453_v57  ;;  %v11451_v1 = vpop.permute.xlu0 %11450 }
 0x616   : > { %11527 = vst.msk [vmem:[%s22688_s11 + $0xa0] sm:$0xff] %vm11506_vm5, %v11451_v1 }
 0x618   : > { %v15049_v27 = vpop.permute.xlu1 %15048 }
 0x619   : > { %15124 = vst.msk [vmem:[%s22688_s11 + $0xa8] sm:$0xff] %vm15102_vm6, %v15049_v27  ;;  %v15047_v62 = vpop.permute.xlu0 %15046 }
 0x61a   : > { %15123 = vst.msk [vmem:[%s22688_s11 + $0xa0] sm:$0xff] %vm15102_vm6, %v15047_v62 }
 0x61c   : > { %v11457_v36 = vpop.permute.xlu1 %11456 }
 0x61d   : > { %11530 = vst.msk [vmem:[%s22688_s11 + $0xb8] sm:$0xff] %vm11506_vm5, %v11457_v36  ;;  %v11455_v53 = vpop.permute.xlu0 %11454 }
 0x61e   : > { %11529 = vst.msk [vmem:[%s22688_s11 + $0xb0] sm:$0xff] %vm11506_vm5, %v11455_v53 }
 0x620   : > { %v15053_v49 = vpop.permute.xlu1 %15052 }
 0x621   : > { %15126 = vst.msk [vmem:[%s22688_s11 + $0xb8] sm:$0xff] %vm15102_vm6, %v15053_v49  ;;  %v15051_v37 = vpop.permute.xlu0 %15050 }
 0x622   : > { %15125 = vst.msk [vmem:[%s22688_s11 + $0xb0] sm:$0xff] %vm15102_vm6, %v15051_v37 }
 0x624   : > { %v11461_v43 = vpop.permute.xlu1 %11460 }
 0x625   : > { %11532 = vst.msk [vmem:[%s22688_s11 + $0xc8] sm:$0xff] %vm11506_vm5, %v11461_v43  ;;  %v11459_v16 = vpop.permute.xlu0 %11458 }
 0x626   : > { %11531 = vst.msk [vmem:[%s22688_s11 + $0xc0] sm:$0xff] %vm11506_vm5, %v11459_v16 }
 0x628   : > { %v15057_v31 = vpop.permute.xlu1 %15056 }
 0x629   : > { %15128 = vst.msk [vmem:[%s22688_s11 + $0xc8] sm:$0xff] %vm15102_vm6, %v15057_v31  ;;  %v15055_v12 = vpop.permute.xlu0 %15054 }
 0x62a   : > { %15127 = vst.msk [vmem:[%s22688_s11 + $0xc0] sm:$0xff] %vm15102_vm6, %v15055_v12 }
 0x62c   : > { %v11465_v3 = vpop.permute.xlu1 %11464 }
 0x62d   : > { %11534 = vst.msk [vmem:[%s22688_s11 + $0xd8] sm:$0xff] %vm11506_vm5, %v11465_v3  ;;  %v11463_v32 = vpop.permute.xlu0 %11462 }
 0x62e   : > { %11533 = vst.msk [vmem:[%s22688_s11 + $0xd0] sm:$0xff] %vm11506_vm5, %v11463_v32 }
 0x630   : > { %v15061_v11 = vpop.permute.xlu1 %15060 }
 0x631   : > { %15130 = vst.msk [vmem:[%s22688_s11 + $0xd8] sm:$0xff] %vm15102_vm6, %v15061_v11  ;;  %v15059_v7 = vpop.permute.xlu0 %15058 }
 0x632   : > { %15129 = vst.msk [vmem:[%s22688_s11 + $0xd0] sm:$0xff] %vm15102_vm6, %v15059_v7 }
 0x634   : > { %v11469_v0 = vpop.permute.xlu1 %11468 }
 0x635   : > { %11536 = vst.msk [vmem:[%s22688_s11 + $0xe8] sm:$0xff] %vm11506_vm5, %v11469_v0  ;;  %v11467_v35 = vpop.permute.xlu0 %11466 }
 0x636   : > { %11535 = vst.msk [vmem:[%s22688_s11 + $0xe0] sm:$0xff] %vm11506_vm5, %v11467_v35 }
 0x638   : > { %v15065_v20 = vpop.permute.xlu1 %15064 }
 0x639   : > { %15132 = vst.msk [vmem:[%s22688_s11 + $0xe8] sm:$0xff] %vm15102_vm6, %v15065_v20  ;;  %v15063_v15 = vpop.permute.xlu0 %15062 }
 0x63a   : > { %15131 = vst.msk [vmem:[%s22688_s11 + $0xe0] sm:$0xff] %vm15102_vm6, %v15063_v15 }
 0x63c   : > { %v11473_v13 = vpop.permute.xlu1 %11472 }
 0x63d   : > { %11538 = vst.msk [vmem:[%s22688_s11 + $0xf8] sm:$0xff] %vm11506_vm5, %v11473_v13  ;;  %v11471_v8 = vpop.permute.xlu0 %11470 }
 0x63e   : > { %11537 = vst.msk [vmem:[%s22688_s11 + $0xf0] sm:$0xff] %vm11506_vm5, %v11471_v8 }
 0x640   : > { %v15069_v41 = vpop.permute.xlu1 %15068 }
 0x641   : > { %15134 = vst.msk [vmem:[%s22688_s11 + $0xf8] sm:$0xff] %vm15102_vm6, %v15069_v41  ;;  %v15067_v10 = vpop.permute.xlu0 %15066 }
 0x642   : > { %15133 = vst.msk [vmem:[%s22688_s11 + $0xf0] sm:$0xff] %vm15102_vm6, %v15067_v10 }
 0x643 PF: > { %s15_s20 = sadd.s32 1, %s21697_s20   ;;  %s26179_s18 = smov %s21693_s19 }
 0x644   : > { %p12_p6 = scmp.ge.s32.totalorder %s15_s20, 4   ;;  %s26180_s19 = smov %s26182_s21 }
 0x646   :  { %14 = sbr.rel (!%p12_p6) target bundleno = 2 (0x2), region = 122 }

</bundles_post_ra>
